<compile_context>
chip_gen: v5e
topology: v5e:2x2
jax: 0.10.0
libtpu: 0.0.40
codegen_flags: <defaults>
</compile_context>

<pallas_src>
import functools

import jax
import jax.numpy as jnp
from jax.experimental import pallas as pl
from jax.experimental.pallas import tpu as pltpu

EPS = 1e-5  # nn.InstanceNorm2d default eps


# -----------------------------------------------------------------------------
# Fused Pallas kernel
# -----------------------------------------------------------------------------
def _cin_block_kernel(x_ref, w1_ref, w2_ref, g1_ref, b1_ref, g2_ref, b2_ref,
                      o_ref, xf_ref, h_ref, *, H, W):
    """conv1 -> IN -> affine -> ReLU -> conv2 -> IN -> affine -> ReLU.

    One batch element per grid step.
      x_ref : (1, NPAD, Cin) bf16   flat zero-padded image,
              NPAD = (H+2)*(W+2)+2 (one extra zero row front/back for bounds)
      w1_ref: (9, Cin,  Cmid) bf16  conv1 weight, tap-major (k = dh*3+dw)
      w2_ref: (9, Cmid, Cout) bf16  conv2 weight
      g*/b* : (1, 1, C) f32         per-sample CIN gamma/beta
      o_ref : (1, H*(W+2), Cout) f32 output on the width-padded grid
              (columns 0 and W+1 of each row are garbage; host slices them off)
      xf_ref: (NPAD, Cin)  f32 scratch -- staged input (f32 so the unaligned
              row-offset tap slices stay on the plain 32-bit path)
      h_ref : (NPAD, Cmid) f32 scratch -- padded intermediate for stage 2
    """
    Wp = W + 2
    N2 = H * Wp                # rows of the width-padded output grid
    inv_n = 1.0 / (H * W)      # InstanceNorm uses biased variance over H*W

    # Valid-column mask over the (H, W+2) grid: 1 for columns 1..W, else 0.
    col = jax.lax.broadcasted_iota(jnp.int32, (N2, 1), 0) % Wp
    mask = ((col >= 1) & (col <= W)).astype(jnp.float32)

    def conv3x3(src_ref, w_ref):
        """3x3 'same' conv as 9 tap-sliced bf16 matmuls with f32 accumulation."""
        cout = w_ref.shape[2]
        acc = jnp.zeros((N2, cout), jnp.float32)
        for k in range(9):                       # statically unrolled taps
            dh, dw = divmod(k, 3)
            xs = src_ref[pl.ds(dh * Wp + dw, N2), :].astype(jnp.bfloat16)
            acc = acc + jnp.dot(xs, w_ref[k],
                                preferred_element_type=jnp.float32)
        return acc

    def inorm_affine_relu(acc, g_ref, b_ref):
        """InstanceNorm2d (single-pass masked stats) + class affine + ReLU."""
        m = acc * mask
        s1 = jnp.sum(m, axis=0, keepdims=True)          # (1, C)  sum
        s2 = jnp.sum(m * acc, axis=0, keepdims=True)    # (1, C)  sum of squares
        mean = s1 * inv_n
        var = jnp.maximum(s2 * inv_n - mean * mean, 0.0)
        normed = (acc - mean) * jax.lax.rsqrt(var + EPS)
        return jnp.maximum(g_ref[0] * normed + b_ref[0], 0.0)

    # Stage the bf16 HBM block once into f32 VMEM for cheap unaligned slicing.
    xf_ref[...] = x_ref[0].astype(jnp.float32)

    # ---- stage 1: conv1 -> IN -> affine -> ReLU ----
    acc1 = conv3x3(xf_ref, w1_ref)
    # mask => garbage columns become the horizontal zero padding for conv2
    h1 = inorm_affine_relu(acc1, g1_ref, b1_ref) * mask

    # Place h into the same flat padded layout so stage 2 reuses the tap slices.
    h_ref[...] = jnp.zeros(h_ref.shape, jnp.float32)     # vertical zero pad
    h_ref[pl.ds(Wp + 1, N2), :] = h1                     # interior rows

    # ---- stage 2: conv2 -> IN -> affine -> ReLU ----
    acc2 = conv3x3(h_ref, w2_ref)
    o_ref[0] = inorm_affine_relu(acc2, g2_ref, b2_ref).astype(o_ref.dtype)


# -----------------------------------------------------------------------------
# Wrapper
# -----------------------------------------------------------------------------
def _vmem_limit_bytes(npad, n2, cin, cmid, cout):
    """Scoped-VMEM budget from the actual (lane/sublane padded) footprint."""
    f32, bf16 = 4, 2
    rpad = lambda r: -(-r // 8) * 8
    cpad = lambda c: -(-c // 128) * 128
    blocks = 2 * (rpad(npad) * cpad(cin) * bf16          # input  (double buf)
                  + rpad(n2) * cpad(cout) * f32          # output (double buf)
                  + 9 * rpad(cin) * cpad(cmid) * bf16    # conv1 weight
                  + 9 * rpad(cmid) * cpad(cout) * bf16   # conv2 weight
                  + 8 * 8 * cpad(max(cmid, cout)) * f32)  # gamma/beta blocks
    scratch = rpad(npad) * (cpad(cin) + cpad(cmid)) * f32
    temps = 12 * rpad(n2) * cpad(max(cmid, cout)) * f32   # acc/normed spills
    return int(min(blocks + scratch + temps + (16 << 20), 100 << 20))


def _fused_cin_block(x_nhwc, w1_hwio, w2_hwio, g1, b1, g2, b2):
    B, H, W, Cin = x_nhwc.shape
    Cmid = w1_hwio.shape[-1]
    Cout = w2_hwio.shape[-1]
    Wp = W + 2
    N2 = H * Wp
    Npad = (H + 2) * Wp + 2

    # Flat zero-padded image: tap (dh, dw) for output-grid row n is flat row
    # n + dh*Wp + dw; the one extra zero row front/back keeps slices in bounds.
    xp = jnp.pad(x_nhwc, ((0, 0), (1, 1), (1, 1), (0, 0)))
    x_lin = jnp.pad(xp.reshape(B, (H + 2) * Wp, Cin), ((0, 0), (1, 1), (0, 0)))
    x_lin = x_lin.astype(jnp.bfloat16)

    w1f = w1_hwio.reshape(9, Cin, Cmid).astype(jnp.bfloat16)
    w2f = w2_hwio.reshape(9, Cmid, Cout).astype(jnp.bfloat16)

    kernel = functools.partial(_cin_block_kernel, H=H, W=W)
    out = pl.pallas_call(
        kernel,
        out_shape=jax.ShapeDtypeStruct((B, N2, Cout), jnp.float32),
        grid=(B,),
        in_specs=[
            pl.BlockSpec((1, Npad, Cin), lambda b: (b, 0, 0)),
            pl.BlockSpec((9, Cin, Cmid), lambda b: (0, 0, 0)),
            pl.BlockSpec((9, Cmid, Cout), lambda b: (0, 0, 0)),
            pl.BlockSpec((1, 1, Cmid), lambda b: (b, 0, 0)),
            pl.BlockSpec((1, 1, Cmid), lambda b: (b, 0, 0)),
            pl.BlockSpec((1, 1, Cout), lambda b: (b, 0, 0)),
            pl.BlockSpec((1, 1, Cout), lambda b: (b, 0, 0)),
        ],
        out_specs=pl.BlockSpec((1, N2, Cout), lambda b: (b, 0, 0)),
        scratch_shapes=[
            pltpu.VMEM((Npad, Cin), jnp.float32),    # staged f32 input
            pltpu.VMEM((Npad, Cmid), jnp.float32),   # padded intermediate h
        ],
        compiler_params=pltpu.CompilerParams(
            dimension_semantics=("parallel",),       # megacore over batch
            vmem_limit_bytes=_vmem_limit_bytes(Npad, N2, Cin, Cmid, Cout),
        ),
    )(x_lin, w1f, w2f, g1, b1, g2, b2)

    # Drop the two garbage columns per row of the width-padded output grid.
    return out.reshape(B, H, Wp, Cout)[:, :, 1:W + 1, :]


def _cin_affine(p_cin, y, C):
    """ClassConditionalInstanceNorm2d gamma/beta: embed(y) -> MLP -> chunk.

    A few hundred FLOPs -- kept in plain jnp (below pallas_call overhead).
    """
    e = p_cin["embed"][y]                                # (B, 2C) gather
    h = jnp.maximum(e @ p_cin["w1"] + p_cin["b1"], 0.0)
    gb = h @ p_cin["w2"] + p_cin["b2"]
    gamma = gb[:, :C].reshape(-1, 1, C)
    beta = gb[:, C:].reshape(-1, 1, C)
    return gamma, beta


def cin_block_forward(params, x_nchw, y):
    """CINBlock.forward: conv1 -> CIN1 -> ReLU -> conv2 -> CIN2 -> ReLU."""
    x = jnp.transpose(x_nchw, (0, 2, 3, 1))              # NCHW -> NHWC
    C_mid = params["conv1_w"].shape[-1]
    C_out = params["conv2_w"].shape[-1]

    g1, b1 = _cin_affine(params["cin1"], y, C_mid)
    g2, b2 = _cin_affine(params["cin2"], y, C_out)

    out = _fused_cin_block(x, params["conv1_w"], params["conv2_w"],
                           g1, b1, g2, b2)
    return jnp.transpose(out, (0, 3, 1, 2))              # NHWC -> NCHW


# -----------------------------------------------------------------------------
# Deterministic parameter init (shapes from the PyTorch module __init__)
# -----------------------------------------------------------------------------
def _xavier_uniform(key, fan_in, fan_out):
    bound = (6.0 / (fan_in + fan_out)) ** 0.5
    return jax.random.uniform(key, (fan_in, fan_out), jnp.float32,
                              -bound, bound)


def init_params(key, num_features, emb_classes, mid_channels=None):
    if mid_channels is None:
        mid_channels = num_features
    C, M = num_features, mid_channels
    keys = jax.random.split(key, 10)

    def cin_params(kk, nf):
        k_e, k_w1, k_w2 = jax.random.split(kk, 3)
        embed = jnp.concatenate(
            [1.0 + 0.02 * jax.random.normal(k_e, (emb_classes, nf)),
             jnp.zeros((emb_classes, nf))], axis=1).astype(jnp.float32)
        return {
            "embed": embed,                                   # (classes, 2*nf)
            "w1": _xavier_uniform(k_w1, 2 * nf, 2 * nf),      # stored (in,out)
            "b1": jnp.full((1, 2 * nf), 0.1, jnp.float32),
            "w2": _xavier_uniform(k_w2, 2 * nf, 2 * nf),
            "b2": jnp.full((1, 2 * nf), 0.1, jnp.float32),
        }

    return {
        # conv weights in HWIO layout (3,3,Cin,Cout); bias=False in the module
        "conv1_w": 0.1 * jax.random.normal(keys[0], (3, 3, C, M), jnp.float32),
        "conv2_w": 0.1 * jax.random.normal(keys[1], (3, 3, M, C), jnp.float32),
        "cin1": cin_params(keys[2], M),
        "cin2": cin_params(keys[3], C),
    }


# -----------------------------------------------------------------------------
# Pure-JAX reference (same bf16-matmul / f32-accumulate precision policy)
# -----------------------------------------------------------------------------
def _ref_forward(params, x_nchw, y):
    def conv(x, w_hwio):
        return jax.lax.conv_general_dilated(
            x.astype(jnp.bfloat16), w_hwio.astype(jnp.bfloat16), (1, 1), "SAME",
            dimension_numbers=("NCHW", "HWIO", "NCHW"),
            preferred_element_type=jnp.float32)

    def cin(x, p):
        mean = x.mean(axis=(2, 3), keepdims=True)
        var = jnp.square(x - mean).mean(axis=(2, 3), keepdims=True)
        xn = (x - mean) / jnp.sqrt(var + EPS)
        e = p["embed"][y]
        h = jnp.maximum(e @ p["w1"] + p["b1"], 0.0)
        gb = h @ p["w2"] + p["b2"]
        C = x.shape[1]
        gamma = gb[:, :C].reshape(-1, C, 1, 1)
        beta = gb[:, C:].reshape(-1, C, 1, 1)
        return gamma * xn + beta

    h = jnp.maximum(cin(conv(x_nchw, params["conv1_w"]), params["cin1"]), 0.0)
    return jnp.maximum(cin(conv(h, params["conv2_w"]), params["cin2"]), 0.0)


# -----------------------------------------------------------------------------
if __name__ == "__main__":
    B, C, H, W = 2, 4, 16, 16
    emb_classes = 10

    key = jax.random.PRNGKey(0)
    k_params, k_x, k_y = jax.random.split(key, 3)

    params = init_params(k_params, num_features=C, emb_classes=emb_classes)
    x = jax.random.normal(k_x, (B, C, H, W), jnp.float32)
    y = jax.random.randint(k_y, (B,), 0, emb_classes)

    out = jax.block_until_ready(cin_block_forward(params, x, y))
    ref = jax.block_until_ready(_ref_forward(params, x, y))

    assert out.shape == (B, C, H, W), out.shape
    max_err = float(jnp.max(jnp.abs(out - ref)))
    # bf16 matmuls in both paths; residual diffs come from accumulation order
    # and from re-rounding the (slightly different) f32 intermediate to bf16.
    assert jnp.allclose(out, ref, atol=3e-2, rtol=3e-2), max_err

    print("KERNEL_OK")
</pallas_src>

<mosaic_0001>
module attributes {stable_mosaic.version = 11 : i64} {
  func.func @_cin_block_kernel(%arg0: i32, %arg1: memref<1x326x4xbf16, #tpu.memory_space<vmem>>, %arg2: memref<9x4x4xbf16, #tpu.memory_space<vmem>>, %arg3: memref<9x4x4xbf16, #tpu.memory_space<vmem>>, %arg4: memref<1x1x4xf32, #tpu.memory_space<vmem>>, %arg5: memref<1x1x4xf32, #tpu.memory_space<vmem>>, %arg6: memref<1x1x4xf32, #tpu.memory_space<vmem>>, %arg7: memref<1x1x4xf32, #tpu.memory_space<vmem>>, %arg8: memref<1x288x4xf32, #tpu.memory_space<vmem>>, %arg9: memref<326x4xf32, #tpu.memory_space<vmem>>, %arg10: memref<326x4xf32, #tpu.memory_space<vmem>>) attributes {dimension_semantics = [#tpu.dimension_semantics<parallel>], iteration_bounds = array<i64: 2>, scalar_prefetch = 0 : i64, scratch_operands = 2 : i64, tpu.core_type = #tpu.core_type<tc>, window_params = [{transform_indices = @transform_0, window_bounds = array<i64: 1, 326, 4>}, {pipeline_mode = #tpu.pipeline_mode<synchronous>, transform_indices = @transform_1, window_bounds = array<i64: 9, 4, 4>}, {pipeline_mode = #tpu.pipeline_mode<synchronous>, transform_indices = @transform_2, window_bounds = array<i64: 9, 4, 4>}, {transform_indices = @transform_3, window_bounds = array<i64: 1, 1, 4>}, {transform_indices = @transform_4, window_bounds = array<i64: 1, 1, 4>}, {transform_indices = @transform_5, window_bounds = array<i64: 1, 1, 4>}, {transform_indices = @transform_6, window_bounds = array<i64: 1, 1, 4>}, {transform_indices = @transform_7, window_bounds = array<i64: 1, 288, 4>}]} {
    %0 = tpu.iota {dimensions = array<i32: 0>} : vector<288x1xi32>
    %c18_i32 = arith.constant 18 : i32
    %c0_i32 = arith.constant 0 : i32
    %1 = arith.cmpi eq, %c18_i32, %c0_i32 : i32
    %c1_i32 = arith.constant 1 : i32
    %2 = arith.select %1, %c1_i32, %c18_i32 : i32
    %3 = vector.broadcast %2 : i32 to vector<288x1xi32>
    %4 = arith.remsi %0, %3 : vector<288x1xi32>
    %c0_i32_0 = arith.constant 0 : i32
    %5 = vector.broadcast %c0_i32_0 : i32 to vector<288x1xi32>
    %6 = arith.cmpi ne, %4, %5 : vector<288x1xi32>
    %c0_i32_1 = arith.constant 0 : i32
    %7 = vector.broadcast %c0_i32_1 : i32 to vector<288x1xi32>
    %8 = arith.cmpi slt, %4, %7 : vector<288x1xi32>
    %c0_i32_2 = arith.constant 0 : i32
    %9 = arith.cmpi slt, %2, %c0_i32_2 : i32
    %10 = vector.broadcast %9 : i1 to vector<288x1xi1>
    %11 = vector.broadcast %10 : vector<288x1xi1> to vector<288x1xi1>
    %12 = arith.xori %8, %11 : vector<288x1xi1>
    %13 = arith.andi %12, %6 : vector<288x1xi1>
    %14 = vector.broadcast %2 : i32 to vector<288x1xi32>
    %15 = arith.addi %4, %14 : vector<288x1xi32>
    %16 = arith.select %13, %15, %4 : vector<288x1xi1>, vector<288x1xi32>
    %c1_i32_3 = arith.constant 1 : i32
    %17 = vector.broadcast %c1_i32_3 : i32 to vector<288x1xi32>
    %18 = arith.cmpi sge, %16, %17 : vector<288x1xi32>
    %c16_i32 = arith.constant 16 : i32
    %19 = vector.broadcast %c16_i32 : i32 to vector<288x1xi32>
    %20 = arith.cmpi sle, %16, %19 : vector<288x1xi32>
    %21 = arith.andi %18, %20 : vector<288x1xi1>
    %22 = arith.extui %21 : vector<288x1xi1> to vector<288x1xi32>
    %23 = arith.sitofp %22 : vector<288x1xi32> to vector<288x1xf32>
    %c0 = arith.constant 0 : index
    %c0_4 = arith.constant 0 : index
    %c0_5 = arith.constant 0 : index
    %24 = vector.load %arg1[%c0, %c0_4, %c0_5] : memref<1x326x4xbf16, #tpu.memory_space<vmem>>, vector<1x326x4xbf16>
    %25 = vector.shape_cast %24 : vector<1x326x4xbf16> to vector<326x4xbf16>
    %26 = arith.extf %25 : vector<326x4xbf16> to vector<326x4xf32>
    %c0_6 = arith.constant 0 : index
    %c0_7 = arith.constant 0 : index
    %27 = vector.load %arg9[%c0_6, %c0_7] : memref<326x4xf32, #tpu.memory_space<vmem>>, vector<326x4xf32>
    tpu.vector_store %arg9[%c0_6, %c0_7], %26 {strides = array<i32>} : memref<326x4xf32, #tpu.memory_space<vmem>>, vector<326x4xf32>,
    %cst = arith.constant 0.000000e+00 : f32
    %28 = vector.broadcast %cst : f32 to vector<288x4xf32>
    %c0_8 = arith.constant 0 : index
    %c0_9 = arith.constant 0 : index
    %29 = vector.load %arg9[%c0_8, %c0_9] : memref<326x4xf32, #tpu.memory_space<vmem>>, vector<288x4xf32>
    %30 = arith.truncf %29 : vector<288x4xf32> to vector<288x4xbf16>
    %c0_10 = arith.constant 0 : index
    %c0_11 = arith.constant 0 : index
    %c0_12 = arith.constant 0 : index
    %31 = vector.load %arg2[%c0_10, %c0_11, %c0_12] : memref<9x4x4xbf16, #tpu.memory_space<vmem>>, vector<1x4x4xbf16>
    %32 = vector.shape_cast %31 : vector<1x4x4xbf16> to vector<4x4xbf16>
    %cst_13 = arith.constant dense<0.000000e+00> : vector<288x4xf32>
    %33 = tpu.matmul %30, %32, %cst_13 {dimension_numbers = #tpu.dot_dimension_numbers<[1], [0], [0], [1], [0, 0, 1, 1], [], []>} : vector<288x4xbf16>, vector<4x4xbf16>, vector<288x4xf32> -> vector<288x4xf32>
    %34 = arith.addf %28, %33 : vector<288x4xf32>
    %c1 = arith.constant 1 : index
    %c0_14 = arith.constant 0 : index
    %35 = vector.load %arg9[%c1, %c0_14] : memref<326x4xf32, #tpu.memory_space<vmem>>, vector<288x4xf32>
    %36 = arith.truncf %35 : vector<288x4xf32> to vector<288x4xbf16>
    %c1_15 = arith.constant 1 : index
    %c0_16 = arith.constant 0 : index
    %c0_17 = arith.constant 0 : index
    %37 = vector.load %arg2[%c1_15, %c0_16, %c0_17] : memref<9x4x4xbf16, #tpu.memory_space<vmem>>, vector<1x4x4xbf16>
    %38 = vector.shape_cast %37 : vector<1x4x4xbf16> to vector<4x4xbf16>
    %cst_18 = arith.constant dense<0.000000e+00> : vector<288x4xf32>
    %39 = tpu.matmul %36, %38, %cst_18 {dimension_numbers = #tpu.dot_dimension_numbers<[1], [0], [0], [1], [0, 0, 1, 1], [], []>} : vector<288x4xbf16>, vector<4x4xbf16>, vector<288x4xf32> -> vector<288x4xf32>
    %40 = arith.addf %34, %39 : vector<288x4xf32>
    %c2 = arith.constant 2 : index
    %c0_19 = arith.constant 0 : index
    %41 = vector.load %arg9[%c2, %c0_19] : memref<326x4xf32, #tpu.memory_space<vmem>>, vector<288x4xf32>
    %42 = arith.truncf %41 : vector<288x4xf32> to vector<288x4xbf16>
    %c2_20 = arith.constant 2 : index
    %c0_21 = arith.constant 0 : index
    %c0_22 = arith.constant 0 : index
    %43 = vector.load %arg2[%c2_20, %c0_21, %c0_22] : memref<9x4x4xbf16, #tpu.memory_space<vmem>>, vector<1x4x4xbf16>
    %44 = vector.shape_cast %43 : vector<1x4x4xbf16> to vector<4x4xbf16>
    %cst_23 = arith.constant dense<0.000000e+00> : vector<288x4xf32>
    %45 = tpu.matmul %42, %44, %cst_23 {dimension_numbers = #tpu.dot_dimension_numbers<[1], [0], [0], [1], [0, 0, 1, 1], [], []>} : vector<288x4xbf16>, vector<4x4xbf16>, vector<288x4xf32> -> vector<288x4xf32>
    %46 = arith.addf %40, %45 : vector<288x4xf32>
    %c18 = arith.constant 18 : index
    %c0_24 = arith.constant 0 : index
    %47 = vector.load %arg9[%c18, %c0_24] : memref<326x4xf32, #tpu.memory_space<vmem>>, vector<288x4xf32>
    %48 = arith.truncf %47 : vector<288x4xf32> to vector<288x4xbf16>
    %c3 = arith.constant 3 : index
    %c0_25 = arith.constant 0 : index
    %c0_26 = arith.constant 0 : index
    %49 = vector.load %arg2[%c3, %c0_25, %c0_26] : memref<9x4x4xbf16, #tpu.memory_space<vmem>>, vector<1x4x4xbf16>
    %50 = vector.shape_cast %49 : vector<1x4x4xbf16> to vector<4x4xbf16>
    %cst_27 = arith.constant dense<0.000000e+00> : vector<288x4xf32>
    %51 = tpu.matmul %48, %50, %cst_27 {dimension_numbers = #tpu.dot_dimension_numbers<[1], [0], [0], [1], [0, 0, 1, 1], [], []>} : vector<288x4xbf16>, vector<4x4xbf16>, vector<288x4xf32> -> vector<288x4xf32>
    %52 = arith.addf %46, %51 : vector<288x4xf32>
    %c19 = arith.constant 19 : index
    %c0_28 = arith.constant 0 : index
    %53 = vector.load %arg9[%c19, %c0_28] : memref<326x4xf32, #tpu.memory_space<vmem>>, vector<288x4xf32>
    %54 = arith.truncf %53 : vector<288x4xf32> to vector<288x4xbf16>
    %c4 = arith.constant 4 : index
    %c0_29 = arith.constant 0 : index
    %c0_30 = arith.constant 0 : index
    %55 = vector.load %arg2[%c4, %c0_29, %c0_30] : memref<9x4x4xbf16, #tpu.memory_space<vmem>>, vector<1x4x4xbf16>
    %56 = vector.shape_cast %55 : vector<1x4x4xbf16> to vector<4x4xbf16>
    %cst_31 = arith.constant dense<0.000000e+00> : vector<288x4xf32>
    %57 = tpu.matmul %54, %56, %cst_31 {dimension_numbers = #tpu.dot_dimension_numbers<[1], [0], [0], [1], [0, 0, 1, 1], [], []>} : vector<288x4xbf16>, vector<4x4xbf16>, vector<288x4xf32> -> vector<288x4xf32>
    %58 = arith.addf %52, %57 : vector<288x4xf32>
    %c20 = arith.constant 20 : index
    %c0_32 = arith.constant 0 : index
    %59 = vector.load %arg9[%c20, %c0_32] : memref<326x4xf32, #tpu.memory_space<vmem>>, vector<288x4xf32>
    %60 = arith.truncf %59 : vector<288x4xf32> to vector<288x4xbf16>
    %c5 = arith.constant 5 : index
    %c0_33 = arith.constant 0 : index
    %c0_34 = arith.constant 0 : index
    %61 = vector.load %arg2[%c5, %c0_33, %c0_34] : memref<9x4x4xbf16, #tpu.memory_space<vmem>>, vector<1x4x4xbf16>
    %62 = vector.shape_cast %61 : vector<1x4x4xbf16> to vector<4x4xbf16>
    %cst_35 = arith.constant dense<0.000000e+00> : vector<288x4xf32>
    %63 = tpu.matmul %60, %62, %cst_35 {dimension_numbers = #tpu.dot_dimension_numbers<[1], [0], [0], [1], [0, 0, 1, 1], [], []>} : vector<288x4xbf16>, vector<4x4xbf16>, vector<288x4xf32> -> vector<288x4xf32>
    %64 = arith.addf %58, %63 : vector<288x4xf32>
    %c36 = arith.constant 36 : index
    %c0_36 = arith.constant 0 : index
    %65 = vector.load %arg9[%c36, %c0_36] : memref<326x4xf32, #tpu.memory_space<vmem>>, vector<288x4xf32>
    %66 = arith.truncf %65 : vector<288x4xf32> to vector<288x4xbf16>
    %c6 = arith.constant 6 : index
    %c0_37 = arith.constant 0 : index
    %c0_38 = arith.constant 0 : index
    %67 = vector.load %arg2[%c6, %c0_37, %c0_38] : memref<9x4x4xbf16, #tpu.memory_space<vmem>>, vector<1x4x4xbf16>
    %68 = vector.shape_cast %67 : vector<1x4x4xbf16> to vector<4x4xbf16>
    %cst_39 = arith.constant dense<0.000000e+00> : vector<288x4xf32>
    %69 = tpu.matmul %66, %68, %cst_39 {dimension_numbers = #tpu.dot_dimension_numbers<[1], [0], [0], [1], [0, 0, 1, 1], [], []>} : vector<288x4xbf16>, vector<4x4xbf16>, vector<288x4xf32> -> vector<288x4xf32>
    %70 = arith.addf %64, %69 : vector<288x4xf32>
    %c37 = arith.constant 37 : index
    %c0_40 = arith.constant 0 : index
    %71 = vector.load %arg9[%c37, %c0_40] : memref<326x4xf32, #tpu.memory_space<vmem>>, vector<288x4xf32>
    %72 = arith.truncf %71 : vector<288x4xf32> to vector<288x4xbf16>
    %c7 = arith.constant 7 : index
    %c0_41 = arith.constant 0 : index
    %c0_42 = arith.constant 0 : index
    %73 = vector.load %arg2[%c7, %c0_41, %c0_42] : memref<9x4x4xbf16, #tpu.memory_space<vmem>>, vector<1x4x4xbf16>
    %74 = vector.shape_cast %73 : vector<1x4x4xbf16> to vector<4x4xbf16>
    %cst_43 = arith.constant dense<0.000000e+00> : vector<288x4xf32>
    %75 = tpu.matmul %72, %74, %cst_43 {dimension_numbers = #tpu.dot_dimension_numbers<[1], [0], [0], [1], [0, 0, 1, 1], [], []>} : vector<288x4xbf16>, vector<4x4xbf16>, vector<288x4xf32> -> vector<288x4xf32>
    %76 = arith.addf %70, %75 : vector<288x4xf32>
    %c38 = arith.constant 38 : index
    %c0_44 = arith.constant 0 : index
    %77 = vector.load %arg9[%c38, %c0_44] : memref<326x4xf32, #tpu.memory_space<vmem>>, vector<288x4xf32>
    %78 = arith.truncf %77 : vector<288x4xf32> to vector<288x4xbf16>
    %c8 = arith.constant 8 : index
    %c0_45 = arith.constant 0 : index
    %c0_46 = arith.constant 0 : index
    %79 = vector.load %arg2[%c8, %c0_45, %c0_46] : memref<9x4x4xbf16, #tpu.memory_space<vmem>>, vector<1x4x4xbf16>
    %80 = vector.shape_cast %79 : vector<1x4x4xbf16> to vector<4x4xbf16>
    %cst_47 = arith.constant dense<0.000000e+00> : vector<288x4xf32>
    %81 = tpu.matmul %78, %80, %cst_47 {dimension_numbers = #tpu.dot_dimension_numbers<[1], [0], [0], [1], [0, 0, 1, 1], [], []>} : vector<288x4xbf16>, vector<4x4xbf16>, vector<288x4xf32> -> vector<288x4xf32>
    %82 = arith.addf %76, %81 : vector<288x4xf32>
    %83 = vector.broadcast %23 : vector<288x1xf32> to vector<288x4xf32>
    %84 = arith.mulf %82, %83 : vector<288x4xf32>
    %cst_48 = arith.constant dense<0.000000e+00> : vector<4xf32>
    %85 = vector.multi_reduction <add>, %84, %cst_48 [0] : vector<288x4xf32> to vector<4xf32>
    %86 = vector.shape_cast %85 : vector<4xf32> to vector<1x4xf32>
    %87 = arith.mulf %84, %82 : vector<288x4xf32>
    %cst_49 = arith.constant dense<0.000000e+00> : vector<4xf32>
    %88 = vector.multi_reduction <add>, %87, %cst_49 [0] : vector<288x4xf32> to vector<4xf32>
    %89 = vector.shape_cast %88 : vector<4xf32> to vector<1x4xf32>
    %cst_50 = arith.constant 3.906250e-03 : f32
    %90 = vector.broadcast %cst_50 : f32 to vector<1x4xf32>
    %91 = arith.mulf %86, %90 : vector<1x4xf32>
    %cst_51 = arith.constant 3.906250e-03 : f32
    %92 = vector.broadcast %cst_51 : f32 to vector<1x4xf32>
    %93 = arith.mulf %89, %92 : vector<1x4xf32>
    %94 = arith.mulf %91, %91 : vector<1x4xf32>
    %95 = arith.subf %93, %94 : vector<1x4xf32>
    %cst_52 = arith.constant 0.000000e+00 : f32
    %96 = vector.broadcast %cst_52 : f32 to vector<1x4xf32>
    %97 = arith.maximumf %95, %96 : vector<1x4xf32>
    %98 = vector.broadcast %91 : vector<1x4xf32> to vector<288x4xf32>
    %99 = arith.subf %82, %98 : vector<288x4xf32>
    %cst_53 = arith.constant 9.99999974E-6 : f32
    %100 = vector.broadcast %cst_53 : f32 to vector<1x4xf32>
    %101 = arith.addf %97, %100 : vector<1x4xf32>
    %102 = math.rsqrt %101 : vector<1x4xf32>
    %103 = vector.broadcast %102 : vector<1x4xf32> to vector<288x4xf32>
    %104 = arith.mulf %99, %103 : vector<288x4xf32>
    %c0_54 = arith.constant 0 : index
    %c0_55 = arith.constant 0 : index
    %c0_56 = arith.constant 0 : index
    %105 = vector.load %arg4[%c0_54, %c0_55, %c0_56] : memref<1x1x4xf32, #tpu.memory_space<vmem>>, vector<1x1x4xf32>
    %106 = vector.shape_cast %105 : vector<1x1x4xf32> to vector<1x4xf32>
    %107 = vector.broadcast %106 : vector<1x4xf32> to vector<288x4xf32>
    %108 = arith.mulf %107, %104 : vector<288x4xf32>
    %c0_57 = arith.constant 0 : index
    %c0_58 = arith.constant 0 : index
    %c0_59 = arith.constant 0 : index
    %109 = vector.load %arg5[%c0_57, %c0_58, %c0_59] : memref<1x1x4xf32, #tpu.memory_space<vmem>>, vector<1x1x4xf32>
    %110 = vector.shape_cast %109 : vector<1x1x4xf32> to vector<1x4xf32>
    %111 = vector.broadcast %110 : vector<1x4xf32> to vector<288x4xf32>
    %112 = arith.addf %108, %111 : vector<288x4xf32>
    %cst_60 = arith.constant 0.000000e+00 : f32
    %113 = vector.broadcast %cst_60 : f32 to vector<288x4xf32>
    %114 = arith.maximumf %112, %113 : vector<288x4xf32>
    %115 = vector.broadcast %23 : vector<288x1xf32> to vector<288x4xf32>
    %116 = arith.mulf %114, %115 : vector<288x4xf32>
    %cst_61 = arith.constant 0.000000e+00 : f32
    %117 = vector.broadcast %cst_61 : f32 to vector<326x4xf32>
    %c0_62 = arith.constant 0 : index
    %c0_63 = arith.constant 0 : index
    %118 = vector.load %arg10[%c0_62, %c0_63] : memref<326x4xf32, #tpu.memory_space<vmem>>, vector<326x4xf32>
    tpu.vector_store %arg10[%c0_62, %c0_63], %117 {strides = array<i32>} : memref<326x4xf32, #tpu.memory_space<vmem>>, vector<326x4xf32>,
    %c19_64 = arith.constant 19 : index
    %c0_65 = arith.constant 0 : index
    %119 = vector.load %arg10[%c19_64, %c0_65] : memref<326x4xf32, #tpu.memory_space<vmem>>, vector<288x4xf32>
    tpu.vector_store %arg10[%c19_64, %c0_65], %116 {strides = array<i32>} : memref<326x4xf32, #tpu.memory_space<vmem>>, vector<288x4xf32>,
    %cst_66 = arith.constant 0.000000e+00 : f32
    %120 = vector.broadcast %cst_66 : f32 to vector<288x4xf32>
    %c0_67 = arith.constant 0 : index
    %c0_68 = arith.constant 0 : index
    %121 = vector.load %arg10[%c0_67, %c0_68] : memref<326x4xf32, #tpu.memory_space<vmem>>, vector<288x4xf32>
    %122 = arith.truncf %121 : vector<288x4xf32> to vector<288x4xbf16>
    %c0_69 = arith.constant 0 : index
    %c0_70 = arith.constant 0 : index
    %c0_71 = arith.constant 0 : index
    %123 = vector.load %arg3[%c0_69, %c0_70, %c0_71] : memref<9x4x4xbf16, #tpu.memory_space<vmem>>, vector<1x4x4xbf16>
    %124 = vector.shape_cast %123 : vector<1x4x4xbf16> to vector<4x4xbf16>
    %cst_72 = arith.constant dense<0.000000e+00> : vector<288x4xf32>
    %125 = tpu.matmul %122, %124, %cst_72 {dimension_numbers = #tpu.dot_dimension_numbers<[1], [0], [0], [1], [0, 0, 1, 1], [], []>} : vector<288x4xbf16>, vector<4x4xbf16>, vector<288x4xf32> -> vector<288x4xf32>
    %126 = arith.addf %120, %125 : vector<288x4xf32>
    %c1_73 = arith.constant 1 : index
    %c0_74 = arith.constant 0 : index
    %127 = vector.load %arg10[%c1_73, %c0_74] : memref<326x4xf32, #tpu.memory_space<vmem>>, vector<288x4xf32>
    %128 = arith.truncf %127 : vector<288x4xf32> to vector<288x4xbf16>
    %c1_75 = arith.constant 1 : index
    %c0_76 = arith.constant 0 : index
    %c0_77 = arith.constant 0 : index
    %129 = vector.load %arg3[%c1_75, %c0_76, %c0_77] : memref<9x4x4xbf16, #tpu.memory_space<vmem>>, vector<1x4x4xbf16>
    %130 = vector.shape_cast %129 : vector<1x4x4xbf16> to vector<4x4xbf16>
    %cst_78 = arith.constant dense<0.000000e+00> : vector<288x4xf32>
    %131 = tpu.matmul %128, %130, %cst_78 {dimension_numbers = #tpu.dot_dimension_numbers<[1], [0], [0], [1], [0, 0, 1, 1], [], []>} : vector<288x4xbf16>, vector<4x4xbf16>, vector<288x4xf32> -> vector<288x4xf32>
    %132 = arith.addf %126, %131 : vector<288x4xf32>
    %c2_79 = arith.constant 2 : index
    %c0_80 = arith.constant 0 : index
    %133 = vector.load %arg10[%c2_79, %c0_80] : memref<326x4xf32, #tpu.memory_space<vmem>>, vector<288x4xf32>
    %134 = arith.truncf %133 : vector<288x4xf32> to vector<288x4xbf16>
    %c2_81 = arith.constant 2 : index
    %c0_82 = arith.constant 0 : index
    %c0_83 = arith.constant 0 : index
    %135 = vector.load %arg3[%c2_81, %c0_82, %c0_83] : memref<9x4x4xbf16, #tpu.memory_space<vmem>>, vector<1x4x4xbf16>
    %136 = vector.shape_cast %135 : vector<1x4x4xbf16> to vector<4x4xbf16>
    %cst_84 = arith.constant dense<0.000000e+00> : vector<288x4xf32>
    %137 = tpu.matmul %134, %136, %cst_84 {dimension_numbers = #tpu.dot_dimension_numbers<[1], [0], [0], [1], [0, 0, 1, 1], [], []>} : vector<288x4xbf16>, vector<4x4xbf16>, vector<288x4xf32> -> vector<288x4xf32>
    %138 = arith.addf %132, %137 : vector<288x4xf32>
    %c18_85 = arith.constant 18 : index
    %c0_86 = arith.constant 0 : index
    %139 = vector.load %arg10[%c18_85, %c0_86] : memref<326x4xf32, #tpu.memory_space<vmem>>, vector<288x4xf32>
    %140 = arith.truncf %139 : vector<288x4xf32> to vector<288x4xbf16>
    %c3_87 = arith.constant 3 : index
    %c0_88 = arith.constant 0 : index
    %c0_89 = arith.constant 0 : index
    %141 = vector.load %arg3[%c3_87, %c0_88, %c0_89] : memref<9x4x4xbf16, #tpu.memory_space<vmem>>, vector<1x4x4xbf16>
    %142 = vector.shape_cast %141 : vector<1x4x4xbf16> to vector<4x4xbf16>
    %cst_90 = arith.constant dense<0.000000e+00> : vector<288x4xf32>
    %143 = tpu.matmul %140, %142, %cst_90 {dimension_numbers = #tpu.dot_dimension_numbers<[1], [0], [0], [1], [0, 0, 1, 1], [], []>} : vector<288x4xbf16>, vector<4x4xbf16>, vector<288x4xf32> -> vector<288x4xf32>
    %144 = arith.addf %138, %143 : vector<288x4xf32>
    %c19_91 = arith.constant 19 : index
    %c0_92 = arith.constant 0 : index
    %145 = vector.load %arg10[%c19_91, %c0_92] : memref<326x4xf32, #tpu.memory_space<vmem>>, vector<288x4xf32>
    %146 = arith.truncf %145 : vector<288x4xf32> to vector<288x4xbf16>
    %c4_93 = arith.constant 4 : index
    %c0_94 = arith.constant 0 : index
    %c0_95 = arith.constant 0 : index
    %147 = vector.load %arg3[%c4_93, %c0_94, %c0_95] : memref<9x4x4xbf16, #tpu.memory_space<vmem>>, vector<1x4x4xbf16>
    %148 = vector.shape_cast %147 : vector<1x4x4xbf16> to vector<4x4xbf16>
    %cst_96 = arith.constant dense<0.000000e+00> : vector<288x4xf32>
    %149 = tpu.matmul %146, %148, %cst_96 {dimension_numbers = #tpu.dot_dimension_numbers<[1], [0], [0], [1], [0, 0, 1, 1], [], []>} : vector<288x4xbf16>, vector<4x4xbf16>, vector<288x4xf32> -> vector<288x4xf32>
    %150 = arith.addf %144, %149 : vector<288x4xf32>
    %c20_97 = arith.constant 20 : index
    %c0_98 = arith.constant 0 : index
    %151 = vector.load %arg10[%c20_97, %c0_98] : memref<326x4xf32, #tpu.memory_space<vmem>>, vector<288x4xf32>
    %152 = arith.truncf %151 : vector<288x4xf32> to vector<288x4xbf16>
    %c5_99 = arith.constant 5 : index
    %c0_100 = arith.constant 0 : index
    %c0_101 = arith.constant 0 : index
    %153 = vector.load %arg3[%c5_99, %c0_100, %c0_101] : memref<9x4x4xbf16, #tpu.memory_space<vmem>>, vector<1x4x4xbf16>
    %154 = vector.shape_cast %153 : vector<1x4x4xbf16> to vector<4x4xbf16>
    %cst_102 = arith.constant dense<0.000000e+00> : vector<288x4xf32>
    %155 = tpu.matmul %152, %154, %cst_102 {dimension_numbers = #tpu.dot_dimension_numbers<[1], [0], [0], [1], [0, 0, 1, 1], [], []>} : vector<288x4xbf16>, vector<4x4xbf16>, vector<288x4xf32> -> vector<288x4xf32>
    %156 = arith.addf %150, %155 : vector<288x4xf32>
    %c36_103 = arith.constant 36 : index
    %c0_104 = arith.constant 0 : index
    %157 = vector.load %arg10[%c36_103, %c0_104] : memref<326x4xf32, #tpu.memory_space<vmem>>, vector<288x4xf32>
    %158 = arith.truncf %157 : vector<288x4xf32> to vector<288x4xbf16>
    %c6_105 = arith.constant 6 : index
    %c0_106 = arith.constant 0 : index
    %c0_107 = arith.constant 0 : index
    %159 = vector.load %arg3[%c6_105, %c0_106, %c0_107] : memref<9x4x4xbf16, #tpu.memory_space<vmem>>, vector<1x4x4xbf16>
    %160 = vector.shape_cast %159 : vector<1x4x4xbf16> to vector<4x4xbf16>
    %cst_108 = arith.constant dense<0.000000e+00> : vector<288x4xf32>
    %161 = tpu.matmul %158, %160, %cst_108 {dimension_numbers = #tpu.dot_dimension_numbers<[1], [0], [0], [1], [0, 0, 1, 1], [], []>} : vector<288x4xbf16>, vector<4x4xbf16>, vector<288x4xf32> -> vector<288x4xf32>
    %162 = arith.addf %156, %161 : vector<288x4xf32>
    %c37_109 = arith.constant 37 : index
    %c0_110 = arith.constant 0 : index
    %163 = vector.load %arg10[%c37_109, %c0_110] : memref<326x4xf32, #tpu.memory_space<vmem>>, vector<288x4xf32>
    %164 = arith.truncf %163 : vector<288x4xf32> to vector<288x4xbf16>
    %c7_111 = arith.constant 7 : index
    %c0_112 = arith.constant 0 : index
    %c0_113 = arith.constant 0 : index
    %165 = vector.load %arg3[%c7_111, %c0_112, %c0_113] : memref<9x4x4xbf16, #tpu.memory_space<vmem>>, vector<1x4x4xbf16>
    %166 = vector.shape_cast %165 : vector<1x4x4xbf16> to vector<4x4xbf16>
    %cst_114 = arith.constant dense<0.000000e+00> : vector<288x4xf32>
    %167 = tpu.matmul %164, %166, %cst_114 {dimension_numbers = #tpu.dot_dimension_numbers<[1], [0], [0], [1], [0, 0, 1, 1], [], []>} : vector<288x4xbf16>, vector<4x4xbf16>, vector<288x4xf32> -> vector<288x4xf32>
    %168 = arith.addf %162, %167 : vector<288x4xf32>
    %c38_115 = arith.constant 38 : index
    %c0_116 = arith.constant 0 : index
    %169 = vector.load %arg10[%c38_115, %c0_116] : memref<326x4xf32, #tpu.memory_space<vmem>>, vector<288x4xf32>
    %170 = arith.truncf %169 : vector<288x4xf32> to vector<288x4xbf16>
    %c8_117 = arith.constant 8 : index
    %c0_118 = arith.constant 0 : index
    %c0_119 = arith.constant 0 : index
    %171 = vector.load %arg3[%c8_117, %c0_118, %c0_119] : memref<9x4x4xbf16, #tpu.memory_space<vmem>>, vector<1x4x4xbf16>
    %172 = vector.shape_cast %171 : vector<1x4x4xbf16> to vector<4x4xbf16>
    %cst_120 = arith.constant dense<0.000000e+00> : vector<288x4xf32>
    %173 = tpu.matmul %170, %172, %cst_120 {dimension_numbers = #tpu.dot_dimension_numbers<[1], [0], [0], [1], [0, 0, 1, 1], [], []>} : vector<288x4xbf16>, vector<4x4xbf16>, vector<288x4xf32> -> vector<288x4xf32>
    %174 = arith.addf %168, %173 : vector<288x4xf32>
    %175 = vector.broadcast %23 : vector<288x1xf32> to vector<288x4xf32>
    %176 = arith.mulf %174, %175 : vector<288x4xf32>
    %cst_121 = arith.constant dense<0.000000e+00> : vector<4xf32>
    %177 = vector.multi_reduction <add>, %176, %cst_121 [0] : vector<288x4xf32> to vector<4xf32>
    %178 = vector.shape_cast %177 : vector<4xf32> to vector<1x4xf32>
    %179 = arith.mulf %176, %174 : vector<288x4xf32>
    %cst_122 = arith.constant dense<0.000000e+00> : vector<4xf32>
    %180 = vector.multi_reduction <add>, %179, %cst_122 [0] : vector<288x4xf32> to vector<4xf32>
    %181 = vector.shape_cast %180 : vector<4xf32> to vector<1x4xf32>
    %cst_123 = arith.constant 3.906250e-03 : f32
    %182 = vector.broadcast %cst_123 : f32 to vector<1x4xf32>
    %183 = arith.mulf %178, %182 : vector<1x4xf32>
    %cst_124 = arith.constant 3.906250e-03 : f32
    %184 = vector.broadcast %cst_124 : f32 to vector<1x4xf32>
    %185 = arith.mulf %181, %184 : vector<1x4xf32>
    %186 = arith.mulf %183, %183 : vector<1x4xf32>
    %187 = arith.subf %185, %186 : vector<1x4xf32>
    %cst_125 = arith.constant 0.000000e+00 : f32
    %188 = vector.broadcast %cst_125 : f32 to vector<1x4xf32>
    %189 = arith.maximumf %187, %188 : vector<1x4xf32>
    %190 = vector.broadcast %183 : vector<1x4xf32> to vector<288x4xf32>
    %191 = arith.subf %174, %190 : vector<288x4xf32>
    %cst_126 = arith.constant 9.99999974E-6 : f32
    %192 = vector.broadcast %cst_126 : f32 to vector<1x4xf32>
    %193 = arith.addf %189, %192 : vector<1x4xf32>
    %194 = math.rsqrt %193 : vector<1x4xf32>
    %195 = vector.broadcast %194 : vector<1x4xf32> to vector<288x4xf32>
    %196 = arith.mulf %191, %195 : vector<288x4xf32>
    %c0_127 = arith.constant 0 : index
    %c0_128 = arith.constant 0 : index
    %c0_129 = arith.constant 0 : index
    %197 = vector.load %arg6[%c0_127, %c0_128, %c0_129] : memref<1x1x4xf32, #tpu.memory_space<vmem>>, vector<1x1x4xf32>
    %198 = vector.shape_cast %197 : vector<1x1x4xf32> to vector<1x4xf32>
    %199 = vector.broadcast %198 : vector<1x4xf32> to vector<288x4xf32>
    %200 = arith.mulf %199, %196 : vector<288x4xf32>
    %c0_130 = arith.constant 0 : index
    %c0_131 = arith.constant 0 : index
    %c0_132 = arith.constant 0 : index
    %201 = vector.load %arg7[%c0_130, %c0_131, %c0_132] : memref<1x1x4xf32, #tpu.memory_space<vmem>>, vector<1x1x4xf32>
    %202 = vector.shape_cast %201 : vector<1x1x4xf32> to vector<1x4xf32>
    %203 = vector.broadcast %202 : vector<1x4xf32> to vector<288x4xf32>
    %204 = arith.addf %200, %203 : vector<288x4xf32>
    %cst_133 = arith.constant 0.000000e+00 : f32
    %205 = vector.broadcast %cst_133 : f32 to vector<288x4xf32>
    %206 = arith.maximumf %204, %205 : vector<288x4xf32>
    %c0_134 = arith.constant 0 : index
    %c0_135 = arith.constant 0 : index
    %c0_136 = arith.constant 0 : index
    %207 = vector.load %arg8[%c0_134, %c0_135, %c0_136] : memref<1x288x4xf32, #tpu.memory_space<vmem>>, vector<1x288x4xf32>
    %208 = vector.shape_cast %207 : vector<1x288x4xf32> to vector<288x4xf32>
    %209 = vector.shape_cast %206 : vector<288x4xf32> to vector<1x288x4xf32>
    tpu.vector_store %arg8[%c0_134, %c0_135, %c0_136], %209 {strides = array<i32>} : memref<1x288x4xf32, #tpu.memory_space<vmem>>, vector<1x288x4xf32>,
    return
  }
  func.func @transform_0(%arg0: i32) -> (i32, i32, i32) {
    %c0_i32 = arith.constant 0 : i32
    %c0_i32_0 = arith.constant 0 : i32
    %c0_i32_1 = arith.constant 0 : i32
    return %arg0, %c0_i32, %c0_i32_0 : i32, i32, i32
  }
  func.func @transform_1(%arg0: i32) -> (i32, i32, i32) {
    %c0_i32 = arith.constant 0 : i32
    %c0_i32_0 = arith.constant 0 : i32
    %c0_i32_1 = arith.constant 0 : i32
    %c0_i32_2 = arith.constant 0 : i32
    return %c0_i32, %c0_i32_0, %c0_i32_1 : i32, i32, i32
  }
  func.func @transform_2(%arg0: i32) -> (i32, i32, i32) {
    %c0_i32 = arith.constant 0 : i32
    %c0_i32_0 = arith.constant 0 : i32
    %c0_i32_1 = arith.constant 0 : i32
    %c0_i32_2 = arith.constant 0 : i32
    return %c0_i32, %c0_i32_0, %c0_i32_1 : i32, i32, i32
  }
  func.func @transform_3(%arg0: i32) -> (i32, i32, i32) {
    %c0_i32 = arith.constant 0 : i32
    %c0_i32_0 = arith.constant 0 : i32
    %c0_i32_1 = arith.constant 0 : i32
    return %arg0, %c0_i32, %c0_i32_0 : i32, i32, i32
  }
  func.func @transform_4(%arg0: i32) -> (i32, i32, i32) {
    %c0_i32 = arith.constant 0 : i32
    %c0_i32_0 = arith.constant 0 : i32
    %c0_i32_1 = arith.constant 0 : i32
    return %arg0, %c0_i32, %c0_i32_0 : i32, i32, i32
  }
  func.func @transform_5(%arg0: i32) -> (i32, i32, i32) {
    %c0_i32 = arith.constant 0 : i32
    %c0_i32_0 = arith.constant 0 : i32
    %c0_i32_1 = arith.constant 0 : i32
    return %arg0, %c0_i32, %c0_i32_0 : i32, i32, i32
  }
  func.func @transform_6(%arg0: i32) -> (i32, i32, i32) {
    %c0_i32 = arith.constant 0 : i32
    %c0_i32_0 = arith.constant 0 : i32
    %c0_i32_1 = arith.constant 0 : i32
    return %arg0, %c0_i32, %c0_i32_0 : i32, i32, i32
  }
  func.func @transform_7(%arg0: i32) -> (i32, i32, i32) {
    %c0_i32 = arith.constant 0 : i32
    %c0_i32_0 = arith.constant 0 : i32
    %c0_i32_1 = arith.constant 0 : i32
    return %arg0, %c0_i32, %c0_i32_0 : i32, i32, i32
  }
}

</mosaic_0001>

<bundles_post_ra>
// kernel: tpu_custom_call.1
= control target key start
LH: loop header
LB: loop body
LE: loop exit
PB: predicated region body
PF: predicated region fallthrough
CT: control target
= control target key end

     0   :  { %s7878_s24 = smov 0   ;;  %s11112_s0 = inlined_call_operand.vmem [shape: bf16[2,326,4], index: 0, kind: input, shape index: {}]   ;;  %s11113_s1 = inlined_call_operand.vmem [shape: bf16[9,4,4], index: 1, kind: input, shape index: {}]   ;;  %s11114_s2 = inlined_call_operand.vmem [shape: bf16[9,4,4], index: 2, kind: input, shape index: {}]   ;;  %s11115_s3 = inlined_call_operand.vmem [shape: f32[2,1,4], index: 3, kind: input, shape index: {}]   ;;  %s11116_s4 = inlined_call_operand.vmem [shape: f32[2,1,4], index: 4, kind: input, shape index: {}]   ;;  %s11117_s5 = inlined_call_operand.vmem [shape: f32[2,1,4], index: 5, kind: input, shape index: {}]   ;;  %s11118_s6 = inlined_call_operand.vmem [shape: f32[2,1,4], index: 6, kind: input, shape index: {}]   ;;  %s11119_s7 = inlined_call_operand.vmem [shape: f32[2,288,4], index: 7, kind: output, shape index: {}]  }
   0x1 LB: > { %s7321_s25 = sadd.s32 4294967295, %s7834_s24   ;;  %p7325_p0 = scmp.ge.s32.totalorder %s7834_s24, 1  ;;  %s7834_s24 = sphi %s7878_s24, %s17_s24  }
   0x2   : > { %p269_p1 = scmp.lt.s32.totalorder %s7834_s24, 3 }
   0x4   : > { %p270_p2 = pnand %p7325_p0, %p269_p1 }
   0x6   : > { %273 = sbr.rel (%p270_p2) target bundleno = 2104 (0x838), region = 48 }
   0xb   : > { %v7364_v0 = vld [vmem:[%s11113_s1 + $0x2] sm:$0x3]  ;;  %vm2067_vm0 = vcmask 1041408   ;;  %v1956_v1 = vld [vmem:[%s11113_s1] sm:$0x3]  ;;  %p313_p3 = scmp.lt.s32.totalorder %s7321_s25, 1 }
   0xc   : > { %v2069_v2 = vsel %vm2067_vm0, %v7364_v0, 0  ;;  %v2225_v3 = vsel %vm2067_vm0, %v1956_v1, 0  ;;  %v7401_v4 = vld [vmem:[%s11113_s1 + $0x4] sm:$0x3]  ;;  %v7420_v6 = vld [vmem:[%s11113_s1 + $0x6] sm:$0x3] }
   0xd   : > { %7805 = vmatpush.bf16.msra.mxu2 %v2069_v2  ;;  %7806 = vmatpush.bf16.msra.mxu3 %v2225_v3  ;;  %s11463_s25 = smov (!%p313_p3, %s7321_s25), 1  ;;  %v2437_v5 = vsel %vm2067_vm0, %v7401_v4, 0  ;;  %v7439_v7 = vld [vmem:[%s11113_s1 + $0x8] sm:$0x3]  ;;  %v2685_v8 = vsel %vm2067_vm0, %v7420_v6, 0  ;;  %vm1859_vm1 = vcmask 31744  }
   0xe   : > { %2078 = vmatpush.bf16.msra.mxu0 %v2069_v2  ;;  %2234 = vmatpush.bf16.msra.mxu1 %v2225_v3  ;;  %v2933_v9 = vsel %vm2067_vm0, %v7439_v7, 0  ;;  %s7807_s13 = smul.u32 164, %s11463_s25  ;;  %s320_s16 = scalar_lea.vmem %s11115_s3, %s11463_s25 }
   0xf   : > { %s323_s19 = scalar_lea.vmem %s11116_s4, %s11463_s25  ;;  %s326_s22 = scalar_lea.vmem %s11117_s5, %s11463_s25 }
  0x10   : > { %s7924_s27 = scalar_lea.vmem %s11112_s0, %s7807_s13  ;;  %s329_s30 = scalar_lea.vmem %s11118_s6, %s11463_s25 }
  0x11   : > { %2446 = vmatpush.bf16.msrb.mxu2 %v2437_v5  ;;  %2694 = vmatpush.bf16.msrb.mxu3 %v2685_v8  ;;  %v7794_v10 = vld [vmem:[%s7924_s27 + $0x48] sm:$0xff]   ;;  %v7795_v11 = vld [vmem:[%s7924_s27 + $0x50] sm:$0xff]   ;;  %v7707_v15 = vld [vmem:[%s7924_s27] sm:$0xff]  }
  0x12   : > { %2942 = vmatpush.bf16.msrb.mxu0 %v2933_v9  ;;  %v7744_v12 = vunpack.c.l.bf16 %v7794_v10  ;;  %v7745_v13 = vunpack.c.h.bf16 %v7794_v10  ;;  %v7748_v14 = vunpack.c.l.bf16 %v7795_v11  ;;  %v7708_v16 = vunpack.c.l.bf16 %v7707_v15  ;;  %v7786_v17 = vld [vmem:[%s7924_s27 + $0x8] sm:$0xff]   ;;  %v7796_v19 = vld [vmem:[%s7924_s27 + $0x58] sm:$0xff]   ;;  %v7787_v22 = vld [vmem:[%s7924_s27 + $0x10] sm:$0xff]  }
  0x13   : > { %v7709_v18 = vunpack.c.h.bf16 %v7707_v15  ;;  %v7712_v20 = vunpack.c.l.bf16 %v7786_v17  ;;  %v7749_v21 = vunpack.c.h.bf16 %v7795_v11  ;;  %v7752_v23 = vunpack.c.l.bf16 %v7796_v19  ;;  %v7797_v25 = vld [vmem:[%s7924_s27 + $0x60] sm:$0xff]   ;;  %v7788_v28 = vld [vmem:[%s7924_s27 + $0x18] sm:$0xff]   ;;  %v7798_v45 = vld [vmem:[%s7924_s27 + $0x68] sm:$0xff]  }
  0x14   : > { %1878 = vst.msk [vmem:[#allocation2 + $0x90] sm:$0xff] %vm1859_vm1, %v7744_v12  ;;  %v7713_v24 = vunpack.c.h.bf16 %v7786_v17  ;;  %v7716_v26 = vunpack.c.l.bf16 %v7787_v22  ;;  %v7753_v27 = vunpack.c.h.bf16 %v7796_v19  ;;  %v7756_v30 = vunpack.c.l.bf16 %v7797_v25  ;;  %v7789_v47 = vld [vmem:[%s7924_s27 + $0x20] sm:$0xff]   ;;  %v7799_v63 = vld [vmem:[%s7924_s27 + $0x70] sm:$0xff]   ;;  %v7790_v1 = vld [vmem:[%s7924_s27 + $0x28] sm:$0xff]  }
  0x15   : > { %1879 = vst.msk [vmem:[#allocation2 + $0x98] sm:$0xff] %vm1859_vm1, %v7745_v13  ;;  %v7717_v33 = vunpack.c.h.bf16 %v7787_v22  ;;  %v7720_v36 = vunpack.c.l.bf16 %v7788_v28  ;;  %v7757_v44 = vunpack.c.h.bf16 %v7797_v25  ;;  %v7760_v46 = vunpack.c.l.bf16 %v7798_v45  ;;  %v7800_v17 = vld [vmem:[%s7924_s27 + $0x78] sm:$0xff]   ;;  %v7791_v19 = vld [vmem:[%s7924_s27 + $0x30] sm:$0xff]  }
  0x16   : > { %1880 = vst.msk [vmem:[#allocation2 + $0xa0] sm:$0xff] %vm1859_vm1, %v7748_v14  ;;  %v7721_v48 = vunpack.c.h.bf16 %v7788_v28  ;;  %v7724_v49 = vunpack.c.l.bf16 %v7789_v47  ;;  %v7761_v62 = vunpack.c.h.bf16 %v7798_v45  ;;  %v7764_v0 = vunpack.c.l.bf16 %v7799_v63 }
  0x17   : > { %1860 = vst.msk [vmem:[#allocation2] sm:$0xff] %vm1859_vm1, %v7708_v16  ;;  %v7725_v2 = vunpack.c.h.bf16 %v7789_v47  ;;  %v7728_v3 = vunpack.c.l.bf16 %v7790_v1  ;;  %v7765_v16 = vunpack.c.h.bf16 %v7799_v63 }
  0x18   : > { %1861 = vst.msk [vmem:[#allocation2 + $0x8] sm:$0xff] %vm1859_vm1, %v7709_v18  ;;  %v7768_v18 = vunpack.c.l.bf16 %v7800_v17 }
  0x19   : > { %1862 = vst.msk [vmem:[#allocation2 + $0x10] sm:$0xff] %vm1859_vm1, %v7712_v20  ;;  %v7729_v20 = vunpack.c.h.bf16 %v7790_v1 }
  0x1a   : > { %1881 = vst.msk [vmem:[#allocation2 + $0xa8] sm:$0xff] %vm1859_vm1, %v7749_v21  ;;  %v7732_v21 = vunpack.c.l.bf16 %v7791_v19 }
  0x1b   : > { %v1920_v29 = vld [vmem:[#allocation2 + $0x90] sm:$0xff]  ;;  %1882 = vst.msk [vmem:[#allocation2 + $0xb0] sm:$0xff] %vm1859_vm1, %v7752_v23 }
  0x1c   : > { %v1975_v31 = vld [vmem:[#allocation2 + $0x91] sm:$0xff]  ;;  %1863 = vst.msk [vmem:[#allocation2 + $0x18] sm:$0xff] %vm1859_vm1, %v7713_v24 }
  0x1d   : > { %v1921_v32 = vld [vmem:[#allocation2 + $0x98] sm:$0xff]  ;;  %1864 = vst.msk [vmem:[#allocation2 + $0x20] sm:$0xff] %vm1859_vm1, %v7716_v26  ;;  %v1922_v50 = vld [vmem:[#allocation2 + $0xa0] sm:$0xff] }
  0x1e   : > { %v1976_v34 = vld [vmem:[#allocation2 + $0x99] sm:$0xff]  ;;  %v1947_v35 = vpack.c.bf16 %v1921_v32, %v1920_v29  ;;  %1883 = vst.msk [vmem:[#allocation2 + $0xb8] sm:$0xff] %vm1859_vm1, %v7753_v27 }
  0x1f   : > { %v2002_v37 = vpack.c.bf16 %v1976_v34, %v1975_v31  ;;  %v1902_v38 = vld [vmem:[#allocation2] sm:$0xff]  ;;  %v1903_v40 = vld [vmem:[#allocation2 + $0x8] sm:$0xff]  ;;  %1884 = vst.msk [vmem:[#allocation2 + $0xc0] sm:$0xff] %vm1859_vm1, %v7756_v30  ;;  %v7769_v34 = vunpack.c.h.bf16 %v7800_v17 }
  0x20   : > { %7392 = vmatmul.msk.bf16.vlgmr.msra.gmra.mxu3 %vm1859_vm1, %v1947_v35  ;;  %v1957_v39 = vld [vmem:[#allocation2 + $0x1] sm:$0xff]  ;;  %v1958_v41 = vld [vmem:[#allocation2 + $0x9] sm:$0xff]  ;;  %v1938_v42 = vpack.c.bf16 %v1903_v40, %v1902_v38  ;;  %1865 = vst.msk [vmem:[#allocation2 + $0x28] sm:$0xff] %vm1859_vm1, %v7717_v33  ;;  %v7733_v38 = vunpack.c.h.bf16 %v7791_v19 }
  0x21   : > { %7374 = vmatmul.msk.bf16.vlgmr.msra.gmra.mxu2 %vm1859_vm1, %v2002_v37  ;;  %v1993_v43 = vpack.c.bf16 %v1958_v41, %v1957_v39  ;;  %1866 = vst.msk [vmem:[#allocation2 + $0x30] sm:$0xff] %vm1859_vm1, %v7720_v36  ;;  %v1923_v51 = vld [vmem:[#allocation2 + $0xa8] sm:$0xff]  ;;  %v1904_v55 = vld [vmem:[#allocation2 + $0x10] sm:$0xff]  ;;  %v7801_v35 = vld [vmem:[%s7924_s27 + $0x80] sm:$0xff]  }
  0x22   : > { %7383 = vmatmul.msk.bf16.vlgmr.msra.gmra.mxu1 %vm1859_vm1, %v1938_v42  ;;  %1885 = vst.msk [vmem:[#allocation2 + $0xc8] sm:$0xff] %vm1859_vm1, %v7757_v44  ;;  %v1977_v52 = vld [vmem:[#allocation2 + $0xa1] sm:$0xff]  ;;  %v1978_v53 = vld [vmem:[#allocation2 + $0xa9] sm:$0xff]  ;;  %v1948_v54 = vpack.c.bf16 %v1923_v51, %v1922_v50  ;;  %v7772_v36 = vunpack.c.l.bf16 %v7801_v35  ;;  %v7792_v37 = vld [vmem:[%s7924_s27 + $0x38] sm:$0xff]  }
  0x23   : > { %7365 = vmatmul.msk.bf16.vlgmr.msra.gmra.mxu0 %vm1859_vm1, %v1993_v43  ;;  %1886 = vst.msk [vmem:[#allocation2 + $0xd0] sm:$0xff] %vm1859_vm1, %v7760_v46  ;;  %v1905_v56 = vld [vmem:[#allocation2 + $0x18] sm:$0xff]  ;;  %v2003_v57 = vpack.c.bf16 %v1978_v53, %v1977_v52  ;;  %v1924_v4 = vld [vmem:[#allocation2 + $0xb0] sm:$0xff]  ;;  %v7736_v39 = vunpack.c.l.bf16 %v7792_v37  ;;  %v7773_v52 = vunpack.c.h.bf16 %v7801_v35  ;;  %v7802_v53 = vld [vmem:[%s7924_s27 + $0x88] sm:$0xff]  }
  0x24   : > { %1867 = vst.msk [vmem:[#allocation2 + $0x38] sm:$0xff] %vm1859_vm1, %v7721_v48  ;;  %v1959_v58 = vld [vmem:[#allocation2 + $0x11] sm:$0xff]  ;;  %v1960_v59 = vld [vmem:[#allocation2 + $0x19] sm:$0xff]  ;;  %v1939_v60 = vpack.c.bf16 %v1905_v56, %v1904_v55  ;;  %v7737_v56 = vunpack.c.h.bf16 %v7792_v37  ;;  %v7477_v35 = vld [vmem:[%s11113_s1 + $0xc] sm:$0x3] }
  0x25   : > { %1868 = vst.msk [vmem:[#allocation2 + $0x40] sm:$0xff] %vm1859_vm1, %v7724_v49  ;;  %v1994_v61 = vpack.c.bf16 %v1960_v59, %v1959_v58  ;;  %v1925_v5 = vld [vmem:[#allocation2 + $0xb8] sm:$0xff]  ;;  %v1906_v9 = vld [vmem:[#allocation2 + $0x20] sm:$0xff]  ;;  %v7496_v37 = vld [vmem:[%s11113_s1 + $0xe] sm:$0x3] }
  0x26   : > { %1887 = vst.msk [vmem:[#allocation2 + $0xd8] sm:$0xff] %vm1859_vm1, %v7761_v62  ;;  %v1979_v6 = vld [vmem:[#allocation2 + $0xb1] sm:$0xff]  ;;  %v1980_v7 = vld [vmem:[#allocation2 + $0xb9] sm:$0xff]  ;;  %v1949_v8 = vpack.c.bf16 %v1925_v5, %v1924_v4 }
  0x27   : > { %1888 = vst.msk [vmem:[#allocation2 + $0xe0] sm:$0xff] %vm1859_vm1, %v7764_v0  ;;  %v1907_v10 = vld [vmem:[#allocation2 + $0x28] sm:$0xff]  ;;  %v2004_v11 = vpack.c.bf16 %v1980_v7, %v1979_v6  ;;  %v1926_v22 = vld [vmem:[#allocation2 + $0xc0] sm:$0xff]  ;;  %v7803_v6 = vld [vmem:[%s7924_s27 + $0x90] sm:$0xff]   ;;  %v7777_v7 = vunpack.c.h.bf16 %v7802_v53 }
  0x28   : > { %1869 = vst.msk [vmem:[#allocation2 + $0x48] sm:$0xff] %vm1859_vm1, %v7725_v2  ;;  %v1961_v12 = vld [vmem:[#allocation2 + $0x21] sm:$0xff]  ;;  %v1962_v13 = vld [vmem:[#allocation2 + $0x29] sm:$0xff]  ;;  %v1940_v14 = vpack.c.bf16 %v1907_v10, %v1906_v9 }
  0x29   : > { %1870 = vst.msk [vmem:[#allocation2 + $0x50] sm:$0xff] %vm1859_vm1, %v7728_v3  ;;  %v1995_v15 = vpack.c.bf16 %v1962_v13, %v1961_v12  ;;  %v1927_v23 = vld [vmem:[#allocation2 + $0xc8] sm:$0xff]  ;;  %v1908_v27 = vld [vmem:[#allocation2 + $0x30] sm:$0xff]  ;;  %v7793_v55 = vld [vmem:[%s7924_s27 + $0x40] sm:$0xff]  }
  0x2a   : > { %1889 = vst.msk [vmem:[#allocation2 + $0xe8] sm:$0xff] %vm1859_vm1, %v7765_v16  ;;  %v1981_v24 = vld [vmem:[#allocation2 + $0xc1] sm:$0xff]  ;;  %v1982_v25 = vld [vmem:[#allocation2 + $0xc9] sm:$0xff]  ;;  %v1950_v26 = vpack.c.bf16 %v1927_v23, %v1926_v22  ;;  %v7741_v9 = vunpack.c.h.bf16 %v7793_v55  ;;  %v7781_v22 = vunpack.c.h.bf16 %v7803_v6 }
  0x2b   : > { %1890 = vst.msk [vmem:[#allocation2 + $0xf0] sm:$0xff] %vm1859_vm1, %v7768_v18  ;;  %v1909_v28 = vld [vmem:[#allocation2 + $0x38] sm:$0xff]  ;;  %v2005_v29 = vpack.c.bf16 %v1982_v25, %v1981_v24  ;;  %v1928_v40 = vld [vmem:[#allocation2 + $0xd0] sm:$0xff] }
  0x2c   : > { %1871 = vst.msk [vmem:[#allocation2 + $0x58] sm:$0xff] %vm1859_vm1, %v7729_v20  ;;  %v1963_v30 = vld [vmem:[#allocation2 + $0x31] sm:$0xff]  ;;  %v1964_v31 = vld [vmem:[#allocation2 + $0x39] sm:$0xff]  ;;  %v1941_v32 = vpack.c.bf16 %v1909_v28, %v1908_v27 }
  0x2d   : > { %1872 = vst.msk [vmem:[#allocation2 + $0x60] sm:$0xff] %vm1859_vm1, %v7732_v21  ;;  %v1996_v33 = vpack.c.bf16 %v1964_v31, %v1963_v30  ;;  %v1929_v41 = vld [vmem:[#allocation2 + $0xd8] sm:$0xff]  ;;  %v1910_v45 = vld [vmem:[#allocation2 + $0x40] sm:$0xff] }
  0x2e   : > { %1891 = vst.msk [vmem:[#allocation2 + $0xf8] sm:$0xff] %vm1859_vm1, %v7769_v34  ;;  %v1983_v42 = vld [vmem:[#allocation2 + $0xd1] sm:$0xff]  ;;  %v1984_v43 = vld [vmem:[#allocation2 + $0xd9] sm:$0xff]  ;;  %v1951_v44 = vpack.c.bf16 %v1929_v41, %v1928_v40  ;;  %v7458_v41 = vld [vmem:[%s11113_s1 + $0xa] sm:$0x3] }
  0x2f   : > { %1892 = vst.msk [vmem:[#allocation2 + $0x100] sm:$0xff] %vm1859_vm1, %v7772_v36  ;;  %v1911_v46 = vld [vmem:[#allocation2 + $0x48] sm:$0xff]  ;;  %v2006_v47 = vpack.c.bf16 %v1984_v43, %v1983_v42  ;;  %v1930_v58 = vld [vmem:[#allocation2 + $0xe0] sm:$0xff]  ;;  %v3429_v36 = vsel %vm2067_vm0, %v7477_v35, 0 }
  0x30   : > { %7393 = vmatmul.msk.bf16.gmra.mxu3 %vm1859_vm1, %v1948_v54  ;;  %1873 = vst.msk [vmem:[#allocation2 + $0x68] sm:$0xff] %vm1859_vm1, %v7733_v38  ;;  %v1965_v48 = vld [vmem:[#allocation2 + $0x41] sm:$0xff]  ;;  %v1966_v49 = vld [vmem:[#allocation2 + $0x49] sm:$0xff]  ;;  %v1942_v50 = vpack.c.bf16 %v1911_v46, %v1910_v45  ;;  %v7776_v54 = vunpack.c.l.bf16 %v7802_v53  ;;  %3438 = vmatpush.bf16.msra.mxu2 %v3429_v36  ;;  %v3677_v38 = vsel %vm2067_vm0, %v7496_v37, 0 }
  0x31   : > { %7375 = vmatmul.msk.bf16.gmra.mxu2 %vm1859_vm1, %v2003_v57  ;;  %1874 = vst.msk [vmem:[#allocation2 + $0x70] sm:$0xff] %vm1859_vm1, %v7736_v39  ;;  %v1997_v51 = vpack.c.bf16 %v1966_v49, %v1965_v48  ;;  %v7740_v57 = vunpack.c.l.bf16 %v7793_v55  ;;  %v1931_v59 = vld [vmem:[#allocation2 + $0xe8] sm:$0xff]  ;;  %v1912_v63 = vld [vmem:[#allocation2 + $0x50] sm:$0xff]  ;;  %3686 = vmatpush.bf16.msra.mxu3 %v3677_v38 }
  0x32   : > { %7384 = vmatmul.msk.bf16.gmra.mxu1 %vm1859_vm1, %v1939_v60  ;;  %1893 = vst.msk [vmem:[#allocation2 + $0x108] sm:$0xff] %vm1859_vm1, %v7773_v52  ;;  %v1985_v60 = vld [vmem:[#allocation2 + $0xe1] sm:$0xff]  ;;  %v1952_v62 = vpack.c.bf16 %v1931_v59, %v1930_v58  ;;  %v1932_v10 = vld [vmem:[#allocation2 + $0xf0] sm:$0xff] }
  0x33   : > { %7366 = vmatmul.msk.bf16.gmra.mxu0 %vm1859_vm1, %v1994_v61  ;;  %1894 = vst.msk [vmem:[#allocation2 + $0x110] sm:$0xff] %vm1859_vm1, %v7776_v54  ;;  %v1986_v61 = vld [vmem:[#allocation2 + $0xe9] sm:$0xff]  ;;  %v1913_v0 = vld [vmem:[#allocation2 + $0x58] sm:$0xff] }
  0x34   : > { %1875 = vst.msk [vmem:[#allocation2 + $0x78] sm:$0xff] %vm1859_vm1, %v7737_v56  ;;  %v2007_v1 = vpack.c.bf16 %v1986_v61, %v1985_v60  ;;  %v1967_v2 = vld [vmem:[#allocation2 + $0x51] sm:$0xff]  ;;  %v1968_v3 = vld [vmem:[#allocation2 + $0x59] sm:$0xff]  ;;  %v1943_v4 = vpack.c.bf16 %v1913_v0, %v1912_v63 }
  0x35   : > { %1876 = vst.msk [vmem:[#allocation2 + $0x80] sm:$0xff] %vm1859_vm1, %v7740_v57  ;;  %v1998_v5 = vpack.c.bf16 %v1968_v3, %v1967_v2  ;;  %v1987_v12 = vld [vmem:[#allocation2 + $0xf1] sm:$0xff]  ;;  %v2575_v0 = vld [vmem:[#allocation2 + $0x1a] sm:$0xff]  ;;  %v2326_v2 = vld [vmem:[#allocation2 + $0x2] sm:$0xff] }
  0x36   : > { %1895 = vst.msk [vmem:[#allocation2 + $0x118] sm:$0xff] %vm1859_vm1, %v7777_v7  ;;  %v1988_v13 = vld [vmem:[#allocation2 + $0xf9] sm:$0xff]  ;;  %v7515_v45 = vld [vmem:[%s11113_s1 + $0x10] sm:$0x3] }
  0x37   : > { %1877 = vst.msk [vmem:[#allocation2 + $0x88] sm:$0xff] %vm1859_vm1, %v7741_v9  ;;  %v1915_v16 = vld [vmem:[#allocation2 + $0x68] sm:$0xff]  ;;  %v2008_v17 = vpack.c.bf16 %v1988_v13, %v1987_v12  ;;  %v1934_v23 = vld [vmem:[#allocation2 + $0x100] sm:$0xff]  ;;  %v3925_v46 = vsel %vm2067_vm0, %v7515_v45, 0  ;;  %v2574_v63 = vld [vmem:[#allocation2 + $0x12] sm:$0xff] }
  0x38   : > { %v1969_v18 = vld [vmem:[#allocation2 + $0x61] sm:$0xff]  ;;  %v1970_v19 = vld [vmem:[#allocation2 + $0x69] sm:$0xff]  ;;  %1897 = vst.msk [vmem:[#allocation2 + $0x128] sm:$0xff] %vm1859_vm1, %v7781_v22  ;;  %3934 = vmatpush.bf16.msra.mxu0 %v3925_v46  ;;  %v3070_v7 = vld [vmem:[#allocation2 + $0x14] sm:$0xff] }
  0x39   : > { %v1999_v21 = vpack.c.bf16 %v1970_v19, %v1969_v18  ;;  %v1935_v24 = vld [vmem:[#allocation2 + $0x108] sm:$0xff]  ;;  %v1916_v28 = vld [vmem:[#allocation2 + $0x70] sm:$0xff]  ;;  %v2823_v12 = vld [vmem:[#allocation2 + $0x1b] sm:$0xff] }
  0x3a   : > { %v1989_v25 = vld [vmem:[#allocation2 + $0x101] sm:$0xff]  ;;  %v1954_v27 = vpack.c.bf16 %v1935_v24, %v1934_v23  ;;  %v1936_v39 = vld [vmem:[#allocation2 + $0x110] sm:$0xff] }
  0x3b   : > { %v1971_v31 = vld [vmem:[#allocation2 + $0x71] sm:$0xff]  ;;  %v2576_v23 = vld [vmem:[#allocation2 + $0x22] sm:$0xff]  ;;  %v2579_v45 = vld [vmem:[#allocation2 + $0x3a] sm:$0xff] }
  0x3c   : > { %v1918_v48 = vld [vmem:[#allocation2 + $0x80] sm:$0xff]  ;;  %v2327_v3 = vld [vmem:[#allocation2 + $0xa] sm:$0xff] }
  0x3d   : > { %v1937_v40 = vld [vmem:[#allocation2 + $0x118] sm:$0xff]  ;;  %v2577_v24 = vld [vmem:[#allocation2 + $0x2a] sm:$0xff] }
  0x3e   : > { %v1991_v42 = vld [vmem:[#allocation2 + $0x111] sm:$0xff]  ;;  %v1919_v49 = vld [vmem:[#allocation2 + $0x88] sm:$0xff] }
  0x3f   : > { %v1974_v52 = vld [vmem:[#allocation2 + $0x89] sm:$0xff]  ;;  %v1946_v53 = vpack.c.bf16 %v1919_v49, %v1918_v48 }
  0x40   : > { %7394 = vmatmul.msk.bf16.gmra.mxu3 %vm1859_vm1, %v1949_v8  ;;  %v7780_v8 = vunpack.c.l.bf16 %v7803_v6  ;;  %v2610_v6 = vpack.c.bf16 %v2575_v0, %v2574_v63 }
  0x41   : > { %7376 = vmatmul.msk.bf16.gmra.mxu2 %vm1859_vm1, %v2004_v11  ;;  %v1933_v11 = vld [vmem:[#allocation2 + $0xf8] sm:$0xff] }
  0x42   : > { %7385 = vmatmul.msk.bf16.gmra.mxu1 %vm1859_vm1, %v1940_v14  ;;  %1896 = vst.msk [vmem:[#allocation2 + $0x120] sm:$0xff] %vm1859_vm1, %v7780_v8  ;;  %v1953_v14 = vpack.c.bf16 %v1933_v11, %v1932_v10  ;;  %v3071_v8 = vld [vmem:[#allocation2 + $0x1c] sm:$0xff]  ;;  %v2362_v10 = vpack.c.bf16 %v2327_v3, %v2326_v2  ;;  %v2822_v11 = vld [vmem:[#allocation2 + $0x13] sm:$0xff] }
  0x43   : > { %7367 = vmatmul.msk.bf16.gmra.mxu0 %vm1859_vm1, %v1995_v15  ;;  %v1914_v15 = vld [vmem:[#allocation2 + $0x60] sm:$0xff]  ;;  %v3106_v13 = vpack.c.bf16 %v3071_v8, %v3070_v7 }
  0x44   : > { %v1944_v20 = vpack.c.bf16 %v1915_v16, %v1914_v15  ;;  %v2858_v15 = vpack.c.bf16 %v2823_v12, %v2822_v11  ;;  %v3076_v11 = vld [vmem:[#allocation2 + $0x44] sm:$0xff]  ;;  %v3077_v12 = vld [vmem:[#allocation2 + $0x4c] sm:$0xff] }
  0x49   : > { %v1992_v43 = vld [vmem:[#allocation2 + $0x119] sm:$0xff] }
  0x50   : > { %7395 = vmatmul.msk.bf16.gmra.mxu3 %vm1859_vm1, %v1950_v26  ;;  %v1990_v26 = vld [vmem:[#allocation2 + $0x109] sm:$0xff] }
  0x51   : > { %7377 = vmatmul.msk.bf16.gmra.mxu2 %vm1859_vm1, %v2005_v29  ;;  %v1917_v29 = vld [vmem:[#allocation2 + $0x78] sm:$0xff]  ;;  %v2009_v30 = vpack.c.bf16 %v1990_v26, %v1989_v25 }
  0x52   : > { %7386 = vmatmul.msk.bf16.gmra.mxu1 %vm1859_vm1, %v1941_v32  ;;  %v1972_v32 = vld [vmem:[#allocation2 + $0x79] sm:$0xff] }
  0x53   : > { %7368 = vmatmul.msk.bf16.gmra.mxu0 %vm1859_vm1, %v1996_v33  ;;  %v1945_v33 = vpack.c.bf16 %v1917_v29, %v1916_v28  ;;  %v2000_v34 = vpack.c.bf16 %v1972_v32, %v1971_v31  ;;  %v2611_v28 = vpack.c.bf16 %v2577_v24, %v2576_v23  ;;  %v3072_v29 = vld [vmem:[#allocation2 + $0x24] sm:$0xff] }
  0x54   : > { %v2824_v32 = vld [vmem:[#allocation2 + $0x23] sm:$0xff] }
  0x60   : > { %7396 = vmatmul.msk.bf16.gmra.mxu3 %vm1859_vm1, %v1951_v44  ;;  %v3181_v44 = vsel %vm2067_vm0, %v7458_v41, 0 }
  0x61   : > { %7378 = vmatmul.msk.bf16.gmra.mxu2 %vm1859_vm1, %v2006_v47  ;;  %3190 = vmatpush.bf16.msrb.mxu1 %v3181_v44  ;;  %v1955_v47 = vpack.c.bf16 %v1937_v40, %v1936_v39  ;;  %v2578_v44 = vld [vmem:[#allocation2 + $0x32] sm:$0xff] }
  0x62   : > { %7387 = vmatmul.msk.bf16.gmra.mxu1 %vm1859_vm1, %v1942_v50  ;;  %v2010_v50 = vpack.c.bf16 %v1992_v43, %v1991_v42  ;;  %v2612_v49 = vpack.c.bf16 %v2579_v45, %v2578_v44 }
  0x63   : > { %7369 = vmatmul.msk.bf16.gmra.mxu0 %vm1859_vm1, %v1997_v51  ;;  %v1973_v51 = vld [vmem:[#allocation2 + $0x81] sm:$0xff] }
  0x64   : > { %v2001_v55 = vpack.c.bf16 %v1974_v52, %v1973_v51  ;;  %v3075_v51 = vld [vmem:[#allocation2 + $0x3c] sm:$0xff] }
  0x70   : > { %7397 = vmatmul.msk.bf16.gmra.mxu3 %vm1859_vm1, %v1952_v62 }
  0x71   : > { %7379 = vmatmul.msk.bf16.gmra.mxu2 %vm1859_vm1, %v2007_v1 }
  0x72   : > { %7388 = vmatmul.msk.bf16.gmra.mxu1 %vm1859_vm1, %v1943_v4 }
  0x73   : > { %7370 = vmatmul.msk.bf16.gmra.mxu0 %vm1859_vm1, %v1998_v5 }
  0x80   : > { %7398 = vmatmul.msk.bf16.gmra.mxu3 %vm1859_vm1, %v1953_v14 }
  0x81   : > { %7380 = vmatmul.msk.bf16.gmra.mxu2 %vm1859_vm1, %v2008_v17 }
  0x82   : > { %7389 = vmatmul.msk.bf16.gmra.mxu1 %vm1859_vm1, %v1944_v20 }
  0x83   : > { %7371 = vmatmul.msk.bf16.gmra.mxu0 %vm1859_vm1, %v1999_v21 }
  0x90   : > { %7399 = vmatmul.msk.bf16.gmra.mxu3 %vm1859_vm1, %v1954_v27 }
  0x91   : > { %7381 = vmatmul.msk.bf16.gmra.mxu2 %vm1859_vm1, %v2009_v30  ;;  %v3073_v30 = vld [vmem:[#allocation2 + $0x2c] sm:$0xff] }
  0x92   : > { %7390 = vmatmul.msk.bf16.gmra.mxu1 %vm1859_vm1, %v1945_v33  ;;  %v2825_v33 = vld [vmem:[#allocation2 + $0x2b] sm:$0xff] }
  0x93   : > { %7372 = vmatmul.msk.bf16.gmra.mxu0 %vm1859_vm1, %v2000_v34  ;;  %v8059_v34 = vpack.c.bf16 %v3073_v30, %v3072_v29  ;;  %v2859_v36 = vpack.c.bf16 %v2825_v33, %v2824_v32  ;;  %v2582_v29 = vld [vmem:[#allocation2 + $0x52] sm:$0xff]  ;;  %v2583_v30 = vld [vmem:[#allocation2 + $0x5a] sm:$0xff] }
  0x9f   : > { %v2236_v54 = vpop.f32.mrf.mxu1 }
  0xa0   : > { %7400 = vmatmul.msk.bf16.gmra.mxu3 %vm1859_vm1, %v1955_v47  ;;  %v2080_v56 = vpop.f32.mrf.mxu0 }
  0xa1   : > { %7382 = vmatmul.msk.bf16.gmra.mxu2 %vm1859_vm1, %v2010_v50  ;;  %v8037_v57 = vadd.f32 %v2236_v54, %v2080_v56  ;;  %v3074_v50 = vld [vmem:[#allocation2 + $0x34] sm:$0xff] }
  0xa2   : > { %7391 = vmatmul.msk.bf16.gmra.mxu1 %vm1859_vm1, %v1946_v53  ;;  %v2826_v53 = vld [vmem:[#allocation2 + $0x33] sm:$0xff]  ;;  %v2827_v54 = vld [vmem:[#allocation2 + $0x3b] sm:$0xff] }
  0xa3   : > { %v2281_v58 = vpop.f32.mrf.mxu3  ;;  %7373 = vmatmul.msk.bf16.gmra.mxu0 %vm1859_vm1, %v2001_v55  ;;  %v8074_v55 = vpack.c.bf16 %v3075_v51, %v3074_v50 }
  0xa4   : > { %v2125_v59 = vpop.f32.mrf.mxu2 }
  0xa5   : > { %v8041_v60 = vadd.f32 %v2281_v58, %v2125_v59  ;;  %v2860_v58 = vpack.c.bf16 %v2827_v54, %v2826_v53 }
  0xa7   : > { %v2238_v61 = vpop.f32.mrf.mxu1 }
  0xa8   : > { %v2082_v62 = vpop.f32.mrf.mxu0 }
  0xa9   : > { %v8043_v1 = vadd.f32 %v2238_v61, %v2082_v62 }
  0xab   : > { %v2283_v4 = vpop.f32.mrf.mxu3 }
  0xac   : > { %v2127_v5 = vpop.f32.mrf.mxu2 }
  0xad   : > { %v8045_v9 = vadd.f32 %v2283_v4, %v2127_v5  ;;  %v2580_v4 = vld [vmem:[#allocation2 + $0x42] sm:$0xff]  ;;  %v2581_v5 = vld [vmem:[#allocation2 + $0x4a] sm:$0xff] }
  0xaf   : > { %v2241_v14 = vpop.f32.mrf.mxu1 }
  0xb0   : > { %7421 = vmatmul.msk.bf16.vlgmr.msrb.gmra.mxu3 %vm1859_vm1, %v2610_v6  ;;  %v2085_v16 = vpop.f32.mrf.mxu0 }
  0xb1   : > { %7402 = vmatmul.msk.bf16.vlgmr.msrb.gmra.mxu2 %vm1859_vm1, %v2362_v10  ;;  %v8049_v17 = vadd.f32 %v2241_v14, %v2085_v16  ;;  %v2613_v10 = vpack.c.bf16 %v2581_v5, %v2580_v4  ;;  %v2828_v14 = vld [vmem:[#allocation2 + $0x43] sm:$0xff]  ;;  %v8089_v16 = vpack.c.bf16 %v3077_v12, %v3076_v11  ;;  %v3081_v5 = vld [vmem:[#allocation2 + $0x6c] sm:$0xff] }
  0xb2   : > { %7459 = vmatmul.msk.bf16.vlgmr.msrb.gmra.mxu1 %vm1859_vm1, %v3106_v13  ;;  %v3080_v4 = vld [vmem:[#allocation2 + $0x64] sm:$0xff] }
  0xb3   : > { %v2286_v18 = vpop.f32.mrf.mxu3  ;;  %7440 = vmatmul.msk.bf16.vlgmr.msrb.gmra.mxu0 %vm1859_vm1, %v2858_v15  ;;  %v2829_v15 = vld [vmem:[#allocation2 + $0x4b] sm:$0xff]  ;;  %v8119_v11 = vpack.c.bf16 %v3081_v5, %v3080_v4  ;;  %v2588_v4 = vld [vmem:[#allocation2 + $0x82] sm:$0xff] }
  0xb4   : > { %v2130_v19 = vpop.f32.mrf.mxu2  ;;  %v2589_v5 = vld [vmem:[#allocation2 + $0x8a] sm:$0xff] }
  0xb5   : > { %v8053_v20 = vadd.f32 %v2286_v18, %v2130_v19  ;;  %v2861_v19 = vpack.c.bf16 %v2829_v15, %v2828_v14 }
  0xb7   : > { %v2243_v21 = vpop.f32.mrf.mxu1 }
  0xb8   : > { %v2087_v22 = vpop.f32.mrf.mxu0 }
  0xb9   : > { %v8055_v25 = vadd.f32 %v2243_v21, %v2087_v22 }
  0xbb   : > { %v2288_v26 = vpop.f32.mrf.mxu3 }
  0xbc   : > { %v2132_v27 = vpop.f32.mrf.mxu2 }
  0xbd   : > { %v8057_v31 = vadd.f32 %v2288_v26, %v2132_v27 }
  0xbf   : > { %v2246_v35 = vpop.f32.mrf.mxu1 }
  0xc0   : > { %7422 = vmatmul.msk.bf16.gmra.mxu3 %vm1859_vm1, %v2611_v28  ;;  %v2090_v37 = vpop.f32.mrf.mxu0 }
  0xc1   : > { %7403 = vmatmul.msk.bf16.gmra.mxu2 %vm1859_vm1, %v2610_v6  ;;  %v8063_v38 = vadd.f32 %v2246_v35, %v2090_v37  ;;  %v3078_v37 = vld [vmem:[#allocation2 + $0x54] sm:$0xff] }
  0xc2   : > { %7460 = vmatmul.msk.bf16.gmra.mxu1 %vm1859_vm1, %v8059_v34 }
  0xc3   : > { %v2291_v39 = vpop.f32.mrf.mxu3  ;;  %7441 = vmatmul.msk.bf16.gmra.mxu0 %vm1859_vm1, %v2859_v36  ;;  %v2614_v36 = vpack.c.bf16 %v2583_v30, %v2582_v29  ;;  %v2587_v29 = vld [vmem:[#allocation2 + $0x7a] sm:$0xff] }
  0xc4   : > { %v2135_v40 = vpop.f32.mrf.mxu2 }
  0xc5   : > { %v8068_v41 = vadd.f32 %v2291_v39, %v2135_v40  ;;  %v3079_v39 = vld [vmem:[#allocation2 + $0x5c] sm:$0xff] }
  0xc6   : > { %v8104_v44 = vpack.c.bf16 %v3079_v39, %v3078_v37  ;;  %v3082_v37 = vld [vmem:[#allocation2 + $0x74] sm:$0xff]  ;;  %v3083_v39 = vld [vmem:[#allocation2 + $0x7c] sm:$0xff] }
  0xc7   : > { %v2248_v42 = vpop.f32.mrf.mxu1 }
  0xc8   : > { %v2092_v43 = vpop.f32.mrf.mxu0 }
  0xc9   : > { %v8070_v46 = vadd.f32 %v2248_v42, %v2092_v43  ;;  %v2830_v42 = vld [vmem:[#allocation2 + $0x53] sm:$0xff]  ;;  %v2831_v43 = vld [vmem:[#allocation2 + $0x5b] sm:$0xff] }
  0xcb   : > { %v2293_v47 = vpop.f32.mrf.mxu3 }
  0xcc   : > { %v2137_v48 = vpop.f32.mrf.mxu2 }
  0xcd   : > { %v8072_v52 = vadd.f32 %v2293_v47, %v2137_v48  ;;  %v2862_v47 = vpack.c.bf16 %v2831_v43, %v2830_v42  ;;  %v2834_v43 = vld [vmem:[#allocation2 + $0x73] sm:$0xff] }
  0xcf   : > { %v2251_v56 = vpop.f32.mrf.mxu1 }
  0xd0   : > { %7423 = vmatmul.msk.bf16.gmra.mxu3 %vm1859_vm1, %v2612_v49  ;;  %v2095_v59 = vpop.f32.mrf.mxu0 }
  0xd1   : > { %7404 = vmatmul.msk.bf16.gmra.mxu2 %vm1859_vm1, %v2611_v28  ;;  %v8078_v61 = vadd.f32 %v2251_v56, %v2095_v59  ;;  %v2585_v59 = vld [vmem:[#allocation2 + $0x6a] sm:$0xff] }
  0xd2   : > { %7461 = vmatmul.msk.bf16.gmra.mxu1 %vm1859_vm1, %v8074_v55 }
  0xd3   : > { %v2296_v62 = vpop.f32.mrf.mxu3  ;;  %7442 = vmatmul.msk.bf16.gmra.mxu0 %vm1859_vm1, %v2860_v58  ;;  %v2584_v58 = vld [vmem:[#allocation2 + $0x62] sm:$0xff] }
  0xd4   : > { %v2140_v63 = vpop.f32.mrf.mxu2 }
  0xd5   : > { %v8083_v0 = vadd.f32 %v2296_v62, %v2140_v63 }
  0xd7   : > { %v2253_v2 = vpop.f32.mrf.mxu1 }
  0xd8   : > { %v2097_v3 = vpop.f32.mrf.mxu0 }
  0xd9   : > { %v8085_v6 = vadd.f32 %v2253_v2, %v2097_v3  ;;  %v2615_v3 = vpack.c.bf16 %v2585_v59, %v2584_v58 }
  0xdb   : > { %v2298_v7 = vpop.f32.mrf.mxu3 }
  0xdc   : > { %v2142_v8 = vpop.f32.mrf.mxu2 }
  0xdd   : > { %v8087_v13 = vadd.f32 %v2298_v7, %v2142_v8  ;;  %v2832_v8 = vld [vmem:[#allocation2 + $0x63] sm:$0xff] }
  0xdf   : > { %v2256_v18 = vpop.f32.mrf.mxu1 }
  0xe0   : > { %7424 = vmatmul.msk.bf16.gmra.mxu3 %vm1859_vm1, %v2613_v10  ;;  %v2100_v21 = vpop.f32.mrf.mxu0 }
  0xe1   : > { %7405 = vmatmul.msk.bf16.gmra.mxu2 %vm1859_vm1, %v2612_v49  ;;  %v8093_v22 = vadd.f32 %v2256_v18, %v2100_v21 }
  0xe2   : > { %7462 = vmatmul.msk.bf16.gmra.mxu1 %vm1859_vm1, %v8089_v16 }
  0xe3   : > { %v2301_v23 = vpop.f32.mrf.mxu3  ;;  %7443 = vmatmul.msk.bf16.gmra.mxu0 %vm1859_vm1, %v2861_v19 }
  0xe4   : > { %v2145_v24 = vpop.f32.mrf.mxu2 }
  0xe5   : > { %v8098_v26 = vadd.f32 %v2301_v23, %v2145_v24 }
  0xe7   : > { %v2258_v27 = vpop.f32.mrf.mxu1 }
  0xe8   : > { %v2102_v28 = vpop.f32.mrf.mxu0 }
  0xe9   : > { %v8100_v32 = vadd.f32 %v2258_v27, %v2102_v28  ;;  %v2586_v28 = vld [vmem:[#allocation2 + $0x72] sm:$0xff] }
  0xeb   : > { %v2303_v33 = vpop.f32.mrf.mxu3 }
  0xec   : > { %v2147_v35 = vpop.f32.mrf.mxu2 }
  0xed   : > { %v8102_v40 = vadd.f32 %v2303_v33, %v2147_v35 }
  0xef   : > { %v2261_v45 = vpop.f32.mrf.mxu1 }
  0xf0   : > { %7425 = vmatmul.msk.bf16.gmra.mxu3 %vm1859_vm1, %v2614_v36  ;;  %v2105_v48 = vpop.f32.mrf.mxu0 }
  0xf1   : > { %7406 = vmatmul.msk.bf16.gmra.mxu2 %vm1859_vm1, %v2613_v10  ;;  %v8108_v49 = vadd.f32 %v2261_v45, %v2105_v48  ;;  %v2833_v10 = vld [vmem:[#allocation2 + $0x6b] sm:$0xff]  ;;  %v2835_v45 = vld [vmem:[#allocation2 + $0x7b] sm:$0xff] }
  0xf2   : > { %7463 = vmatmul.msk.bf16.gmra.mxu1 %vm1859_vm1, %v8104_v44  ;;  %v2863_v14 = vpack.c.bf16 %v2833_v10, %v2832_v8 }
  0xf3   : > { %v2306_v50 = vpop.f32.mrf.mxu3  ;;  %7444 = vmatmul.msk.bf16.gmra.mxu0 %vm1859_vm1, %v2862_v47  ;;  %v8134_v47 = vpack.c.bf16 %v3083_v39, %v3082_v37 }
  0xf4   : > { %v2150_v51 = vpop.f32.mrf.mxu2 }
  0xf5   : > { %v8113_v53 = vadd.f32 %v2306_v50, %v2150_v51  ;;  %v2864_v50 = vpack.c.bf16 %v2835_v45, %v2834_v43 }
  0xf7   : > { %v2263_v54 = vpop.f32.mrf.mxu1 }
  0xf8   : > { %v2107_v56 = vpop.f32.mrf.mxu0 }
  0xf9   : > { %v8115_v62 = vadd.f32 %v2263_v54, %v2107_v56 }
  0xfb   : > { %v2308_v63 = vpop.f32.mrf.mxu3 }
  0xfc   : > { %v2152_v2 = vpop.f32.mrf.mxu2 }
  0xfd   : > { %v8117_v7 = vadd.f32 %v2308_v63, %v2152_v2 }
  0xff   : > { %v2266_v12 = vpop.f32.mrf.mxu1 }
 0x100   : > { %7426 = vmatmul.msk.bf16.gmra.mxu3 %vm1859_vm1, %v2615_v3  ;;  %v2110_v15 = vpop.f32.mrf.mxu0 }
 0x101   : > { %7407 = vmatmul.msk.bf16.gmra.mxu2 %vm1859_vm1, %v2614_v36  ;;  %v8123_v18 = vadd.f32 %v2266_v12, %v2110_v15  ;;  %v2616_v36 = vpack.c.bf16 %v2587_v29, %v2586_v28  ;;  %v3085_v15 = vld [vmem:[#allocation2 + $0x8c] sm:$0xff] }
 0x102   : > { %7464 = vmatmul.msk.bf16.gmra.mxu1 %vm1859_vm1, %v8119_v11 }
 0x103   : > { %v2311_v19 = vpop.f32.mrf.mxu3  ;;  %7445 = vmatmul.msk.bf16.gmra.mxu0 %vm1859_vm1, %v2863_v14  ;;  %v3084_v14 = vld [vmem:[#allocation2 + $0x84] sm:$0xff] }
 0x104   : > { %v2155_v21 = vpop.f32.mrf.mxu2 }
 0x105   : > { %v8128_v23 = vadd.f32 %v2311_v19, %v2155_v21  ;;  %v2836_v21 = vld [vmem:[#allocation2 + $0x83] sm:$0xff] }
 0x107   : > { %v2268_v24 = vpop.f32.mrf.mxu1 }
 0x108   : > { %v2112_v27 = vpop.f32.mrf.mxu0 }
 0x109   : > { %v8130_v30 = vadd.f32 %v2268_v24, %v2112_v27  ;;  %v2837_v24 = vld [vmem:[#allocation2 + $0x8b] sm:$0xff]  ;;  %v8149_v27 = vpack.c.bf16 %v3085_v15, %v3084_v14 }
 0x10a   : > { %v2865_v29 = vpack.c.bf16 %v2837_v24, %v2836_v21 }
 0x10b   : > { %v2313_v33 = vpop.f32.mrf.mxu3 }
 0x10c   : > { %v2157_v35 = vpop.f32.mrf.mxu2 }
 0x10d   : > { %v8132_v42 = vadd.f32 %v2313_v33, %v2157_v35 }
 0x10f   : > { %v2271_v48 = vpop.f32.mrf.mxu1 }
 0x110   : > { %7427 = vmatmul.msk.bf16.gmra.mxu3 %vm1859_vm1, %v2616_v36  ;;  %v2115_v51 = vpop.f32.mrf.mxu0 }
 0x111   : > { %7408 = vmatmul.msk.bf16.gmra.mxu2 %vm1859_vm1, %v2615_v3  ;;  %v8138_v54 = vadd.f32 %v2271_v48, %v2115_v51  ;;  %v2617_v3 = vpack.c.bf16 %v2589_v5, %v2588_v4  ;;  %v2591_v51 = vld [vmem:[#allocation2 + $0x9a] sm:$0xff] }
 0x112   : > { %7465 = vmatmul.msk.bf16.gmra.mxu1 %vm1859_vm1, %v8134_v47  ;;  %v3087_v4 = vld [vmem:[#allocation2 + $0x9c] sm:$0xff] }
 0x113   : > { %v2316_v56 = vpop.f32.mrf.mxu3  ;;  %7446 = vmatmul.msk.bf16.gmra.mxu0 %vm1859_vm1, %v2864_v50  ;;  %v2590_v50 = vld [vmem:[#allocation2 + $0x92] sm:$0xff] }
 0x114   : > { %v2160_v58 = vpop.f32.mrf.mxu2 }
 0x115   : > { %v8143_v59 = vadd.f32 %v2316_v56, %v2160_v58 }
 0x117   : > { %v2273_v63 = vpop.f32.mrf.mxu1 }
 0x118   : > { %v2117_v2 = vpop.f32.mrf.mxu0 }
 0x119   : > { %v8145_v8 = vadd.f32 %v2273_v63, %v2117_v2  ;;  %v3086_v2 = vld [vmem:[#allocation2 + $0x94] sm:$0xff] }
 0x11a   : > { %v8164_v14 = vpack.c.bf16 %v3087_v4, %v3086_v2  ;;  %v3088_v4 = vld [vmem:[#allocation2 + $0xa4] sm:$0xff] }
 0x11b   : > { %v2318_v10 = vpop.f32.mrf.mxu3 }
 0x11c   : > { %v2162_v12 = vpop.f32.mrf.mxu2  ;;  %11216 = vst [vmem:[#allocation6_spill] sm:$0xff] %v8164_v14 }
 0x11d   : > { %v8147_v19 = vadd.f32 %v2318_v10, %v2162_v12  ;;  %v2838_v10 = vld [vmem:[#allocation2 + $0x93] sm:$0xff]  ;;  %v2839_v12 = vld [vmem:[#allocation2 + $0x9b] sm:$0xff] }
 0x11e   : > { %v2866_v15 = vpack.c.bf16 %v2839_v12, %v2838_v10  ;;  %v3089_v10 = vld [vmem:[#allocation2 + $0xac] sm:$0xff] }
 0x11f   : > { %v2276_v28 = vpop.f32.mrf.mxu1 }
 0x120   : > { %7428 = vmatmul.msk.bf16.gmra.mxu3 %vm1859_vm1, %v2617_v3  ;;  %v2120_v33 = vpop.f32.mrf.mxu0 }
 0x121   : > { %7409 = vmatmul.msk.bf16.gmra.mxu2 %vm1859_vm1, %v2616_v36  ;;  %v8153_v35 = vadd.f32 %v2276_v28, %v2120_v33  ;;  %v2618_v36 = vpack.c.bf16 %v2591_v51, %v2590_v50  ;;  %v2592_v50 = vld [vmem:[#allocation2 + $0xa2] sm:$0xff]  ;;  %v2593_v51 = vld [vmem:[#allocation2 + $0xaa] sm:$0xff] }
 0x122   : > { %7466 = vmatmul.msk.bf16.gmra.mxu1 %vm1859_vm1, %v8149_v27 }
 0x123   : > { %v2321_v37 = vpop.f32.mrf.mxu3  ;;  %7447 = vmatmul.msk.bf16.gmra.mxu0 %vm1859_vm1, %v2865_v29 }
 0x124   : > { %v2165_v39 = vpop.f32.mrf.mxu2 }
 0x125   : > { %v8158_v43 = vadd.f32 %v2321_v37, %v2165_v39 }
 0x127   : > { %11214 = vst [vmem:[#allocation4_spill] sm:$0xff] %v8158_v43  ;;  %v2278_v45 = vpop.f32.mrf.mxu1 }
 0x128   : > { %v2122_v48 = vpop.f32.mrf.mxu0 }
 0x129   : > { %v8160_v56 = vadd.f32 %v2278_v45, %v2122_v48 }
 0x12b   : > { %v2323_v58 = vpop.f32.mrf.mxu3 }
 0x12c   : > { %v2167_v63 = vpop.f32.mrf.mxu2 }
 0x12d   : > { %v8162_v5 = vadd.f32 %v2323_v58, %v2167_v63 }
 0x12f   : > { %11215 = vst [vmem:[#allocation5_spill] sm:$0xff] %v8162_v5  ;;  %v3192_v21 = vpop.f32.mrf.mxu1  ;;  %v2840_v5 = vld [vmem:[#allocation2 + $0xa3] sm:$0xff] }
 0x130   : > { %7429 = vmatmul.msk.bf16.gmra.mxu3 %vm1859_vm1, %v2618_v36  ;;  %v2944_v24 = vpop.f32.mrf.mxu0 }
 0x131   : > { %7410 = vmatmul.msk.bf16.gmra.mxu2 %vm1859_vm1, %v2617_v3  ;;  %v2619_v3 = vpack.c.bf16 %v2593_v51, %v2592_v50 }
 0x132   : > { %7467 = vmatmul.msk.bf16.gmra.mxu1 %vm1859_vm1, %v8164_v14  ;;  %v8175_v14 = vpack.c.bf16 %v3089_v10, %v3088_v4  ;;  %v3091_v10 = vld [vmem:[#allocation2 + $0xbc] sm:$0xff] }
 0x133   : > { %v2696_v28 = vpop.f32.mrf.mxu3  ;;  %7448 = vmatmul.msk.bf16.gmra.mxu0 %vm1859_vm1, %v2866_v15  ;;  %v2841_v15 = vld [vmem:[#allocation2 + $0xab] sm:$0xff] }
 0x134   : > { %v2448_v29 = vpop.f32.mrf.mxu2 }
 0x135   : > { %v2538_v33 = vadd.f32 %v2448_v29, %v8037_v57  ;;  %v2867_v57 = vpack.c.bf16 %v2841_v15, %v2840_v5  ;;  %v2842_v15 = vld [vmem:[#allocation2 + $0xb3] sm:$0xff] }
 0x137   : > { %v2786_v37 = vadd.f32 %v2696_v28, %v2538_v33  ;;  %v3194_v39 = vpop.f32.mrf.mxu1 }
 0x138   : > { %v2946_v45 = vpop.f32.mrf.mxu0 }
 0x139   : > { %v3034_v48 = vadd.f32 %v2944_v24, %v2786_v37 }
 0x13b   : > { %v8172_v58 = vadd.f32 %v3192_v21, %v3034_v48  ;;  %v2698_v63 = vpop.f32.mrf.mxu3 }
 0x13c   : > { %v2450_v2 = vpop.f32.mrf.mxu2 }
 0x13d   : > { %v2539_v12 = vadd.f32 %v2450_v2, %v8043_v1  ;;  %v2595_v2 = vld [vmem:[#allocation2 + $0xba] sm:$0xff] }
 0x13f   : > { %v2787_v43 = vadd.f32 %v2698_v63, %v2539_v12  ;;  %v3197_v24 = vpop.f32.mrf.mxu1  ;;  %v2594_v63 = vld [vmem:[#allocation2 + $0xb2] sm:$0xff] }
 0x140   : > { %7430 = vmatmul.msk.bf16.gmra.mxu3 %vm1859_vm1, %v2619_v3  ;;  %v2949_v28 = vpop.f32.mrf.mxu0 }
 0x141   : > { %7411 = vmatmul.msk.bf16.gmra.mxu2 %vm1859_vm1, %v2618_v36  ;;  %v3035_v21 = vadd.f32 %v2946_v45, %v2787_v43  ;;  %v3090_v45 = vld [vmem:[#allocation2 + $0xb4] sm:$0xff] }
 0x142   : > { %7468 = vmatmul.msk.bf16.gmra.mxu1 %vm1859_vm1, %v8175_v14 }
 0x143   : > { %v8179_v29 = vadd.f32 %v3194_v39, %v3035_v21  ;;  %v2701_v33 = vpop.f32.mrf.mxu3  ;;  %7449 = vmatmul.msk.bf16.gmra.mxu0 %vm1859_vm1, %v2867_v57  ;;  %v2620_v39 = vpack.c.bf16 %v2595_v2, %v2594_v63  ;;  %v2843_v57 = vld [vmem:[#allocation2 + $0xbb] sm:$0xff] }
 0x144   : > { %v2453_v1 = vpop.f32.mrf.mxu2 }
 0x145   : > { %11217 = vst [vmem:[#allocation7_spill] sm:$0xff] %v8179_v29  ;;  %v2540_v37 = vadd.f32 %v2453_v1, %v8049_v17  ;;  %v3116_v29 = vpack.c.bf16 %v3091_v10, %v3090_v45  ;;  %v2868_v17 = vpack.c.bf16 %v2843_v57, %v2842_v15  ;;  %v2597_v45 = vld [vmem:[#allocation2 + $0xca] sm:$0xff] }
 0x146   : > { %v3093_v15 = vld [vmem:[#allocation2 + $0xcc] sm:$0xff]  ;;  %v2844_v57 = vld [vmem:[#allocation2 + $0xc3] sm:$0xff] }
 0x147   : > { %v2788_v48 = vadd.f32 %v2701_v33, %v2540_v37  ;;  %v3199_v50 = vpop.f32.mrf.mxu1 }
 0x148   : > { %v2951_v51 = vpop.f32.mrf.mxu0 }
 0x149   : > { %v3036_v5 = vadd.f32 %v2949_v28, %v2788_v48 }
 0x14b   : > { %v8185_v4 = vadd.f32 %v3197_v24, %v3036_v5  ;;  %v2703_v43 = vpop.f32.mrf.mxu3 }
 0x14c   : > { %v2455_v36 = vpop.f32.mrf.mxu2 }
 0x14d   : > { %v2541_v12 = vadd.f32 %v2455_v36, %v8055_v25  ;;  %v2596_v36 = vld [vmem:[#allocation2 + $0xc2] sm:$0xff] }
 0x14f   : > { %v2789_v21 = vadd.f32 %v2703_v43, %v2541_v12  ;;  %v3202_v33 = vpop.f32.mrf.mxu1  ;;  %v3092_v12 = vld [vmem:[#allocation2 + $0xc4] sm:$0xff] }
 0x150   : > { %7431 = vmatmul.msk.bf16.gmra.mxu3 %vm1859_vm1, %v2620_v39  ;;  %v2954_v28 = vpop.f32.mrf.mxu0 }
 0x151   : > { %7412 = vmatmul.msk.bf16.gmra.mxu2 %vm1859_vm1, %v2619_v3  ;;  %v3037_v24 = vadd.f32 %v2951_v51, %v2789_v21  ;;  %v2845_v21 = vld [vmem:[#allocation2 + $0xcb] sm:$0xff] }
 0x152   : > { %7469 = vmatmul.msk.bf16.gmra.mxu1 %vm1859_vm1, %v3116_v29 }
 0x153   : > { %v8190_v1 = vadd.f32 %v3199_v50, %v3037_v24  ;;  %v2706_v37 = vpop.f32.mrf.mxu3  ;;  %7450 = vmatmul.msk.bf16.gmra.mxu0 %vm1859_vm1, %v2868_v17  ;;  %v2621_v50 = vpack.c.bf16 %v2597_v45, %v2596_v36  ;;  %v3117_v24 = vpack.c.bf16 %v3093_v15, %v3092_v12  ;;  %v2599_v12 = vld [vmem:[#allocation2 + $0xda] sm:$0xff] }
 0x154   : > { %v2458_v25 = vpop.f32.mrf.mxu2 }
 0x155   : > { %v2542_v48 = vadd.f32 %v2458_v25, %v8063_v38  ;;  %v2869_v38 = vpack.c.bf16 %v2845_v21, %v2844_v57  ;;  %v3095_v57 = vld [vmem:[#allocation2 + $0xdc] sm:$0xff] }
 0x157   : > { %v2790_v5 = vadd.f32 %v2706_v37, %v2542_v48  ;;  %v3204_v63 = vpop.f32.mrf.mxu1 }
 0x158   : > { %v2956_v2 = vpop.f32.mrf.mxu0 }
 0x159   : > { %v3038_v43 = vadd.f32 %v2954_v28, %v2790_v5 }
 0x15b   : > { %v8195_v10 = vadd.f32 %v3202_v33, %v3038_v43  ;;  %v2708_v3 = vpop.f32.mrf.mxu3 }
 0x15c   : > { %v2460_v51 = vpop.f32.mrf.mxu2 }
 0x15d   : > { %v2543_v29 = vadd.f32 %v2460_v51, %v8070_v46  ;;  %v2598_v51 = vld [vmem:[#allocation2 + $0xd2] sm:$0xff] }
 0x15f   : > { %v2791_v17 = vadd.f32 %v2708_v3, %v2543_v29  ;;  %v3207_v37 = vpop.f32.mrf.mxu1  ;;  %v3094_v29 = vld [vmem:[#allocation2 + $0xd4] sm:$0xff] }
 0x160   : > { %7432 = vmatmul.msk.bf16.gmra.mxu3 %vm1859_vm1, %v2621_v50  ;;  %v2959_v28 = vpop.f32.mrf.mxu0 }
 0x161   : > { %7413 = vmatmul.msk.bf16.gmra.mxu2 %vm1859_vm1, %v2620_v39  ;;  %v3039_v33 = vadd.f32 %v2956_v2, %v2791_v17  ;;  %v2846_v17 = vld [vmem:[#allocation2 + $0xd3] sm:$0xff] }
 0x162   : > { %7470 = vmatmul.msk.bf16.gmra.mxu1 %vm1859_vm1, %v3117_v24  ;;  %v2847_v24 = vld [vmem:[#allocation2 + $0xdb] sm:$0xff] }
 0x163   : > { %v8200_v25 = vadd.f32 %v3204_v63, %v3039_v33  ;;  %v2711_v48 = vpop.f32.mrf.mxu3  ;;  %7451 = vmatmul.msk.bf16.gmra.mxu0 %vm1859_vm1, %v2869_v38  ;;  %v2622_v63 = vpack.c.bf16 %v2599_v12, %v2598_v51  ;;  %v3118_v33 = vpack.c.bf16 %v3095_v57, %v3094_v29  ;;  %v2601_v29 = vld [vmem:[#allocation2 + $0xea] sm:$0xff] }
 0x164   : > { %v2463_v46 = vpop.f32.mrf.mxu2 }
 0x165   : > { %v2544_v5 = vadd.f32 %v2463_v46, %v8078_v61  ;;  %v2870_v61 = vpack.c.bf16 %v2847_v24, %v2846_v17  ;;  %v3097_v17 = vld [vmem:[#allocation2 + $0xec] sm:$0xff] }
 0x167   : > { %v2792_v43 = vadd.f32 %v2711_v48, %v2544_v5  ;;  %v3209_v36 = vpop.f32.mrf.mxu1 }
 0x168   : > { %v2961_v45 = vpop.f32.mrf.mxu0 }
 0x169   : > { %v3040_v3 = vadd.f32 %v2959_v28, %v2792_v43 }
 0x16b   : > { %v8205_v15 = vadd.f32 %v3207_v37, %v3040_v3  ;;  %v2713_v39 = vpop.f32.mrf.mxu3 }
 0x16c   : > { %v2465_v2 = vpop.f32.mrf.mxu2 }
 0x16d   : > { %v2545_v21 = vadd.f32 %v2465_v2, %v8085_v6  ;;  %v2600_v2 = vld [vmem:[#allocation2 + $0xe2] sm:$0xff] }
 0x16f   : > { %v2793_v38 = vadd.f32 %v2713_v39, %v2545_v21  ;;  %v3212_v48 = vpop.f32.mrf.mxu1  ;;  %v3096_v21 = vld [vmem:[#allocation2 + $0xe4] sm:$0xff] }
 0x170   : > { %7433 = vmatmul.msk.bf16.gmra.mxu3 %vm1859_vm1, %v2622_v63  ;;  %v2964_v28 = vpop.f32.mrf.mxu0 }
 0x171   : > { %7414 = vmatmul.msk.bf16.gmra.mxu2 %vm1859_vm1, %v2621_v50  ;;  %v3041_v37 = vadd.f32 %v2961_v45, %v2793_v38  ;;  %v2848_v38 = vld [vmem:[#allocation2 + $0xe3] sm:$0xff] }
 0x172   : > { %7471 = vmatmul.msk.bf16.gmra.mxu1 %vm1859_vm1, %v3118_v33  ;;  %v2849_v33 = vld [vmem:[#allocation2 + $0xeb] sm:$0xff] }
 0x173   : > { %v8210_v46 = vadd.f32 %v3209_v36, %v3041_v37  ;;  %v2716_v5 = vpop.f32.mrf.mxu3  ;;  %7452 = vmatmul.msk.bf16.gmra.mxu0 %vm1859_vm1, %v2870_v61  ;;  %v2623_v36 = vpack.c.bf16 %v2601_v29, %v2600_v2  ;;  %v3119_v37 = vpack.c.bf16 %v3097_v17, %v3096_v21  ;;  %v2603_v21 = vld [vmem:[#allocation2 + $0xfa] sm:$0xff] }
 0x174   : > { %v2468_v6 = vpop.f32.mrf.mxu2 }
 0x175   : > { %v2546_v43 = vadd.f32 %v2468_v6, %v8093_v22  ;;  %v2871_v22 = vpack.c.bf16 %v2849_v33, %v2848_v38  ;;  %v3099_v38 = vld [vmem:[#allocation2 + $0xfc] sm:$0xff] }
 0x177   : > { %v2794_v3 = vadd.f32 %v2716_v5, %v2546_v43  ;;  %v3214_v51 = vpop.f32.mrf.mxu1 }
 0x178   : > { %v2966_v12 = vpop.f32.mrf.mxu0 }
 0x179   : > { %v3042_v39 = vadd.f32 %v2964_v28, %v2794_v3 }
 0x17b   : > { %v8215_v57 = vadd.f32 %v3212_v48, %v3042_v39  ;;  %v2718_v50 = vpop.f32.mrf.mxu3 }
 0x17c   : > { %v2470_v45 = vpop.f32.mrf.mxu2 }
 0x17d   : > { %v2547_v24 = vadd.f32 %v2470_v45, %v8100_v32  ;;  %v2602_v45 = vld [vmem:[#allocation2 + $0xf2] sm:$0xff] }
 0x17f   : > { %v2795_v61 = vadd.f32 %v2718_v50, %v2547_v24  ;;  %v3217_v5 = vpop.f32.mrf.mxu1  ;;  %v3098_v24 = vld [vmem:[#allocation2 + $0xf4] sm:$0xff] }
 0x180   : > { %7434 = vmatmul.msk.bf16.gmra.mxu3 %vm1859_vm1, %v2623_v36  ;;  %v2969_v28 = vpop.f32.mrf.mxu0 }
 0x181   : > { %7415 = vmatmul.msk.bf16.gmra.mxu2 %vm1859_vm1, %v2622_v63  ;;  %v3043_v48 = vadd.f32 %v2966_v12, %v2795_v61  ;;  %v2850_v61 = vld [vmem:[#allocation2 + $0xf3] sm:$0xff] }
 0x182   : > { %7472 = vmatmul.msk.bf16.gmra.mxu1 %vm1859_vm1, %v3119_v37  ;;  %v2851_v37 = vld [vmem:[#allocation2 + $0xfb] sm:$0xff] }
 0x183   : > { %v8220_v6 = vadd.f32 %v3214_v51, %v3043_v48  ;;  %v2721_v43 = vpop.f32.mrf.mxu3  ;;  %7453 = vmatmul.msk.bf16.gmra.mxu0 %vm1859_vm1, %v2871_v22  ;;  %v2624_v51 = vpack.c.bf16 %v2603_v21, %v2602_v45  ;;  %v2872_v48 = vpack.c.bf16 %v2851_v37, %v2850_v61  ;;  %v3100_v37 = vld [vmem:[#allocation2 + $0x104] sm:$0xff] }
 0x184   : > { %v2473_v32 = vpop.f32.mrf.mxu2 }
 0x185   : > { %v2548_v3 = vadd.f32 %v2473_v32, %v8108_v49  ;;  %v3120_v49 = vpack.c.bf16 %v3099_v38, %v3098_v24 }
 0x187   : > { %v2796_v39 = vadd.f32 %v2721_v43, %v2548_v3  ;;  %v3219_v2 = vpop.f32.mrf.mxu1 }
 0x188   : > { %v2971_v29 = vpop.f32.mrf.mxu0 }
 0x189   : > { %v3044_v50 = vadd.f32 %v2969_v28, %v2796_v39 }
 0x18b   : > { %v8225_v17 = vadd.f32 %v3217_v5, %v3044_v50  ;;  %v2723_v63 = vpop.f32.mrf.mxu3  ;;  %v7804_v50 = vld [vmem:[%s7924_s27 + $0x98] sm:$0xff]  }
 0x18c   : > { %v2475_v12 = vpop.f32.mrf.mxu2  ;;  %v7784_v45 = vunpack.c.l.bf16 %v7804_v50 }
 0x18d   : > { %v2549_v33 = vadd.f32 %v2475_v12, %v8115_v62 }
 0x18e   : > { %1898 = vst.msk [vmem:[#allocation2 + $0x130] sm:$0xff] %vm1859_vm1, %v7784_v45 }
 0x18f   : > { %v2797_v22 = vadd.f32 %v2723_v63, %v2549_v33  ;;  %v3222_v28 = vpop.f32.mrf.mxu1 }
 0x190   : > { %7435 = vmatmul.msk.bf16.gmra.mxu3 %vm1859_vm1, %v2624_v51  ;;  %v2974_v43 = vpop.f32.mrf.mxu0 }
 0x191   : > { %7416 = vmatmul.msk.bf16.gmra.mxu2 %vm1859_vm1, %v2623_v36  ;;  %v3045_v5 = vadd.f32 %v2971_v29, %v2797_v22  ;;  %v2604_v29 = vld [vmem:[#allocation2 + $0x102] sm:$0xff]  ;;  %v3101_v22 = vld [vmem:[#allocation2 + $0x10c] sm:$0xff] }
 0x192   : > { %7473 = vmatmul.msk.bf16.gmra.mxu1 %vm1859_vm1, %v3120_v49  ;;  %v2852_v49 = vld [vmem:[#allocation2 + $0x103] sm:$0xff] }
 0x193   : > { %v8230_v32 = vadd.f32 %v3219_v2, %v3045_v5  ;;  %v2726_v3 = vpop.f32.mrf.mxu3  ;;  %7454 = vmatmul.msk.bf16.gmra.mxu0 %vm1859_vm1, %v2872_v48  ;;  %v2605_v2 = vld [vmem:[#allocation2 + $0x10a] sm:$0xff] }
 0x194   : > { %v2478_v62 = vpop.f32.mrf.mxu2  ;;  %v2625_v61 = vpack.c.bf16 %v2605_v2, %v2604_v29  ;;  %v2853_v48 = vld [vmem:[#allocation2 + $0x10b] sm:$0xff] }
 0x195   : > { %v2550_v39 = vadd.f32 %v2478_v62, %v8123_v18  ;;  %v2873_v62 = vpack.c.bf16 %v2853_v48, %v2852_v49  ;;  %v3103_v49 = vld [vmem:[#allocation2 + $0x11c] sm:$0xff] }
 0x197   : > { %v2798_v21 = vadd.f32 %v2726_v3, %v2550_v39  ;;  %v8236_v63 = vpop.f32.mrf.mxu1  ;;  %v3121_v3 = vpack.c.bf16 %v3101_v22, %v3100_v37 }
 0x198   : > { %v2976_v12 = vpop.f32.mrf.mxu0 }
 0x199   : > { %v3046_v36 = vadd.f32 %v2974_v43, %v2798_v21 }
 0x19b   : > { %v8239_v24 = vadd.f32 %v3222_v28, %v3046_v36  ;;  %v2728_v38 = vpop.f32.mrf.mxu3 }
 0x19c   : > { %v2480_v33 = vpop.f32.mrf.mxu2 }
 0x19d   : > { %11218 = vst [vmem:[#allocation8_spill] sm:$0xff] %v8239_v24  ;;  %v2551_v18 = vadd.f32 %v2480_v33, %v8130_v30  ;;  %v2607_v33 = vld [vmem:[#allocation2 + $0x11a] sm:$0xff] }
 0x19f   : > { %v2799_v5 = vadd.f32 %v2728_v38, %v2551_v18  ;;  %v3227_v39 = vpop.f32.mrf.mxu1  ;;  %v2606_v38 = vld [vmem:[#allocation2 + $0x112] sm:$0xff] }
 0x1a0   : > { %7436 = vmatmul.msk.bf16.gmra.mxu3 %vm1859_vm1, %v2625_v61  ;;  %v2979_v43 = vpop.f32.mrf.mxu0  ;;  %v2626_v22 = vpack.c.bf16 %v2607_v33, %v2606_v38  ;;  %v3102_v18 = vld [vmem:[#allocation2 + $0x114] sm:$0xff] }
 0x1a1   : > { %7417 = vmatmul.msk.bf16.gmra.mxu2 %vm1859_vm1, %v2624_v51  ;;  %v8244_v28 = vadd.f32 %v2976_v12, %v2799_v5  ;;  %v2854_v5 = vld [vmem:[#allocation2 + $0x113] sm:$0xff] }
 0x1a2   : > { %7474 = vmatmul.msk.bf16.gmra.mxu1 %vm1859_vm1, %v3121_v3  ;;  %v2855_v3 = vld [vmem:[#allocation2 + $0x11b] sm:$0xff] }
 0x1a3   : > { %v2731_v50 = vpop.f32.mrf.mxu3  ;;  %7455 = vmatmul.msk.bf16.gmra.mxu0 %vm1859_vm1, %v2873_v62 }
 0x1a4   : > { %v2483_v45 = vpop.f32.mrf.mxu2 }
 0x1a5   : > { %v2552_v30 = vadd.f32 %v2483_v45, %v8138_v54  ;;  %v3122_v54 = vpack.c.bf16 %v3103_v49, %v3102_v18  ;;  %v2609_v18 = vld [vmem:[#allocation2 + $0x12a] sm:$0xff] }
 0x1a7   : > { %v2800_v21 = vadd.f32 %v2731_v50, %v2552_v30  ;;  %v8249_v36 = vpop.f32.mrf.mxu1  ;;  %v2874_v50 = vpack.c.bf16 %v2855_v3, %v2854_v5  ;;  %v3104_v5 = vld [vmem:[#allocation2 + $0x124] sm:$0xff]  ;;  %v3105_v3 = vld [vmem:[#allocation2 + $0x12c] sm:$0xff] }
 0x1a8   : > { %v2981_v29 = vpop.f32.mrf.mxu0 }
 0x1a9   : > { %v3048_v2 = vadd.f32 %v2979_v43, %v2800_v21 }
 0x1ab   : > { %v8251_v37 = vadd.f32 %v3227_v39, %v3048_v2  ;;  %v2733_v51 = vpop.f32.mrf.mxu3 }
 0x1ac   : > { %v2485_v12 = vpop.f32.mrf.mxu2 }
 0x1ad   : > { %11219 = vst [vmem:[#allocation9_spill] sm:$0xff] %v8251_v37  ;;  %v2553_v48 = vadd.f32 %v2485_v12, %v8145_v8  ;;  %v2608_v12 = vld [vmem:[#allocation2 + $0x122] sm:$0xff] }
 0x1af   : > { %v2801_v62 = vadd.f32 %v2733_v51, %v2553_v48  ;;  %v3232_v45 = vpop.f32.mrf.mxu1  ;;  %v2627_v48 = vpack.c.bf16 %v2609_v18, %v2608_v12 }
 0x1b0   : > { %7437 = vmatmul.msk.bf16.gmra.mxu3 %vm1859_vm1, %v2626_v22  ;;  %v2984_v43 = vpop.f32.mrf.mxu0 }
 0x1b1   : > { %7418 = vmatmul.msk.bf16.gmra.mxu2 %vm1859_vm1, %v2625_v61  ;;  %v8256_v39 = vadd.f32 %v2981_v29, %v2801_v62 }
 0x1b2   : > { %7475 = vmatmul.msk.bf16.gmra.mxu1 %vm1859_vm1, %v3122_v54  ;;  %v2856_v54 = vld [vmem:[#allocation2 + $0x123] sm:$0xff] }
 0x1b3   : > { %v2736_v30 = vpop.f32.mrf.mxu3  ;;  %7456 = vmatmul.msk.bf16.gmra.mxu0 %vm1859_vm1, %v2874_v50  ;;  %v2857_v50 = vld [vmem:[#allocation2 + $0x12b] sm:$0xff] }
 0x1b4   : > { %v2488_v21 = vpop.f32.mrf.mxu2 }
 0x1b5   : > { %v2554_v8 = vadd.f32 %v2488_v21, %v8153_v35  ;;  %v3123_v35 = vpack.c.bf16 %v3105_v3, %v3104_v5 }
 0x1b7   : > { %v2802_v2 = vadd.f32 %v2736_v30, %v2554_v8  ;;  %v8261_v38 = vpop.f32.mrf.mxu1  ;;  %v2875_v30 = vpack.c.bf16 %v2857_v50, %v2856_v54  ;;  %v3815_v54 = vld [vmem:[#allocation2 + $0x2e] sm:$0xff] }
 0x1b8   : > { %v2986_v33 = vpop.f32.mrf.mxu0 }
 0x1b9   : > { %v3050_v51 = vadd.f32 %v2984_v43, %v2802_v2 }
 0x1bb   : > { %v8263_v49 = vadd.f32 %v3232_v45, %v3050_v51  ;;  %v2738_v61 = vpop.f32.mrf.mxu3 }
 0x1bc   : > { %v2490_v29 = vpop.f32.mrf.mxu2 }
 0x1bd   : > { %11220 = vst [vmem:[#allocation10_spill] sm:$0xff] %v8263_v49  ;;  %v2555_v62 = vadd.f32 %v2490_v29, %v8160_v56  ;;  %v3566_v29 = vld [vmem:[#allocation2 + $0x25] sm:$0xff] }
 0x1bf   : > { %v2803_v37 = vadd.f32 %v2738_v61, %v2555_v62  ;;  %v3237_v21 = vpop.f32.mrf.mxu1  ;;  %v3814_v62 = vld [vmem:[#allocation2 + $0x26] sm:$0xff] }
 0x1c0   : > { %7438 = vmatmul.msk.bf16.gmra.mxu3 %vm1859_vm1, %v2627_v48  ;;  %v2989_v43 = vpop.f32.mrf.mxu0  ;;  %v3567_v48 = vld [vmem:[#allocation2 + $0x2d] sm:$0xff] }
 0x1c1   : > { %7419 = vmatmul.msk.bf16.gmra.mxu2 %vm1859_vm1, %v2626_v22  ;;  %v8268_v45 = vadd.f32 %v2986_v33, %v2803_v37  ;;  %v3602_v33 = vpack.c.bf16 %v3567_v48, %v3566_v29  ;;  %v3569_v29 = vld [vmem:[#allocation2 + $0x3d] sm:$0xff] }
 0x1c2   : > { %7476 = vmatmul.msk.bf16.gmra.mxu1 %vm1859_vm1, %v3123_v35 }
 0x1c3   : > { %v2741_v8 = vpop.f32.mrf.mxu3  ;;  %7457 = vmatmul.msk.bf16.gmra.mxu0 %vm1859_vm1, %v2875_v30 }
 0x1c4   : > { %v2493_v2 = vpop.f32.mrf.mxu2 }
 0x1c5   : > { %v2556_v56 = vadd.f32 %v2493_v2, %v8041_v60  ;;  %v3850_v60 = vpack.c.bf16 %v3815_v54, %v3814_v62  ;;  %v3817_v62 = vld [vmem:[#allocation2 + $0x3e] sm:$0xff] }
 0x1c7   : > { %v2804_v51 = vadd.f32 %v2741_v8, %v2556_v56  ;;  %v8273_v12 = vpop.f32.mrf.mxu1 }
 0x1c8   : > { %v2991_v18 = vpop.f32.mrf.mxu0 }
 0x1c9   : > { %v3052_v61 = vadd.f32 %v2989_v43, %v2804_v51 }
 0x1cb   : > { %v8275_v5 = vadd.f32 %v3237_v21, %v3052_v61  ;;  %v2743_v22 = vpop.f32.mrf.mxu3  ;;  %v3568_v61 = vld [vmem:[#allocation2 + $0x35] sm:$0xff] }
 0x1cc   : > { %v2495_v37 = vpop.f32.mrf.mxu2 }
 0x1cd   : > { %11221 = vst [vmem:[#allocation11_spill] sm:$0xff] %v8275_v5  ;;  %v2557_v3 = vadd.f32 %v2495_v37, %v8045_v9 }
 0x1cf   : > { %v2805_v50 = vadd.f32 %v2743_v22, %v2557_v3  ;;  %v3242_v35 = vpop.f32.mrf.mxu1  ;;  %v3816_v3 = vld [vmem:[#allocation2 + $0x36] sm:$0xff] }
 0x1d0   : > { %7497 = vmatmul.msk.bf16.vlgmr.msra.gmra.mxu3 %vm1859_vm1, %v3602_v33  ;;  %v2994_v30 = vpop.f32.mrf.mxu0 }
 0x1d1   : > { %7478 = vmatmul.msk.bf16.vlgmr.msra.gmra.mxu2 %vm1859_vm1, %v8059_v34  ;;  %v8281_v43 = vadd.f32 %v2991_v18, %v2805_v50  ;;  %v3603_v34 = vpack.c.bf16 %v3569_v29, %v3568_v61  ;;  %v3571_v61 = vld [vmem:[#allocation2 + $0x4d] sm:$0xff] }
 0x1d3   : > { %v2746_v21 = vpop.f32.mrf.mxu3  ;;  %7516 = vmatmul.msk.bf16.vlgmr.msra.gmra.mxu0 %vm1859_vm1, %v3850_v60 }
 0x1d4   : > { %v2498_v8 = vpop.f32.mrf.mxu2 }
 0x1d5   : > { %v2558_v2 = vadd.f32 %v2498_v8, %v8053_v20  ;;  %v3851_v20 = vpack.c.bf16 %v3817_v62, %v3816_v3 }
 0x1d7   : > { %v2806_v9 = vadd.f32 %v2746_v21, %v2558_v2  ;;  %v8285_v48 = vpop.f32.mrf.mxu1 }
 0x1d8   : > { %v2996_v56 = vpop.f32.mrf.mxu0 }
 0x1d9   : > { %v3054_v51 = vadd.f32 %v2994_v30, %v2806_v9 }
 0x1db   : > { %v8287_v22 = vadd.f32 %v3242_v35, %v3054_v51  ;;  %v2748_v37 = vpop.f32.mrf.mxu3  ;;  %v3570_v51 = vld [vmem:[#allocation2 + $0x45] sm:$0xff] }
 0x1dc   : > { %v2500_v33 = vpop.f32.mrf.mxu2 }
 0x1dd   : > { %11222 = vst [vmem:[#allocation12_spill] sm:$0xff] %v8287_v22  ;;  %v2559_v18 = vadd.f32 %v2500_v33, %v8057_v31 }
 0x1df   : > { %v2807_v54 = vadd.f32 %v2748_v37, %v2559_v18  ;;  %v3247_v21 = vpop.f32.mrf.mxu1  ;;  %v3819_v18 = vld [vmem:[#allocation2 + $0x4e] sm:$0xff] }
 0x1e0   : > { %7498 = vmatmul.msk.bf16.gmra.mxu3 %vm1859_vm1, %v3603_v34  ;;  %v2999_v50 = vpop.f32.mrf.mxu0  ;;  %v3604_v34 = vpack.c.bf16 %v3571_v61, %v3570_v51  ;;  %v3573_v51 = vld [vmem:[#allocation2 + $0x5d] sm:$0xff] }
 0x1e1   : > { %7479 = vmatmul.msk.bf16.gmra.mxu2 %vm1859_vm1, %v8074_v55  ;;  %v8293_v60 = vadd.f32 %v2996_v56, %v2807_v54  ;;  %v3818_v56 = vld [vmem:[#allocation2 + $0x46] sm:$0xff] }
 0x1e3   : > { %v2751_v30 = vpop.f32.mrf.mxu3  ;;  %7517 = vmatmul.msk.bf16.gmra.mxu0 %vm1859_vm1, %v3851_v20 }
 0x1e4   : > { %v2503_v35 = vpop.f32.mrf.mxu2 }
 0x1e5   : > { %v2560_v8 = vadd.f32 %v2503_v35, %v8068_v41  ;;  %v3852_v41 = vpack.c.bf16 %v3819_v18, %v3818_v56 }
 0x1e7   : > { %v2808_v31 = vadd.f32 %v2751_v30, %v2560_v8  ;;  %v8300_v3 = vpop.f32.mrf.mxu1 }
 0x1e8   : > { %v3001_v2 = vpop.f32.mrf.mxu0 }
 0x1e9   : > { %v3056_v9 = vadd.f32 %v2999_v50, %v2808_v31 }
 0x1eb   : > { %v8297_v29 = vadd.f32 %v3247_v21, %v3056_v9  ;;  %v2753_v37 = vpop.f32.mrf.mxu3  ;;  %v3572_v9 = vld [vmem:[#allocation2 + $0x55] sm:$0xff] }
 0x1ec   : > { %v2505_v33 = vpop.f32.mrf.mxu2 }
 0x1ed   : > { %11223 = vst [vmem:[#allocation13_spill] sm:$0xff] %v8297_v29  ;;  %v2561_v55 = vadd.f32 %v2505_v33, %v8072_v52 }
 0x1ef   : > { %v2809_v62 = vadd.f32 %v2753_v37, %v2561_v55  ;;  %v3252_v21 = vpop.f32.mrf.mxu1  ;;  %v3821_v55 = vld [vmem:[#allocation2 + $0x5e] sm:$0xff] }
 0x1f0   : > { %7499 = vmatmul.msk.bf16.gmra.mxu3 %vm1859_vm1, %v3604_v34  ;;  %v3004_v54 = vpop.f32.mrf.mxu0  ;;  %v3605_v34 = vpack.c.bf16 %v3573_v51, %v3572_v9 }
 0x1f1   : > { %7480 = vmatmul.msk.bf16.gmra.mxu2 %vm1859_vm1, %v8089_v16  ;;  %v8305_v20 = vadd.f32 %v3001_v2, %v2809_v62  ;;  %v3820_v2 = vld [vmem:[#allocation2 + $0x56] sm:$0xff] }
 0x1f2   : > { %v3853_v18 = vpack.c.bf16 %v3821_v55, %v3820_v2 }
 0x1f3   : > { %v2756_v50 = vpop.f32.mrf.mxu3  ;;  %7518 = vmatmul.msk.bf16.gmra.mxu0 %vm1859_vm1, %v3852_v41 }
 0x1f4   : > { %v2508_v30 = vpop.f32.mrf.mxu2 }
 0x1f5   : > { %v2562_v52 = vadd.f32 %v2508_v30, %v8083_v0 }
 0x1f7   : > { %v2810_v35 = vadd.f32 %v2756_v50, %v2562_v52 }
 0x1f8   : > { %v3006_v8 = vpop.f32.mrf.mxu0 }
 0x1f9   : > { %v3058_v31 = vadd.f32 %v3004_v54, %v2810_v35  ;;  %v3574_v35 = vld [vmem:[#allocation2 + $0x65] sm:$0xff] }
 0x1fb   : > { %v8309_v61 = vadd.f32 %v3252_v21, %v3058_v31  ;;  %v2758_v37 = vpop.f32.mrf.mxu3  ;;  %v3575_v21 = vld [vmem:[#allocation2 + $0x6d] sm:$0xff] }
 0x1fc   : > { %v2510_v33 = vpop.f32.mrf.mxu2  ;;  %v3606_v51 = vpack.c.bf16 %v3575_v21, %v3574_v35  ;;  %v336_v21 = vlaneseq }
 0x1fd   : > { %11224 = vst [vmem:[#allocation14_spill] sm:$0xff] %v8309_v61  ;;  %v2563_v16 = vadd.f32 %v2510_v33, %v8087_v13 }
 0x1ff   : > { %v2811_v56 = vadd.f32 %v2758_v37, %v2563_v16 }
 0x200   : > { %7500 = vmatmul.msk.bf16.gmra.mxu3 %vm1859_vm1, %v3605_v34  ;;  %v3009_v0 = vpop.f32.mrf.mxu0 }
 0x201   : > { %7481 = vmatmul.msk.bf16.gmra.mxu2 %vm1859_vm1, %v8104_v44  ;;  %v8315_v62 = vadd.f32 %v3006_v8, %v2811_v56  ;;  %v3822_v44 = vld [vmem:[#allocation2 + $0x66] sm:$0xff]  ;;  %v3823_v8 = vld [vmem:[#allocation2 + $0x6e] sm:$0xff] }
 0x202   : > { %v3854_v34 = vpack.c.bf16 %v3823_v8, %v3822_v44 }
 0x203   : > { %v2761_v41 = vpop.f32.mrf.mxu3  ;;  %7519 = vmatmul.msk.bf16.gmra.mxu0 %vm1859_vm1, %v3853_v18 }
 0x204   : > { %v2513_v54 = vpop.f32.mrf.mxu2 }
 0x205   : > { %v2564_v50 = vadd.f32 %v2513_v54, %v8098_v26  ;;  %v3577_v54 = vld [vmem:[#allocation2 + $0x7d] sm:$0xff] }
 0x207   : > { %v2812_v30 = vadd.f32 %v2761_v41, %v2564_v50  ;;  %v3576_v41 = vld [vmem:[#allocation2 + $0x75] sm:$0xff] }
 0x208   : > { %v3011_v13 = vpop.f32.mrf.mxu0  ;;  %v3607_v35 = vpack.c.bf16 %v3577_v54, %v3576_v41 }
 0x209   : > { %v8319_v52 = vadd.f32 %v3009_v0, %v2812_v30 }
 0x20b   : > { %v2763_v31 = vpop.f32.mrf.mxu3 }
 0x20c   : > { %v2515_v9 = vpop.f32.mrf.mxu2 }
 0x20d   : > { %v2565_v37 = vadd.f32 %v2515_v9, %v8102_v40  ;;  %v8332_v9 = vshrl.u32 %v336_v21, 7 }
 0x20f   : > { %v2813_v33 = vadd.f32 %v2763_v31, %v2565_v37  ;;  %v3825_v31 = vld [vmem:[#allocation2 + $0x7e] sm:$0xff]  ;;  %v376_v37 = vand.u32 65535, %v8332_v9  ;;  %v8347_v21 = vadd.s32 8, %v8332_v9  ;;  %v8358_v49 = vadd.s32 16, %v8332_v9 }
 0x210   : > { %7501 = vmatmul.msk.bf16.gmra.mxu3 %vm1859_vm1, %v3606_v51  ;;  %v3014_v16 = vpop.f32.mrf.mxu0 }
 0x211   : > { %7482 = vmatmul.msk.bf16.gmra.mxu2 %vm1859_vm1, %v8119_v11  ;;  %v8325_v26 = vadd.f32 %v3011_v13, %v2813_v33  ;;  %v3824_v13 = vld [vmem:[#allocation2 + $0x76] sm:$0xff]  ;;  %v8340_v33 = vpop.f32.mrf.mxu1 }
 0x213   : > { %v2766_v2 = vpop.f32.mrf.mxu3  ;;  %7520 = vmatmul.msk.bf16.gmra.mxu0 %vm1859_vm1, %v3854_v34  ;;  %v380_v34 = vmul.u32 58254, %v376_v37 }
 0x214   : > { %v2518_v55 = vpop.f32.mrf.mxu2 }
 0x215   : > { %v2566_v56 = vadd.f32 %v2518_v55, %v8113_v53  ;;  %v3855_v53 = vpack.c.bf16 %v3825_v31, %v3824_v13  ;;  %v379_v55 = vmul.u32 14564, %v376_v37  ;;  %v384_v37 = vshrl.u32 %v380_v34, 16 }
 0x217   : > { %v2814_v18 = vadd.f32 %v2766_v2, %v2566_v56 }
 0x218   : > { %v3016_v40 = vpop.f32.mrf.mxu0 }
 0x219   : > { %v8329_v0 = vadd.f32 %v3014_v16, %v2814_v18  ;;  %v383_v18 = vshll.u32 %v380_v34, 16 }
 0x21b   : > { %v2768_v50 = vpop.f32.mrf.mxu3  ;;  %vm387_vm2 = vc.u32 %v379_v55, %v383_v18 }
 0x21c   : > { %v2520_v30 = vpop.f32.mrf.mxu2 }
 0x21d   : > { %v2567_v11 = vadd.f32 %v2520_v30, %v8117_v7  ;;  %v377_v7 = vshrl.u32 %v8332_v9, 16 }
 0x21f   : > { %v2815_v51 = vadd.f32 %v2768_v50, %v2567_v11  ;;  %v381_v56 = vmul.u32 14564, %v377_v7  ;;  %v382_v54 = vmul.u32 58254, %v377_v7 }
 0x220   : > { %7502 = vmatmul.msk.bf16.gmra.mxu3 %vm1859_vm1, %v3607_v35  ;;  %v3019_v44 = vpop.f32.mrf.mxu0  ;;  %v389_v35 = vadd.s32 %v383_v18, %v379_v55  ;;  %v8354_v18 = vpop.f32.mrf.mxu1 }
 0x221   : > { %7483 = vmatmul.msk.bf16.gmra.mxu2 %vm1859_vm1, %v8134_v47  ;;  %v8338_v8 = vadd.f32 %v3016_v40, %v2815_v51  ;;  %v385_v50 = vshll.u32 %v381_v56, 16  ;;  %v11121_v40 = vmov 0   ;;  %v3578_v51 = vld [vmem:[#allocation2 + $0x85] sm:$0xff] }
 0x222   : > { %v388_v30 = vsel %vm387_vm2, 1, %v11121_v40 }
 0x223   : > { %v2771_v16 = vpop.f32.mrf.mxu3  ;;  %7521 = vmatmul.msk.bf16.gmra.mxu0 %vm1859_vm1, %v3855_v53  ;;  %v390_v11 = vadd.s32 %v388_v30, %v382_v54  ;;  %v3579_v53 = vld [vmem:[#allocation2 + $0x8d] sm:$0xff]  ;;  %vm391_vm3 = vc.u32 %v389_v35, %v385_v50  ;;  %v386_v30 = vshrl.u32 %v381_v56, 16 }
 0x224   : > { %v2523_v2 = vpop.f32.mrf.mxu2  ;;  %v392_v7 = vsel %vm391_vm3, 1, %v11121_v40  ;;  %v3608_v54 = vpack.c.bf16 %v3579_v53, %v3578_v51  ;;  %v3826_v50 = vld [vmem:[#allocation2 + $0x86] sm:$0xff]  ;;  %v3827_v35 = vld [vmem:[#allocation2 + $0x8e] sm:$0xff]  ;;  %v11225_v51 = vmov 0  }
 0x225   : > { %v2568_v41 = vadd.f32 %v2523_v2, %v8128_v23  ;;  %v405_v23 = vand.u32 65535, %v8347_v21  ;;  %v3856_v56 = vpack.c.bf16 %v3827_v35, %v3826_v50 }
 0x227   : > { %v2816_v47 = vadd.f32 %v2771_v16, %v2568_v41  ;;  %v406_v16 = vshrl.u32 %v8347_v21, 16  ;;  %v394_v41 = vadd.s32 %v392_v7, %v390_v11  ;;  %v409_v55 = vmul.u32 58254, %v405_v23 }
 0x228   : > { %v3021_v13 = vpop.f32.mrf.mxu0 }
 0x229   : > { %v8349_v31 = vadd.f32 %v3019_v44, %v2816_v47  ;;  %v408_v44 = vmul.u32 14564, %v405_v23  ;;  %v410_v47 = vmul.u32 14564, %v406_v16  ;;  %v395_v22 = vadd.s32 %v394_v41, %v384_v37 }
 0x22a   : > { %v412_v34 = vshll.u32 %v409_v55, 16  ;;  %v411_v5 = vmul.u32 58254, %v406_v16 }
 0x22b   : > { %v2773_v2 = vpop.f32.mrf.mxu3  ;;  %v414_v40 = vshll.u32 %v410_v47, 16  ;;  %v396_v7 = vadd.s32 %v395_v22, %v386_v30  ;;  %v415_v35 = vshrl.u32 %v410_v47, 16  ;;  %v3581_v47 = vld [vmem:[#allocation2 + $0x9d] sm:$0xff] }
 0x22c   : > { %v2525_v61 = vpop.f32.mrf.mxu2  ;;  %vm416_vm4 = vc.u32 %v408_v44, %v412_v34  ;;  %v418_v24 = vadd.s32 %v412_v34, %v408_v44 }
 0x22d   : > { %v2569_v29 = vadd.f32 %v2525_v61, %v8132_v42  ;;  %v417_v53 = vsel %vm416_vm4, 1, %v11225_v51  ;;  %v434_v42 = vand.u32 65535, %v8358_v49  ;;  %v397_v37 = vshrl.u32 %v396_v7, 4 }
 0x22e   : > { %v419_v16 = vadd.s32 %v417_v53, %v411_v5  ;;  %vm420_vm5 = vc.u32 %v418_v24, %v414_v40  ;;  %v8375_v40 = vpop.f32.mrf.mxu1 }
 0x22f   : > { %v2817_v11 = vadd.f32 %v2773_v2, %v2569_v29  ;;  %v413_v29 = vshrl.u32 %v409_v55, 16  ;;  %v421_v22 = vsel %vm420_vm5, 1, %v11225_v51  ;;  %v435_v2 = vshrl.u32 %v8358_v49, 16 }
 0x230   : > { %7503 = vmatmul.msk.bf16.gmra.mxu3 %vm1859_vm1, %v3608_v54  ;;  %v3024_v61 = vpop.f32.mrf.mxu0  ;;  %v423_v54 = vadd.s32 %v421_v22, %v419_v16  ;;  %v8369_v30 = vmul.u32 58254, %v434_v42  ;;  %v398_v50 = vmul.u32 18, %v397_v37  ;;  %v11123_v55 = vmov 0.0  }
 0x231   : > { %7484 = vmatmul.msk.bf16.gmra.mxu2 %vm1859_vm1, %v8149_v27  ;;  %v8365_v23 = vadd.f32 %v3021_v13, %v2817_v11  ;;  %v437_v27 = vmul.u32 14564, %v434_v42  ;;  %v8372_v13 = vmul.u32 14564, %v435_v2  ;;  %4530 = vst.msk [vmem:[#allocation3 + $0x10] sm:$0xff] %vm1859_vm1, %v11123_v55  ;;  %v8381_v11 = vadd.s32 24, %v8332_v9 }
 0x232   : > { %v424_v24 = vadd.s32 %v423_v54, %v413_v29  ;;  %v441_v34 = vshll.u32 %v8369_v30, 16  ;;  %4531 = vst.msk [vmem:[#allocation3 + $0x18] sm:$0xff] %vm1859_vm1, %v11123_v55  ;;  %v440_v53 = vmul.u32 58254, %v435_v2  ;;  %v8387_v42 = vsub.s32 %v8332_v9, %v398_v50 }
 0x233   : > { %v2776_v41 = vpop.f32.mrf.mxu3  ;;  %7522 = vmatmul.msk.bf16.gmra.mxu0 %vm1859_vm1, %v3856_v56  ;;  %v3580_v56 = vld [vmem:[#allocation2 + $0x95] sm:$0xff]  ;;  %4528 = vst.msk [vmem:[#allocation3] sm:$0xff] %vm1859_vm1, %v11123_v55  ;;  %v8393_v29 = vadd.f32 %v8236_v63, %v8244_v28  ;;  %v463_v54 = vand.u32 65535, %v8381_v11  ;;  %v8407_v50 = vadd.f32 %v8261_v38, %v8268_v45 }
 0x234   : > { %v2528_v44 = vpop.f32.mrf.mxu2  ;;  %v425_v37 = vadd.s32 %v424_v24, %v415_v35  ;;  %vm445_vm6 = vc.u32 %v437_v27, %v441_v34  ;;  %v447_v16 = vadd.s32 %v441_v34, %v437_v27  ;;  %4529 = vst.msk [vmem:[#allocation3 + $0x8] sm:$0xff] %vm1859_vm1, %v11123_v55  ;;  %v3609_v63 = vpack.c.bf16 %v3581_v47, %v3580_v56  ;;  %v3828_v24 = vld [vmem:[#allocation2 + $0x96] sm:$0xff]  ;;  %v3829_v34 = vld [vmem:[#allocation2 + $0x9e] sm:$0xff] }
 0x235   : > { %v2570_v5 = vadd.f32 %v2528_v44, %v8143_v59  ;;  %v443_v59 = vshll.u32 %v8372_v13, 16  ;;  %v446_v2 = vsel %vm445_vm6, 1, %v11225_v51  ;;  %v8403_v44 = vadd.f32 %v8249_v36, %v8256_v39  ;;  %4532 = vst.msk [vmem:[#allocation3 + $0x20] sm:$0xff] %vm1859_vm1, %v11123_v55 }
 0x236   : > { %v426_v28 = vshrl.u32 %v425_v37, 4  ;;  %4533 = vst.msk [vmem:[#allocation3 + $0x28] sm:$0xff] %vm1859_vm1, %v11123_v55  ;;  %v442_v35 = vshrl.u32 %v8369_v30, 16  ;;  %v448_v27 = vadd.s32 %v446_v2, %v440_v53  ;;  %v464_v36 = vshrl.u32 %v8381_v11, 16 }
 0x237   : > { %v2818_v7 = vadd.f32 %v2776_v41, %v2570_v5  ;;  %vm449_vm7 = vc.u32 %v447_v16, %v443_v59  ;;  %vm1417_vm8 = vcmp.ne.s32.totalorder %v8387_v42, 0  ;;  %vm1453_vm9 = vcmp.lt.s32.totalorder %v8387_v42, 0  ;;  %4534 = vst.msk [vmem:[#allocation3 + $0x30] sm:$0xff] %vm1859_vm1, %v11123_v55 }
 0x238   : > { %v3026_v22 = vpop.f32.mrf.mxu0  ;;  %v427_v38 = vmul.u32 18, %v426_v28  ;;  %v450_v45 = vsel %vm449_vm7, 1, %v11225_v51  ;;  %4535 = vst.msk [vmem:[#allocation3 + $0x38] sm:$0xff] %vm1859_vm1, %v11123_v55  ;;  %v444_v30 = vshrl.u32 %v8372_v13, 16  ;;  %v8424_v56 = vmul.u32 58254, %v463_v54  ;;  %vm8454_vm10 = vmand %vm1453_vm9, %vm1417_vm8 }
 0x239   : > { %v8395_v41 = vadd.f32 %v3024_v61, %v2818_v7  ;;  %v452_v7 = vadd.s32 %v450_v45, %v448_v27  ;;  %v8428_v47 = vadd.f32 %v8273_v12, %v8281_v43  ;;  %v1525_v53 = vadd.s32 18, %v8387_v42  ;;  %4536 = vst.msk [vmem:[#allocation3 + $0x40] sm:$0xff] %vm1859_vm1, %v11123_v55 }
 0x23a   : > { %v8433_v59 = vmul.u32 14564, %v464_v36  ;;  %4537 = vst.msk [vmem:[#allocation3 + $0x48] sm:$0xff] %vm1859_vm1, %v11123_v55  ;;  %v8438_v13 = vsub.s32 %v8347_v21, %v427_v38  ;;  %v470_v2 = vshll.u32 %v8424_v56, 16  ;;  %v8443_v12 = vadd.f32 %v8285_v48, %v8293_v60 }
 0x23b   : > { %v2778_v61 = vpop.f32.mrf.mxu3  ;;  %11226 = vst [vmem:[#allocation15_spill] sm:$0xff] %v8428_v47  ;;  %v453_v16 = vadd.s32 %v452_v7, %v442_v35  ;;  %v8447_v43 = vadd.f32 %v8300_v3, %v8305_v20  ;;  %v3857_v28 = vpack.c.bf16 %v3829_v34, %v3828_v24  ;;  %v8461_v48 = vadd.s32 32, %v8332_v9  ;;  %v11232_v20 = vld [vmem:[#allocation6_spill] sm:$0xff] }
 0x23c   : > { %v2530_v39 = vpop.f32.mrf.mxu2  ;;  %11227 = vst [vmem:[#allocation16_spill] sm:$0xff] %v8443_v12  ;;  %v8465_v60 = vadd.f32 %v8340_v33, %v8315_v62  ;;  %v469_v35 = vmul.u32 58254, %v464_v36  ;;  %v8475_v27 = vadd.f32 %v8354_v18, %v8319_v52  ;;  %v472_v62 = vshll.u32 %v8433_v59, 16  ;;  %v3582_v34 = vld [vmem:[#allocation2 + $0xa5] sm:$0xff] }
 0x23d   : > { %v2571_v5 = vadd.f32 %v2530_v39, %v8147_v19  ;;  %v466_v19 = vmul.u32 14564, %v463_v54  ;;  %11228 = vst [vmem:[#allocation17_spill] sm:$0xff] %v8447_v43  ;;  %v3262_v54 = vpop.f32.mrf.mxu1  ;;  %v8479_v39 = vadd.f32 %v8375_v40, %v8325_v26  ;;  %v8490_v36 = vsel %vm8454_vm10, %v1525_v53, %v8387_v42  ;;  %v11236_v42 = vld [vmem:[#allocation4_spill] sm:$0xff] }
 0x23e   : > { %4538 = vst.msk [vmem:[#allocation3 + $0x50] sm:$0xff] %vm1859_vm1, %v11123_v55  ;;  %v8485_v33 = vadd.f32 %v3262_v54, %v8329_v0  ;;  %vm1418_vm12 = vcmp.ne.s32.totalorder %v8438_v13, 0  ;;  %vm1454_vm13 = vcmp.lt.s32.totalorder %v8438_v13, 0  ;;  %v492_v40 = vand.u32 65535, %v8461_v48 }
 0x23f   : > { %v2819_v37 = vadd.f32 %v2778_v61, %v2571_v5  ;;  %11231 = vst [vmem:[#allocation18_spill] sm:$0xff] %v8465_v60  ;;  %v454_v61 = vadd.s32 %v453_v16, %v444_v30  ;;  %vm474_vm11 = vc.u32 %v466_v19, %v470_v2  ;;  %v476_v18 = vadd.s32 %v470_v2, %v466_v19  ;;  %v3583_v30 = vld [vmem:[#allocation2 + $0xad] sm:$0xff]  ;;  %vm8521_vm15 = vmand %vm1454_vm13, %vm1418_vm12 }
 0x240   : > { %7504 = vmatmul.msk.bf16.gmra.mxu3 %vm1859_vm1, %v3609_v63  ;;  %v3029_v3 = vpop.f32.mrf.mxu0  ;;  %4539 = vst.msk [vmem:[#allocation3 + $0x58] sm:$0xff] %vm1859_vm1, %v11123_v55  ;;  %v475_v0 = vsel %vm474_vm11, 1, %v11225_v51  ;;  %v471_v5 = vshrl.u32 %v8424_v56, 16  ;;  %v493_v7 = vshrl.u32 %v8461_v48, 16  ;;  %v495_v53 = vmul.u32 14564, %v492_v40 }
 0x241   : > { %7485 = vmatmul.msk.bf16.gmra.mxu2 %vm1859_vm1, %v11232_v20  ;;  %v8469_v63 = vadd.f32 %v3026_v22, %v2819_v37  ;;  %11233 = vst [vmem:[#allocation6_spill] sm:$0xff] %v8475_v27  ;;  %v455_v52 = vshrl.u32 %v454_v61, 4  ;;  %v477_v24 = vadd.s32 %v475_v0, %v469_v35  ;;  %vm478_vm14 = vc.u32 %v476_v18, %v472_v62 }
 0x242   : > { %11234 = vst [vmem:[#allocation19_spill] sm:$0xff] %v8479_v39  ;;  %v8508_v19 = vmul.u32 58254, %v492_v40  ;;  %v1526_v16 = vadd.s32 18, %v8438_v13  ;;  %v473_v56 = vshrl.u32 %v8433_v59, 16  ;;  %v479_v2 = vsel %vm478_vm14, 1, %v11225_v51 }
 0x243   : > { %4540 = vst.msk [vmem:[#allocation3 + $0x60] sm:$0xff] %vm1859_vm1, %v11123_v55  ;;  %v2781_v22 = vpop.f32.mrf.mxu3  ;;  %7523 = vmatmul.msk.bf16.gmra.mxu0 %vm1859_vm1, %v3857_v28  ;;  %v456_v45 = vmul.u32 18, %v455_v52  ;;  %v481_v21 = vadd.s32 %v479_v2, %v477_v24  ;;  %v8528_v20 = vmul.u32 14564, %v493_v7  ;;  %v3610_v62 = vpack.c.bf16 %v3583_v30, %v3582_v34  ;;  %v3830_v34 = vld [vmem:[#allocation2 + $0xa6] sm:$0xff]  ;;  %v3831_v30 = vld [vmem:[#allocation2 + $0xae] sm:$0xff] }
 0x244   : > { %11235 = vst [vmem:[#allocation20_spill] sm:$0xff] %v8485_v33  ;;  %v2533_v26 = vpop.f32.mrf.mxu2  ;;  %v499_v59 = vshll.u32 %v8508_v19, 16  ;;  %v8536_v52 = vadd.s32 40, %v8332_v9  ;;  %vm1597_vm2 = vcmp.ge.s32.totalorder %v8490_v36, 1  ;;  %vm1633_vm4 = vcmp.le.s32.totalorder %v8490_v36, 16 }
 0x245   : > { %4541 = vst.msk [vmem:[#allocation3 + $0x68] sm:$0xff] %vm1859_vm1, %v11123_v55  ;;  %v2572_v38 = vadd.f32 %v2533_v26, %v11236_v42  ;;  %v8526_v28 = vsub.s32 %v8358_v49, %v456_v45  ;;  %v482_v49 = vadd.s32 %v481_v21, %v471_v5  ;;  %v501_v26 = vshll.u32 %v8528_v20, 16  ;;  %v11240_v5 = vld [vmem:[#allocation5_spill] sm:$0xff]  ;;  %vm8564_vm8 = vmand %vm1597_vm2, %vm1633_vm4 }
 0x246   : > { %4542 = vst.msk [vmem:[#allocation3 + $0x70] sm:$0xff] %vm1859_vm1, %v11123_v55  ;;  %vm503_vm3 = vc.u32 %v495_v53, %v499_v59  ;;  %v505_v40 = vadd.s32 %v499_v59, %v495_v53  ;;  %v500_v45 = vshrl.u32 %v8508_v19, 16  ;;  %v3858_v59 = vpack.c.bf16 %v3831_v30, %v3830_v34  ;;  %v8623_v53 = vld [vmem:[#allocation2 + $0xbc] sm:$0xff] }
 0x247   : > { %4543 = vst.msk [vmem:[#allocation3 + $0x78] sm:$0xff] %vm1859_vm1, %v11123_v55  ;;  %v2820_v37 = vadd.f32 %v2781_v22, %v2572_v38  ;;  %v498_v22 = vmul.u32 58254, %v493_v7  ;;  %v504_v18 = vsel %vm503_vm3, 1, %v11225_v51  ;;  %vm1419_vm5 = vcmp.ne.s32.totalorder %v8526_v28, 0 }
 0x248   : > { %4544 = vst.msk [vmem:[#allocation3 + $0x80] sm:$0xff] %vm1859_vm1, %v11123_v55  ;;  %v3031_v61 = vpop.f32.mrf.mxu0  ;;  %vm1455_vm6 = vcmp.lt.s32.totalorder %v8526_v28, 0  ;;  %v483_v38 = vadd.s32 %v482_v49, %v473_v56  ;;  %vm507_vm7 = vc.u32 %v505_v40, %v501_v26  ;;  %v521_v7 = vand.u32 65535, %v8536_v52 }
 0x249   : > { %4545 = vst.msk [vmem:[#allocation3 + $0x88] sm:$0xff] %vm1859_vm1, %v11123_v55  ;;  %v8531_v35 = vadd.f32 %v3029_v3, %v2820_v37  ;;  %v8548_v3 = vsel %vm8521_vm15, %v1526_v16, %v8438_v13  ;;  %v506_v13 = vadd.s32 %v504_v18, %v498_v22  ;;  %v502_v37 = vshrl.u32 %v8528_v20, 16  ;;  %vm8598_vm9 = vmand %vm1455_vm6, %vm1419_vm5 }
 0x24a   : > { %4546 = vst.msk [vmem:[#allocation3 + $0x90] sm:$0xff] %vm1859_vm1, %v11123_v55  ;;  %v484_v19 = vshrl.u32 %v483_v38, 4  ;;  %v508_v16 = vsel %vm507_vm7, 1, %v11225_v51  ;;  %v522_v56 = vshrl.u32 %v8536_v52, 16  ;;  %v524_v36 = vmul.u32 14564, %v521_v7 }
 0x24b   : > { %11239 = vst [vmem:[#allocation4_spill] sm:$0xff] %v8531_v35  ;;  %v2783_v0 = vpop.f32.mrf.mxu3  ;;  %v510_v54 = vadd.s32 %v508_v16, %v506_v13  ;;  %v8575_v21 = vmul.u32 58254, %v521_v7  ;;  %v1527_v20 = vadd.s32 18, %v8526_v28  ;;  %v8590_v18 = vsel %vm8564_vm8, 1.0, %v11123_v55  ;;  %v8621_v7 = vld [vmem:[#allocation2 + $0xb4] sm:$0xff]  ;;  %v8630_v16 = vld [vmem:[#allocation2 + $0xbd] sm:$0xff] }
 0x24c   : > { %4547 = vst.msk [vmem:[#allocation3 + $0x98] sm:$0xff] %vm1859_vm1, %v11123_v55  ;;  %v2535_v42 = vpop.f32.mrf.mxu2  ;;  %v485_v22 = vmul.u32 18, %v484_v19  ;;  %v8581_v49 = vmul.u32 14564, %v522_v56  ;;  %vm1598_vm10 = vcmp.ge.s32.totalorder %v8548_v3, 1  ;;  %vm1634_vm11 = vcmp.le.s32.totalorder %v8548_v3, 16  ;;  %v8715_v3 = vld [vmem:[#allocation2 + $0xcd] sm:$0xff] }
 0x24d   : > { %4548 = vst.msk [vmem:[#allocation3 + $0xa0] sm:$0xff] %vm1859_vm1, %v11123_v55  ;;  %v2573_v24 = vadd.f32 %v2535_v42, %v11240_v5  ;;  %v511_v40 = vadd.s32 %v510_v54, %v500_v45  ;;  %v527_v42 = vmul.u32 58254, %v522_v56  ;;  %v529_v30 = vshrl.u32 %v8575_v21, 16  ;;  %vm8657_vm5 = vmand %vm1598_vm10, %vm1634_vm11 }
 0x24e   : > { %4549 = vst.msk [vmem:[#allocation3 + $0xa8] sm:$0xff] %vm1859_vm1, %v11123_v55  ;;  %v530_v38 = vshll.u32 %v8581_v49, 16  ;;  %v8634_v54 = vadd.s32 48, %v8332_v9 }
 0x24f   : > { %4550 = vst.msk [vmem:[#allocation3 + $0xb0] sm:$0xff] %vm1859_vm1, %v11123_v55  ;;  %v2821_v2 = vadd.f32 %v2783_v0, %v2573_v24  ;;  %v512_v24 = vadd.s32 %v511_v40, %v502_v37 }
 0x250   : > { %4551 = vst.msk [vmem:[#allocation3 + $0xb8] sm:$0xff] %vm1859_vm1, %v11123_v55  ;;  %7505 = vmatmul.msk.bf16.gmra.mxu3 %vm1859_vm1, %v3610_v62  ;;  %v3936_v26 = vpop.f32.mrf.mxu0  ;;  %v550_v62 = vand.u32 65535, %v8634_v54  ;;  %v551_v40 = vshrl.u32 %v8634_v54, 16 }
 0x251   : > { %4552 = vst.msk [vmem:[#allocation3 + $0xc0] sm:$0xff] %vm1859_vm1, %v11123_v55  ;;  %7486 = vmatmul.msk.bf16.gmra.mxu2 %vm1859_vm1, %v8175_v14  ;;  %v8585_v0 = vadd.f32 %v3031_v61, %v2821_v2  ;;  %v528_v14 = vshll.u32 %v8575_v21, 16  ;;  %v486_v61 = vsub.s32 %v8381_v11, %v485_v22  ;;  %v1563_v11 = vsel %vm8598_vm9, %v1527_v20, %v8526_v28  ;;  %v8628_v28 = vld [vmem:[#allocation2 + $0xb5] sm:$0xff]  ;;  %v8706_v21 = vld [vmem:[#allocation2 + $0xcc] sm:$0xff] }
 0x252   : > { %4553 = vst.msk [vmem:[#allocation3 + $0xc8] sm:$0xff] %vm1859_vm1, %v11123_v55  ;;  %v513_v19 = vshrl.u32 %v512_v24, 4  ;;  %vm1599_vm2 = vcmp.ge.s32.totalorder %v1563_v11, 1  ;;  %vm1635_vm3 = vcmp.le.s32.totalorder %v1563_v11, 16  ;;  %v531_v20 = vshrl.u32 %v8581_v49, 16  ;;  %v8667_v24 = vld [vmem:[#allocation2 + $0xbe] sm:$0xff] }
 0x253   : > { %4554 = vst.msk [vmem:[#allocation3 + $0xd0] sm:$0xff] %vm1859_vm1, %v11123_v55  ;;  %v3688_v5 = vpop.f32.mrf.mxu3  ;;  %vm532_vm12 = vc.u32 %v524_v36, %v528_v14  ;;  %v534_v45 = vadd.s32 %v528_v14, %v524_v36  ;;  %7524 = vmatmul.msk.bf16.gmra.mxu0 %vm1859_vm1, %v3858_v59  ;;  %vm1420_vm13 = vcmp.ne.s32.totalorder %v486_v61, 0  ;;  %vm1456_vm14 = vcmp.lt.s32.totalorder %v486_v61, 0  ;;  %vm8674_vm6 = vmand %vm1599_vm2, %vm1635_vm3 }
 0x254   : > { %11243 = vst [vmem:[#allocation5_spill] sm:$0xff] %v8585_v0  ;;  %v3440_v34 = vpop.f32.mrf.mxu2  ;;  %v533_v37 = vsel %vm532_vm12, 1, %v11225_v51  ;;  %v1528_v56 = vadd.s32 18, %v486_v61  ;;  %vm8640_vm4 = vmand %vm1456_vm14, %vm1420_vm13  ;;  %v514_v59 = vmul.u32 18, %v513_v19  ;;  %v3363_v49 = vpack.c.bf16 %v8623_v53, %v8621_v7 }
 0x255   : > { %11244 = vst [vmem:[#allocation21_spill] sm:$0xff] %v8590_v18  ;;  %v3530_v13 = vadd.f32 %v3440_v34, %v8172_v58  ;;  %vm536_vm15 = vc.u32 %v534_v45, %v530_v38  ;;  %v535_v58 = vadd.s32 %v533_v37, %v527_v42  ;;  %v553_v7 = vmul.u32 14564, %v550_v62 }
 0x256   : > { %4555 = vst.msk [vmem:[#allocation3 + $0xd8] sm:$0xff] %vm1859_vm1, %v11123_v55  ;;  %v537_v2 = vsel %vm536_vm15, 1, %v11225_v51  ;;  %v515_v45 = vsub.s32 %v8461_v48, %v514_v59  ;;  %v1564_v34 = vsel %vm8640_vm4, %v1528_v56, %v486_v61  ;;  %v8680_v53 = vmul.u32 58254, %v550_v62  ;;  %v11255_v56 = vld [vmem:[#allocation7_spill] sm:$0xff] }
 0x257   : > { %4556 = vst.msk [vmem:[#allocation3 + $0xe0] sm:$0xff] %vm1859_vm1, %v11123_v55  ;;  %v3778_v36 = vadd.f32 %v3688_v5, %v3530_v13  ;;  %v539_v22 = vadd.s32 %v537_v2, %v535_v58  ;;  %v3611_v5 = vpack.c.bf16 %v8630_v16, %v8628_v28  ;;  %v8684_v37 = vmul.u32 14564, %v551_v40 }
 0x258   : > { %4557 = vst.msk [vmem:[#allocation3 + $0xe8] sm:$0xff] %vm1859_vm1, %v11123_v55  ;;  %v3938_v42 = vpop.f32.mrf.mxu0  ;;  %vm1421_vm7 = vcmp.ne.s32.totalorder %v515_v45, 0  ;;  %vm1457_vm8 = vcmp.lt.s32.totalorder %v515_v45, 0  ;;  %v1529_v19 = vadd.s32 18, %v515_v45  ;;  %v8691_v61 = vsel %vm8657_vm5, 1.0, %v11123_v55 }
 0x259   : > { %4558 = vst.msk [vmem:[#allocation3 + $0xf0] sm:$0xff] %vm1859_vm1, %v11123_v55  ;;  %v8649_v14 = vadd.f32 %v3936_v26, %v3778_v36  ;;  %v8665_v26 = vld [vmem:[#allocation2 + $0xb6] sm:$0xff]  ;;  %v540_v13 = vadd.s32 %v539_v22, %v529_v30  ;;  %vm1493_vm9 = vmand %vm1457_vm8, %vm1421_vm7  ;;  %v557_v16 = vshll.u32 %v8680_v53, 16  ;;  %v8702_v2 = vsel %vm8674_vm6, 1.0, %v11123_v55  ;;  %v8704_v36 = vld [vmem:[#allocation2 + $0xc4] sm:$0xff] }
 0x25a   : > { %4559 = vst.msk [vmem:[#allocation3 + $0xf8] sm:$0xff] %vm1859_vm1, %v11123_v55  ;;  %v3859_v30 = vpack.c.bf16 %v8667_v24, %v8665_v26  ;;  %v1565_v59 = vsel %vm1493_vm9, %v1529_v19, %v515_v45  ;;  %v556_v22 = vmul.u32 58254, %v551_v40  ;;  %vm1600_vm10 = vcmp.ge.s32.totalorder %v1564_v34, 1  ;;  %v8762_v45 = vld [vmem:[#allocation2 + $0xdc] sm:$0xff] }
 0x25b   : > { %4560 = vst.msk [vmem:[#allocation3 + $0x100] sm:$0xff] %vm1859_vm1, %v11123_v55  ;;  %v3690_v48 = vpop.f32.mrf.mxu3  ;;  %v541_v28 = vadd.s32 %v540_v13, %v531_v20  ;;  %vm1636_vm11 = vcmp.le.s32.totalorder %v1564_v34, 16  ;;  %v8708_v20 = vld [vmem:[#allocation2 + $0xc5] sm:$0xff]  ;;  %v8711_v38 = vadd.s32 56, %v8332_v9  ;;  %v4062_v26 = vmul.f32 %v8590_v18, %v8649_v14 }
 0x25c   : > { %4561 = vst.msk [vmem:[#allocation3 + $0x108] sm:$0xff] %vm1859_vm1, %v11123_v55  ;;  %v3442_v11 = vpop.f32.mrf.mxu2  ;;  %v8717_v13 = vld [vmem:[#allocation2 + $0xc6] sm:$0xff]  ;;  %v559_v40 = vshll.u32 %v8684_v37, 16  ;;  %vm561_vm12 = vc.u32 %v553_v7, %v557_v16  ;;  %vm1601_vm13 = vcmp.ge.s32.totalorder %v1565_v59, 1  ;;  %vm1637_vm14 = vcmp.le.s32.totalorder %v1565_v59, 16  ;;  %vm8731_vm15 = vmand %vm1600_vm10, %vm1636_vm11 }
 0x25d   : > { %4562 = vst.msk [vmem:[#allocation3 + $0x110] sm:$0xff] %vm1859_vm1, %v11123_v55  ;;  %v3531_v58 = vadd.f32 %v3442_v11, %v11255_v56  ;;  %v542_v62 = vshrl.u32 %v541_v28, 4  ;;  %v8719_v11 = vld [vmem:[#allocation2 + $0xce] sm:$0xff]  ;;  %v562_v28 = vsel %vm561_vm12, 1, %v11225_v51  ;;  %v580_v34 = vshrl.u32 %v8711_v38, 16  ;;  %vm8749_vm3 = vmand %vm1601_vm13, %vm1637_vm14 }
 0x25e   : > { %11249 = vst [vmem:[#allocation22_spill] sm:$0xff] %v8649_v14  ;;  %v8775_v18 = vadd.s32 64, %v8332_v9 }
 0x25f   : > { %4563 = vst.msk [vmem:[#allocation3 + $0x118] sm:$0xff] %vm1859_vm1, %v11123_v55  ;;  %v3779_v24 = vadd.f32 %v3690_v48, %v3531_v58  ;;  %v543_v19 = vmul.u32 18, %v542_v62  ;;  %v563_v58 = vadd.s32 %v557_v16, %v553_v7  ;;  %v558_v16 = vshrl.u32 %v8680_v53, 16 }
 0x260   : > { %4564 = vst.msk [vmem:[#allocation3 + $0x120] sm:$0xff] %vm1859_vm1, %v11123_v55  ;;  %7506 = vmatmul.msk.bf16.gmra.mxu3 %vm1859_vm1, %v3611_v5  ;;  %v3941_v48 = vpop.f32.mrf.mxu0  ;;  %v8765_v5 = vsel %vm1859_vm1, %v4062_v26, 0.0  ;;  %v8792_v60 = vmul.u32 14564, %v580_v34  ;;  %v608_v39 = vand.u32 65535, %v8775_v18 }
 0x261   : > { %4565 = vst.msk [vmem:[#allocation3 + $0x128] sm:$0xff] %vm1859_vm1, %v11123_v55  ;;  %v8726_v56 = vadd.f32 %v3938_v42, %v3779_v24  ;;  %7487 = vmatmul.msk.bf16.gmra.mxu2 %vm1859_vm1, %v3363_v49  ;;  %v544_v42 = vsub.s32 %v8536_v52, %v543_v19  ;;  %v579_v24 = vand.u32 65535, %v8711_v38  ;;  %v4175_v49 = vmul.f32 %v4062_v26, %v8649_v14  ;;  %v8785_v26 = vld [vmem:[#allocation2 + $0xd5] sm:$0xff] }
 0x262   : > { %4566 = vst.msk [vmem:[#allocation3 + $0x130] sm:$0xff] %vm1859_vm1, %v11123_v55  ;;  %vm565_vm2 = vc.u32 %v563_v58, %v559_v40  ;;  %v11262_v40 = vmov 0.0   ;;  %v8810_v12 = vmul.u32 58254, %v608_v39 }
 0x263   : > { %11254 = vst [vmem:[#allocation23_spill] sm:$0xff] %v8691_v61  ;;  %v3693_v7 = vpop.f32.mrf.mxu3  ;;  %7525 = vmatmul.msk.bf16.gmra.mxu0 %vm1859_vm1, %v3859_v30  ;;  %vm1422_vm4 = vcmp.ne.s32.totalorder %v544_v42, 0  ;;  %vm1458_vm5 = vcmp.lt.s32.totalorder %v544_v42, 0  ;;  %v566_v19 = vsel %vm565_vm2, 1, %v11225_v51  ;;  %v8758_v58 = vsel %vm8731_vm15, 1.0, %v11262_v40  ;;  %v8760_v30 = vld [vmem:[#allocation2 + $0xd4] sm:$0xff] }
 0x264   : > { %4567 = vst.msk [vmem:[#allocation3 + $0x138] sm:$0xff] %vm1859_vm1, %v11123_v55  ;;  %v564_v55 = vadd.s32 %v562_v28, %v556_v22  ;;  %v4063_v22 = vmul.f32 %v8691_v61, %v8726_v56  ;;  %v3445_v28 = vpop.f32.mrf.mxu2  ;;  %v1530_v62 = vadd.s32 18, %v544_v42  ;;  %vm8767_vm6 = vmand %vm1458_vm5, %vm1422_vm4  ;;  %v8778_v14 = vsel %vm1859_vm1, %v4175_v49, 0.0 }
 0x265   : > { %11256 = vst [vmem:[#allocation7_spill] sm:$0xff] %v8702_v2  ;;  %v3532_v53 = vadd.f32 %v3445_v28, %v8185_v4  ;;  %v560_v4 = vshrl.u32 %v8684_v37, 16  ;;  %v8772_v28 = vmul.u32 58254, %v579_v24  ;;  %v582_v33 = vmul.u32 14564, %v579_v24 }
 0x266   : > { %11257 = vst [vmem:[#allocation24_spill] sm:$0xff] %v8726_v56  ;;  %v568_v59 = vadd.s32 %v566_v19, %v564_v55  ;;  %v8783_v55 = vsel %vm8749_vm3, 1.0, %v11262_v40  ;;  %v8787_v19 = vld [vmem:[#allocation2 + $0xdd] sm:$0xff]  ;;  %v4176_v37 = vmul.f32 %v4063_v22, %v8726_v56  ;;  %v1566_v52 = vsel %vm8767_vm6, %v1530_v62, %v544_v42 }
 0x267   : > { %11263 = vst [vmem:[#allocation25_spill] sm:$0xff] %v8758_v58  ;;  %v3780_v0 = vadd.f32 %v3693_v7, %v3532_v53  ;;  %v585_v53 = vmul.u32 58254, %v580_v34  ;;  %v586_v35 = vshll.u32 %v8772_v28, 16  ;;  %v588_v56 = vshll.u32 %v8792_v60, 16 }
 0x268   : > { %11266 = vst [vmem:[#allocation26_spill] sm:$0xff] %v8783_v55  ;;  %v569_v27 = vadd.s32 %v568_v59, %v558_v16  ;;  %v3943_v7 = vpop.f32.mrf.mxu0  ;;  %v4099_v16 = vsel %vm1859_vm1, %v4063_v22, 0.0  ;;  %v4212_v62 = vsel %vm1859_vm1, %v4176_v37, 0.0  ;;  %vm1602_vm8 = vcmp.ge.s32.totalorder %v1566_v52, 1 }
 0x269   : > { %v8794_v49 = vadd.f32 %v3941_v48, %v3780_v0  ;;  %vm590_vm7 = vc.u32 %v582_v33, %v586_v35  ;;  %v592_v61 = vadd.s32 %v586_v35, %v582_v33  ;;  %v609_v24 = vshrl.u32 %v8775_v18, 16 }
 0x26a   : > { %v570_v43 = vadd.s32 %v569_v27, %v560_v4  ;;  %v591_v59 = vsel %vm590_vm7, 1, %v11225_v51  ;;  %vm1638_vm9 = vcmp.le.s32.totalorder %v1566_v52, 16  ;;  %v589_v37 = vshrl.u32 %v8792_v60, 16 }
 0x26b   : > { %v4064_v0 = vmul.f32 %v8702_v2, %v8794_v49  ;;  %v3695_v48 = vpop.f32.mrf.mxu3  ;;  %v593_v4 = vadd.s32 %v591_v59, %v585_v53  ;;  %v587_v2 = vshrl.u32 %v8772_v28, 16  ;;  %vm594_vm10 = vc.u32 %v592_v61, %v588_v56  ;;  %v8821_v53 = vld [vmem:[#allocation2 + $0xd6] sm:$0xff]  ;;  %v7534_v28 = vld [vmem:[%s11114_s2 + $0x2] sm:$0x3]  ;;  %vm8841_vm11 = vmand %vm1602_vm8, %vm1638_vm9 }
 0x26c   : > { %v3447_v42 = vpop.f32.mrf.mxu2  ;;  %v571_v34 = vshrl.u32 %v570_v43, 4  ;;  %v595_v43 = vsel %vm594_vm10, 1, %v11225_v51  ;;  %v4213_v52 = vadd.f32 %v4212_v62, %v8778_v14  ;;  %v8864_v14 = vsel %vm8841_vm11, 1.0, %v11262_v40  ;;  %v8873_v59 = vld [vmem:[#allocation2 + $0xed] sm:$0xff] }
 0x26d   : > { %v3533_v27 = vadd.f32 %v3447_v42, %v8190_v1  ;;  %v4177_v33 = vmul.f32 %v4064_v0, %v8794_v49  ;;  %v4101_v47 = vsel %vm1859_vm1, %v4064_v0, 0.0  ;;  %v11267_v1 = vpack.c.bf16 %v8715_v3, %v8708_v20  ;;  %v8823_v42 = vld [vmem:[#allocation2 + $0xde] sm:$0xff]  ;;  %11272 = vst [vmem:[#allocation27_spill] sm:$0xff] %v8864_v14 }
 0x26e   : > { %v572_v22 = vmul.u32 18, %v571_v34  ;;  %v597_v60 = vadd.s32 %v595_v43, %v593_v4  ;;  %v11268_v20 = vpack.c.bf16 %v8706_v21, %v8704_v36  ;;  %v4771_v3 = vsel %vm2067_vm0, %v7534_v28, 0 }
 0x26f   : > { %v3781_v35 = vadd.f32 %v3695_v48, %v3533_v27  ;;  %v611_v48 = vmul.u32 14564, %v608_v39  ;;  %v8836_v34 = vmul.u32 14564, %v609_v24  ;;  %4780 = vmatpush.bf16.msra.mxu1 %v4771_v3  ;;  %v4100_v36 = vadd.f32 %v4099_v16, %v8765_v5  ;;  %v8856_v16 = vld [vmem:[#allocation2 + $0xe4] sm:$0xff] }
 0x270   : > { %7507 = vmatmul.msk.bf16.gmra.mxu3 %vm1859_vm1, %v11267_v1  ;;  %v573_v56 = vsub.s32 %v8634_v54, %v572_v22  ;;  %v3946_v0 = vpop.f32.mrf.mxu0  ;;  %v615_v54 = vshll.u32 %v8810_v12, 16  ;;  %v4214_v21 = vsel %vm1859_vm1, %v4177_v33, 0.0  ;;  %v614_v22 = vmul.u32 58254, %v609_v24  ;;  %v8858_v33 = vld [vmem:[#allocation2 + $0xec] sm:$0xff] }
 0x271   : > { %v8829_v61 = vadd.f32 %v3943_v7, %v3781_v35  ;;  %7488 = vmatmul.msk.bf16.gmra.mxu2 %vm1859_vm1, %v11268_v20  ;;  %v598_v7 = vadd.s32 %v597_v60, %v587_v2  ;;  %v11271_v43 = vpack.c.bf16 %v8719_v11, %v8717_v13  ;;  %v4102_v1 = vadd.f32 %v4101_v47, %v4100_v36  ;;  %v8871_v36 = vld [vmem:[#allocation2 + $0xe5] sm:$0xff] }
 0x272   : > { %vm1423_vm12 = vcmp.ne.s32.totalorder %v573_v56, 0  ;;  %vm1459_vm13 = vcmp.lt.s32.totalorder %v573_v56, 0  ;;  %v1531_v39 = vadd.s32 18, %v573_v56  ;;  %vm619_vm15 = vc.u32 %v611_v48, %v615_v54 }
 0x273   : > { %v3698_v27 = vpop.f32.mrf.mxu3  ;;  %vm1495_vm14 = vmand %vm1459_vm13, %vm1423_vm12  ;;  %v4065_v35 = vmul.f32 %v8758_v58, %v8829_v61  ;;  %7526 = vmatmul.msk.bf16.gmra.mxu0 %vm1859_vm1, %v11271_v43  ;;  %v599_v5 = vadd.s32 %v598_v7, %v589_v37  ;;  %v617_v62 = vshll.u32 %v8836_v34, 16  ;;  %v4215_v13 = vadd.f32 %v4214_v21, %v4213_v52 }
 0x274   : > { %v3450_v2 = vpop.f32.mrf.mxu2  ;;  %v1567_v11 = vsel %vm1495_vm14, %v1531_v39, %v573_v56  ;;  %v620_v37 = vsel %vm619_vm15, 1, %v11225_v51  ;;  %v621_v3 = vadd.s32 %v615_v54, %v611_v48  ;;  %v616_v43 = vshrl.u32 %v8810_v12, 16  ;;  %v8882_v54 = vld [vmem:[#allocation2 + $0xe6] sm:$0xff] }
 0x275   : > { %v3534_v24 = vadd.f32 %v3450_v2, %v8195_v10  ;;  %v600_v28 = vshrl.u32 %v599_v5, 4  ;;  %v622_v47 = vadd.s32 %v620_v37, %v614_v22  ;;  %v4178_v10 = vmul.f32 %v4065_v35, %v8829_v61 }
 0x276   : > { %v8877_v56 = vadd.s32 72, %v8332_v9  ;;  %vm1603_vm2 = vcmp.ge.s32.totalorder %v1567_v11, 1  ;;  %vm1639_vm3 = vcmp.le.s32.totalorder %v1567_v11, 16  ;;  %vm623_vm4 = vc.u32 %v621_v3, %v617_v62 }
 0x277   : > { %v3782_v60 = vadd.f32 %v3698_v27, %v3534_v24  ;;  %v601_v7 = vmul.u32 18, %v600_v28  ;;  %v8884_v27 = vld [vmem:[#allocation2 + $0xee] sm:$0xff]  ;;  %v624_v22 = vsel %vm623_vm4, 1, %v11225_v51  ;;  %v4103_v2 = vsel %vm1859_vm1, %v4065_v35, 0.0  ;;  %vm8896_vm5 = vmand %vm1603_vm2, %vm1639_vm3 }
 0x278   : > { %v3948_v21 = vpop.f32.mrf.mxu0  ;;  %v637_v52 = vand.u32 65535, %v8877_v56  ;;  %v638_v12 = vshrl.u32 %v8877_v56, 16  ;;  %v618_v24 = vshrl.u32 %v8836_v34, 16  ;;  %v626_v62 = vadd.s32 %v624_v22, %v622_v47 }
 0x279   : > { %v8879_v39 = vadd.f32 %v3946_v0, %v3782_v60  ;;  %v602_v48 = vsub.s32 %v8711_v38, %v601_v7  ;;  %v4216_v38 = vsel %vm1859_vm1, %v4178_v10, 0.0  ;;  %v4104_v20 = vadd.f32 %v4103_v2, %v4102_v1 }
 0x27a   : > { %v627_v47 = vadd.s32 %v626_v62, %v616_v43  ;;  %v640_v7 = vmul.u32 14564, %v637_v52  ;;  %v641_v11 = vmul.u32 58254, %v637_v52  ;;  %v8905_v22 = vmul.u32 14564, %v638_v12 }
 0x27b   : > { %v3700_v0 = vpop.f32.mrf.mxu3  ;;  %vm1424_vm6 = vcmp.ne.s32.totalorder %v602_v48, 0  ;;  %vm1460_vm7 = vcmp.lt.s32.totalorder %v602_v48, 0  ;;  %v1532_v60 = vadd.s32 18, %v602_v48  ;;  %v4066_v35 = vmul.f32 %v8783_v55, %v8879_v39 }
 0x27c   : > { %v3452_v28 = vpop.f32.mrf.mxu2  ;;  %vm1496_vm8 = vmand %vm1460_vm7, %vm1424_vm6  ;;  %v4217_v5 = vadd.f32 %v4216_v38, %v4215_v13  ;;  %v8908_v58 = vadd.s32 80, %v8332_v9  ;;  %v11275_v55 = vpack.c.bf16 %v8787_v19, %v8785_v26  ;;  %v628_v43 = vadd.s32 %v627_v47, %v618_v24 }
 0x27d   : > { %v3535_v3 = vadd.f32 %v3452_v28, %v8200_v25  ;;  %v1568_v10 = vsel %vm1496_vm8, %v1532_v60, %v602_v48  ;;  %v8917_v25 = vsel %vm8896_vm5, 1.0, %v11262_v40  ;;  %v643_v48 = vmul.u32 58254, %v638_v12 }
 0x27e   : > { %11276 = vst [vmem:[#allocation28_spill] sm:$0xff] %v8917_v25  ;;  %v644_v52 = vshll.u32 %v641_v11, 16  ;;  %v4179_v1 = vmul.f32 %v4066_v35, %v8879_v39  ;;  %vm1604_vm9 = vcmp.ge.s32.totalorder %v1568_v10, 1  ;;  %vm1640_vm10 = vcmp.le.s32.totalorder %v1568_v10, 16 }
 0x27f   : > { %v3783_v4 = vadd.f32 %v3700_v0, %v3535_v3  ;;  %v11277_v0 = vpack.c.bf16 %v8762_v45, %v8760_v30  ;;  %v629_v26 = vshrl.u32 %v628_v43, 4  ;;  %v4105_v12 = vsel %vm1859_vm1, %v4066_v35, 0.0  ;;  %vm8941_vm13 = vmand %vm1604_vm9, %vm1640_vm10 }
 0x280   : > { %7508 = vmatmul.msk.bf16.gmra.mxu3 %vm1859_vm1, %v11275_v55  ;;  %v3951_v2 = vpop.f32.mrf.mxu0  ;;  %v646_v55 = vshll.u32 %v8905_v22, 16  ;;  %vm648_vm11 = vc.u32 %v640_v7, %v644_v52  ;;  %v650_v19 = vadd.s32 %v644_v52, %v640_v7  ;;  %v11278_v30 = vpack.c.bf16 %v8823_v42, %v8821_v53  ;;  %v8947_v52 = vld [vmem:[#allocation2 + $0xf4] sm:$0xff] }
 0x281   : > { %v8920_v13 = vadd.f32 %v3948_v21, %v3783_v4  ;;  %7489 = vmatmul.msk.bf16.gmra.mxu2 %vm1859_vm1, %v11277_v0  ;;  %v649_v62 = vsel %vm648_vm11, 1, %v11225_v51  ;;  %v666_v4 = vand.u32 65535, %v8908_v58  ;;  %v667_v21 = vshrl.u32 %v8908_v58, 16 }
 0x282   : > { %v630_v28 = vmul.u32 18, %v629_v26  ;;  %v651_v37 = vadd.s32 %v649_v62, %v643_v48  ;;  %vm652_vm12 = vc.u32 %v650_v19, %v646_v55  ;;  %v4218_v60 = vsel %vm1859_vm1, %v4179_v1, 0.0  ;;  %v8949_v48 = vld [vmem:[#allocation2 + $0xfc] sm:$0xff] }
 0x283   : > { %v3703_v24 = vpop.f32.mrf.mxu3  ;;  %v4067_v45 = vmul.f32 %v8864_v14, %v8920_v13  ;;  %7527 = vmatmul.msk.bf16.gmra.mxu0 %vm1859_vm1, %v11278_v30  ;;  %v645_v47 = vshrl.u32 %v641_v11, 16  ;;  %v653_v7 = vsel %vm652_vm12, 1, %v11225_v51  ;;  %v4106_v53 = vadd.f32 %v4105_v12, %v4104_v20  ;;  %v8951_v1 = vld [vmem:[#allocation2 + $0xf5] sm:$0xff]  ;;  %v8957_v55 = vld [vmem:[#allocation2 + $0xfd] sm:$0xff] }
 0x284   : > { %v3455_v38 = vpop.f32.mrf.mxu2  ;;  %v647_v42 = vshrl.u32 %v8905_v22, 16  ;;  %v655_v43 = vadd.s32 %v653_v7, %v651_v37  ;;  %v631_v0 = vsub.s32 %v8775_v18, %v630_v28  ;;  %v8959_v11 = vld [vmem:[#allocation2 + $0xf6] sm:$0xff]  ;;  %v8961_v20 = vld [vmem:[#allocation2 + $0xfe] sm:$0xff]  ;;  %v670_v22 = vmul.u32 58254, %v666_v4 }
 0x285   : > { %v3536_v35 = vadd.f32 %v3455_v38, %v8205_v15  ;;  %v8954_v15 = vadd.s32 88, %v8332_v9  ;;  %v8963_v26 = vmul.u32 14564, %v667_v21  ;;  %v4219_v19 = vadd.f32 %v4218_v60, %v4217_v5 }
 0x286   : > { %v4107_v12 = vsel %vm1859_vm1, %v4067_v45, 0.0  ;;  %v8969_v62 = vsel %vm8941_vm13, 1.0, %v11262_v40  ;;  %v4180_v18 = vmul.f32 %v4067_v45, %v8920_v13  ;;  %v656_v28 = vadd.s32 %v655_v43, %v645_v47 }
 0x287   : > { %v3784_v10 = vadd.f32 %v3703_v24, %v3536_v35  ;;  %11281 = vst [vmem:[#allocation29_spill] sm:$0xff] %v8969_v62  ;;  %v669_v24 = vmul.u32 14564, %v666_v4  ;;  %v673_v37 = vshll.u32 %v670_v22, 16  ;;  %v675_v3 = vshll.u32 %v8963_v26, 16 }
 0x288   : > { %v3953_v38 = vpop.f32.mrf.mxu0  ;;  %v8981_v7 = vadd.f32 %v4107_v12, %v4106_v53  ;;  %vm1425_vm14 = vcmp.ne.s32.totalorder %v631_v0, 0  ;;  %v672_v45 = vmul.u32 58254, %v667_v21  ;;  %vm1461_vm15 = vcmp.lt.s32.totalorder %v631_v0, 0 }
 0x289   : > { %v8972_v30 = vadd.f32 %v3951_v2, %v3784_v10  ;;  %v657_v2 = vadd.s32 %v656_v28, %v647_v42  ;;  %vm677_vm2 = vc.u32 %v669_v24, %v673_v37  ;;  %v679_v47 = vadd.s32 %v673_v37, %v669_v24  ;;  %vm8991_vm4 = vmand %vm1461_vm15, %vm1425_vm14 }
 0x28a   : > { %v695_v43 = vand.u32 65535, %v8954_v15  ;;  %v4220_v35 = vsel %vm1859_vm1, %v4180_v18, 0.0  ;;  %v1533_v34 = vadd.s32 18, %v631_v0  ;;  %v696_v60 = vshrl.u32 %v8954_v15, 16 }
 0x28b   : > { %v3705_v4 = vpop.f32.mrf.mxu3  ;;  %v4068_v53 = vmul.f32 %v8917_v25, %v8972_v30  ;;  %v658_v12 = vshrl.u32 %v657_v2, 4  ;;  %v678_v42 = vsel %vm677_vm2, 1, %v11225_v51  ;;  %vm681_vm3 = vc.u32 %v679_v47, %v675_v3 }
 0x28c   : > { %v3457_v10 = vpop.f32.mrf.mxu2  ;;  %v674_v28 = vshrl.u32 %v670_v22, 16  ;;  %v680_v18 = vadd.s32 %v678_v42, %v672_v45  ;;  %v4221_v37 = vadd.f32 %v4220_v35, %v4219_v19  ;;  %v698_v25 = vmul.u32 14564, %v695_v43 }
 0x28d   : > { %v3537_v5 = vadd.f32 %v3457_v10, %v8210_v46  ;;  %v682_v46 = vsel %vm681_vm3, 1, %v11225_v51  ;;  %v11284_v10 = vpack.c.bf16 %v8873_v59, %v8871_v36  ;;  %v659_v2 = vmul.u32 18, %v658_v12 }
 0x28e   : > { %v699_v14 = vmul.u32 58254, %v695_v43  ;;  %v676_v22 = vshrl.u32 %v8963_v26, 16  ;;  %v684_v45 = vadd.s32 %v682_v46, %v680_v18  ;;  %v9007_v19 = vmul.u32 14564, %v696_v60 }
 0x28f   : > { %v3785_v21 = vadd.f32 %v3705_v4, %v3537_v5  ;;  %v11285_v4 = vpack.c.bf16 %v8858_v33, %v8856_v16  ;;  %v4181_v36 = vmul.f32 %v4068_v53, %v8972_v30  ;;  %v1569_v59 = vsel %vm8991_vm4, %v1533_v34, %v631_v0 }
 0x290   : > { %7509 = vmatmul.msk.bf16.gmra.mxu3 %vm1859_vm1, %v11284_v10  ;;  %v3956_v5 = vpop.f32.mrf.mxu0  ;;  %v660_v35 = vsub.s32 %v8877_v56, %v659_v2  ;;  %v685_v16 = vadd.s32 %v684_v45, %v674_v28  ;;  %v701_v33 = vmul.u32 58254, %v696_v60  ;;  %v704_v12 = vshll.u32 %v9007_v19, 16 }
 0x291   : > { %v9000_v3 = vadd.f32 %v3953_v38, %v3785_v21  ;;  %7490 = vmatmul.msk.bf16.gmra.mxu2 %vm1859_vm1, %v11285_v4  ;;  %v702_v38 = vshll.u32 %v699_v14, 16  ;;  %v11286_v26 = vpack.c.bf16 %v8884_v27, %v8882_v54  ;;  %vm1605_vm8 = vcmp.ge.s32.totalorder %v1569_v59, 1 }
 0x292   : > { %vm1426_vm5 = vcmp.ne.s32.totalorder %v660_v35, 0  ;;  %vm1462_vm6 = vcmp.lt.s32.totalorder %v660_v35, 0  ;;  %v1534_v34 = vadd.s32 18, %v660_v35  ;;  %vm1641_vm9 = vcmp.le.s32.totalorder %v1569_v59, 16  ;;  %v9034_v59 = vld [vmem:[#allocation2 + $0x104] sm:$0xff] }
 0x293   : > { %v4069_v47 = vmul.f32 %v8969_v62, %v9000_v3  ;;  %v3708_v43 = vpop.f32.mrf.mxu3  ;;  %7528 = vmatmul.msk.bf16.gmra.mxu0 %vm1859_vm1, %v11286_v26  ;;  %vm706_vm7 = vc.u32 %v698_v25, %v702_v38  ;;  %vm1498_vm10 = vmand %vm1462_vm6, %vm1426_vm5  ;;  %v686_v0 = vadd.s32 %v685_v16, %v676_v22  ;;  %v708_v28 = vadd.s32 %v702_v38, %v698_v25 }
 0x294   : > { %v3460_v42 = vpop.f32.mrf.mxu2  ;;  %v1570_v21 = vsel %vm1498_vm10, %v1534_v34, %v660_v35  ;;  %v707_v24 = vsel %vm706_vm7, 1, %v11225_v51  ;;  %v4109_v54 = vsel %vm1859_vm1, %v4068_v53, 0.0  ;;  %v4222_v27 = vsel %vm1859_vm1, %v4181_v36, 0.0  ;;  %vm9026_vm11 = vmand %vm1605_vm8, %vm1641_vm9  ;;  %v9036_v35 = vld [vmem:[#allocation2 + $0x10c] sm:$0xff] }
 0x295   : > { %v3538_v56 = vadd.f32 %v3460_v42, %v8215_v57  ;;  %v4182_v60 = vmul.f32 %v4069_v47, %v9000_v3  ;;  %v703_v46 = vshrl.u32 %v699_v14, 16  ;;  %v4111_v10 = vsel %vm1859_vm1, %v4069_v47, 0.0 }
 0x296   : > { %v687_v2 = vshrl.u32 %v686_v0, 4  ;;  %v709_v4 = vadd.s32 %v707_v24, %v701_v33  ;;  %vm710_vm12 = vc.u32 %v708_v28, %v704_v12  ;;  %vm1606_vm13 = vcmp.ge.s32.totalorder %v1570_v21, 1  ;;  %v9065_v24 = vld [vmem:[#allocation2 + $0x10d] sm:$0xff] }
 0x297   : > { %v3786_v18 = vadd.f32 %v3708_v43, %v3538_v56  ;;  %vm1642_vm14 = vcmp.le.s32.totalorder %v1570_v21, 16  ;;  %v711_v25 = vsel %vm710_vm12, 1, %v11225_v51  ;;  %v4224_v53 = vsel %vm1859_vm1, %v4182_v60, 0.0  ;;  %v9063_v21 = vld [vmem:[#allocation2 + $0x105] sm:$0xff] }
 0x298   : > { %v3958_v45 = vpop.f32.mrf.mxu0  ;;  %v688_v36 = vmul.u32 18, %v687_v2  ;;  %v713_v14 = vadd.s32 %v711_v25, %v709_v4  ;;  %v9039_v38 = vadd.s32 96, %v8332_v9  ;;  %v4110_v47 = vadd.f32 %v4109_v54, %v8981_v7  ;;  %vm9049_vm15 = vmand %vm1606_vm13, %vm1642_vm14  ;;  %v9067_v28 = vld [vmem:[#allocation2 + $0x106] sm:$0xff]  ;;  %v9069_v54 = vld [vmem:[#allocation2 + $0x10e] sm:$0xff] }
 0x299   : > { %v9030_v22 = vadd.f32 %v3956_v5, %v3786_v18  ;;  %v4223_v5 = vadd.f32 %v4222_v27, %v4221_v37  ;;  %v9045_v43 = vsel %vm9026_vm11, 1.0, %v11262_v40  ;;  %v705_v33 = vshrl.u32 %v9007_v19, 16 }
 0x29a   : > { %11289 = vst [vmem:[#allocation30_spill] sm:$0xff] %v9045_v43  ;;  %v689_v42 = vsub.s32 %v8908_v58, %v688_v36  ;;  %v714_v34 = vadd.s32 %v713_v14, %v703_v46  ;;  %v724_v7 = vand.u32 65535, %v9039_v38  ;;  %v725_v37 = vshrl.u32 %v9039_v38, 16 }
 0x29b   : > { %v3710_v16 = vpop.f32.mrf.mxu3  ;;  %v9056_v56 = vadd.f32 %v4111_v10, %v4110_v47  ;;  %v9058_v0 = vadd.f32 %v4224_v53, %v4223_v5  ;;  %v9072_v27 = vadd.s32 104, %v8332_v9  ;;  %v9079_v18 = vsel %vm9049_vm15, 1.0, %v11262_v40 }
 0x29c   : > { %v3462_v12 = vpop.f32.mrf.mxu2  ;;  %vm1427_vm2 = vcmp.ne.s32.totalorder %v689_v42, 0  ;;  %vm1463_vm3 = vcmp.lt.s32.totalorder %v689_v42, 0  ;;  %v1535_v58 = vadd.s32 18, %v689_v42  ;;  %11292 = vst [vmem:[#allocation31_spill] sm:$0xff] %v9079_v18  ;;  %v715_v10 = vadd.s32 %v714_v34, %v705_v33 }
 0x29d   : > { %v3539_v60 = vadd.f32 %v3462_v12, %v8220_v6  ;;  %v4070_v6 = vmul.f32 %v9045_v43, %v9030_v22  ;;  %vm1499_vm4 = vmand %vm1463_vm3, %vm1427_vm2  ;;  %v11293_v57 = vpack.c.bf16 %v8957_v55, %v8951_v1  ;;  %v727_v4 = vmul.u32 14564, %v724_v7 }
 0x29e   : > { %v1571_v2 = vsel %vm1499_vm4, %v1535_v58, %v689_v42  ;;  %v728_v25 = vmul.u32 58254, %v724_v7  ;;  %v9085_v53 = vmul.u32 14564, %v725_v37  ;;  %v11294_v47 = vpack.c.bf16 %v8949_v48, %v8947_v52 }
 0x29f   : > { %v3787_v46 = vadd.f32 %v3710_v16, %v3539_v60  ;;  %v716_v5 = vshrl.u32 %v715_v10, 4  ;;  %v753_v12 = vand.u32 65535, %v9072_v27  ;;  %vm1607_vm5 = vcmp.ge.s32.totalorder %v1571_v2, 1 }
 0x2a0   : > { %7510 = vmatmul.msk.bf16.gmra.mxu3 %vm1859_vm1, %v11293_v57  ;;  %v3961_v14 = vpop.f32.mrf.mxu0  ;;  %v731_v55 = vshll.u32 %v728_v25, 16  ;;  %v733_v33 = vshll.u32 %v9085_v53, 16  ;;  %vm1643_vm6 = vcmp.le.s32.totalorder %v1571_v2, 16  ;;  %v9103_v26 = vadd.s32 120, %v8332_v9 }
 0x2a1   : > { %v9087_v36 = vadd.f32 %v3958_v45, %v3787_v46  ;;  %7491 = vmatmul.msk.bf16.gmra.mxu2 %vm1859_vm1, %v11294_v47  ;;  %v9100_v45 = vadd.s32 112, %v8332_v9  ;;  %v717_v48 = vmul.u32 18, %v716_v5  ;;  %v4113_v42 = vsel %vm1859_vm1, %v4070_v6, 0.0  ;;  %v9110_v46 = vpop.f32.mrf.mxu1  ;;  %vm1679_vm8 = vmand %vm1607_vm5, %vm1643_vm6 }
 0x2a2   : > { %v11295_v34 = vpack.c.bf16 %v8961_v20, %v8959_v11  ;;  %v730_v60 = vmul.u32 58254, %v725_v37  ;;  %vm735_vm7 = vc.u32 %v727_v4, %v731_v55  ;;  %v737_v58 = vadd.s32 %v731_v55, %v727_v4 }
 0x2a3   : > { %v3713_v52 = vpop.f32.mrf.mxu3  ;;  %v4183_v10 = vmul.f32 %v4070_v6, %v9030_v22  ;;  %v718_v47 = vsub.s32 %v8954_v15, %v717_v48  ;;  %v754_v5 = vshrl.u32 %v9072_v27, 16  ;;  %v732_v11 = vshrl.u32 %v728_v25, 16 }
 0x2a4   : > { %7529 = vmatmul.msk.bf16.gmra.mxu0 %vm1859_vm1, %v11295_v34  ;;  %v3465_v7 = vpop.f32.mrf.mxu2  ;;  %v736_v20 = vsel %vm735_vm7, 1, %v11225_v51  ;;  %vm739_vm9 = vc.u32 %v737_v58, %v733_v33  ;;  %v9119_v37 = vmul.u32 58254, %v753_v12  ;;  %v4071_v4 = vmul.f32 %v9079_v18, %v9087_v36 }
 0x2a5   : > { %v3540_v57 = vadd.f32 %v3465_v7, %v8225_v17  ;;  %vm1428_vm10 = vcmp.ne.s32.totalorder %v718_v47, 0  ;;  %vm1464_vm11 = vcmp.lt.s32.totalorder %v718_v47, 0  ;;  %v1536_v17 = vadd.s32 18, %v718_v47 }
 0x2a6   : > { %vm1500_vm12 = vmand %vm1464_vm11, %vm1428_vm10  ;;  %v738_v15 = vadd.s32 %v736_v20, %v730_v60  ;;  %v740_v6 = vsel %vm739_vm9, 1, %v11225_v51  ;;  %v756_v48 = vmul.u32 14564, %v753_v12  ;;  %v9125_v2 = vsel %vm1679_vm8, 1.0, %v11262_v40 }
 0x2a7   : > { %v3788_v55 = vadd.f32 %v3713_v52, %v3540_v57  ;;  %11296 = vst [vmem:[#allocation32_spill] sm:$0xff] %v9125_v2  ;;  %v9129_v34 = vmul.u32 14564, %v754_v5  ;;  %v760_v7 = vshll.u32 %v9119_v37, 16  ;;  %v4226_v52 = vsel %vm1859_vm1, %v4183_v10, 0.0 }
 0x2a8   : > { %v3963_v33 = vpop.f32.mrf.mxu0  ;;  %v1572_v58 = vsel %vm1500_vm12, %v1536_v17, %v718_v47  ;;  %v734_v57 = vshrl.u32 %v9085_v53, 16  ;;  %v742_v1 = vadd.s32 %v740_v6, %v738_v15  ;;  %v4114_v60 = vadd.f32 %v4113_v42, %v9056_v56 }
 0x2a9   : > { %v9127_v25 = vadd.f32 %v3961_v14, %v3788_v55  ;;  %v4184_v12 = vmul.f32 %v4071_v4, %v9087_v36  ;;  %v759_v19 = vmul.u32 58254, %v754_v5  ;;  %v762_v14 = vshll.u32 %v9129_v34, 16  ;;  %v3267_v5 = vpop.f32.mrf.mxu1 }
 0x2aa   : > { %v743_v18 = vadd.s32 %v742_v1, %v732_v11  ;;  %vm764_vm13 = vc.u32 %v756_v48, %v760_v7  ;;  %v766_v43 = vadd.s32 %v760_v7, %v756_v48  ;;  %v4227_v10 = vadd.f32 %v4226_v52, %v9058_v0 }
 0x2ab   : > { %v3715_v20 = vpop.f32.mrf.mxu3  ;;  %v4072_v55 = vmul.f32 %v9125_v2, %v9127_v25  ;;  %v4115_v53 = vsel %vm1859_vm1, %v4071_v4, 0.0  ;;  %vm1608_vm14 = vcmp.ge.s32.totalorder %v1572_v58, 1  ;;  %vm1644_vm15 = vcmp.le.s32.totalorder %v1572_v58, 16  ;;  %v9154_v4 = vld [vmem:[#allocation2 + $0x11c] sm:$0xff] }
 0x2ac   : > { %v3467_v16 = vpop.f32.mrf.mxu2  ;;  %v744_v56 = vadd.s32 %v743_v18, %v734_v57  ;;  %v765_v42 = vsel %vm764_vm13, 1, %v11225_v51  ;;  %vm768_vm2 = vc.u32 %v766_v43, %v762_v14  ;;  %v761_v15 = vshrl.u32 %v9119_v37, 16  ;;  %v9152_v43 = vld [vmem:[#allocation2 + $0x114] sm:$0xff]  ;;  %vm9158_vm3 = vmand %vm1608_vm14, %vm1644_vm15 }
 0x2ad   : > { %v3541_v47 = vadd.f32 %v3467_v16, %v8230_v32  ;;  %v767_v6 = vadd.s32 %v765_v42, %v759_v19  ;;  %v769_v1 = vsel %vm768_vm2, 1, %v11225_v51  ;;  %v4228_v11 = vsel %vm1859_vm1, %v4184_v12, 0.0  ;;  %v11303_v42 = vld [vmem:[#allocation8_spill] sm:$0xff] }
 0x2ae   : > { %v4185_v0 = vmul.f32 %v4072_v55, %v9127_v25  ;;  %v11297_v32 = vpack.c.bf16 %v9065_v24, %v9063_v21  ;;  %v745_v18 = vshrl.u32 %v744_v56, 4  ;;  %v763_v16 = vshrl.u32 %v9129_v34, 16 }
 0x2af   : > { %v3789_v17 = vadd.f32 %v3715_v20, %v3541_v47  ;;  %v11300_v21 = vpack.c.bf16 %v9036_v35, %v9034_v59  ;;  %v771_v24 = vadd.s32 %v769_v1, %v767_v6  ;;  %v782_v34 = vand.u32 65535, %v9100_v45 }
 0x2b0   : > { %7511 = vmatmul.msk.bf16.gmra.mxu3 %vm1859_vm1, %v11297_v32  ;;  %v3966_v48 = vpop.f32.mrf.mxu0  ;;  %v783_v7 = vshrl.u32 %v9100_v45, 16  ;;  %v9172_v52 = vadd.f32 %v9110_v46, %v8338_v8  ;;  %v9175_v58 = vadd.f32 %v3267_v5, %v8349_v31  ;;  %v746_v57 = vmul.u32 18, %v745_v18  ;;  %v9206_v18 = vld [vmem:[#allocation2 + $0x116] sm:$0xff] }
 0x2b1   : > { %v9162_v37 = vadd.f32 %v3963_v33, %v3789_v17  ;;  %7492 = vmatmul.msk.bf16.gmra.mxu2 %vm1859_vm1, %v11300_v21  ;;  %v9177_v33 = vadd.f32 %v4115_v53, %v4114_v60  ;;  %v9179_v12 = vadd.f32 %v4228_v11, %v4227_v10  ;;  %v772_v35 = vadd.s32 %v771_v24, %v761_v15  ;;  %v3596_v10 = vld [vmem:[#allocation2 + $0x115] sm:$0xff]  ;;  %v3597_v53 = vld [vmem:[#allocation2 + $0x11d] sm:$0xff] }
 0x2b2   : > { %v3369_v20 = vpack.c.bf16 %v9154_v4, %v9152_v43  ;;  %v9183_v14 = vmul.u32 58254, %v782_v34  ;;  %v9186_v47 = vsel %vm1859_vm1, %v4072_v55, 0.0  ;;  %v9191_v8 = vsel %vm9158_vm3, 1.0, %v11262_v40 }
 0x2b3   : > { %v3718_v59 = vpop.f32.mrf.mxu3  ;;  %11301 = vst [vmem:[#allocation33_spill] sm:$0xff] %v9191_v8  ;;  %v11302_v31 = vpack.c.bf16 %v9069_v54, %v9067_v28  ;;  %v747_v60 = vsub.s32 %v9039_v38, %v746_v57  ;;  %v9198_v56 = vmul.u32 14564, %v783_v7  ;;  %v9201_v55 = vsel %vm1859_vm1, %v4185_v0, 0.0  ;;  %v9208_v0 = vld [vmem:[#allocation2 + $0x11e] sm:$0xff] }
 0x2b4   : > { %v3470_v46 = vpop.f32.mrf.mxu2  ;;  %v773_v17 = vadd.s32 %v772_v35, %v763_v16  ;;  %v811_v15 = vand.u32 65535, %v9103_v26  ;;  %v785_v54 = vmul.u32 14564, %v782_v34  ;;  %v3617_v38 = vpack.c.bf16 %v3597_v53, %v3596_v10 }
 0x2b5   : > { %7530 = vmatmul.msk.bf16.gmra.mxu0 %vm1859_vm1, %v11302_v31  ;;  %v3542_v5 = vadd.f32 %v3470_v46, %v11303_v42  ;;  %vm1429_vm4 = vcmp.ne.s32.totalorder %v747_v60, 0  ;;  %vm1465_vm5 = vcmp.lt.s32.totalorder %v747_v60, 0  ;;  %v1537_v28 = vadd.s32 18, %v747_v60 }
 0x2b6   : > { %vm1501_vm6 = vmand %vm1465_vm5, %vm1429_vm4  ;;  %v774_v1 = vshrl.u32 %v773_v17, 4  ;;  %v789_v11 = vshll.u32 %v9183_v14, 16  ;;  %v788_v19 = vmul.u32 58254, %v783_v7  ;;  %v791_v16 = vshll.u32 %v9198_v56, 16 }
 0x2b7   : > { %v3790_v6 = vadd.f32 %v3718_v59, %v3542_v5  ;;  %v1573_v32 = vsel %vm1501_vm6, %v1537_v28, %v747_v60  ;;  %v812_v21 = vshrl.u32 %v9103_v26, 16  ;;  %v3269_v59 = vpop.f32.mrf.mxu1  ;;  %v4073_v35 = vmul.f32 %v9191_v8, %v9162_v37 }
 0x2b8   : > { %vm1609_vm7 = vcmp.ge.s32.totalorder %v1573_v32, 1  ;;  %vm1645_vm8 = vcmp.le.s32.totalorder %v1573_v32, 16  ;;  %v3968_v34 = vpop.f32.mrf.mxu0  ;;  %v775_v57 = vmul.u32 18, %v774_v1  ;;  %vm793_vm10 = vc.u32 %v785_v54, %v789_v11 }
 0x2b9   : > { %v9212_v24 = vadd.f32 %v3966_v48, %v3790_v6  ;;  %vm1681_vm9 = vmand %vm1609_vm7, %vm1645_vm8  ;;  %v795_v31 = vadd.s32 %v789_v11, %v785_v54  ;;  %v9216_v46 = vmul.u32 58254, %v811_v15  ;;  %v3865_v10 = vpack.c.bf16 %v9208_v0, %v9206_v18 }
 0x2ba   : > { %v776_v7 = vsub.s32 %v9072_v27, %v775_v57  ;;  %v790_v48 = vshrl.u32 %v9183_v14, 16  ;;  %v794_v53 = vsel %vm793_vm10, 1, %v11225_v51  ;;  %v9224_v42 = vsel %vm1681_vm9, 1.0, %v11262_v40 }
 0x2bb   : > { %v3720_v60 = vpop.f32.mrf.mxu3  ;;  %11304 = vst [vmem:[#allocation8_spill] sm:$0xff] %v9224_v42  ;;  %v796_v17 = vadd.s32 %v794_v53, %v788_v19  ;;  %vm797_vm11 = vc.u32 %v795_v31, %v791_v16  ;;  %v9226_v28 = vmul.u32 14564, %v812_v21  ;;  %v4119_v6 = vsel %vm1859_vm1, %v4073_v35, 0.0 }
 0x2bc   : > { %v3472_v5 = vpop.f32.mrf.mxu2  ;;  %vm1430_vm12 = vcmp.ne.s32.totalorder %v776_v7, 0  ;;  %vm1466_vm13 = vcmp.lt.s32.totalorder %v776_v7, 0  ;;  %v1538_v27 = vadd.s32 18, %v776_v7  ;;  %v798_v14 = vsel %vm797_vm11, 1, %v11225_v51 }
 0x2bd   : > { %v3543_v54 = vadd.f32 %v3472_v5, %v8393_v29  ;;  %vm1502_vm14 = vmand %vm1466_vm13, %vm1430_vm12  ;;  %v814_v1 = vmul.u32 14564, %v811_v15  ;;  %v818_v11 = vshll.u32 %v9216_v46, 16  ;;  %v4186_v32 = vmul.f32 %v4073_v35, %v9162_v37 }
 0x2be   : > { %v1574_v18 = vsel %vm1502_vm14, %v1538_v27, %v776_v7  ;;  %v792_v0 = vshrl.u32 %v9198_v56, 16  ;;  %v800_v19 = vadd.s32 %v798_v14, %v796_v17  ;;  %v4074_v29 = vmul.f32 %v9224_v42, %v9212_v24 }
 0x2bf   : > { %vm1610_vm15 = vcmp.ge.s32.totalorder %v1574_v18, 1  ;;  %vm1646_vm2 = vcmp.le.s32.totalorder %v1574_v18, 16  ;;  %v817_v16 = vmul.u32 58254, %v812_v21  ;;  %v4118_v57 = vadd.f32 %v9186_v47, %v9177_v33  ;;  %v3598_v18 = vld [vmem:[#allocation2 + $0x125] sm:$0xff] }
 0x2c0   : > { %7512 = vmatmul.msk.bf16.gmra.mxu3 %vm1859_vm1, %v3617_v38  ;;  %v3791_v15 = vadd.f32 %v3720_v60, %v3543_v54  ;;  %v3971_v31 = vpop.f32.mrf.mxu0  ;;  %v801_v56 = vadd.s32 %v800_v19, %v790_v48  ;;  %v820_v35 = vshll.u32 %v9226_v28, 16  ;;  %v9245_v7 = vadd.f32 %v3269_v59, %v8365_v23  ;;  %vm1682_vm4 = vmand %vm1610_vm15, %vm1646_vm2  ;;  %v9259_v23 = vpop.f32.mrf.mxu1  ;;  %v11305_v48 = vld [vmem:[#allocation9_spill] sm:$0xff] }
 0x2c1   : > { %7493 = vmatmul.msk.bf16.gmra.mxu2 %vm1859_vm1, %v3369_v20  ;;  %vm822_vm3 = vc.u32 %v814_v1, %v818_v11  ;;  %v824_v53 = vadd.s32 %v818_v11, %v814_v1  ;;  %v9248_v38 = vadd.s32 128, %v8332_v9  ;;  %v9252_v33 = vadd.f32 %v9201_v55, %v9179_v12 }
 0x2c2   : > { %v9254_v47 = vadd.f32 %v4119_v6, %v4118_v57  ;;  %v802_v43 = vadd.s32 %v801_v56, %v792_v0  ;;  %v823_v20 = vsel %vm822_vm3, 1, %v11225_v51  ;;  %v9262_v21 = vsel %vm1859_vm1, %v4186_v32, 0.0  ;;  %v3599_v0 = vld [vmem:[#allocation2 + $0x12d] sm:$0xff] }
 0x2c3   : > { %v3723_v4 = vpop.f32.mrf.mxu3  ;;  %v9265_v59 = vsel %vm1859_vm1, %v4074_v29, 0.0  ;;  %v825_v55 = vadd.s32 %v823_v20, %v817_v16  ;;  %vm826_vm5 = vc.u32 %v824_v53, %v820_v35  ;;  %v9268_v60 = vadd.f32 %v3968_v34, %v3791_v15 }
 0x2c4   : > { %v3475_v12 = vpop.f32.mrf.mxu2  ;;  %v803_v17 = vshrl.u32 %v802_v43, 4  ;;  %v819_v54 = vshrl.u32 %v9216_v46, 16  ;;  %v9273_v27 = vsel %vm1682_vm4, 1.0, %v11262_v40  ;;  %v827_v6 = vsel %vm826_vm5, 1, %v11225_v51  ;;  %v3350_v43 = vld [vmem:[#allocation2 + $0x124] sm:$0xff] }
 0x2c5   : > { %7531 = vmatmul.msk.bf16.gmra.mxu0 %vm1859_vm1, %v3865_v10  ;;  %v3544_v5 = vadd.f32 %v3475_v12, %v11305_v48  ;;  %11306 = vst [vmem:[#allocation9_spill] sm:$0xff] %v9273_v27  ;;  %v840_v14 = vand.u32 65535, %v9248_v38  ;;  %v841_v1 = vshrl.u32 %v9248_v38, 16  ;;  %v821_v32 = vshrl.u32 %v9226_v28, 16 }
 0x2c6   : > { %v804_v10 = vmul.u32 18, %v803_v17  ;;  %v829_v34 = vadd.s32 %v827_v6, %v825_v55  ;;  %v4187_v19 = vmul.f32 %v4074_v29, %v9212_v24  ;;  %v9284_v15 = vmul.f32 %v9273_v27, %v9268_v60 }
 0x2c7   : > { %v3792_v11 = vadd.f32 %v3723_v4, %v3544_v5  ;;  %v843_v16 = vmul.u32 14564, %v840_v14  ;;  %v844_v46 = vmul.u32 58254, %v840_v14  ;;  %v9280_v57 = vmul.u32 14564, %v841_v1  ;;  %v3351_v4 = vld [vmem:[#allocation2 + $0x12c] sm:$0xff] }
 0x2c8   : > { %v805_v56 = vsub.s32 %v9100_v45, %v804_v10  ;;  %v9289_v53 = vpop.f32.mrf.mxu0  ;;  %v830_v28 = vadd.s32 %v829_v34, %v819_v54  ;;  %v3618_v20 = vpack.c.bf16 %v3599_v0, %v3598_v18  ;;  %v846_v29 = vmul.u32 58254, %v841_v1  ;;  %v3846_v45 = vld [vmem:[#allocation2 + $0x126] sm:$0xff]  ;;  %v7827_v10 = vld [vmem:[%s7924_s27 + $0x98] sm:$0xff]   ;;  %v3274_v27 = vpop.f32.mrf.mxu1 }
 0x2c9   : > { %v9287_v35 = vadd.f32 %v3971_v31, %v3792_v11  ;;  %v847_v12 = vshll.u32 %v844_v46, 16  ;;  %v849_v55 = vshll.u32 %v9280_v57, 16  ;;  %v3847_v31 = vld [vmem:[#allocation2 + $0x12e] sm:$0xff]  ;;  %v9295_v14 = vadd.s32 136, %v8332_v9 }
 0x2ca   : > { %vm1431_vm6 = vcmp.ne.s32.totalorder %v805_v56, 0  ;;  %vm1467_vm7 = vcmp.lt.s32.totalorder %v805_v56, 0  ;;  %v1539_v48 = vadd.s32 18, %v805_v56  ;;  %v831_v5 = vadd.s32 %v830_v28, %v821_v32 }
 0x2cb   : > { %v9292_v17 = vpop.f32.mrf.mxu3  ;;  %vm1503_vm8 = vmand %vm1467_vm7, %vm1431_vm6  ;;  %vm851_vm9 = vc.u32 %v843_v16, %v847_v12  ;;  %v853_v54 = vadd.s32 %v847_v12, %v843_v16  ;;  %v7785_v1 = vunpack.c.h.bf16 %v7827_v10  ;;  %v3370_v18 = vpack.c.bf16 %v3351_v4, %v3350_v43 }
 0x2cc   : > { %v3477_v6 = vpop.f32.mrf.mxu2  ;;  %v1575_v11 = vsel %vm1503_vm8, %v1539_v48, %v805_v56  ;;  %v832_v34 = vshrl.u32 %v831_v5, 4  ;;  %v852_v0 = vsel %vm851_vm9, 1, %v11225_v51  ;;  %v3866_v32 = vpack.c.bf16 %v3847_v31, %v3846_v45  ;;  %v11309_v45 = vld [vmem:[#allocation10_spill] sm:$0xff] }
 0x2cd   : > { %v848_v28 = vshrl.u32 %v844_v46, 16  ;;  %v854_v42 = vadd.s32 %v852_v0, %v846_v29  ;;  %vm855_vm10 = vc.u32 %v853_v54, %v849_v55  ;;  %1899 = vst.msk [vmem:[#allocation2 + $0x138] sm:$0xff] %vm1859_vm1, %v7785_v1  ;;  %v850_v16 = vshrl.u32 %v9280_v57, 16 }
 0x2ce   : > { %v833_v8 = vmul.u32 18, %v832_v34  ;;  %v856_v12 = vsel %vm855_vm10, 1, %v11225_v51  ;;  %v869_v2 = vand.u32 65535, %v9295_v14  ;;  %vm1611_vm11 = vcmp.ge.s32.totalorder %v1575_v11, 1 }
 0x2cf   : > { %vm1647_vm12 = vcmp.le.s32.totalorder %v1575_v11, 16  ;;  %v858_v56 = vadd.s32 %v856_v12, %v854_v42  ;;  %v870_v43 = vshrl.u32 %v9295_v14, 16  ;;  %v9307_v46 = vadd.f32 %v9259_v23, %v8395_v41  ;;  %v1817_v41 = vld [vmem:[%s7924_s27 + $0xa0] sm:$0x7] }
 0x2d0   : > { %7513 = vmatmul.msk.bf16.gmra.mxu3 %vm1859_vm1, %v3618_v20  ;;  %v9310_v4 = vadd.f32 %v3274_v27, %v8469_v63  ;;  %v4233_v57 = vadd.f32 %v9262_v21, %v9252_v33  ;;  %v834_v29 = vsub.s32 %v9103_v26, %v833_v8  ;;  %v3976_v55 = vpop.f32.mrf.mxu0  ;;  %v4122_v42 = vadd.f32 %v9265_v59, %v9254_v47  ;;  %vm9326_vm13 = vmand %vm1611_vm11, %vm1647_vm12 }
 0x2d1   : > { %7494 = vmatmul.msk.bf16.gmra.mxu2 %vm1859_vm1, %v3370_v18  ;;  %v859_v20 = vadd.s32 %v858_v56, %v848_v28  ;;  %v9318_v48 = vmul.u32 58254, %v869_v2  ;;  %v9320_v5 = vmul.u32 14564, %v870_v43  ;;  %v4234_v63 = vsel %vm1859_vm1, %v4187_v19, 0.0 }
 0x2d2   : > { %vm1432_vm14 = vcmp.ne.s32.totalorder %v834_v29, 0  ;;  %vm1468_vm15 = vcmp.lt.s32.totalorder %v834_v29, 0  ;;  %v872_v8 = vmul.u32 14564, %v869_v2  ;;  %v4188_v47 = vmul.f32 %v9284_v15, %v9268_v60 }
 0x2d3   : > { %v3728_v26 = vpop.f32.mrf.mxu3  ;;  %vm1504_vm2 = vmand %vm1468_vm15, %vm1432_vm14  ;;  %v1540_v23 = vadd.s32 18, %v834_v29  ;;  %v860_v59 = vadd.s32 %v859_v20, %v850_v16  ;;  %v876_v27 = vshll.u32 %v9318_v48, 16  ;;  %v3545_v19 = vadd.f32 %v3477_v6, %v8403_v44 }
 0x2d4   : > { %v3480_v21 = vpop.f32.mrf.mxu2  ;;  %v875_v54 = vmul.u32 58254, %v870_v43  ;;  %v1858_v10 = vunpack.c.l.bf16 %v1817_v41  ;;  %v9339_v2 = vsel %vm9326_vm13, 1.0, %v11262_v40  ;;  %v878_v34 = vshll.u32 %v9320_v5, 16 }
 0x2d5   : > { %7532 = vmatmul.msk.bf16.gmra.mxu0 %vm1859_vm1, %v3866_v32  ;;  %v3546_v31 = vadd.f32 %v3480_v21, %v11309_v45  ;;  %11310 = vst [vmem:[#allocation10_spill] sm:$0xff] %v9339_v2  ;;  %v1576_v1 = vsel %vm1504_vm2, %v1540_v23, %v834_v29  ;;  %v861_v11 = vshrl.u32 %v860_v59, 4  ;;  %vm880_vm5 = vc.u32 %v872_v8, %v876_v27 }
 0x2d6   : > { %vm1612_vm3 = vcmp.ge.s32.totalorder %v1576_v1, 1  ;;  %vm1648_vm4 = vcmp.le.s32.totalorder %v1576_v1, 16  ;;  %v881_v44 = vsel %vm880_vm5, 1, %v11225_v51  ;;  %v882_v6 = vadd.s32 %v876_v27, %v872_v8 }
 0x2d7   : > { %v3794_v18 = vadd.f32 %v3728_v26, %v3546_v31  ;;  %v862_v0 = vmul.u32 18, %v861_v11  ;;  %vm1900_vm6 = vcmask 29696   ;;  %v3793_v32 = vadd.f32 %v9292_v17, %v3545_v19  ;;  %vm9359_vm8 = vmand %vm1612_vm3, %vm1648_vm4 }
 0x2d8   : > { %v9346_v16 = vpop.f32.mrf.mxu0  ;;  %v883_v12 = vadd.s32 %v881_v44, %v875_v54  ;;  %1901 = vst.msk [vmem:[#allocation2 + $0x140] sm:$0x3f] %vm1900_vm6, %v1858_v10  ;;  %v9349_v56 = vadd.s32 144, %v8332_v9  ;;  %v4123_v43 = vsel %vm1859_vm1, %v9284_v15, 0.0  ;;  %v4076_v29 = vmul.f32 %v9339_v2, %v9287_v35  ;;  %v3848_v10 = vld [vmem:[#allocation2 + $0x136] sm:$0xff] }
 0x2d9   : > { %v9344_v28 = vadd.f32 %v3976_v55, %v3794_v18  ;;  %v863_v20 = vsub.s32 %v9248_v38, %v862_v0  ;;  %vm884_vm7 = vc.u32 %v882_v6, %v878_v34  ;;  %4568 = vst.msk [vmem:[#allocation3 + $0x140] sm:$0x3f] %vm1900_vm6, %v11262_v40  ;;  %v877_v55 = vshrl.u32 %v9318_v48, 16 }
 0x2da   : > { %v885_v41 = vsel %vm884_vm7, 1, %v11225_v51  ;;  %v898_v15 = vand.u32 65535, %v9349_v56  ;;  %v899_v26 = vshrl.u32 %v9349_v56, 16  ;;  %v4235_v38 = vadd.f32 %v4234_v63, %v4233_v57  ;;  %v3352_v63 = vld [vmem:[#allocation2 + $0x134] sm:$0xff] }
 0x2db   : > { %v9365_v33 = vpop.f32.mrf.mxu3  ;;  %v4236_v8 = vsel %vm1859_vm1, %v4188_v47, 0.0  ;;  %vm1433_vm9 = vcmp.ne.s32.totalorder %v863_v20, 0  ;;  %vm1469_vm10 = vcmp.lt.s32.totalorder %v863_v20, 0  ;;  %v9371_v21 = vadd.f32 %v9289_v53, %v3793_v32  ;;  %v3600_v47 = vld [vmem:[#allocation2 + $0x135] sm:$0xff] }
 0x2dc   : > { %v3482_v23 = vpop.f32.mrf.mxu2  ;;  %vm1505_vm11 = vmand %vm1469_vm10, %vm1433_vm9  ;;  %v1541_v59 = vadd.s32 18, %v863_v20  ;;  %v879_v48 = vshrl.u32 %v9320_v5, 16  ;;  %v887_v27 = vadd.s32 %v885_v41, %v883_v12  ;;  %v9374_v19 = vadd.f32 %v4123_v43, %v4122_v42 }
 0x2dd   : > { %v4189_v45 = vmul.f32 %v4076_v29, %v9287_v35  ;;  %v9380_v57 = vsel %vm9359_vm8, 1.0, %v11262_v40  ;;  %v9382_v31 = vmul.u32 58254, %v898_v15  ;;  %v9384_v1 = vmul.u32 14564, %v899_v26 }
 0x2de   : > { %11313 = vst [vmem:[#allocation34_spill] sm:$0xff] %v9380_v57  ;;  %v1577_v53 = vsel %vm1505_vm11, %v1541_v59, %v863_v20  ;;  %v888_v54 = vadd.s32 %v887_v27, %v877_v55  ;;  %v9387_v5 = vadd.s32 152, %v8332_v9  ;;  %v9389_v42 = vadd.f32 %v4236_v8, %v4235_v38 }
 0x2df   : > { %vm1613_vm12 = vcmp.ge.s32.totalorder %v1577_v53, 1  ;;  %vm1649_vm13 = vcmp.le.s32.totalorder %v1577_v53, 16  ;;  %v3353_v11 = vld [vmem:[#allocation2 + $0x13c] sm:$0xff]  ;;  %v901_v0 = vmul.u32 14564, %v898_v15  ;;  %v4077_v44 = vmul.f32 %v9380_v57, %v9371_v21 }
 0x2e0   : > { %v3601_v34 = vld [vmem:[#allocation2 + $0x13d] sm:$0xff]  ;;  %v889_v6 = vadd.s32 %v888_v54, %v879_v48  ;;  %v3981_v32 = vpop.f32.mrf.mxu0  ;;  %v3371_v12 = vpack.c.bf16 %v3353_v11, %v3352_v63  ;;  %v4125_v20 = vsel %vm1859_vm1, %v4076_v29, 0.0  ;;  %v9395_v17 = vsel %vm1859_vm1, %v4189_v45, 0.0  ;;  %vm9399_vm14 = vmand %vm1613_vm12, %vm1649_vm13 }
 0x2e1   : > { %v3849_v18 = vld [vmem:[#allocation2 + $0x13e] sm:$0xff]  ;;  %v3619_v43 = vpack.c.bf16 %v3601_v34, %v3600_v47  ;;  %v905_v41 = vshll.u32 %v9382_v31, 16  ;;  %v904_v8 = vmul.u32 58254, %v899_v26  ;;  %v907_v59 = vshll.u32 %v9384_v1, 16 }
 0x2e2   : > { %v3867_v55 = vpack.c.bf16 %v3849_v18, %v3848_v10  ;;  %v890_v15 = vshrl.u32 %v889_v6, 4  ;;  %7495 = vmatmul.msk.bf16.gmra.mxu2 %vm1859_vm1, %v3371_v12  ;;  %v9407_v48 = vadd.s32 160, %v8332_v9  ;;  %v927_v63 = vand.u32 65535, %v9387_v5  ;;  %v11316_v10 = vld [vmem:[#allocation11_spill] sm:$0xff] }
 0x2e3   : > { %7514 = vmatmul.msk.bf16.gmra.mxu3 %vm1859_vm1, %v3619_v43  ;;  %v3733_v29 = vpop.f32.mrf.mxu3  ;;  %vm909_vm15 = vc.u32 %v901_v0, %v905_v41  ;;  %v911_v45 = vadd.s32 %v905_v41, %v901_v0  ;;  %v928_v47 = vshrl.u32 %v9387_v5, 16  ;;  %v4127_v53 = vsel %vm1859_vm1, %v4077_v44, 0.0 }
 0x2e4   : > { %v3485_v27 = vpop.f32.mrf.mxu2  ;;  %v3547_v54 = vadd.f32 %v3482_v23, %v8407_v50  ;;  %v891_v26 = vmul.u32 18, %v890_v15  ;;  %v9418_v34 = vsel %vm9399_vm14, 1.0, %v11262_v40  ;;  %v906_v18 = vshrl.u32 %v9382_v31, 16 }
 0x2e5   : > { %7533 = vmatmul.msk.bf16.gmra.mxu0 %vm1859_vm1, %v3867_v55  ;;  %v3548_v11 = vadd.f32 %v3485_v27, %v11316_v10  ;;  %11317 = vst [vmem:[#allocation11_spill] sm:$0xff] %v9418_v34  ;;  %v910_v0 = vsel %vm909_vm15, 1, %v11225_v51  ;;  %vm913_vm2 = vc.u32 %v911_v45, %v907_v59  ;;  %v908_v12 = vshrl.u32 %v9384_v1, 16 }
 0x2e6   : > { %v892_v6 = vsub.s32 %v9295_v14, %v891_v26  ;;  %v912_v43 = vadd.s32 %v910_v0, %v904_v8  ;;  %v914_v50 = vsel %vm913_vm2, 1, %v11225_v51  ;;  %v930_v55 = vmul.u32 14564, %v927_v63 }
 0x2e7   : > { %v3796_v23 = vadd.f32 %v3733_v29, %v3548_v11  ;;  %v931_v41 = vmul.u32 58254, %v927_v63  ;;  %v932_v15 = vmul.u32 14564, %v928_v47  ;;  %v4190_v31 = vmul.f32 %v4077_v44, %v9371_v21 }
 0x2e8   : > { %vm1434_vm3 = vcmp.ne.s32.totalorder %v892_v6, 0  ;;  %vm1470_vm4 = vcmp.lt.s32.totalorder %v892_v6, 0  ;;  %v1542_v38 = vadd.s32 18, %v892_v6  ;;  %v916_v27 = vadd.s32 %v914_v50, %v912_v43  ;;  %v9429_v26 = vpop.f32.mrf.mxu0 }
 0x2e9   : > { %vm1506_vm5 = vmand %vm1470_vm4, %vm1434_vm3  ;;  %v9426_v10 = vadd.f32 %v3981_v32, %v3796_v23  ;;  %v933_v59 = vmul.u32 58254, %v928_v47  ;;  %v934_v14 = vshll.u32 %v931_v41, 16  ;;  %v3795_v1 = vadd.f32 %v9365_v33, %v3547_v54 }
 0x2ea   : > { %v1578_v45 = vsel %vm1506_vm5, %v1542_v38, %v892_v6  ;;  %v917_v8 = vadd.s32 %v916_v27, %v906_v18  ;;  %v936_v29 = vshll.u32 %v932_v15, 16  ;;  %v4078_v11 = vmul.f32 %v9418_v34, %v9344_v28 }
 0x2eb   : > { %11318 = vst [vmem:[#allocation35_spill] sm:$0xff] %v9426_v10  ;;  %v9431_v63 = vpop.f32.mrf.mxu3  ;;  %v935_v43 = vshrl.u32 %v931_v41, 16  ;;  %vm938_vm6 = vc.u32 %v930_v55, %v934_v14  ;;  %v940_v44 = vadd.s32 %v934_v14, %v930_v55  ;;  %vm1614_vm7 = vcmp.ge.s32.totalorder %v1578_v45, 1 }
 0x2ec   : > { %v3487_v0 = vpop.f32.mrf.mxu2  ;;  %v918_v32 = vadd.s32 %v917_v8, %v908_v12  ;;  %v939_v47 = vsel %vm938_vm6, 1, %v11225_v51  ;;  %v956_v6 = vand.u32 65535, %v9407_v48  ;;  %vm1650_vm8 = vcmp.le.s32.totalorder %v1578_v45, 16 }
 0x2ed   : > { %v941_v33 = vadd.s32 %v939_v47, %v933_v59  ;;  %vm942_vm9 = vc.u32 %v940_v44, %v936_v29  ;;  %v957_v54 = vshrl.u32 %v9407_v48, 16  ;;  %v4126_v18 = vadd.f32 %v4125_v20, %v9374_v19  ;;  %vm1686_vm10 = vmand %vm1614_vm7, %vm1650_vm8 }
 0x2ee   : > { %v919_v50 = vshrl.u32 %v918_v32, 4  ;;  %v937_v23 = vshrl.u32 %v932_v15, 16  ;;  %v943_v38 = vsel %vm942_vm9, 1, %v11225_v51  ;;  %v959_v27 = vmul.u32 14564, %v956_v6 }
 0x2ef   : > { %v945_v41 = vadd.s32 %v943_v38, %v941_v33  ;;  %v960_v55 = vmul.u32 58254, %v956_v6  ;;  %v9440_v14 = vmul.u32 14564, %v957_v54  ;;  %v4239_v12 = vadd.f32 %v9395_v17, %v9389_v42  ;;  %v11320_v6 = vld [vmem:[#allocation15_spill] sm:$0xff] }
 0x2f0   : > { %v4128_v8 = vadd.f32 %v4127_v53, %v4126_v18  ;;  %v4240_v59 = vsel %vm1859_vm1, %v4190_v31, 0.0  ;;  %v920_v29 = vmul.u32 18, %v919_v50  ;;  %v4129_v19 = vsel %vm1859_vm1, %v4078_v11, 0.0 }
 0x2f1   : > { %v9449_v20 = vadd.f32 %v9346_v16, %v3795_v1  ;;  %v946_v15 = vadd.s32 %v945_v41, %v935_v43  ;;  %v963_v44 = vshll.u32 %v960_v55, 16  ;;  %v4191_v32 = vmul.f32 %v4078_v11, %v9344_v28  ;;  %v3986_v1 = vpop.f32.mrf.mxu0  ;;  %v11322_v43 = vld [vmem:[#allocation12_spill] sm:$0xff] }
 0x2f2   : > { %v921_v47 = vsub.s32 %v9349_v56, %v920_v29  ;;  %v3549_v42 = vadd.f32 %v3487_v0, %v11320_v6  ;;  %v962_v17 = vmul.u32 58254, %v957_v54  ;;  %v9455_v31 = vsel %vm1686_vm10, 1.0, %v11262_v40 }
 0x2f3   : > { %11319 = vst [vmem:[#allocation36_spill] sm:$0xff] %v9449_v20  ;;  %v3738_v53 = vpop.f32.mrf.mxu3  ;;  %v947_v45 = vadd.s32 %v946_v15, %v937_v23  ;;  %v965_v18 = vshll.u32 %v9440_v14, 16  ;;  %vm967_vm11 = vc.u32 %v959_v27, %v963_v44  ;;  %v969_v54 = vadd.s32 %v963_v44, %v959_v27 }
 0x2f4   : > { %11321 = vst [vmem:[#allocation15_spill] sm:$0xff] %v9455_v31  ;;  %v3490_v33 = vpop.f32.mrf.mxu2  ;;  %vm1435_vm12 = vcmp.ne.s32.totalorder %v921_v47, 0  ;;  %vm1471_vm13 = vcmp.lt.s32.totalorder %v921_v47, 0  ;;  %v1543_v16 = vadd.s32 18, %v921_v47  ;;  %v968_v0 = vsel %vm967_vm11, 1, %v11225_v51 }
 0x2f5   : > { %v3550_v11 = vadd.f32 %v3490_v33, %v11322_v43  ;;  %vm1507_vm14 = vmand %vm1471_vm13, %vm1435_vm12  ;;  %v948_v56 = vshrl.u32 %v947_v45, 4  ;;  %v9461_v50 = vadd.s32 168, %v8332_v9  ;;  %v964_v23 = vshrl.u32 %v960_v55, 16 }
 0x2f6   : > { %v1579_v38 = vsel %vm1507_vm14, %v1543_v16, %v921_v47  ;;  %v970_v41 = vadd.s32 %v968_v0, %v962_v17  ;;  %vm971_vm3 = vc.u32 %v969_v54, %v965_v18  ;;  %v4079_v27 = vmul.f32 %v9455_v31, %v9449_v20 }
 0x2f7   : > { %v3798_v29 = vadd.f32 %v3738_v53, %v3550_v11  ;;  %vm1615_vm15 = vcmp.ge.s32.totalorder %v1579_v38, 1  ;;  %vm1651_vm2 = vcmp.le.s32.totalorder %v1579_v38, 16  ;;  %v949_v15 = vmul.u32 18, %v948_v56 }
 0x2f8   : > { %v972_v6 = vsel %vm971_vm3, 1, %v11225_v51  ;;  %v985_v45 = vand.u32 65535, %v9461_v50  ;;  %v986_v33 = vshrl.u32 %v9461_v50, 16  ;;  %vm1687_vm4 = vmand %vm1615_vm15, %vm1651_vm2  ;;  %v966_v44 = vshrl.u32 %v9440_v14, 16 }
 0x2f9   : > { %v9464_v34 = vadd.f32 %v3986_v1, %v3798_v29  ;;  %v950_v55 = vsub.s32 %v9387_v5, %v949_v15  ;;  %v974_v47 = vadd.s32 %v972_v6, %v970_v41  ;;  %v4242_v17 = vsel %vm1859_vm1, %v4191_v32, 0.0 }
 0x2fa   : > { %v3797_v53 = vadd.f32 %v9431_v63, %v3549_v42  ;;  %v989_v18 = vmul.u32 58254, %v985_v45  ;;  %v9474_v16 = vmul.u32 14564, %v986_v33  ;;  %v4241_v56 = vadd.f32 %v4240_v59, %v4239_v12  ;;  %v9488_v12 = vpop.f32.mrf.mxu0 }
 0x2fb   : > { %11323 = vst [vmem:[#allocation12_spill] sm:$0xff] %v9464_v34  ;;  %vm1436_vm5 = vcmp.ne.s32.totalorder %v950_v55, 0  ;;  %vm1472_vm6 = vcmp.lt.s32.totalorder %v950_v55, 0  ;;  %v1544_v1 = vadd.s32 18, %v950_v55  ;;  %v975_v43 = vadd.s32 %v974_v47, %v964_v23  ;;  %v9481_v14 = vpop.f32.mrf.mxu3 }
 0x2fc   : > { %v9476_v11 = vpop.f32.mrf.mxu2  ;;  %v9479_v0 = vsel %vm1687_vm4, 1.0, %v11262_v40  ;;  %vm1508_vm7 = vmand %vm1472_vm6, %vm1436_vm5  ;;  %v988_v5 = vmul.u32 14564, %v985_v45  ;;  %v9484_v32 = vadd.s32 176, %v8332_v9  ;;  %v4130_v63 = vadd.f32 %v4129_v19, %v4128_v8 }
 0x2fd   : > { %11324 = vst [vmem:[#allocation37_spill] sm:$0xff] %v9479_v0  ;;  %v4131_v42 = vsel %vm1859_vm1, %v4079_v27, 0.0  ;;  %v976_v54 = vadd.s32 %v975_v43, %v966_v44  ;;  %v992_v38 = vshll.u32 %v989_v18, 16  ;;  %v4243_v41 = vadd.f32 %v4242_v17, %v4241_v56 }
 0x2fe   : > { %v4192_v23 = vmul.f32 %v4079_v27, %v9449_v20  ;;  %v1580_v29 = vsel %vm1508_vm7, %v1544_v1, %v950_v55  ;;  %v991_v59 = vmul.u32 58254, %v986_v33  ;;  %v4080_v15 = vmul.f32 %v9479_v0, %v9426_v10 }
 0x2ff   : > { %v9493_v6 = vadd.f32 %v9429_v26, %v3797_v53  ;;  %v977_v45 = vshrl.u32 %v976_v54, 4  ;;  %v994_v8 = vshll.u32 %v9474_v16, 16  ;;  %v4132_v19 = vadd.f32 %v4131_v42, %v4130_v63  ;;  %v11326_v54 = vld [vmem:[#allocation13_spill] sm:$0xff] }
 0x300   : > { %vm996_vm8 = vc.u32 %v988_v5, %v992_v38  ;;  %v998_v44 = vadd.s32 %v992_v38, %v988_v5  ;;  %v1014_v47 = vand.u32 65535, %v9484_v32  ;;  %vm1616_vm9 = vcmp.ge.s32.totalorder %v1580_v29, 1 }
 0x301   : > { %11325 = vst [vmem:[#allocation38_spill] sm:$0xff] %v9493_v6  ;;  %vm1652_vm10 = vcmp.le.s32.totalorder %v1580_v29, 16  ;;  %v978_v27 = vmul.u32 18, %v977_v45  ;;  %v997_v55 = vsel %vm996_vm8, 1, %v11225_v51  ;;  %v993_v33 = vshrl.u32 %v989_v18, 16  ;;  %v11331_v18 = vld [vmem:[#allocation16_spill] sm:$0xff] }
 0x302   : > { %v999_v17 = vadd.s32 %v997_v55, %v991_v59  ;;  %vm1000_vm11 = vc.u32 %v998_v44, %v994_v8  ;;  %v1015_v1 = vshrl.u32 %v9484_v32, 16  ;;  %v4244_v26 = vsel %vm1859_vm1, %v4192_v23, 0.0  ;;  %vm9507_vm12 = vmand %vm1616_vm9, %vm1652_vm10 }
 0x303   : > { %v4193_v53 = vmul.f32 %v4080_v15, %v9426_v10  ;;  %v979_v43 = vsub.s32 %v9407_v48, %v978_v27  ;;  %v1001_v56 = vsel %vm1000_vm11, 1, %v11225_v51  ;;  %v995_v63 = vshrl.u32 %v9474_v16, 16  ;;  %v3743_v27 = vpop.f32.mrf.mxu3 }
 0x304   : > { %v3495_v5 = vpop.f32.mrf.mxu2  ;;  %v1003_v42 = vadd.s32 %v1001_v56, %v999_v17  ;;  %v1018_v45 = vmul.u32 58254, %v1014_v47  ;;  %v1017_v59 = vmul.u32 14564, %v1014_v47  ;;  %v4245_v48 = vadd.f32 %v4244_v26, %v4243_v41  ;;  %v3991_v47 = vpop.f32.mrf.mxu0 }
 0x305   : > { %v3552_v38 = vadd.f32 %v3495_v5, %v11326_v54  ;;  %vm1437_vm13 = vcmp.ne.s32.totalorder %v979_v43, 0  ;;  %vm1473_vm14 = vcmp.lt.s32.totalorder %v979_v43, 0  ;;  %v1545_v23 = vadd.s32 18, %v979_v43 }
 0x306   : > { %v4133_v8 = vsel %vm1859_vm1, %v4080_v15, 0.0  ;;  %vm1509_vm15 = vmand %vm1473_vm14, %vm1437_vm13  ;;  %v1004_v44 = vadd.s32 %v1003_v42, %v993_v33  ;;  %v1019_v16 = vmul.u32 14564, %v1015_v1  ;;  %v1020_v17 = vmul.u32 58254, %v1015_v1 }
 0x307   : > { %v1581_v55 = vsel %vm1509_vm15, %v1545_v23, %v979_v43  ;;  %v1021_v56 = vshll.u32 %v1018_v45, 16  ;;  %v3800_v5 = vadd.f32 %v3743_v27, %v3552_v38  ;;  %v4246_v29 = vsel %vm1859_vm1, %v4193_v53, 0.0 }
 0x308   : > { %v9516_v54 = vsel %vm9507_vm12, 1.0, %v11262_v40  ;;  %v1005_v0 = vadd.s32 %v1004_v44, %v995_v63  ;;  %v1023_v41 = vshll.u32 %v1019_v16, 16  ;;  %vm1617_vm2 = vcmp.ge.s32.totalorder %v1581_v55, 1 }
 0x309   : > { %11329 = vst [vmem:[#allocation13_spill] sm:$0xff] %v9516_v54  ;;  %vm1025_vm3 = vc.u32 %v1017_v59, %v1021_v56  ;;  %v1027_v15 = vadd.s32 %v1021_v56, %v1017_v59  ;;  %v9518_v33 = vadd.f32 %v3991_v47, %v3800_v5  ;;  %vm1653_vm4 = vcmp.le.s32.totalorder %v1581_v55, 16 }
 0x30a   : > { %v1006_v26 = vshrl.u32 %v1005_v0, 4  ;;  %v1026_v1 = vsel %vm1025_vm3, 1, %v11225_v51  ;;  %v9522_v43 = vadd.s32 184, %v8332_v9  ;;  %v4081_v53 = vmul.f32 %v9516_v54, %v9493_v6  ;;  %vm1689_vm6 = vmand %vm1617_vm2, %vm1653_vm4 }
 0x30b   : > { %11330 = vst [vmem:[#allocation39_spill] sm:$0xff] %v9518_v33  ;;  %v1022_v42 = vshrl.u32 %v1018_v45, 16  ;;  %v1028_v38 = vadd.s32 %v1026_v1, %v1020_v17  ;;  %vm1029_vm5 = vc.u32 %v1027_v15, %v1023_v41  ;;  %v3551_v23 = vadd.f32 %v9476_v11, %v11331_v18 }
 0x30c   : > { %v3497_v63 = vpop.f32.mrf.mxu2  ;;  %v1007_v59 = vmul.u32 18, %v1006_v26  ;;  %v1030_v44 = vsel %vm1029_vm5, 1, %v11225_v51  ;;  %v1043_v0 = vand.u32 65535, %v9522_v43  ;;  %v4134_v27 = vadd.f32 %v4133_v8, %v4132_v19 }
 0x30d   : > { %v1024_v56 = vshrl.u32 %v1019_v16, 16  ;;  %v1032_v5 = vadd.s32 %v1030_v44, %v1028_v38  ;;  %v1044_v47 = vshrl.u32 %v9522_v43, 16  ;;  %v4247_v54 = vadd.f32 %v4246_v29, %v4245_v48 }
 0x30e   : > { %v1008_v45 = vsub.s32 %v9461_v50, %v1007_v59  ;;  %v1047_v17 = vmul.u32 58254, %v1043_v0  ;;  %v9534_v41 = vadd.s32 192, %v8332_v9  ;;  %v4194_v11 = vmul.f32 %v4081_v53, %v9493_v6  ;;  %v3745_v59 = vpop.f32.mrf.mxu3 }
 0x30f   : > { %v1033_v15 = vadd.s32 %v1032_v5, %v1022_v42  ;;  %v1046_v26 = vmul.u32 14564, %v1043_v0  ;;  %v1048_v1 = vmul.u32 14564, %v1044_v47  ;;  %v9538_v19 = vsel %vm1689_vm6, 1.0, %v11262_v40 }
 0x310   : > { %11332 = vst [vmem:[#allocation16_spill] sm:$0xff] %v9538_v19  ;;  %vm1438_vm7 = vcmp.ne.s32.totalorder %v1008_v45, 0  ;;  %vm1474_vm8 = vcmp.lt.s32.totalorder %v1008_v45, 0  ;;  %v1546_v8 = vadd.s32 18, %v1008_v45  ;;  %v3799_v48 = vadd.f32 %v9481_v14, %v3551_v23  ;;  %v9546_v14 = vpop.f32.mrf.mxu0 }
 0x311   : > { %vm1510_vm9 = vmand %vm1474_vm8, %vm1438_vm7  ;;  %v1034_v16 = vadd.s32 %v1033_v15, %v1024_v56  ;;  %v1049_v50 = vmul.u32 58254, %v1044_v47  ;;  %v1050_v55 = vshll.u32 %v1047_v17, 16  ;;  %v4135_v29 = vsel %vm1859_vm1, %v4081_v53, 0.0  ;;  %v11333_v53 = vld [vmem:[#allocation14_spill] sm:$0xff] }
 0x312   : > { %v1582_v38 = vsel %vm1510_vm9, %v1546_v8, %v1008_v45  ;;  %v1052_v18 = vshll.u32 %v1048_v1, 16  ;;  %v1072_v42 = vand.u32 65535, %v9534_v41  ;;  %v4248_v44 = vsel %vm1859_vm1, %v4194_v11, 0.0  ;;  %v11334_v11 = vld [vmem:[#allocation17_spill] sm:$0xff] }
 0x313   : > { %v4082_v0 = vmul.f32 %v9538_v19, %v9464_v34  ;;  %v1035_v5 = vshrl.u32 %v1034_v16, 4  ;;  %vm1054_vm10 = vc.u32 %v1046_v26, %v1050_v55  ;;  %vm1618_vm11 = vcmp.ge.s32.totalorder %v1582_v38, 1 }
 0x314   : > { %v3500_v31 = vpop.f32.mrf.mxu2  ;;  %v1055_v23 = vsel %vm1054_vm10, 1, %v11225_v51  ;;  %v1056_v56 = vadd.s32 %v1050_v55, %v1046_v26  ;;  %vm1654_vm12 = vcmp.le.s32.totalorder %v1582_v38, 16  ;;  %v1073_v8 = vshrl.u32 %v9534_v41, 16 }
 0x315   : > { %v3554_v47 = vadd.f32 %v3500_v31, %v11333_v53  ;;  %v1036_v45 = vmul.u32 18, %v1035_v5  ;;  %v1057_v15 = vadd.s32 %v1055_v23, %v1049_v50  ;;  %v3553_v57 = vadd.f32 %v3497_v63, %v11334_v11  ;;  %vm1690_vm14 = vmand %vm1618_vm11, %vm1654_vm12 }
 0x316   : > { %v1051_v2 = vshrl.u32 %v1047_v17, 16  ;;  %vm1058_vm13 = vc.u32 %v1056_v56, %v1052_v18  ;;  %v1076_v16 = vmul.u32 58254, %v1072_v42  ;;  %v1075_v6 = vmul.u32 14564, %v1072_v42 }
 0x317   : > { %v1037_v19 = vsub.s32 %v9484_v32, %v1036_v45  ;;  %v1059_v62 = vsel %vm1058_vm13, 1, %v11225_v51  ;;  %v9554_v10 = vmul.u32 14564, %v1073_v8  ;;  %v4195_v26 = vmul.f32 %v4082_v0, %v9464_v34 }
 0x318   : > { %v1053_v31 = vshrl.u32 %v1048_v1, 16  ;;  %v1061_v50 = vadd.s32 %v1059_v62, %v1057_v15  ;;  %v1079_v55 = vshll.u32 %v1076_v16, 16  ;;  %v1078_v17 = vmul.u32 58254, %v1073_v8  ;;  %v3996_v15 = vpop.f32.mrf.mxu0 }
 0x319   : > { %vm1439_vm15 = vcmp.ne.s32.totalorder %v1037_v19, 0  ;;  %vm1475_vm2 = vcmp.lt.s32.totalorder %v1037_v19, 0  ;;  %v1547_v63 = vadd.s32 18, %v1037_v19  ;;  %v4136_v18 = vadd.f32 %v4135_v29, %v4134_v27 }
 0x31a   : > { %v4249_v5 = vadd.f32 %v4248_v44, %v4247_v54  ;;  %v9559_v32 = vadd.f32 %v9488_v12, %v3799_v48  ;;  %vm1511_vm3 = vmand %vm1475_vm2, %vm1439_vm15  ;;  %v1062_v42 = vadd.s32 %v1061_v50, %v1051_v2  ;;  %v4137_v23 = vsel %vm1859_vm1, %v4082_v0, 0.0  ;;  %v3748_v54 = vpop.f32.mrf.mxu3  ;;  %v3277_v2 = vpop.f32.mrf.mxu1 }
 0x31b   : > { %v9563_v56 = vsel %vm1690_vm14, 1.0, %v11262_v40  ;;  %v1081_v1 = vshll.u32 %v9554_v10, 16  ;;  %vm1083_vm4 = vc.u32 %v1075_v6, %v1079_v55  ;;  %v4250_v62 = vsel %vm1859_vm1, %v4195_v26, 0.0 }
 0x31c   : > { %11335 = vst [vmem:[#allocation14_spill] sm:$0xff] %v9559_v32  ;;  %v1583_v38 = vsel %vm1511_vm3, %v1547_v63, %v1037_v19  ;;  %v1063_v53 = vadd.s32 %v1062_v42, %v1053_v31  ;;  %v1084_v27 = vsel %vm1083_vm4, 1, %v11225_v51  ;;  %v3801_v29 = vadd.f32 %v3745_v59, %v3553_v57  ;;  %v3502_v63 = vpop.f32.mrf.mxu2 }
 0x31d   : > { %11336 = vst [vmem:[#allocation17_spill] sm:$0xff] %v9563_v56  ;;  %v1085_v12 = vadd.s32 %v1079_v55, %v1075_v6  ;;  %v1086_v48 = vadd.s32 %v1084_v27, %v1078_v17  ;;  %v3802_v44 = vadd.f32 %v3748_v54, %v3554_v47  ;;  %v4083_v0 = vmul.f32 %v9563_v56, %v9559_v32  ;;  %v11337_v47 = vld [vmem:[#allocation4_spill] sm:$0xff]  ;;  %v11342_v56 = vld [vmem:[#allocation6_spill] sm:$0xff] }
 0x31e   : > { %v1064_v45 = vshrl.u32 %v1063_v53, 4  ;;  %v1080_v8 = vshrl.u32 %v1076_v16, 16  ;;  %v9571_v11 = vadd.s32 200, %v8332_v9  ;;  %vm1619_vm5 = vcmp.ge.s32.totalorder %v1583_v38, 1 }
 0x31f   : > { %vm1655_vm6 = vcmp.le.s32.totalorder %v1583_v38, 16  ;;  %vm1087_vm7 = vc.u32 %v1085_v12, %v1081_v1  ;;  %v9573_v19 = vadd.f32 %v3996_v15, %v3802_v44  ;;  %v9579_v31 = vadd.f32 %v3277_v2, %v11337_v47 }
 0x320   : > { %v1065_v26 = vmul.u32 18, %v1064_v45  ;;  %v1088_v57 = vsel %vm1087_vm7, 1, %v11225_v51  ;;  %v1101_v6 = vand.u32 65535, %v9571_v11  ;;  %v1102_v59 = vshrl.u32 %v9571_v11, 16  ;;  %vm1691_vm8 = vmand %vm1619_vm5, %vm1655_vm6  ;;  %v11340_v45 = vld [vmem:[#allocation18_spill] sm:$0xff] }
 0x321   : > { %v4138_v50 = vadd.f32 %v4137_v23, %v4136_v18  ;;  %v1082_v16 = vshrl.u32 %v9554_v10, 16  ;;  %v1090_v55 = vadd.s32 %v1088_v57, %v1086_v48  ;;  %v9582_v17 = vadd.f32 %v4250_v62, %v4249_v5 }
 0x322   : > { %v1066_v42 = vsub.s32 %v9522_v43, %v1065_v26  ;;  %v1105_v1 = vmul.u32 58254, %v1101_v6  ;;  %v9586_v53 = vadd.s32 208, %v8332_v9  ;;  %v9591_v27 = vadd.f32 %v9546_v14, %v3801_v29 }
 0x323   : > { %v1091_v54 = vadd.s32 %v1090_v55, %v1080_v8  ;;  %v1104_v18 = vmul.u32 14564, %v1101_v6  ;;  %v1106_v23 = vmul.u32 14564, %v1102_v59  ;;  %v4139_v10 = vsel %vm1859_vm1, %v4083_v0, 0.0  ;;  %v3750_v55 = vpop.f32.mrf.mxu3 }
 0x324   : > { %11338 = vst [vmem:[#allocation4_spill] sm:$0xff] %v9591_v27  ;;  %vm1440_vm9 = vcmp.ne.s32.totalorder %v1066_v42, 0  ;;  %vm1476_vm10 = vcmp.lt.s32.totalorder %v1066_v42, 0  ;;  %v1548_v5 = vadd.s32 18, %v1066_v42  ;;  %v4196_v43 = vmul.f32 %v4083_v0, %v9559_v32 }
 0x325   : > { %vm1512_vm11 = vmand %vm1476_vm10, %vm1440_vm9  ;;  %v1092_v62 = vadd.s32 %v1091_v54, %v1082_v16  ;;  %v1107_v12 = vmul.u32 58254, %v1102_v59  ;;  %v1108_v48 = vshll.u32 %v1105_v1, 16  ;;  %v9596_v38 = vsel %vm1691_vm8, 1.0, %v11262_v40 }
 0x326   : > { %11339 = vst [vmem:[#allocation40_spill] sm:$0xff] %v9596_v38  ;;  %v1584_v44 = vsel %vm1512_vm11, %v1548_v5, %v1066_v42  ;;  %v1110_v14 = vshll.u32 %v1106_v23, 16  ;;  %v1130_v29 = vand.u32 65535, %v9586_v53  ;;  %v3555_v15 = vadd.f32 %v3502_v63, %v11340_v45 }
 0x327   : > { %vm1620_vm12 = vcmp.ge.s32.totalorder %v1584_v44, 1  ;;  %vm1656_vm13 = vcmp.le.s32.totalorder %v1584_v44, 16  ;;  %v1093_v2 = vshrl.u32 %v1092_v62, 4  ;;  %vm1112_vm14 = vc.u32 %v1104_v18, %v1108_v48  ;;  %v3505_v62 = vpop.f32.mrf.mxu2 }
 0x328   : > { %vm1692_vm15 = vmand %vm1620_vm12, %vm1656_vm13  ;;  %v1113_v0 = vsel %vm1112_vm14, 1, %v11225_v51  ;;  %v1114_v8 = vadd.s32 %v1108_v48, %v1104_v18  ;;  %v1131_v26 = vshrl.u32 %v9586_v53, 16  ;;  %v4084_v57 = vmul.f32 %v9596_v38, %v9518_v33 }
 0x329   : > { %v1094_v6 = vmul.u32 18, %v1093_v2  ;;  %v1115_v59 = vadd.s32 %v1113_v0, %v1107_v12  ;;  %v1134_v47 = vmul.u32 58254, %v1130_v29  ;;  %v1109_v16 = vshrl.u32 %v1105_v1, 16  ;;  %v3998_v0 = vpop.f32.mrf.mxu0 }
 0x32a   : > { %vm1116_vm2 = vc.u32 %v1114_v8, %v1110_v14  ;;  %v1133_v42 = vmul.u32 14564, %v1130_v29  ;;  %v1135_v54 = vmul.u32 14564, %v1131_v26  ;;  %v9605_v5 = vsel %vm1692_vm15, 1.0, %v11262_v40 }
 0x32b   : > { %11341 = vst [vmem:[#allocation18_spill] sm:$0xff] %v9605_v5  ;;  %v1095_v63 = vsub.s32 %v9534_v41, %v1094_v6  ;;  %v1117_v18 = vsel %vm1116_vm2, 1, %v11225_v51  ;;  %v1137_v48 = vshll.u32 %v1134_v47, 16  ;;  %v4140_v44 = vadd.f32 %v4139_v10, %v4138_v50 }
 0x32c   : > { %v1111_v45 = vshrl.u32 %v1106_v23, 16  ;;  %v1119_v38 = vadd.s32 %v1117_v18, %v1115_v59  ;;  %v1136_v2 = vmul.u32 58254, %v1131_v26  ;;  %v1139_v12 = vshll.u32 %v1135_v54, 16 }
 0x32d   : > { %vm1441_vm3 = vcmp.ne.s32.totalorder %v1095_v63, 0  ;;  %vm1477_vm4 = vcmp.lt.s32.totalorder %v1095_v63, 0  ;;  %v1549_v1 = vadd.s32 18, %v1095_v63  ;;  %v4252_v14 = vsel %vm1859_vm1, %v4196_v43, 0.0 }
 0x32e   : > { %v4085_v29 = vmul.f32 %v9605_v5, %v9591_v27  ;;  %vm1513_vm5 = vmand %vm1477_vm4, %vm1441_vm3  ;;  %v1120_v41 = vadd.s32 %v1119_v38, %v1109_v16  ;;  %vm1141_vm6 = vc.u32 %v1133_v42, %v1137_v48  ;;  %v4141_v8 = vsel %vm1859_vm1, %v4084_v57, 0.0 }
 0x32f   : > { %v3803_v6 = vadd.f32 %v3750_v55, %v3555_v15  ;;  %v1142_v50 = vsel %vm1141_vm6, 1, %v11225_v51  ;;  %v1143_v23 = vadd.s32 %v1137_v48, %v1133_v42  ;;  %v4197_v10 = vmul.f32 %v4084_v57, %v9518_v33 }
 0x330   : > { %v1585_v26 = vsel %vm1513_vm5, %v1549_v1, %v1095_v63  ;;  %v1121_v59 = vadd.s32 %v1120_v41, %v1111_v45  ;;  %v1144_v18 = vadd.s32 %v1142_v50, %v1136_v2  ;;  %v3556_v43 = vadd.f32 %v3505_v62, %v11342_v56  ;;  %v3507_v1 = vpop.f32.mrf.mxu2 }
 0x331   : > { %v1138_v32 = vshrl.u32 %v1134_v47, 16  ;;  %vm1145_vm7 = vc.u32 %v1143_v23, %v1139_v12  ;;  %v9617_v5 = vadd.s32 216, %v8332_v9  ;;  %v4198_v38 = vmul.f32 %v4085_v29, %v9591_v27  ;;  %v3753_v47 = vpop.f32.mrf.mxu3 }
 0x332   : > { %v1122_v16 = vshrl.u32 %v1121_v59, 4  ;;  %v1140_v34 = vshrl.u32 %v1135_v54, 16  ;;  %v1146_v15 = vsel %vm1145_vm7, 1, %v11225_v51  ;;  %vm1621_vm8 = vcmp.ge.s32.totalorder %v1585_v26, 1 }
 0x333   : > { %vm1657_vm9 = vcmp.le.s32.totalorder %v1585_v26, 16  ;;  %v1148_v55 = vadd.s32 %v1146_v15, %v1144_v18  ;;  %v1159_v57 = vand.u32 65535, %v9617_v5  ;;  %v4253_v42 = vadd.f32 %v4252_v14, %v9582_v17 }
 0x334   : > { %v1123_v63 = vmul.u32 18, %v1122_v16  ;;  %v9623_v56 = vadd.f32 %v3998_v0, %v3803_v6  ;;  %v1160_v62 = vshrl.u32 %v9617_v5, 16  ;;  %v4142_v48 = vadd.f32 %v4141_v8, %v4140_v44  ;;  %vm1693_vm10 = vmand %vm1621_vm8, %vm1657_vm9 }
 0x335   : > { %v4254_v45 = vsel %vm1859_vm1, %v4197_v10, 0.0  ;;  %v4143_v54 = vsel %vm1859_vm1, %v4085_v29, 0.0  ;;  %v1149_v2 = vadd.s32 %v1148_v55, %v1138_v32  ;;  %v1163_v41 = vmul.u32 58254, %v1159_v57  ;;  %v4001_v29 = vpop.f32.mrf.mxu0  ;;  %v11344_v32 = vld [vmem:[#allocation19_spill] sm:$0xff] }
 0x336   : > { %11343 = vst [vmem:[#allocation6_spill] sm:$0xff] %v9623_v56  ;;  %v1124_v12 = vsub.s32 %v9571_v11, %v1123_v63  ;;  %v9629_v50 = vmul.u32 14564, %v1160_v62  ;;  %v9632_v17 = vadd.s32 224, %v8332_v9  ;;  %v4256_v14 = vsel %vm1859_vm1, %v4198_v38, 0.0 }
 0x337   : > { %v1150_v0 = vadd.s32 %v1149_v2, %v1140_v34  ;;  %v3804_v6 = vadd.f32 %v3753_v47, %v3556_v43  ;;  %v1162_v44 = vmul.u32 14564, %v1159_v57  ;;  %v3557_v23 = vadd.f32 %v3507_v1, %v11344_v32 }
 0x338   : > { %vm1442_vm11 = vcmp.ne.s32.totalorder %v1124_v12, 0  ;;  %vm1478_vm12 = vcmp.lt.s32.totalorder %v1124_v12, 0  ;;  %v1550_v8 = vadd.s32 18, %v1124_v12  ;;  %v9637_v10 = vsel %vm1693_vm10, 1.0, %v11262_v40 }
 0x339   : > { %11345 = vst [vmem:[#allocation19_spill] sm:$0xff] %v9637_v10  ;;  %vm1514_vm13 = vmand %vm1478_vm12, %vm1442_vm11  ;;  %v1151_v11 = vshrl.u32 %v1150_v0, 4  ;;  %v1165_v26 = vmul.u32 58254, %v1160_v62  ;;  %v1166_v59 = vshll.u32 %v1163_v41, 16  ;;  %v1168_v16 = vshll.u32 %v9629_v50, 16  ;;  %v3755_v0 = vpop.f32.mrf.mxu3 }
 0x33a   : > { %v1586_v18 = vsel %vm1514_vm13, %v1550_v8, %v1124_v12  ;;  %v1188_v34 = vand.u32 65535, %v9632_v17  ;;  %v1189_v43 = vshrl.u32 %v9632_v17, 16  ;;  %v4086_v15 = vmul.f32 %v9637_v10, %v9573_v19  ;;  %v3510_v10 = vpop.f32.mrf.mxu2 }
 0x33b   : > { %vm1622_vm14 = vcmp.ge.s32.totalorder %v1586_v18, 1  ;;  %vm1658_vm15 = vcmp.le.s32.totalorder %v1586_v18, 16  ;;  %v1152_v38 = vmul.u32 18, %v1151_v11  ;;  %vm1170_vm2 = vc.u32 %v1162_v44, %v1166_v59 }
 0x33c   : > { %vm1694_vm3 = vmand %vm1622_vm14, %vm1658_vm15  ;;  %v1171_v55 = vsel %vm1170_vm2, 1, %v11225_v51  ;;  %v1172_v57 = vadd.s32 %v1166_v59, %v1162_v44  ;;  %v1192_v63 = vmul.u32 58254, %v1188_v34  ;;  %v1167_v62 = vshrl.u32 %v1163_v41, 16 }
 0x33d   : > { %v1153_v47 = vsub.s32 %v9586_v53, %v1152_v38  ;;  %v1173_v2 = vadd.s32 %v1171_v55, %v1165_v26  ;;  %v1193_v1 = vmul.u32 14564, %v1189_v43  ;;  %v9647_v12 = vsel %vm1694_vm3, 1.0, %v11262_v40  ;;  %v4003_v27 = vpop.f32.mrf.mxu0 }
 0x33e   : > { %11346 = vst [vmem:[#allocation41_spill] sm:$0xff] %v9647_v12  ;;  %vm1174_vm4 = vc.u32 %v1172_v57, %v1168_v16  ;;  %v1191_v8 = vmul.u32 14564, %v1188_v34  ;;  %v1195_v32 = vshll.u32 %v1192_v63, 16  ;;  %v4255_v44 = vadd.f32 %v4254_v45, %v4253_v42 }
 0x33f   : > { %vm1443_vm5 = vcmp.ne.s32.totalorder %v1153_v47, 0  ;;  %vm1479_vm6 = vcmp.lt.s32.totalorder %v1153_v47, 0  ;;  %v1551_v11 = vadd.s32 18, %v1153_v47  ;;  %v1175_v18 = vsel %vm1174_vm4, 1, %v11225_v51 }
 0x340   : > { %v4144_v59 = vadd.f32 %v4143_v54, %v4142_v48  ;;  %vm1515_vm7 = vmand %vm1479_vm6, %vm1443_vm5  ;;  %v1169_v53 = vshrl.u32 %v9629_v50, 16  ;;  %v1177_v41 = vadd.s32 %v1175_v18, %v1173_v2  ;;  %v4087_v26 = vmul.f32 %v9647_v12, %v9623_v56 }
 0x341   : > { %v1587_v38 = vsel %vm1515_vm7, %v1551_v11, %v1153_v47  ;;  %v1194_v16 = vmul.u32 58254, %v1189_v43  ;;  %v1197_v55 = vshll.u32 %v1193_v1, 16  ;;  %v9653_v34 = vadd.f32 %v4256_v14, %v4255_v44 }
 0x342   : > { %v9655_v57 = vadd.f32 %v4001_v29, %v3804_v6  ;;  %v1178_v33 = vadd.s32 %v1177_v41, %v1167_v62  ;;  %v3805_v20 = vadd.f32 %v3755_v0, %v3557_v23  ;;  %v4145_v42 = vsel %vm1859_vm1, %v4086_v15, 0.0  ;;  %v11348_v29 = vld [vmem:[#allocation20_spill] sm:$0xff] }
 0x343   : > { %v4199_v48 = vmul.f32 %v4086_v15, %v9573_v19  ;;  %vm1199_vm8 = vc.u32 %v1191_v8, %v1195_v32  ;;  %v1201_v45 = vadd.s32 %v1195_v32, %v1191_v8  ;;  %vm1623_vm9 = vcmp.ge.s32.totalorder %v1587_v38, 1 }
 0x344   : > { %11347 = vst [vmem:[#allocation42_spill] sm:$0xff] %v9655_v57  ;;  %vm1659_vm10 = vcmp.le.s32.totalorder %v1587_v38, 16  ;;  %v1179_v54 = vadd.s32 %v1178_v33, %v1169_v53  ;;  %v1200_v50 = vsel %vm1199_vm8, 1, %v11225_v51  ;;  %v4200_v43 = vmul.f32 %v4087_v26, %v9623_v56 }
 0x345   : > { %v1196_v14 = vshrl.u32 %v1192_v63, 16  ;;  %v1202_v47 = vadd.s32 %v1200_v50, %v1194_v16  ;;  %vm1203_vm11 = vc.u32 %v1201_v45, %v1197_v55  ;;  %v3558_v62 = vadd.f32 %v3510_v10, %v11348_v29  ;;  %vm1695_vm12 = vmand %vm1623_vm9, %vm1659_vm10  ;;  %v3758_v63 = vpop.f32.mrf.mxu3 }
 0x346   : > { %v1180_v6 = vshrl.u32 %v1179_v54, 4  ;;  %v1204_v23 = vsel %vm1203_vm11, 1, %v11225_v51  ;;  %v9664_v2 = vadd.s32 232, %v8332_v9  ;;  %v9666_v15 = vadd.f32 %v4145_v42, %v4144_v59  ;;  %v3512_v59 = vpop.f32.mrf.mxu2  ;;  %v4006_v54 = vpop.f32.mrf.mxu0 }
 0x347   : > { %v4258_v0 = vsel %vm1859_vm1, %v4199_v48, 0.0  ;;  %v1198_v33 = vshrl.u32 %v1193_v1, 16  ;;  %v1206_v8 = vadd.s32 %v1204_v23, %v1202_v47  ;;  %v9669_v11 = vadd.f32 %v4003_v27, %v3805_v20 }
 0x348   : > { %v1181_v32 = vmul.u32 18, %v1180_v6  ;;  %v1217_v18 = vand.u32 65535, %v9664_v2  ;;  %v1218_v10 = vshrl.u32 %v9664_v2, 16  ;;  %v4147_v44 = vsel %vm1859_vm1, %v4087_v26, 0.0 }
 0x349   : > { %v4260_v53 = vsel %vm1859_vm1, %v4200_v43, 0.0  ;;  %v1207_v41 = vadd.s32 %v1206_v8, %v1196_v14  ;;  %v9676_v38 = vadd.s32 240, %v8332_v9  ;;  %v9679_v1 = vsel %vm1695_vm12, 1.0, %v11262_v40 }
 0x34a   : > { %11349 = vst [vmem:[#allocation20_spill] sm:$0xff] %v9679_v1  ;;  %v1182_v20 = vsub.s32 %v9617_v5, %v1181_v32  ;;  %v1220_v27 = vmul.u32 14564, %v1217_v18  ;;  %v1221_v16 = vmul.u32 58254, %v1217_v18  ;;  %v1222_v42 = vmul.u32 14564, %v1218_v10 }
 0x34b   : > { %v1208_v55 = vadd.s32 %v1207_v41, %v1198_v33  ;;  %v1223_v48 = vmul.u32 58254, %v1218_v10  ;;  %v1246_v45 = vand.u32 65535, %v9676_v38  ;;  %v4088_v43 = vmul.f32 %v9679_v1, %v9655_v57 }
 0x34c   : > { %vm1444_vm13 = vcmp.ne.s32.totalorder %v1182_v20, 0  ;;  %vm1480_vm14 = vcmp.lt.s32.totalorder %v1182_v20, 0  ;;  %v1552_v26 = vadd.s32 18, %v1182_v20  ;;  %v1224_v50 = vshll.u32 %v1221_v16, 16 }
 0x34d   : > { %vm1516_vm15 = vmand %vm1480_vm14, %vm1444_vm13  ;;  %v1209_v14 = vshrl.u32 %v1208_v55, 4  ;;  %v3806_v47 = vadd.f32 %v3758_v63, %v3558_v62  ;;  %v1226_v6 = vshll.u32 %v1222_v42, 16  ;;  %v1247_v23 = vshrl.u32 %v9676_v38, 16 }
 0x34e   : > { %v1588_v5 = vsel %vm1516_vm15, %v1552_v26, %v1182_v20  ;;  %vm1228_vm2 = vc.u32 %v1220_v27, %v1224_v50  ;;  %v1230_v29 = vadd.s32 %v1224_v50, %v1220_v27  ;;  %v1225_v32 = vshrl.u32 %v1221_v16, 16  ;;  %v3760_v50 = vpop.f32.mrf.mxu3 }
 0x34f   : > { %vm1624_vm3 = vcmp.ge.s32.totalorder %v1588_v5, 1  ;;  %vm1660_vm4 = vcmp.le.s32.totalorder %v1588_v5, 16  ;;  %v1210_v33 = vmul.u32 18, %v1209_v14  ;;  %v1229_v8 = vsel %vm1228_vm2, 1, %v11225_v51 }
 0x350   : > { %vm1696_vm5 = vmand %vm1624_vm3, %vm1660_vm4  ;;  %v1231_v18 = vadd.s32 %v1229_v8, %v1223_v48  ;;  %vm1232_vm6 = vc.u32 %v1230_v29, %v1226_v6  ;;  %v1250_v10 = vmul.u32 58254, %v1246_v45  ;;  %v1249_v63 = vmul.u32 14564, %v1246_v45  ;;  %v3515_v6 = vpop.f32.mrf.mxu2 }
 0x351   : > { %v1211_v41 = vsub.s32 %v9632_v17, %v1210_v33  ;;  %v1233_v62 = vsel %vm1232_vm6, 1, %v11225_v51  ;;  %v9689_v20 = vmul.u32 14564, %v1247_v23  ;;  %v9692_v27 = vsel %vm1696_vm5, 1.0, %v11262_v40 }
 0x352   : > { %11350 = vst [vmem:[#allocation43_spill] sm:$0xff] %v9692_v27  ;;  %v1227_v55 = vshrl.u32 %v1222_v42, 16  ;;  %v1235_v26 = vadd.s32 %v1233_v62, %v1231_v18  ;;  %v1253_v14 = vshll.u32 %v1250_v10, 16  ;;  %v3559_v48 = vadd.f32 %v3512_v59, %v9172_v52  ;;  %v4008_v59 = vpop.f32.mrf.mxu0 }
 0x353   : > { %vm1445_vm7 = vcmp.ne.s32.totalorder %v1211_v41, 0  ;;  %vm1481_vm8 = vcmp.lt.s32.totalorder %v1211_v41, 0  ;;  %v1553_v16 = vadd.s32 18, %v1211_v41  ;;  %v4259_v17 = vadd.f32 %v4258_v0, %v9653_v34 }
 0x354   : > { %v4201_v5 = vmul.f32 %v4088_v43, %v9655_v57  ;;  %vm1517_vm9 = vmand %vm1481_vm8, %vm1445_vm7  ;;  %v1236_v45 = vadd.s32 %v1235_v26, %v1225_v32  ;;  %v1252_v29 = vmul.u32 58254, %v1247_v23  ;;  %v4149_v33 = vsel %vm1859_vm1, %v4088_v43, 0.0 }
 0x355   : > { %v4089_v42 = vmul.f32 %v9692_v27, %v9669_v11  ;;  %v1255_v8 = vshll.u32 %v9689_v20, 16  ;;  %vm1257_vm10 = vc.u32 %v1249_v63, %v1253_v14  ;;  %v4148_v18 = vadd.f32 %v4147_v44, %v9666_v15 }
 0x356   : > { %v4261_v62 = vadd.f32 %v4260_v53, %v4259_v17  ;;  %v9702_v52 = vadd.f32 %v4006_v54, %v3806_v47  ;;  %v1237_v34 = vadd.s32 %v1236_v45, %v1227_v55  ;;  %v1589_v0 = vsel %vm1517_vm9, %v1553_v16, %v1211_v41 }
 0x357   : > { %v3807_v1 = vadd.f32 %v3760_v50, %v3559_v48  ;;  %v1258_v32 = vsel %vm1257_vm10, 1, %v11225_v51  ;;  %v1259_v23 = vadd.s32 %v1253_v14, %v1249_v63  ;;  %v4150_v26 = vadd.f32 %v4149_v33, %v4148_v18  ;;  %v3763_v14 = vpop.f32.mrf.mxu3 }
 0x358   : > { %v4262_v43 = vsel %vm1859_vm1, %v4201_v5, 0.0  ;;  %v1238_v12 = vshrl.u32 %v1237_v34, 4  ;;  %v1260_v27 = vadd.s32 %v1258_v32, %v1252_v29  ;;  %v4151_v57 = vsel %vm1859_vm1, %v4089_v42, 0.0  ;;  %v3517_v5 = vpop.f32.mrf.mxu2 }
 0x359   : > { %v1254_v56 = vshrl.u32 %v1250_v10, 16  ;;  %vm1261_vm11 = vc.u32 %v1259_v23, %v1255_v8  ;;  %v9708_v15 = vadd.s32 248, %v8332_v9  ;;  %vm1625_vm12 = vcmp.ge.s32.totalorder %v1589_v0, 1 }
 0x35a   : > { %vm1661_vm13 = vcmp.le.s32.totalorder %v1589_v0, 16  ;;  %v1239_v44 = vmul.u32 18, %v1238_v12  ;;  %v1262_v53 = vsel %vm1261_vm11, 1, %v11225_v51  ;;  %v4202_v54 = vmul.f32 %v4089_v42, %v9669_v11  ;;  %v4011_v33 = vpop.f32.mrf.mxu0 }
 0x35b   : > { %v1256_v47 = vshrl.u32 %v9689_v20, 16  ;;  %v1264_v41 = vadd.s32 %v1262_v53, %v1260_v27  ;;  %v1275_v63 = vand.u32 65535, %v9708_v15  ;;  %v9715_v50 = vadd.f32 %v4008_v59, %v3807_v1  ;;  %vm1697_vm14 = vmand %vm1625_vm12, %vm1661_vm13 }
 0x35c   : > { %v1240_v55 = vsub.s32 %v9664_v2, %v1239_v44  ;;  %v3560_v10 = vadd.f32 %v3515_v6, %v9175_v58  ;;  %v1276_v16 = vshrl.u32 %v9708_v15, 16  ;;  %v4263_v48 = vadd.f32 %v4262_v43, %v4261_v62 }
 0x35d   : > { %v9719_v12 = vadd.f32 %v4151_v57, %v4150_v26  ;;  %v1265_v17 = vadd.s32 %v1264_v41, %v1254_v56  ;;  %v1279_v20 = vmul.u32 58254, %v1275_v63  ;;  %v1278_v45 = vmul.u32 14564, %v1275_v63 }
 0x35e   : > { %vm1446_vm15 = vcmp.ne.s32.totalorder %v1240_v55, 0  ;;  %vm1482_vm2 = vcmp.lt.s32.totalorder %v1240_v55, 0  ;;  %v1554_v27 = vadd.s32 18, %v1240_v55  ;;  %v4264_v2 = vsel %vm1859_vm1, %v4202_v54, 0.0 }
 0x35f   : > { %vm1518_vm3 = vmand %vm1482_vm2, %vm1446_vm15  ;;  %v1266_v1 = vadd.s32 %v1265_v17, %v1256_v47  ;;  %v1280_v58 = vmul.u32 14564, %v1276_v16  ;;  %v1282_v6 = vshll.u32 %v1279_v20, 16  ;;  %v9724_v29 = vsel %vm1697_vm14, 1.0, %v11262_v40  ;;  %v3765_v17 = vpop.f32.mrf.mxu3 }
 0x360   : > { %11351 = vst [vmem:[#allocation44_spill] sm:$0xff] %v9724_v29  ;;  %v1590_v57 = vsel %vm1518_vm3, %v1554_v27, %v1240_v55  ;;  %v1281_v42 = vmul.u32 58254, %v1276_v16  ;;  %v9727_v56 = vadd.s32 256, %v8332_v9  ;;  %v3561_v62 = vadd.f32 %v3517_v5, %v9245_v7 }
 0x361   : > { %vm1626_vm4 = vcmp.ge.s32.totalorder %v1590_v57, 1  ;;  %vm1662_vm5 = vcmp.le.s32.totalorder %v1590_v57, 16  ;;  %v1267_v8 = vshrl.u32 %v1266_v1, 4  ;;  %v1284_v18 = vshll.u32 %v1280_v58, 16 }
 0x362   : > { %vm1286_vm6 = vc.u32 %v1278_v45, %v1282_v6  ;;  %v1288_v59 = vadd.s32 %v1282_v6, %v1278_v45  ;;  %v1304_v34 = vand.u32 65535, %v9727_v56  ;;  %v4090_v0 = vmul.f32 %v9724_v29, %v9702_v52  ;;  %vm1698_vm7 = vmand %vm1626_vm4, %vm1662_vm5 }
 0x363   : > { %v1268_v32 = vmul.u32 18, %v1267_v8  ;;  %v1287_v23 = vsel %vm1286_vm6, 1, %v11225_v51  ;;  %v1305_v26 = vshrl.u32 %v9727_v56, 16  ;;  %v3808_v43 = vadd.f32 %v3763_v14, %v3560_v10  ;;  %v3520_v14 = vpop.f32.mrf.mxu2 }
 0x364   : > { %v1283_v44 = vshrl.u32 %v1279_v20, 16  ;;  %v1289_v53 = vadd.s32 %v1287_v23, %v1281_v42  ;;  %vm1290_vm8 = vc.u32 %v1288_v59, %v1284_v18  ;;  %v1308_v47 = vmul.u32 58254, %v1304_v34  ;;  %v4013_v18 = vpop.f32.mrf.mxu0 }
 0x365   : > { %v1269_v54 = vsub.s32 %v9676_v38, %v1268_v32  ;;  %v1291_v7 = vsel %vm1290_vm8, 1, %v11225_v51  ;;  %v1309_v41 = vmul.u32 14564, %v1305_v26  ;;  %v9738_v63 = vsel %vm1698_vm7, 1.0, %v11262_v40 }
 0x366   : > { %11352 = vst [vmem:[#allocation45_spill] sm:$0xff] %v9738_v63  ;;  %v1285_v55 = vshrl.u32 %v1280_v58, 16  ;;  %v1293_v16 = vadd.s32 %v1291_v7, %v1289_v53  ;;  %v1307_v5 = vmul.u32 14564, %v1304_v34  ;;  %v4153_v27 = vsel %vm1859_vm1, %v4090_v0, 0.0 }
 0x367   : > { %vm1447_vm9 = vcmp.ne.s32.totalorder %v1269_v54, 0  ;;  %vm1483_vm10 = vcmp.lt.s32.totalorder %v1269_v54, 0  ;;  %v3809_v10 = vadd.f32 %v3765_v17, %v3561_v62  ;;  %v1555_v20 = vadd.s32 18, %v1269_v54 }
 0x368   : > { %v1294_v45 = vadd.s32 %v1293_v16, %v1283_v44  ;;  %v1310_v38 = vmul.u32 58254, %v1305_v26  ;;  %v1311_v1 = vshll.u32 %v1308_v47, 16  ;;  %v4265_v6 = vadd.f32 %v4264_v2, %v4263_v48  ;;  %vm1519_vm11 = vmand %vm1483_vm10, %vm1447_vm9 }
 0x369   : > { %v4203_v57 = vmul.f32 %v4090_v0, %v9702_v52  ;;  %v4091_v42 = vmul.f32 %v9738_v63, %v9715_v50  ;;  %v1313_v58 = vshll.u32 %v1309_v41, 16  ;;  %v9744_v8 = vadd.f32 %v4011_v33, %v3808_v43 }
 0x36a   : > { %v1295_v59 = vadd.s32 %v1294_v45, %v1285_v55  ;;  %v3562_v34 = vadd.f32 %v3520_v14, %v9307_v46  ;;  %vm1315_vm12 = vc.u32 %v1307_v5, %v1311_v1  ;;  %v4154_v62 = vadd.f32 %v4153_v27, %v9719_v12 }
 0x36b   : > { %v9748_v32 = vadd.f32 %v4013_v18, %v3809_v10  ;;  %v1316_v48 = vsel %vm1315_vm12, 1, %v11225_v51  ;;  %v1317_v2 = vadd.s32 %v1311_v1, %v1307_v5  ;;  %v1591_v0 = vsel %vm1519_vm11, %v1555_v20, %v1269_v54  ;;  %v3768_v20 = vpop.f32.mrf.mxu3 }
 0x36c   : > { %v1296_v23 = vshrl.u32 %v1295_v59, 4  ;;  %v1318_v26 = vadd.s32 %v1316_v48, %v1310_v38  ;;  %v9752_v44 = vadd.s32 264, %v8332_v9  ;;  %v4266_v33 = vsel %vm1859_vm1, %v4203_v57, 0.0  ;;  %v3522_v48 = vpop.f32.mrf.mxu2 }
 0x36d   : > { %v4155_v43 = vsel %vm1859_vm1, %v4091_v42, 0.0  ;;  %v1312_v53 = vshrl.u32 %v1308_v47, 16  ;;  %vm1319_vm13 = vc.u32 %v1317_v2, %v1313_v58  ;;  %vm1627_vm14 = vcmp.ge.s32.totalorder %v1591_v0, 1 }
 0x36e   : > { %v1297_v46 = vmul.u32 18, %v1296_v23  ;;  %v1320_v12 = vsel %vm1319_vm13, 1, %v11225_v51  ;;  %v1333_v7 = vand.u32 65535, %v9752_v44  ;;  %v1334_v55 = vshrl.u32 %v9752_v44, 16 }
 0x36f   : > { %vm1663_vm15 = vcmp.le.s32.totalorder %v1591_v0, 16  ;;  %v1314_v54 = vshrl.u32 %v1309_v41, 16  ;;  %v1322_v16 = vadd.s32 %v1320_v12, %v1318_v26  ;;  %v4204_v17 = vmul.f32 %v4091_v42, %v9715_v50 }
 0x370   : > { %v1298_v5 = vsub.s32 %v9708_v15, %v1297_v46  ;;  %v1337_v27 = vmul.u32 58254, %v1333_v7  ;;  %v9762_v10 = vadd.s32 272, %v8332_v9  ;;  %v4267_v47 = vadd.f32 %v4266_v33, %v4265_v6  ;;  %vm1699_vm2 = vmand %vm1627_vm14, %vm1663_vm15  ;;  %v4016_v33 = vpop.f32.mrf.mxu0 }
 0x371   : > { %v1323_v14 = vadd.s32 %v1322_v16, %v1312_v53  ;;  %v1336_v45 = vmul.u32 14564, %v1333_v7  ;;  %v1338_v38 = vmul.u32 14564, %v1334_v55  ;;  %v3810_v57 = vadd.f32 %v3768_v20, %v3562_v34 }
 0x372   : > { %vm1448_vm3 = vcmp.ne.s32.totalorder %v1298_v5, 0  ;;  %vm1484_vm4 = vcmp.lt.s32.totalorder %v1298_v5, 0  ;;  %v1556_v1 = vadd.s32 18, %v1298_v5  ;;  %v9764_v41 = vadd.f32 %v4155_v43, %v4154_v62 }
 0x373   : > { %vm1520_vm5 = vmand %vm1484_vm4, %vm1448_vm3  ;;  %v1324_v42 = vadd.s32 %v1323_v14, %v1314_v54  ;;  %v1339_v58 = vmul.u32 58254, %v1334_v55  ;;  %v1340_v15 = vshll.u32 %v1337_v27, 16  ;;  %v4268_v18 = vsel %vm1859_vm1, %v4204_v17, 0.0 }
 0x374   : > { %v1592_v59 = vsel %vm1520_vm5, %v1556_v1, %v1298_v5  ;;  %v1342_v6 = vshll.u32 %v1338_v38, 16  ;;  %v1362_v2 = vand.u32 65535, %v9762_v10  ;;  %v9769_v0 = vsel %vm1699_vm2, 1.0, %v11262_v40 }
 0x375   : > { %11353 = vst [vmem:[#allocation46_spill] sm:$0xff] %v9769_v0  ;;  %vm1628_vm6 = vcmp.ge.s32.totalorder %v1592_v59, 1  ;;  %v1325_v23 = vshrl.u32 %v1324_v42, 4  ;;  %vm1344_vm7 = vc.u32 %v1336_v45, %v1340_v15  ;;  %vm1664_vm8 = vcmp.le.s32.totalorder %v1592_v59, 16  ;;  %v3770_v42 = vpop.f32.mrf.mxu3 }
 0x376   : > { %v1345_v34 = vsel %vm1344_vm7, 1, %v11225_v51  ;;  %v1346_v62 = vadd.s32 %v1340_v15, %v1336_v45  ;;  %v1363_v26 = vshrl.u32 %v9762_v10, 16  ;;  %v3563_v53 = vadd.f32 %v3522_v48, %v9310_v4  ;;  %vm1700_vm10 = vmand %vm1628_vm6, %vm1664_vm8 }
 0x377   : > { %v1326_v43 = vmul.u32 18, %v1325_v23  ;;  %v1347_v46 = vadd.s32 %v1345_v34, %v1339_v58  ;;  %v1366_v12 = vmul.u32 58254, %v1362_v2  ;;  %v1341_v7 = vshrl.u32 %v1337_v27, 16 }
 0x378   : > { %vm1348_vm9 = vc.u32 %v1346_v62, %v1342_v6  ;;  %v1365_v55 = vmul.u32 14564, %v1362_v2  ;;  %v1367_v54 = vmul.u32 14564, %v1363_v26  ;;  %v4092_v16 = vmul.f32 %v9769_v0, %v9744_v8 }
 0x379   : > { %v1327_v17 = vsub.s32 %v9727_v56, %v1326_v43  ;;  %v1349_v5 = vsel %vm1348_vm9, 1, %v11225_v51  ;;  %v1369_v14 = vshll.u32 %v1366_v12, 16  ;;  %v4269_v20 = vadd.f32 %v4268_v18, %v4267_v47 }
 0x37a   : > { %v1343_v45 = vshrl.u32 %v1338_v38, 16  ;;  %v1351_v1 = vadd.s32 %v1349_v5, %v1347_v46  ;;  %v1368_v4 = vmul.u32 58254, %v1363_v26  ;;  %v1371_v58 = vshll.u32 %v1367_v54, 16 }
 0x37b   : > { %vm1449_vm11 = vcmp.ne.s32.totalorder %v1327_v17, 0  ;;  %vm1485_vm12 = vcmp.lt.s32.totalorder %v1327_v17, 0  ;;  %v1557_v27 = vadd.s32 18, %v1327_v17  ;;  %v9780_v15 = vsel %vm1700_vm10, 1.0, %v11262_v40 }
 0x37c   : > { %11354 = vst [vmem:[#allocation47_spill] sm:$0xff] %v9780_v15  ;;  %vm1521_vm13 = vmand %vm1485_vm12, %vm1449_vm11  ;;  %v1352_v59 = vadd.s32 %v1351_v1, %v1341_v7  ;;  %v3811_v48 = vadd.f32 %v3770_v42, %v3563_v53  ;;  %vm1373_vm14 = vc.u32 %v1365_v55, %v1369_v14  ;;  %v4205_v56 = vmul.f32 %v4092_v16, %v9744_v8  ;;  %v3525_v1 = vpop.f32.mrf.mxu2 }
 0x37d   : > { %v1593_v6 = vsel %vm1521_vm13, %v1557_v27, %v1327_v17  ;;  %v1374_v47 = vsel %vm1373_vm14, 1, %v11225_v51  ;;  %v1375_v38 = vadd.s32 %v1369_v14, %v1365_v55  ;;  %v4093_v23 = vmul.f32 %v9780_v15, %v9748_v32  ;;  %v4018_v55 = vpop.f32.mrf.mxu0 }
 0x37e   : > { %vm1629_vm15 = vcmp.ge.s32.totalorder %v1593_v6, 1  ;;  %vm1665_vm2 = vcmp.le.s32.totalorder %v1593_v6, 16  ;;  %v1353_v18 = vadd.s32 %v1352_v59, %v1343_v45  ;;  %v1376_v2 = vadd.s32 %v1374_v47, %v1368_v4 }
 0x37f   : > { %vm1701_vm3 = vmand %vm1629_vm15, %vm1665_vm2  ;;  %v1370_v34 = vshrl.u32 %v1366_v12, 16  ;;  %vm1377_vm4 = vc.u32 %v1375_v38, %v1371_v58  ;;  %v9787_v62 = vadd.s32 280, %v8332_v9  ;;  %v4157_v26 = vsel %vm1859_vm1, %v4092_v16, 0.0 }
 0x380   : > { %v9790_v43 = vadd.f32 %v4016_v33, %v3810_v57  ;;  %v1354_v53 = vshrl.u32 %v1353_v18, 4  ;;  %v1378_v46 = vsel %vm1377_vm4, 1, %v11225_v51  ;;  %v9794_v7 = vsel %vm1701_vm3, 1.0, %v11262_v40 }
 0x381   : > { %11355 = vst [vmem:[#allocation48_spill] sm:$0xff] %v9794_v7  ;;  %v1372_v17 = vshrl.u32 %v1367_v54, 16  ;;  %v1380_v5 = vadd.s32 %v1378_v46, %v1376_v2  ;;  %v1391_v14 = vand.u32 65535, %v9787_v62  ;;  %v4270_v12 = vsel %vm1859_vm1, %v4205_v56, 0.0  ;;  %v3773_v46 = vpop.f32.mrf.mxu3 }
 0x382   : > { %v1355_v45 = vmul.u32 18, %v1354_v53  ;;  %v9798_v9 = vadd.f32 %v4018_v55, %v3811_v48  ;;  %v1392_v57 = vshrl.u32 %v9787_v62, 16  ;;  %v4158_v33 = vadd.f32 %v4157_v26, %v9764_v41 }
 0x383   : > { %v4159_v16 = vsel %vm1859_vm1, %v4093_v23, 0.0  ;;  %v4206_v4 = vmul.f32 %v4093_v23, %v9748_v32  ;;  %v1381_v27 = vadd.s32 %v1380_v5, %v1370_v34  ;;  %v4094_v54 = vmul.f32 %v9794_v7, %v9790_v43 }
 0x384   : > { %v1356_v42 = vsub.s32 %v9752_v44, %v1355_v45  ;;  %v1395_v58 = vmul.u32 58254, %v1391_v14  ;;  %v1396_v59 = vmul.u32 14564, %v1392_v57  ;;  %v4271_v56 = vadd.f32 %v4270_v12, %v4269_v20 }
 0x385   : > { %v3564_v48 = vadd.f32 %v3525_v1, %v9579_v31  ;;  %v1382_v6 = vadd.s32 %v1381_v27, %v1372_v17  ;;  %v1394_v47 = vmul.u32 14564, %v1391_v14  ;;  %v4160_v38 = vadd.f32 %v4159_v16, %v4158_v33 }
 0x386   : > { %vm1450_vm5 = vcmp.ne.s32.totalorder %v1356_v42, 0  ;;  %vm1486_vm6 = vcmp.lt.s32.totalorder %v1356_v42, 0  ;;  %v1558_v41 = vadd.s32 18, %v1356_v42  ;;  %v4272_v18 = vsel %vm1859_vm1, %v4206_v4, 0.0 }
 0x387   : > { %vm1522_vm7 = vmand %vm1486_vm6, %vm1450_vm5  ;;  %v1383_v2 = vshrl.u32 %v1382_v6, 4  ;;  %v1397_v23 = vmul.u32 58254, %v1392_v57  ;;  %v1398_v34 = vshll.u32 %v1395_v58, 16  ;;  %v4161_v26 = vsel %vm1859_vm1, %v4094_v54, 0.0 }
 0x388   : > { %v4207_v44 = vmul.f32 %v4094_v54, %v9790_v43  ;;  %v1594_v53 = vsel %vm1522_vm7, %v1558_v41, %v1356_v42  ;;  %v1400_v20 = vshll.u32 %v1396_v59, 16  ;;  %v4273_v55 = vadd.f32 %v4272_v18, %v4271_v56 }
 0x389   : > { %vm1630_vm8 = vcmp.ge.s32.totalorder %v1594_v53, 1  ;;  %vm1666_vm9 = vcmp.le.s32.totalorder %v1594_v53, 16  ;;  %v1384_v31 = vmul.u32 18, %v1383_v2  ;;  %vm1402_vm10 = vc.u32 %v1394_v47, %v1398_v34 }
 0x38a   : > { %vm1702_vm11 = vmand %vm1630_vm8, %vm1666_vm9  ;;  %v3812_v17 = vadd.f32 %v3773_v46, %v3564_v48  ;;  %v1403_v5 = vsel %vm1402_vm10, 1, %v11225_v51  ;;  %v1404_v14 = vadd.s32 %v1398_v34, %v1394_v47  ;;  %v4162_v12 = vadd.f32 %v4161_v26, %v4160_v38  ;;  %v4021_v48 = vpop.f32.mrf.mxu0  ;;  %v3279_v47 = vpop.f32.mrf.mxu1  ;;  %v11357_v26 = vld [vmem:[#allocation5_spill] sm:$0xff] }
 0x38b   : > { %v9813_v45 = vsel %vm1702_vm11, 1.0, %v11262_v40  ;;  %v1385_v1 = vsub.s32 %v9762_v10, %v1384_v31  ;;  %v1405_v57 = vadd.s32 %v1403_v5, %v1397_v23  ;;  %v4274_v33 = vsel %vm1859_vm1, %v4207_v44, 0.0  ;;  %v3527_v34 = vpop.f32.mrf.mxu2 }
 0x38c   : > { %11356 = vst [vmem:[#allocation49_spill] sm:$0xff] %v9813_v45  ;;  %v4095_v16 = vmul.f32 %v9813_v45, %v9798_v9  ;;  %v1399_v4 = vshrl.u32 %v1395_v58, 16  ;;  %vm1406_vm12 = vc.u32 %v1404_v14, %v1400_v20  ;;  %v1401_v10 = vshrl.u32 %v1396_v59, 16 }
 0x38d   : > { %vm1451_vm13 = vcmp.ne.s32.totalorder %v1385_v1, 0  ;;  %vm1487_vm14 = vcmp.lt.s32.totalorder %v1385_v1, 0  ;;  %v1559_v27 = vadd.s32 18, %v1385_v1  ;;  %v1407_v54 = vsel %vm1406_vm12, 1, %v11225_v51 }
 0x38e   : > { %v4163_v42 = vsel %vm1859_vm1, %v4095_v16, 0.0  ;;  %v4208_v56 = vmul.f32 %v4095_v16, %v9798_v9  ;;  %vm1523_vm15 = vmand %vm1487_vm14, %vm1451_vm13  ;;  %v1409_v6 = vadd.s32 %v1407_v54, %v1405_v57  ;;  %v4275_v38 = vadd.f32 %v4274_v33, %v4273_v55 }
 0x38f   : > { %v4164_v41 = vadd.f32 %v4163_v42, %v4162_v12  ;;  %v1595_v18 = vsel %vm1523_vm15, %v1559_v27, %v1385_v1  ;;  %v9822_v2 = vadd.f32 %v4021_v48, %v3812_v17  ;;  %v3317_v44 = vadd.f32 %v3279_v47, %v11357_v26  ;;  %v3775_v1 = vpop.f32.mrf.mxu3  ;;  %v7571_v26 = vld [vmem:[%s11114_s2 + $0x4] sm:$0x3] }
 0x390   : > { %v4276_v58 = vsel %vm1859_vm1, %v4208_v56, 0.0  ;;  %vm1631_vm2 = vcmp.ge.s32.totalorder %v1595_v18, 1  ;;  %vm1667_vm3 = vcmp.le.s32.totalorder %v1595_v18, 16  ;;  %v1410_v23 = vadd.s32 %v1409_v6, %v1399_v4 }
 0x391   : > { %v4277_v51 = vadd.f32 %v4276_v58, %v4275_v38  ;;  %vm1703_vm4 = vmand %vm1631_vm2, %vm1667_vm3  ;;  %v3565_v31 = vadd.f32 %v3527_v34, %v3317_v44 }
 0x392   : > { %v9827_v53 = vsel %vm1703_vm4, 1.0, %v11262_v40  ;;  %v1411_v59 = vadd.s32 %v1410_v23, %v1401_v10  ;;  %v4023_v27 = vpop.f32.mrf.mxu0  ;;  %v4659_v23 = vld [vmem:[%s11114_s2] sm:$0x3] }
 0x393   : > { %11358 = vst [vmem:[#allocation5_spill] sm:$0xff] %v9827_v53  ;;  %v4096_v20 = vmul.f32 %v9827_v53, %v9822_v2  ;;  %v3813_v16 = vadd.f32 %v3775_v1, %v3565_v31  ;;  %v4927_v34 = vsel %vm2067_vm0, %v4659_v23, 0 }
 0x394   : > { %v1412_v46 = vshrl.u32 %v1411_v59, 4  ;;  %4936 = vmatpush.bf16.msrb.mxu2 %v4927_v34 }
 0x395   : > { %v4165_v55 = vsel %vm1859_vm1, %v4096_v20, 0.0  ;;  %v4209_v17 = vmul.f32 %v4096_v20, %v9822_v2  ;;  %v9835_v42 = vadd.f32 %v4023_v27, %v3813_v16  ;;  %v5139_v20 = vsel %vm2067_vm0, %v7571_v26, 0 }
 0x396   : > { %v4166_v5 = vadd.f32 %v4165_v55, %v4164_v41  ;;  %v1413_v14 = vmul.u32 18, %v1412_v46  ;;  %5148 = vmatpush.bf16.msrb.mxu3 %v5139_v20 }
 0x397   : > { %v4278_v12 = vsel %vm1859_vm1, %v4209_v17, 0.0 }
 0x398   : > { %v4279_v57 = vadd.f32 %v4278_v12, %v4277_v51  ;;  %v1414_v33 = vsub.s32 %v9787_v62, %v1413_v14  ;;  %v4606_v14 = vld [vmem:[#allocation3 + $0x8] sm:$0xff] }
 0x39a   : > { %vm1452_vm5 = vcmp.ne.s32.totalorder %v1414_v33, 0  ;;  %vm1488_vm6 = vcmp.lt.s32.totalorder %v1414_v33, 0  ;;  %v1560_v4 = vadd.s32 18, %v1414_v33 }
 0x39b   : > { %vm1524_vm7 = vmand %vm1488_vm6, %vm1452_vm5 }
 0x39c   : > { %v1596_v54 = vsel %vm1524_vm7, %v1560_v4, %v1414_v33 }
 0x39d   : > { %vm1632_vm8 = vcmp.ge.s32.totalorder %v1596_v54, 1  ;;  %vm1668_vm9 = vcmp.le.s32.totalorder %v1596_v54, 16 }
 0x39e   : > { %vm1704_vm10 = vmand %vm1632_vm8, %vm1668_vm9 }
 0x39f   : > { %v9838_v56 = vsel %vm1704_vm10, 1.0, %v11262_v40 }
 0x3a0   : > { %11359 = vst [vmem:[#allocation50_spill] sm:$0xff] %v9838_v56  ;;  %v4097_v48 = vmul.f32 %v9838_v56, %v9835_v42 }
 0x3a2   : > { %v4167_v62 = vsel %vm1859_vm1, %v4097_v48, 0.0  ;;  %v4210_v10 = vmul.f32 %v4097_v48, %v9835_v42 }
 0x3a3   : > { %v4168_v6 = vadd.f32 %v4167_v62, %v4166_v5  ;;  %v4605_v5 = vld [vmem:[#allocation3] sm:$0xff] }
 0x3a4   : > { %v4280_v47 = vsel %vm1859_vm1, %v4210_v10, 0.0  ;;  %v5028_v62 = vld [vmem:[#allocation3 + $0x2] sm:$0xff]  ;;  %v5029_v10 = vld [vmem:[#allocation3 + $0xa] sm:$0xff] }
 0x3a5   : > { %v4169_v38 = vrot.slane %v4168_v6, 4  ;;  %v4281_v41 = vadd.f32 %v4280_v47, %v4279_v57  ;;  %v4641_v57 = vpack.c.bf16 %v4606_v14, %v4605_v5 }
 0x3a7   : > { %v4170_v18 = vadd.f32 %v4169_v38, %v4168_v6  ;;  %v4282_v58 = vrot.slane %v4281_v41, 4  ;;  %7553 = vmatmul.msk.bf16.vlgmr.msrb.gmra.mxu2 %vm1859_vm1, %v4641_v57  ;;  %v11365_v57 = vld [vmem:[#allocation12_spill] sm:$0xff] }
 0x3a9   : > { %v4171_v40 = vrot.slane %v4170_v18, 2  ;;  %v4283_v51 = vadd.f32 %v4282_v58, %v4281_v41  ;;  %v5064_v41 = vpack.c.bf16 %v5029_v10, %v5028_v62  ;;  %v11360_v58 = vld [vmem:[#allocation22_spill] sm:$0xff] }
 0x3ab   : > { %v4172_v44 = vadd.f32 %v4171_v40, %v4170_v18  ;;  %v4284_v59 = vrot.slane %v4283_v51, 2  ;;  %7572 = vmatmul.msk.bf16.vlgmr.msrb.gmra.mxu3 %vm1859_vm1, %v5064_v41  ;;  %v11361_v40 = vld [vmem:[#allocation24_spill] sm:$0xff]  ;;  %v9922_v41 = vld [vmem:[%s320_s16] ss:$0 sm:$0xff] }
 0x3ad   : > { %v4173_v31 = vrot.slane %v4172_v44, 1  ;;  %v4285_v46 = vadd.f32 %v4284_v59, %v4283_v51 }
 0x3af   : > { %v4174_v55 = vadd.f32 %v4173_v31, %v4172_v44  ;;  %v4286_v17 = vrot.slane %v4285_v46, 1 }
 0x3b1   : > { %v4287_v12 = vadd.f32 %v4286_v17, %v4285_v46  ;;  %v9853_v1 = vmul.f32 0.00390625, %v4174_v55 }
 0x3b3   : > { %v4289_v33 = vmul.f32 0.00390625, %v4287_v12  ;;  %v4290_v16 = vmul.f32 %v9853_v1, %v9853_v1  ;;  %v4328_v4 = vsub.f32 %v9835_v42, %v9853_v1  ;;  %v4293_v23 = vsub.f32 %v11360_v58, %v9853_v1 }
 0x3b4   : > { %v4294_v51 = vsub.f32 %v11361_v40, %v9853_v1  ;;  %v4295_v34 = vsub.f32 %v8794_v49, %v9853_v1  ;;  %v4296_v44 = vsub.f32 %v8829_v61, %v9853_v1  ;;  %v4297_v59 = vsub.f32 %v8879_v39, %v9853_v1  ;;  %v11370_v40 = vld [vmem:[#allocation42_spill] sm:$0xff] }
 0x3b5   : > { %v4291_v27 = vsub.f32 %v4289_v33, %v4290_v16  ;;  %v4298_v20 = vsub.f32 %v8920_v13, %v9853_v1  ;;  %v4299_v31 = vsub.f32 %v8972_v30, %v9853_v1  ;;  %v4300_v46 = vsub.f32 %v9000_v3, %v9853_v1  ;;  %v11366_v33 = vld [vmem:[#allocation14_spill] sm:$0xff]  ;;  %v11367_v16 = vld [vmem:[#allocation39_spill] sm:$0xff] }
 0x3b6   : > { %v4301_v55 = vsub.f32 %v9030_v22, %v9853_v1  ;;  %v4302_v49 = vsub.f32 %v9087_v36, %v9853_v1  ;;  %v4303_v61 = vsub.f32 %v9127_v25, %v9853_v1  ;;  %v4304_v39 = vsub.f32 %v9162_v37, %v9853_v1  ;;  %v11362_v37 = vld [vmem:[#allocation36_spill] sm:$0xff] }
 0x3b7   : > { %v4292_v54 = vmax.f32 %v4291_v27, 0.0  ;;  %v4305_v13 = vsub.f32 %v9212_v24, %v9853_v1  ;;  %v4306_v30 = vsub.f32 %v9268_v60, %v9853_v1  ;;  %v4307_v3 = vsub.f32 %v9287_v35, %v9853_v1  ;;  %v11363_v24 = vld [vmem:[#allocation35_spill] sm:$0xff]  ;;  %v11364_v60 = vld [vmem:[#allocation38_spill] sm:$0xff] }
 0x3b8   : > { %v4308_v22 = vsub.f32 %v9371_v21, %v9853_v1  ;;  %v4309_v36 = vsub.f32 %v9344_v28, %v9853_v1  ;;  %v4310_v5 = vsub.f32 %v11362_v37, %v9853_v1  ;;  %v4311_v14 = vsub.f32 %v11363_v24, %v9853_v1 }
 0x3b9   : > { %v4329_v48 = vadd.f32 1e-05, %v4292_v54  ;;  %v4312_v12 = vsub.f32 %v11364_v60, %v9853_v1  ;;  %v4313_v35 = vsub.f32 %v11365_v57, %v9853_v1  ;;  %v4314_v21 = vsub.f32 %v11366_v33, %v9853_v1  ;;  %v11368_v54 = vld [vmem:[#allocation4_spill] sm:$0xff]  ;;  %v9943_v60 = vld [vmem:[%s323_s19] ss:$0 sm:$0xff] }
 0x3ba   : > { %v4315_v28 = vsub.f32 %v11367_v16, %v9853_v1  ;;  %v4316_v62 = vsub.f32 %v11368_v54, %v9853_v1  ;;  %v4317_v10 = vsub.f32 %v9573_v19, %v9853_v1  ;;  %v4323_v37 = vsub.f32 %v9744_v8, %v9853_v1 }
 0x3bb   : > { %7823 = vrsqrt.f32 %v4329_v48  ;;  %vm4336_vm12 = vweird.f32 %v4329_v48  ;;  %v4324_v24 = vsub.f32 %v9748_v32, %v9853_v1 }
 0x3c1   : > { %v7824_v42 = vpop.eup %7823 }
 0x3c2   : > { %v4331_v18 = vmul.f32 %v7824_v42, %v4329_v48  ;;  %vm4337_vm11 = vweird.f32 %v7824_v42  ;;  %v4320_v48 = vsub.f32 %v9669_v11, %v9853_v1 }
 0x3c3   : > { %vm4338_vm13 = vmor %vm4336_vm12, %vm4337_vm11 }
 0x3c4   : > { %v4332_v26 = vmul.f32 %v7824_v42, %v4331_v18  ;;  %v11369_v18 = vld [vmem:[#allocation6_spill] sm:$0xff] }
 0x3c5   : > { %v4318_v58 = vsub.f32 %v11369_v18, %v9853_v1 }
 0x3c6   : > { %v4333_v17 = vmul.f32 0.5, %v4332_v26  ;;  %v4319_v26 = vsub.f32 %v11370_v40, %v9853_v1 }
 0x3c8   : > { %v4334_v25 = vsub.f32 1.5, %v4333_v17  ;;  %v4321_v17 = vsub.f32 %v9702_v52, %v9853_v1 }
 0x3ca   : > { %v4335_v27 = vmul.f32 %v7824_v42, %v4334_v25  ;;  %v4322_v25 = vsub.f32 %v9715_v50, %v9853_v1 }
 0x3cc   : > { %v4339_v19 = vsel %vm4338_vm13, %v7824_v42, %v4335_v27 }
 0x3cd   : > { %v4375_v11 = vmul.f32 %v4339_v19, %v4328_v4  ;;  %v4340_v57 = vmul.f32 %v4339_v19, %v4293_v23  ;;  %v4341_v33 = vmul.f32 %v4339_v19, %v4294_v51  ;;  %v4342_v52 = vmul.f32 %v4339_v19, %v4295_v34 }
 0x3ce   : > { %v4343_v42 = vmul.f32 %v4339_v19, %v4296_v44  ;;  %v4344_v16 = vmul.f32 %v4339_v19, %v4297_v59  ;;  %v4345_v27 = vmul.f32 %v4339_v19, %v4298_v20  ;;  %v4346_v50 = vmul.f32 %v4339_v19, %v4299_v31 }
 0x3cf   : > { %v4415_v54 = vmul.f32 %v9922_v41, %v4375_v11  ;;  %v4347_v8 = vmul.f32 %v4339_v19, %v4300_v46  ;;  %v4348_v18 = vmul.f32 %v4339_v19, %v4301_v55  ;;  %v4349_v40 = vmul.f32 %v4339_v19, %v4302_v49 }
 0x3d0   : > { %v4350_v32 = vmul.f32 %v4339_v19, %v4303_v61  ;;  %v4351_v38 = vmul.f32 %v4339_v19, %v4304_v39  ;;  %v4352_v47 = vmul.f32 %v4339_v19, %v4305_v13  ;;  %v4353_v6 = vmul.f32 %v4339_v19, %v4306_v30 }
 0x3d1   : > { %v4455_v53 = vadd.f32 %v9943_v60, %v4415_v54  ;;  %v4354_v45 = vmul.f32 %v4339_v19, %v4307_v3  ;;  %v4355_v4 = vmul.f32 %v4339_v19, %v4308_v22  ;;  %v4356_v23 = vmul.f32 %v4339_v19, %v4309_v36 }
 0x3d2   : > { %v4357_v51 = vmul.f32 %v4339_v19, %v4310_v5  ;;  %v4358_v34 = vmul.f32 %v4339_v19, %v4311_v14  ;;  %v4359_v44 = vmul.f32 %v4339_v19, %v4312_v12  ;;  %v4360_v59 = vmul.f32 %v4339_v19, %v4313_v35 }
 0x3d3   : > { %v4491_v20 = vmax.f32 %v4455_v53, 0.0  ;;  %v4361_v31 = vmul.f32 %v4339_v19, %v4314_v21  ;;  %v4362_v7 = vmul.f32 %v4339_v19, %v4315_v28  ;;  %v4363_v11 = vmul.f32 %v4339_v19, %v4316_v62 }
 0x3d4   : > { %v4364_v46 = vmul.f32 %v4339_v19, %v4317_v10  ;;  %v4365_v55 = vmul.f32 %v4339_v19, %v4318_v58  ;;  %v4366_v49 = vmul.f32 %v4339_v19, %v4319_v26  ;;  %v4367_v61 = vmul.f32 %v4339_v19, %v4320_v48 }
 0x3d5   : > { %v4527_v39 = vmul.f32 %v9838_v56, %v4491_v20  ;;  %v4368_v13 = vmul.f32 %v4339_v19, %v4321_v17  ;;  %v4369_v30 = vmul.f32 %v4339_v19, %v4322_v25  ;;  %v4370_v54 = vmul.f32 %v4339_v19, %v4323_v37 }
 0x3d6   : > { %v4371_v3 = vmul.f32 %v4339_v19, %v4324_v24  ;;  %v11371_v22 = vsub.f32 %v9790_v43, %v9853_v1  ;;  %v11372_v53 = vsub.f32 %v9798_v9, %v9853_v1  ;;  %v11373_v14 = vsub.f32 %v9822_v2, %v9853_v1 }
 0x3d7   : > { %4604 = vst.msk [vmem:[#allocation3 + $0x12b] sm:$0xff] %vm1859_vm1, %v4527_v39  ;;  %v4380_v35 = vmul.f32 %v9922_v41, %v4340_v57  ;;  %v4381_v21 = vmul.f32 %v9922_v41, %v4341_v33  ;;  %v4382_v28 = vmul.f32 %v9922_v41, %v4342_v52  ;;  %v4383_v62 = vmul.f32 %v9922_v41, %v4343_v42 }
 0x3d8   : > { %v4372_v36 = vmul.f32 %v4339_v19, %v11371_v22  ;;  %v4373_v5 = vmul.f32 %v4339_v19, %v11372_v53  ;;  %v4374_v12 = vmul.f32 %v4339_v19, %v11373_v14  ;;  %v4384_v43 = vmul.f32 %v9922_v41, %v4344_v16 }
 0x3d9   : > { %v4385_v10 = vmul.f32 %v9922_v41, %v4345_v27  ;;  %v4386_v9 = vmul.f32 %v9922_v41, %v4346_v50  ;;  %v4387_v58 = vmul.f32 %v9922_v41, %v4347_v8  ;;  %v4388_v2 = vmul.f32 %v9922_v41, %v4348_v18 }
 0x3da   : > { %v4389_v1 = vmul.f32 %v9922_v41, %v4349_v40  ;;  %v4390_v26 = vmul.f32 %v9922_v41, %v4350_v32  ;;  %v4391_v48 = vmul.f32 %v9922_v41, %v4351_v38  ;;  %v4392_v17 = vmul.f32 %v9922_v41, %v4352_v47 }
 0x3db   : > { %v4393_v19 = vmul.f32 %v9922_v41, %v4353_v6  ;;  %v4394_v25 = vmul.f32 %v9922_v41, %v4354_v45  ;;  %v4395_v37 = vmul.f32 %v9922_v41, %v4355_v4  ;;  %v4396_v24 = vmul.f32 %v9922_v41, %v4356_v23 }
 0x3dc   : > { %v4397_v57 = vmul.f32 %v9922_v41, %v4357_v51  ;;  %v4398_v33 = vmul.f32 %v9922_v41, %v4358_v34  ;;  %v4399_v52 = vmul.f32 %v9922_v41, %v4359_v44  ;;  %v4400_v42 = vmul.f32 %v9922_v41, %v4360_v59 }
 0x3dd   : > { %v4401_v38 = vmul.f32 %v9922_v41, %v4361_v31  ;;  %v4402_v47 = vmul.f32 %v9922_v41, %v4362_v7  ;;  %v4403_v6 = vmul.f32 %v9922_v41, %v4363_v11  ;;  %v4404_v45 = vmul.f32 %v9922_v41, %v4364_v46 }
 0x3de   : > { %v4405_v16 = vmul.f32 %v9922_v41, %v4365_v55  ;;  %v4406_v27 = vmul.f32 %v9922_v41, %v4366_v49  ;;  %v4407_v50 = vmul.f32 %v9922_v41, %v4367_v61  ;;  %v4408_v8 = vmul.f32 %v9922_v41, %v4368_v13 }
 0x3df   : > { %v4409_v18 = vmul.f32 %v9922_v41, %v4369_v30  ;;  %v4410_v40 = vmul.f32 %v9922_v41, %v4370_v54  ;;  %v4411_v32 = vmul.f32 %v9922_v41, %v4371_v3  ;;  %v4412_v7 = vmul.f32 %v9922_v41, %v4372_v36 }
 0x3e0   : > { %v4413_v4 = vmul.f32 %v9922_v41, %v4373_v5  ;;  %v4414_v23 = vmul.f32 %v9922_v41, %v4374_v12  ;;  %v4420_v51 = vadd.f32 %v9943_v60, %v4380_v35  ;;  %v4421_v34 = vadd.f32 %v9943_v60, %v4381_v21 }
 0x3e1   : > { %v4422_v44 = vadd.f32 %v9943_v60, %v4382_v28  ;;  %v4423_v59 = vadd.f32 %v9943_v60, %v4383_v62  ;;  %v4424_v20 = vadd.f32 %v9943_v60, %v4384_v43  ;;  %v4425_v31 = vadd.f32 %v9943_v60, %v4385_v10 }
 0x3e2   : > { %v4426_v11 = vadd.f32 %v9943_v60, %v4386_v9  ;;  %v4427_v46 = vadd.f32 %v9943_v60, %v4387_v58  ;;  %v4428_v55 = vadd.f32 %v9943_v60, %v4388_v2  ;;  %v4429_v41 = vadd.f32 %v9943_v60, %v4389_v1 }
 0x3e3   : > { %v4430_v49 = vadd.f32 %v9943_v60, %v4390_v26  ;;  %v10005_v61 = vadd.f32 %v9943_v60, %v4391_v48  ;;  %v10008_v39 = vadd.f32 %v9943_v60, %v4392_v17  ;;  %v10011_v13 = vadd.f32 %v9943_v60, %v4393_v19 }
 0x3e4   : > { %v10014_v30 = vadd.f32 %v9943_v60, %v4394_v25  ;;  %v10017_v54 = vadd.f32 %v9943_v60, %v4395_v37  ;;  %v10020_v3 = vadd.f32 %v9943_v60, %v4396_v24  ;;  %v10023_v22 = vadd.f32 %v9943_v60, %v4397_v57 }
 0x3e5   : > { %v10026_v36 = vadd.f32 %v9943_v60, %v4398_v33  ;;  %v10029_v53 = vadd.f32 %v9943_v60, %v4399_v52  ;;  %v10032_v5 = vadd.f32 %v9943_v60, %v4400_v42  ;;  %v10035_v14 = vadd.f32 %v9943_v60, %v4401_v38  ;;  %v11374_v52 = vld [vmem:[#allocation21_spill] sm:$0xff]  ;;  %v11375_v38 = vld [vmem:[#allocation23_spill] sm:$0xff] }
 0x3e6   : > { %v10038_v12 = vadd.f32 %v9943_v60, %v4402_v47  ;;  %v10041_v35 = vadd.f32 %v9943_v60, %v4403_v6  ;;  %v10044_v21 = vadd.f32 %v9943_v60, %v4404_v45  ;;  %v10047_v28 = vadd.f32 %v9943_v60, %v4405_v16  ;;  %v11376_v6 = vld [vmem:[#allocation7_spill] sm:$0xff] }
 0x3e7   : > { %v10050_v62 = vadd.f32 %v9943_v60, %v4406_v27  ;;  %v10053_v43 = vadd.f32 %v9943_v60, %v4407_v50  ;;  %v10056_v10 = vadd.f32 %v9943_v60, %v4408_v8  ;;  %v10059_v9 = vadd.f32 %v9943_v60, %v4409_v18  ;;  %v11377_v27 = vld [vmem:[#allocation25_spill] sm:$0xff]  ;;  %v11378_v18 = vld [vmem:[#allocation26_spill] sm:$0xff] }
 0x3e8   : > { %v10062_v58 = vadd.f32 %v9943_v60, %v4410_v40  ;;  %v10065_v2 = vadd.f32 %v9943_v60, %v4411_v32  ;;  %v10068_v1 = vadd.f32 %v9943_v60, %v4412_v7  ;;  %v10071_v26 = vadd.f32 %v9943_v60, %v4413_v4  ;;  %v11379_v32 = vld [vmem:[#allocation27_spill] sm:$0xff] }
 0x3e9   : > { %v10074_v48 = vadd.f32 %v9943_v60, %v4414_v23  ;;  %v4456_v17 = vmax.f32 %v4420_v51, 0.0  ;;  %v4457_v19 = vmax.f32 %v4421_v34, 0.0  ;;  %v4458_v25 = vmax.f32 %v4422_v44, 0.0  ;;  %v11380_v23 = vld [vmem:[#allocation28_spill] sm:$0xff]  ;;  %v11381_v44 = vld [vmem:[#allocation29_spill] sm:$0xff] }
 0x3ea   : > { %v4459_v37 = vmax.f32 %v4423_v59, 0.0  ;;  %v4460_v24 = vmax.f32 %v4424_v20, 0.0  ;;  %v4461_v57 = vmax.f32 %v4425_v31, 0.0  ;;  %v4462_v33 = vmax.f32 %v4426_v11, 0.0  ;;  %v4660_v20 = vld [vmem:[#allocation3 + $0x1] sm:$0xff]  ;;  %v4661_v31 = vld [vmem:[#allocation3 + $0x9] sm:$0xff] }
 0x3eb   : > { %v4492_v42 = vmul.f32 %v11374_v52, %v4456_v17  ;;  %v4493_v47 = vmul.f32 %v11375_v38, %v4457_v19  ;;  %v4494_v45 = vmul.f32 %v11376_v6, %v4458_v25  ;;  %v4463_v16 = vmax.f32 %v4427_v46, 0.0  ;;  %v11382_v46 = vld [vmem:[#allocation30_spill] sm:$0xff]  ;;  %v11383_v17 = vld [vmem:[#allocation31_spill] sm:$0xff] }
 0x3ec   : > { %v4495_v50 = vmul.f32 %v11377_v27, %v4459_v37  ;;  %v4464_v8 = vmax.f32 %v4428_v55, 0.0  ;;  %v4496_v60 = vmul.f32 %v11378_v18, %v4460_v24  ;;  %v4465_v40 = vmax.f32 %v4429_v41, 0.0  ;;  %v7590_v41 = vld [vmem:[%s11114_s2 + $0x6] sm:$0x3]  ;;  %v11384_v37 = vld [vmem:[#allocation32_spill] sm:$0xff] }
 0x3ed   : > { %4569 = vst.msk [vmem:[#allocation3 + $0x13] sm:$0xff] %vm1859_vm1, %v4492_v42  ;;  %v4497_v7 = vmul.f32 %v11379_v32, %v4461_v57  ;;  %v4466_v4 = vmax.f32 %v4430_v49, 0.0  ;;  %v4498_v51 = vmul.f32 %v11380_v23, %v4462_v33  ;;  %v4467_v34 = vmax.f32 %v10005_v61, 0.0  ;;  %v7609_v49 = vld [vmem:[%s11114_s2 + $0x8] sm:$0x3]  ;;  %v11385_v57 = vld [vmem:[#allocation33_spill] sm:$0xff] }
 0x3ee   : > { %4570 = vst.msk [vmem:[#allocation3 + $0x1b] sm:$0xff] %vm1859_vm1, %v4493_v47  ;;  %v4499_v59 = vmul.f32 %v11381_v44, %v4463_v16  ;;  %v4468_v11 = vmax.f32 %v10008_v39, 0.0  ;;  %v4500_v55 = vmul.f32 %v11382_v46, %v4464_v8  ;;  %v4469_v61 = vmax.f32 %v10011_v13, 0.0 }
 0x3ef   : > { %4571 = vst.msk [vmem:[#allocation3 + $0x23] sm:$0xff] %vm1859_vm1, %v4494_v45  ;;  %v4501_v19 = vmul.f32 %v11383_v17, %v4465_v40  ;;  %v4470_v39 = vmax.f32 %v10014_v30, 0.0  ;;  %v4471_v25 = vmax.f32 %v10017_v54, 0.0  ;;  %v4502_v24 = vmul.f32 %v11384_v37, %v4466_v4  ;;  %v11386_v30 = vld [vmem:[#allocation8_spill] sm:$0xff] }
 0x3f0   : > { %4572 = vst.msk [vmem:[#allocation3 + $0x2b] sm:$0xff] %vm1859_vm1, %v4495_v50  ;;  %v4503_v33 = vmul.f32 %v11385_v57, %v4467_v34  ;;  %v4696_v42 = vpack.c.bf16 %v4661_v31, %v4660_v20  ;;  %v5387_v47 = vsel %vm2067_vm0, %v7590_v41, 0  ;;  %v5635_v13 = vsel %vm2067_vm0, %v7609_v49, 0  ;;  %v11390_v41 = vld [vmem:[#allocation11_spill] sm:$0xff] }
 0x3f1   : > { %4573 = vst.msk [vmem:[#allocation3 + $0x33] sm:$0xff] %vm1859_vm1, %v4496_v60  ;;  %v4472_v50 = vmax.f32 %v10020_v3, 0.0  ;;  %v4504_v8 = vmul.f32 %v11386_v30, %v4468_v11  ;;  %5396 = vmatpush.bf16.msrb.mxu0 %v5387_v47  ;;  %5644 = vmatpush.bf16.msrb.mxu1 %v5635_v13  ;;  %v4473_v40 = vmax.f32 %v10023_v22, 0.0  ;;  %v4474_v3 = vmax.f32 %v10026_v36, 0.0  ;;  %v11389_v11 = vld [vmem:[#allocation34_spill] sm:$0xff]  ;;  %v11394_v47 = vld [vmem:[#allocation16_spill] sm:$0xff] }
 0x3f2   : > { %4574 = vst.msk [vmem:[#allocation3 + $0x3b] sm:$0xff] %vm1859_vm1, %v4497_v7  ;;  %v11387_v7 = vld [vmem:[#allocation9_spill] sm:$0xff]  ;;  %7535 = vmatmul.msk.bf16.vlgmr.msra.gmra.mxu1 %vm1859_vm1, %v4696_v42  ;;  %v4475_v31 = vmax.f32 %v10029_v53, 0.0  ;;  %v4476_v22 = vmax.f32 %v10032_v5, 0.0  ;;  %v4477_v36 = vmax.f32 %v10035_v14, 0.0  ;;  %v4479_v5 = vmax.f32 %v10041_v35, 0.0 }
 0x3f3   : > { %4575 = vst.msk [vmem:[#allocation3 + $0x43] sm:$0xff] %vm1859_vm1, %v4498_v51  ;;  %v4505_v4 = vmul.f32 %v11387_v7, %v4469_v61  ;;  %v4508_v49 = vmul.f32 %v11390_v41, %v4472_v50  ;;  %v11391_v61 = vld [vmem:[#allocation15_spill] sm:$0xff]  ;;  %v4480_v42 = vmax.f32 %v10044_v21, 0.0  ;;  %v4481_v13 = vmax.f32 %v10047_v28, 0.0  ;;  %v11396_v50 = vld [vmem:[#allocation40_spill] sm:$0xff] }
 0x3f4   : > { %4576 = vst.msk [vmem:[#allocation3 + $0x4b] sm:$0xff] %vm1859_vm1, %v4499_v59  ;;  %v4607_v45 = vld [vmem:[#allocation3 + $0x10] sm:$0xff]  ;;  %v11388_v59 = vld [vmem:[#allocation10_spill] sm:$0xff]  ;;  %v4509_v53 = vmul.f32 %v11391_v61, %v4473_v40  ;;  %v4512_v14 = vmul.f32 %v11394_v47, %v4476_v22  ;;  %v4483_v21 = vmax.f32 %v10053_v43, 0.0  ;;  %v4484_v28 = vmax.f32 %v10056_v10, 0.0 }
 0x3f5   : > { %v5030_v16 = vld [vmem:[#allocation3 + $0x12] sm:$0xff]  ;;  %4577 = vst.msk [vmem:[#allocation3 + $0x53] sm:$0xff] %vm1859_vm1, %v4500_v55  ;;  %v5031_v60 = vld [vmem:[#allocation3 + $0x1a] sm:$0xff]  ;;  %v4506_v20 = vmul.f32 %v11388_v59, %v4470_v39  ;;  %v4507_v55 = vmul.f32 %v11389_v11, %v4471_v25  ;;  %v4486_v43 = vmax.f32 %v10062_v58, 0.0  ;;  %v4489_v58 = vmax.f32 %v10071_v26, 0.0  ;;  %v11402_v26 = vld [vmem:[#allocation48_spill] sm:$0xff] }
 0x3f6   : > { %v4608_v54 = vld [vmem:[#allocation3 + $0x18] sm:$0xff]  ;;  %4578 = vst.msk [vmem:[#allocation3 + $0x5b] sm:$0xff] %vm1859_vm1, %v4501_v19  ;;  %v5065_v34 = vpack.c.bf16 %v5031_v60, %v5030_v16  ;;  %v4478_v19 = vmax.f32 %v10038_v12, 0.0  ;;  %v11392_v39 = vld [vmem:[#allocation37_spill] sm:$0xff]  ;;  %v4482_v16 = vmax.f32 %v10050_v62, 0.0  ;;  %v4485_v62 = vmax.f32 %v10059_v9, 0.0 }
 0x3f7   : > { %v4642_v51 = vpack.c.bf16 %v4608_v54, %v4607_v45  ;;  %4579 = vst.msk [vmem:[#allocation3 + $0x63] sm:$0xff] %vm1859_vm1, %v4502_v24  ;;  %v4510_v25 = vmul.f32 %v11392_v39, %v4474_v3  ;;  %v11393_v24 = vld [vmem:[#allocation13_spill] sm:$0xff]  ;;  %v4663_v54 = vld [vmem:[#allocation3 + $0x19] sm:$0xff]  ;;  %v5032_v10 = vld [vmem:[#allocation3 + $0x22] sm:$0xff]  ;;  %v4488_v9 = vmax.f32 %v10068_v1, 0.0 }
 0x3f8   : > { %4580 = vst.msk [vmem:[#allocation3 + $0x6b] sm:$0xff] %vm1859_vm1, %v4503_v33  ;;  %7573 = vmatmul.msk.bf16.gmra.mxu3 %vm1859_vm1, %v5065_v34  ;;  %7591 = vmatmul.msk.bf16.vlgmr.msrb.gmra.mxu0 %vm1859_vm1, %v5065_v34  ;;  %v4511_v33 = vmul.f32 %v11393_v24, %v4475_v31  ;;  %v11395_v45 = vld [vmem:[#allocation17_spill] sm:$0xff]  ;;  %v4514_v35 = vmul.f32 %v11396_v50, %v4478_v19  ;;  %v11397_v60 = vld [vmem:[#allocation18_spill] sm:$0xff]  ;;  %v4609_v31 = vld [vmem:[#allocation3 + $0x20] sm:$0xff] }
 0x3f9   : > { %7554 = vmatmul.msk.bf16.gmra.mxu2 %vm1859_vm1, %v4642_v51  ;;  %4581 = vst.msk [vmem:[#allocation3 + $0x73] sm:$0xff] %vm1859_vm1, %v4504_v8  ;;  %v4513_v12 = vmul.f32 %v11395_v45, %v4477_v36  ;;  %v4662_v8 = vld [vmem:[#allocation3 + $0x11] sm:$0xff]  ;;  %v4515_v40 = vmul.f32 %v11397_v60, %v4479_v5  ;;  %v11401_v19 = vld [vmem:[#allocation43_spill] sm:$0xff]  ;;  %v4520_v5 = vmul.f32 %v9724_v29, %v4484_v28  ;;  %v7685_v29 = vld [vmem:[%s11114_s2 + $0x10] sm:$0x3] }
 0x3fa   : > { %4582 = vst.msk [vmem:[#allocation3 + $0x7b] sm:$0xff] %vm1859_vm1, %v4505_v4  ;;  %v11398_v4 = vld [vmem:[#allocation19_spill] sm:$0xff]  ;;  %v11399_v34 = vld [vmem:[#allocation41_spill] sm:$0xff]  ;;  %v4612_v28 = vld [vmem:[#allocation3 + $0x38] sm:$0xff] }
 0x3fb   : > { %4583 = vst.msk [vmem:[#allocation3 + $0x83] sm:$0xff] %vm1859_vm1, %v4506_v20  ;;  %v4516_v51 = vmul.f32 %v11398_v4, %v4480_v42  ;;  %v4517_v3 = vmul.f32 %v11399_v34, %v4481_v13  ;;  %v4697_v20 = vpack.c.bf16 %v4663_v54, %v4662_v8  ;;  %v5033_v36 = vld [vmem:[#allocation3 + $0x2a] sm:$0xff]  ;;  %v4522_v13 = vmul.f32 %v9769_v0, %v4486_v43  ;;  %v4664_v54 = vld [vmem:[#allocation3 + $0x21] sm:$0xff] }
 0x3fc   : > { %4584 = vst.msk [vmem:[#allocation3 + $0x8b] sm:$0xff] %vm1859_vm1, %v4507_v55  ;;  %v11400_v55 = vld [vmem:[#allocation20_spill] sm:$0xff]  ;;  %v4666_v43 = vld [vmem:[#allocation3 + $0x31] sm:$0xff]  ;;  %v6271_v45 = vld [vmem:[#allocation3 + $0x3d] sm:$0xff] }
 0x3fd   : > { %4585 = vst.msk [vmem:[#allocation3 + $0x93] sm:$0xff] %vm1859_vm1, %v4508_v49  ;;  %v4518_v22 = vmul.f32 %v11400_v55, %v4482_v16  ;;  %v4610_v49 = vld [vmem:[#allocation3 + $0x28] sm:$0xff]  ;;  %v11403_v16 = vld [vmem:[#allocation49_spill] sm:$0xff] }
 0x3fe   : > { %4586 = vst.msk [vmem:[#allocation3 + $0x9b] sm:$0xff] %vm1859_vm1, %v4509_v53  ;;  %v4487_v53 = vmax.f32 %v10065_v2, 0.0  ;;  %v4643_v42 = vpack.c.bf16 %v4610_v49, %v4609_v31  ;;  %v5066_v2 = vpack.c.bf16 %v5033_v36, %v5032_v10  ;;  %v4613_v49 = vld [vmem:[#allocation3 + $0x40] sm:$0xff]  ;;  %v4614_v10 = vld [vmem:[#allocation3 + $0x48] sm:$0xff] }
 0x3ff   : > { %4587 = vst.msk [vmem:[#allocation3 + $0xa3] sm:$0xff] %vm1859_vm1, %v4510_v25  ;;  %v4519_v25 = vmul.f32 %v11401_v19, %v4483_v21  ;;  %v4665_v21 = vld [vmem:[#allocation3 + $0x29] sm:$0xff]  ;;  %v6627_v19 = vsel %vm2067_vm0, %v7685_v29, 0  ;;  %v5772_v29 = vld [vmem:[#allocation3 + $0x14] sm:$0xff]  ;;  %v6275_v61 = vld [vmem:[#allocation3 + $0x5d] sm:$0xff] }
 0x400   : > { %4588 = vst.msk [vmem:[#allocation3 + $0xab] sm:$0xff] %vm1859_vm1, %v4511_v33  ;;  %v4521_v33 = vmul.f32 %v9738_v63, %v4485_v62  ;;  %v4523_v1 = vmul.f32 %v9780_v15, %v4487_v53  ;;  %v5035_v62 = vld [vmem:[#allocation3 + $0x3a] sm:$0xff]  ;;  %v5036_v36 = vld [vmem:[#allocation3 + $0x42] sm:$0xff]  ;;  %v5037_v53 = vld [vmem:[#allocation3 + $0x4a] sm:$0xff]  ;;  %6636 = vmatpush.bf16.msra.mxu1 %v6627_v19 }
 0x401   : > { %4589 = vst.msk [vmem:[#allocation3 + $0xb3] sm:$0xff] %vm1859_vm1, %v4512_v14  ;;  %v4490_v14 = vmax.f32 %v10074_v48, 0.0  ;;  %v4525_v48 = vmul.f32 %v11403_v16, %v4489_v58  ;;  %v4668_v58 = vld [vmem:[#allocation3 + $0x41] sm:$0xff]  ;;  %v6273_v24 = vld [vmem:[#allocation3 + $0x4d] sm:$0xff] }
 0x402   : > { %4590 = vst.msk [vmem:[#allocation3 + $0xbb] sm:$0xff] %vm1859_vm1, %v4513_v12  ;;  %7536 = vmatmul.msk.bf16.gmra.mxu1 %vm1859_vm1, %v4697_v20  ;;  %v4524_v12 = vmul.f32 %v11402_v26, %v4488_v9  ;;  %v4645_v9 = vpack.c.bf16 %v4614_v10, %v4613_v49  ;;  %v4620_v49 = vld [vmem:[#allocation3 + $0x78] sm:$0xff]  ;;  %v6277_v11 = vld [vmem:[#allocation3 + $0x6d] sm:$0xff] }
 0x403   : > { %4591 = vst.msk [vmem:[#allocation3 + $0xc3] sm:$0xff] %vm1859_vm1, %v4514_v35  ;;  %v11404_v35 = vld [vmem:[#allocation5_spill] sm:$0xff]  ;;  %v6279_v7 = vld [vmem:[#allocation3 + $0x7d] sm:$0xff] }
 0x404   : > { %4592 = vst.msk [vmem:[#allocation3 + $0xcb] sm:$0xff] %vm1859_vm1, %v4515_v40  ;;  %v4526_v8 = vmul.f32 %v11404_v35, %v4490_v14  ;;  %v4611_v40 = vld [vmem:[#allocation3 + $0x30] sm:$0xff] }
 0x405   : > { %4593 = vst.msk [vmem:[#allocation3 + $0xd3] sm:$0xff] %vm1859_vm1, %v4516_v51  ;;  %v5034_v51 = vld [vmem:[#allocation3 + $0x32] sm:$0xff]  ;;  %v4644_v20 = vpack.c.bf16 %v4612_v28, %v4611_v40  ;;  %v4618_v40 = vld [vmem:[#allocation3 + $0x68] sm:$0xff] }
 0x406   : > { %4594 = vst.msk [vmem:[#allocation3 + $0xdb] sm:$0xff] %vm1859_vm1, %v4517_v3  ;;  %v4698_v3 = vpack.c.bf16 %v4665_v21, %v4664_v54  ;;  %v5067_v31 = vpack.c.bf16 %v5035_v62, %v5034_v51  ;;  %v5038_v14 = vld [vmem:[#allocation3 + $0x52] sm:$0xff]  ;;  %v4617_v21 = vld [vmem:[#allocation3 + $0x60] sm:$0xff]  ;;  %v5041_v51 = vld [vmem:[#allocation3 + $0x6a] sm:$0xff] }
 0x407   : > { %4595 = vst.msk [vmem:[#allocation3 + $0xe3] sm:$0xff] %vm1859_vm1, %v4518_v22  ;;  %v4667_v22 = vld [vmem:[#allocation3 + $0x39] sm:$0xff]  ;;  %v5040_v28 = vld [vmem:[#allocation3 + $0x62] sm:$0xff]  ;;  %v6281_v57 = vld [vmem:[#allocation3 + $0x8d] sm:$0xff] }
 0x408   : > { %4596 = vst.msk [vmem:[#allocation3 + $0xeb] sm:$0xff] %vm1859_vm1, %v4519_v25  ;;  %7574 = vmatmul.msk.bf16.gmra.mxu3 %vm1859_vm1, %v5066_v2  ;;  %7592 = vmatmul.msk.bf16.gmra.mxu0 %vm1859_vm1, %v5066_v2  ;;  %v4699_v25 = vpack.c.bf16 %v4667_v22, %v4666_v43  ;;  %v4616_v2 = vld [vmem:[#allocation3 + $0x58] sm:$0xff]  ;;  %v4673_v43 = vld [vmem:[#allocation3 + $0x69] sm:$0xff] }
 0x409   : > { %7555 = vmatmul.msk.bf16.gmra.mxu2 %vm1859_vm1, %v4643_v42  ;;  %4597 = vst.msk [vmem:[#allocation3 + $0xf3] sm:$0xff] %vm1859_vm1, %v4520_v5  ;;  %v5068_v5 = vpack.c.bf16 %v5037_v53, %v5036_v36  ;;  %v4615_v42 = vld [vmem:[#allocation3 + $0x50] sm:$0xff]  ;;  %v4671_v54 = vld [vmem:[#allocation3 + $0x59] sm:$0xff] }
 0x40a   : > { %4598 = vst.msk [vmem:[#allocation3 + $0xfb] sm:$0xff] %vm1859_vm1, %v4521_v33  ;;  %v4669_v33 = vld [vmem:[#allocation3 + $0x49] sm:$0xff]  ;;  %v5042_v10 = vld [vmem:[#allocation3 + $0x72] sm:$0xff]  ;;  %v5043_v36 = vld [vmem:[#allocation3 + $0x7a] sm:$0xff] }
 0x40b   : > { %4599 = vst.msk [vmem:[#allocation3 + $0x103] sm:$0xff] %vm1859_vm1, %v4522_v13  ;;  %v5039_v13 = vld [vmem:[#allocation3 + $0x5a] sm:$0xff]  ;;  %v4619_v22 = vld [vmem:[#allocation3 + $0x70] sm:$0xff] }
 0x40c   : > { %4600 = vst.msk [vmem:[#allocation3 + $0x10b] sm:$0xff] %vm1859_vm1, %v4523_v1  ;;  %v4700_v1 = vpack.c.bf16 %v4669_v33, %v4668_v58  ;;  %v4675_v58 = vld [vmem:[#allocation3 + $0x79] sm:$0xff] }
 0x40d   : > { %4601 = vst.msk [vmem:[#allocation3 + $0x113] sm:$0xff] %vm1859_vm1, %v4524_v12  ;;  %v4646_v12 = vpack.c.bf16 %v4616_v2, %v4615_v42  ;;  %v4621_v33 = vld [vmem:[#allocation3 + $0x80] sm:$0xff]  ;;  %v4622_v42 = vld [vmem:[#allocation3 + $0x88] sm:$0xff] }
 0x40e   : > { %4602 = vst.msk [vmem:[#allocation3 + $0x11b] sm:$0xff] %vm1859_vm1, %v4525_v48  ;;  %v5069_v48 = vpack.c.bf16 %v5039_v13, %v5038_v14  ;;  %v5044_v2 = vld [vmem:[#allocation3 + $0x82] sm:$0xff]  ;;  %v5045_v14 = vld [vmem:[#allocation3 + $0x8a] sm:$0xff] }
 0x40f   : > { %4603 = vst.msk [vmem:[#allocation3 + $0x123] sm:$0xff] %vm1859_vm1, %v4526_v8  ;;  %v4670_v8 = vld [vmem:[#allocation3 + $0x51] sm:$0xff]  ;;  %v6283_v17 = vld [vmem:[#allocation3 + $0x9d] sm:$0xff] }
 0x410   : > { %v4701_v62 = vpack.c.bf16 %v4671_v54, %v4670_v8  ;;  %v4676_v54 = vld [vmem:[#allocation3 + $0x81] sm:$0xff] }
 0x411   : > { %v6287_v23 = vld [vmem:[#allocation3 + $0xbd] sm:$0xff] }
 0x412   : > { %7537 = vmatmul.msk.bf16.gmra.mxu1 %vm1859_vm1, %v4698_v3  ;;  %v4647_v3 = vpack.c.bf16 %v4618_v40, %v4617_v21  ;;  %v4677_v21 = vld [vmem:[#allocation3 + $0x89] sm:$0xff] }
 0x413   : > { %v4623_v40 = vld [vmem:[#allocation3 + $0x90] sm:$0xff] }
 0x416   : > { %v5310_v19 = vld [vmem:[#allocation3 + $0x122] sm:$0xff]  ;;  %v5311_v34 = vld [vmem:[#allocation3 + $0x12a] sm:$0xff] }
 0x418   : > { %7575 = vmatmul.msk.bf16.gmra.mxu3 %vm1859_vm1, %v5067_v31  ;;  %7593 = vmatmul.msk.bf16.gmra.mxu0 %vm1859_vm1, %v5067_v31  ;;  %v4672_v31 = vld [vmem:[#allocation3 + $0x61] sm:$0xff] }
 0x419   : > { %7556 = vmatmul.msk.bf16.gmra.mxu2 %vm1859_vm1, %v4644_v20  ;;  %v5070_v20 = vpack.c.bf16 %v5041_v51, %v5040_v28  ;;  %v4702_v53 = vpack.c.bf16 %v4673_v43, %v4672_v31 }
 0x422   : > { %7538 = vmatmul.msk.bf16.gmra.mxu1 %vm1859_vm1, %v4699_v25  ;;  %v4648_v25 = vpack.c.bf16 %v4620_v49, %v4619_v22  ;;  %v4704_v22 = vpack.c.bf16 %v4677_v21, %v4676_v54  ;;  %v4626_v54 = vld [vmem:[#allocation3 + $0xa8] sm:$0xff] }
 0x423   : > { %v5048_v21 = vld [vmem:[#allocation3 + $0xa2] sm:$0xff] }
 0x428   : > { %7576 = vmatmul.msk.bf16.gmra.mxu3 %vm1859_vm1, %v5068_v5  ;;  %7594 = vmatmul.msk.bf16.gmra.mxu0 %vm1859_vm1, %v5068_v5  ;;  %v4674_v5 = vld [vmem:[#allocation3 + $0x71] sm:$0xff] }
 0x429   : > { %7557 = vmatmul.msk.bf16.gmra.mxu2 %vm1859_vm1, %v4645_v9  ;;  %v5071_v9 = vpack.c.bf16 %v5043_v36, %v5042_v10  ;;  %v4703_v13 = vpack.c.bf16 %v4675_v58, %v4674_v5 }
 0x42e   : > { %v5150_v8 = vpop.f32.mrf.mxu3 }
 0x432   : > { %7539 = vmatmul.msk.bf16.gmra.mxu1 %vm1859_vm1, %v4700_v1  ;;  %v4649_v1 = vpack.c.bf16 %v4622_v42, %v4621_v33 }
 0x436   : > { %v5152_v43 = vpop.f32.mrf.mxu3 }
 0x438   : > { %7577 = vmatmul.msk.bf16.gmra.mxu3 %vm1859_vm1, %v5069_v48  ;;  %7595 = vmatmul.msk.bf16.gmra.mxu0 %vm1859_vm1, %v5069_v48  ;;  %v4938_v48 = vpop.f32.mrf.mxu2 }
 0x439   : > { %7558 = vmatmul.msk.bf16.gmra.mxu2 %vm1859_vm1, %v4646_v12  ;;  %v5072_v12 = vpack.c.bf16 %v5045_v14, %v5044_v2 }
 0x440   : > { %v4940_v51 = vpop.f32.mrf.mxu2 }
 0x442   : > { %7540 = vmatmul.msk.bf16.gmra.mxu1 %vm1859_vm1, %v4701_v62  ;;  %v4624_v62 = vld [vmem:[#allocation3 + $0x98] sm:$0xff] }
 0x443   : > { %v4650_v36 = vpack.c.bf16 %v4624_v62, %v4623_v40  ;;  %v5049_v40 = vld [vmem:[#allocation3 + $0xaa] sm:$0xff] }
 0x448   : > { %7578 = vmatmul.msk.bf16.gmra.mxu3 %vm1859_vm1, %v5070_v20  ;;  %7596 = vmatmul.msk.bf16.gmra.mxu0 %vm1859_vm1, %v5070_v20  ;;  %v5047_v20 = vld [vmem:[#allocation3 + $0x9a] sm:$0xff] }
 0x449   : > { %7559 = vmatmul.msk.bf16.gmra.mxu2 %vm1859_vm1, %v4647_v3  ;;  %v5046_v3 = vld [vmem:[#allocation3 + $0x92] sm:$0xff] }
 0x452   : > { %7541 = vmatmul.msk.bf16.gmra.mxu1 %vm1859_vm1, %v4702_v53  ;;  %v5073_v53 = vpack.c.bf16 %v5047_v20, %v5046_v3 }
 0x458   : > { %7579 = vmatmul.msk.bf16.gmra.mxu3 %vm1859_vm1, %v5071_v9  ;;  %7597 = vmatmul.msk.bf16.gmra.mxu0 %vm1859_vm1, %v5071_v9 }
 0x459   : > { %7560 = vmatmul.msk.bf16.gmra.mxu2 %vm1859_vm1, %v4648_v25 }
 0x462   : > { %7542 = vmatmul.msk.bf16.gmra.mxu1 %vm1859_vm1, %v4703_v13  ;;  %v4678_v13 = vld [vmem:[#allocation3 + $0x91] sm:$0xff] }
 0x468   : > { %7580 = vmatmul.msk.bf16.gmra.mxu3 %vm1859_vm1, %v5072_v12  ;;  %7598 = vmatmul.msk.bf16.gmra.mxu0 %vm1859_vm1, %v5072_v12  ;;  %v4625_v12 = vld [vmem:[#allocation3 + $0xa0] sm:$0xff] }
 0x469   : > { %7561 = vmatmul.msk.bf16.gmra.mxu2 %vm1859_vm1, %v4649_v1  ;;  %v4679_v1 = vld [vmem:[#allocation3 + $0x99] sm:$0xff] }
 0x46f   : > { %v4782_v28 = vpop.f32.mrf.mxu1 }
 0x470   : > { %v4939_v31 = vadd.f32 %v4938_v48, %v4782_v28  ;;  %v4705_v28 = vpack.c.bf16 %v4679_v1, %v4678_v13 }
 0x472   : > { %v5240_v49 = vadd.f32 %v5150_v8, %v4939_v31  ;;  %7543 = vmatmul.msk.bf16.gmra.mxu1 %vm1859_vm1, %v4704_v22  ;;  %v4651_v31 = vpack.c.bf16 %v4626_v54, %v4625_v12  ;;  %v4628_v12 = vld [vmem:[#allocation3 + $0xb8] sm:$0xff] }
 0x473   : > { %v5051_v54 = vld [vmem:[#allocation3 + $0xba] sm:$0xff] }
 0x475   : > { %v5398_v10 = vpop.f32.mrf.mxu0 }
 0x476   : > { %v10211_v25 = vadd.f32 %v5398_v10, %v5240_v49 }
 0x477   : > { %v4784_v9 = vpop.f32.mrf.mxu1 }
 0x478   : > { %7581 = vmatmul.msk.bf16.gmra.mxu3 %vm1859_vm1, %v5073_v53  ;;  %7599 = vmatmul.msk.bf16.gmra.mxu0 %vm1859_vm1, %v5073_v53  ;;  %v4941_v58 = vadd.f32 %v4940_v51, %v4784_v9 }
 0x479   : > { %7562 = vmatmul.msk.bf16.gmra.mxu2 %vm1859_vm1, %v4650_v36 }
 0x47a   : > { %v5241_v42 = vadd.f32 %v5152_v43, %v4941_v58  ;;  %v5074_v43 = vpack.c.bf16 %v5049_v40, %v5048_v21 }
 0x47b   : > { %v5155_v33 = vpop.f32.mrf.mxu3 }
 0x47c   : > { %v4943_v5 = vpop.f32.mrf.mxu2 }
 0x47d   : > { %v5400_v2 = vpop.f32.mrf.mxu0 }
 0x47e   : > { %v10216_v14 = vadd.f32 %v5400_v2, %v5241_v42  ;;  %v4681_v42 = vld [vmem:[#allocation3 + $0xa9] sm:$0xff] }
 0x47f   : > { %v4787_v48 = vpop.f32.mrf.mxu1  ;;  %v4627_v2 = vld [vmem:[#allocation3 + $0xb0] sm:$0xff] }
 0x480   : > { %v4944_v62 = vadd.f32 %v4943_v5, %v4787_v48  ;;  %v5050_v48 = vld [vmem:[#allocation3 + $0xb2] sm:$0xff] }
 0x482   : > { %7544 = vmatmul.msk.bf16.gmra.mxu1 %vm1859_vm1, %v4705_v28  ;;  %v5242_v20 = vadd.f32 %v5155_v33, %v4944_v62  ;;  %v4680_v33 = vld [vmem:[#allocation3 + $0xa1] sm:$0xff] }
 0x483   : > { %v5157_v3 = vpop.f32.mrf.mxu3  ;;  %v4706_v21 = vpack.c.bf16 %v4681_v42, %v4680_v33  ;;  %v4683_v33 = vld [vmem:[#allocation3 + $0xb9] sm:$0xff] }
 0x484   : > { %v4945_v8 = vpop.f32.mrf.mxu2  ;;  %v4629_v42 = vld [vmem:[#allocation3 + $0xc0] sm:$0xff] }
 0x485   : > { %v5403_v51 = vpop.f32.mrf.mxu0 }
 0x486   : > { %v10219_v22 = vadd.f32 %v5403_v51, %v5242_v20  ;;  %v4652_v20 = vpack.c.bf16 %v4628_v12, %v4627_v2  ;;  %v4630_v12 = vld [vmem:[#allocation3 + $0xc8] sm:$0xff] }
 0x487   : > { %v4789_v49 = vpop.f32.mrf.mxu1 }
 0x488   : > { %7582 = vmatmul.msk.bf16.gmra.mxu3 %vm1859_vm1, %v5074_v43  ;;  %7600 = vmatmul.msk.bf16.gmra.mxu0 %vm1859_vm1, %v5074_v43  ;;  %v4946_v36 = vadd.f32 %v4945_v8, %v4789_v49 }
 0x489   : > { %7563 = vmatmul.msk.bf16.gmra.mxu2 %vm1859_vm1, %v4651_v31 }
 0x48a   : > { %v5243_v9 = vadd.f32 %v5157_v3, %v4946_v36  ;;  %v5075_v3 = vpack.c.bf16 %v5051_v54, %v5050_v48  ;;  %v5052_v48 = vld [vmem:[#allocation3 + $0xc2] sm:$0xff]  ;;  %v5053_v54 = vld [vmem:[#allocation3 + $0xca] sm:$0xff] }
 0x48b   : > { %v5160_v53 = vpop.f32.mrf.mxu3 }
 0x48c   : > { %v4948_v10 = vpop.f32.mrf.mxu2 }
 0x48d   : > { %v5405_v5 = vpop.f32.mrf.mxu0 }
 0x48e   : > { %v10224_v58 = vadd.f32 %v5405_v5, %v5243_v9 }
 0x48f   : > { %v4792_v13 = vpop.f32.mrf.mxu1 }
 0x490   : > { %v4949_v40 = vadd.f32 %v4948_v10, %v4792_v13 }
 0x492   : > { %7545 = vmatmul.msk.bf16.gmra.mxu1 %vm1859_vm1, %v4706_v21  ;;  %v5244_v62 = vadd.f32 %v5160_v53, %v4949_v40  ;;  %v4682_v53 = vld [vmem:[#allocation3 + $0xb1] sm:$0xff] }
 0x493   : > { %v5162_v28 = vpop.f32.mrf.mxu3  ;;  %v4707_v21 = vpack.c.bf16 %v4683_v33, %v4682_v53 }
 0x494   : > { %v4950_v1 = vpop.f32.mrf.mxu2 }
 0x495   : > { %v5408_v8 = vpop.f32.mrf.mxu0 }
 0x496   : > { %v10227_v51 = vadd.f32 %v5408_v8, %v5244_v62 }
 0x497   : > { %v4794_v31 = vpop.f32.mrf.mxu1 }
 0x498   : > { %7583 = vmatmul.msk.bf16.gmra.mxu3 %vm1859_vm1, %v5075_v3  ;;  %7601 = vmatmul.msk.bf16.gmra.mxu0 %vm1859_vm1, %v5075_v3  ;;  %v4951_v49 = vadd.f32 %v4950_v1, %v4794_v31 }
 0x499   : > { %7564 = vmatmul.msk.bf16.gmra.mxu2 %vm1859_vm1, %v4652_v20  ;;  %v4653_v20 = vpack.c.bf16 %v4630_v12, %v4629_v42  ;;  %v4631_v42 = vld [vmem:[#allocation3 + $0xd0] sm:$0xff] }
 0x49a   : > { %v5245_v10 = vadd.f32 %v5162_v28, %v4951_v49  ;;  %v5076_v28 = vpack.c.bf16 %v5053_v54, %v5052_v48  ;;  %v4632_v54 = vld [vmem:[#allocation3 + $0xd8] sm:$0xff] }
 0x49b   : > { %v5165_v36 = vpop.f32.mrf.mxu3 }
 0x49c   : > { %v4953_v43 = vpop.f32.mrf.mxu2 }
 0x49d   : > { %v5410_v9 = vpop.f32.mrf.mxu0 }
 0x49e   : > { %v10232_v5 = vadd.f32 %v5410_v9, %v5245_v10 }
 0x49f   : > { %v4797_v2 = vpop.f32.mrf.mxu1 }
 0x4a0   : > { %v4954_v40 = vadd.f32 %v4953_v43, %v4797_v2  ;;  %v4685_v2 = vld [vmem:[#allocation3 + $0xc9] sm:$0xff] }
 0x4a2   : > { %7546 = vmatmul.msk.bf16.gmra.mxu1 %vm1859_vm1, %v4707_v21  ;;  %v5246_v8 = vadd.f32 %v5165_v36, %v4954_v40  ;;  %v4684_v36 = vld [vmem:[#allocation3 + $0xc1] sm:$0xff]  ;;  %v5054_v21 = vld [vmem:[#allocation3 + $0xd2] sm:$0xff] }
 0x4a3   : > { %v5167_v62 = vpop.f32.mrf.mxu3  ;;  %v5055_v40 = vld [vmem:[#allocation3 + $0xda] sm:$0xff] }
 0x4a4   : > { %v4955_v13 = vpop.f32.mrf.mxu2 }
 0x4a5   : > { %v5413_v1 = vpop.f32.mrf.mxu0 }
 0x4a6   : > { %v10235_v3 = vadd.f32 %v5413_v1, %v5246_v8  ;;  %v4708_v8 = vpack.c.bf16 %v4685_v2, %v4684_v36 }
 0x4a7   : > { %v4799_v31 = vpop.f32.mrf.mxu1 }
 0x4a8   : > { %7584 = vmatmul.msk.bf16.gmra.mxu3 %vm1859_vm1, %v5076_v28  ;;  %7602 = vmatmul.msk.bf16.gmra.mxu0 %vm1859_vm1, %v5076_v28  ;;  %v4956_v10 = vadd.f32 %v4955_v13, %v4799_v31  ;;  %v4654_v31 = vpack.c.bf16 %v4632_v54, %v4631_v42  ;;  %v4633_v42 = vld [vmem:[#allocation3 + $0xe0] sm:$0xff] }
 0x4a9   : > { %7565 = vmatmul.msk.bf16.gmra.mxu2 %vm1859_vm1, %v4653_v20 }
 0x4aa   : > { %v5247_v43 = vadd.f32 %v5167_v62, %v4956_v10  ;;  %v5077_v62 = vpack.c.bf16 %v5055_v40, %v5054_v21  ;;  %v4634_v40 = vld [vmem:[#allocation3 + $0xe8] sm:$0xff] }
 0x4ab   : > { %v5170_v9 = vpop.f32.mrf.mxu3 }
 0x4ac   : > { %v4958_v49 = vpop.f32.mrf.mxu2 }
 0x4ad   : > { %v5415_v53 = vpop.f32.mrf.mxu0 }
 0x4ae   : > { %v10240_v33 = vadd.f32 %v5415_v53, %v5247_v43 }
 0x4af   : > { %v4802_v12 = vpop.f32.mrf.mxu1 }
 0x4b0   : > { %v4959_v1 = vadd.f32 %v4958_v49, %v4802_v12 }
 0x4b2   : > { %7547 = vmatmul.msk.bf16.gmra.mxu1 %vm1859_vm1, %v4708_v8  ;;  %v5248_v28 = vadd.f32 %v5170_v9, %v4959_v1  ;;  %v4686_v9 = vld [vmem:[#allocation3 + $0xd1] sm:$0xff]  ;;  %v4687_v8 = vld [vmem:[#allocation3 + $0xd9] sm:$0xff]  ;;  %v5056_v1 = vld [vmem:[#allocation3 + $0xe2] sm:$0xff] }
 0x4b3   : > { %v5172_v20 = vpop.f32.mrf.mxu3 }
 0x4b4   : > { %v4960_v48 = vpop.f32.mrf.mxu2 }
 0x4b5   : > { %v5418_v13 = vpop.f32.mrf.mxu0 }
 0x4b6   : > { %v10243_v10 = vadd.f32 %v5418_v13, %v5248_v28  ;;  %v5057_v28 = vld [vmem:[#allocation3 + $0xea] sm:$0xff]  ;;  %v4709_v13 = vpack.c.bf16 %v4687_v8, %v4686_v9 }
 0x4b7   : > { %v4804_v43 = vpop.f32.mrf.mxu1 }
 0x4b8   : > { %7585 = vmatmul.msk.bf16.gmra.mxu3 %vm1859_vm1, %v5077_v62  ;;  %7603 = vmatmul.msk.bf16.gmra.mxu0 %vm1859_vm1, %v5077_v62  ;;  %v4961_v56 = vadd.f32 %v4960_v48, %v4804_v43  ;;  %v4655_v43 = vpack.c.bf16 %v4634_v40, %v4633_v42  ;;  %v4635_v42 = vld [vmem:[#allocation3 + $0xf0] sm:$0xff] }
 0x4b9   : > { %7566 = vmatmul.msk.bf16.gmra.mxu2 %vm1859_vm1, %v4654_v31 }
 0x4ba   : > { %v5249_v49 = vadd.f32 %v5172_v20, %v4961_v56  ;;  %v5078_v56 = vpack.c.bf16 %v5057_v28, %v5056_v1  ;;  %v4636_v28 = vld [vmem:[#allocation3 + $0xf8] sm:$0xff] }
 0x4bb   : > { %v5175_v36 = vpop.f32.mrf.mxu3 }
 0x4bc   : > { %v4963_v53 = vpop.f32.mrf.mxu2 }
 0x4bd   : > { %v5420_v2 = vpop.f32.mrf.mxu0 }
 0x4be   : > { %v10248_v12 = vadd.f32 %v5420_v2, %v5249_v49 }
 0x4bf   : > { %v4807_v54 = vpop.f32.mrf.mxu1 }
 0x4c0   : > { %v4964_v31 = vadd.f32 %v4963_v53, %v4807_v54 }
 0x4c2   : > { %7548 = vmatmul.msk.bf16.gmra.mxu1 %vm1859_vm1, %v4709_v13  ;;  %v5250_v62 = vadd.f32 %v5175_v36, %v4964_v31  ;;  %v4688_v36 = vld [vmem:[#allocation3 + $0xe1] sm:$0xff]  ;;  %v4689_v13 = vld [vmem:[#allocation3 + $0xe9] sm:$0xff]  ;;  %v5058_v31 = vld [vmem:[#allocation3 + $0xf2] sm:$0xff] }
 0x4c3   : > { %v5177_v35 = vpop.f32.mrf.mxu3 }
 0x4c4   : > { %v4965_v21 = vpop.f32.mrf.mxu2 }
 0x4c5   : > { %v5423_v48 = vpop.f32.mrf.mxu0 }
 0x4c6   : > { %v10251_v20 = vadd.f32 %v5423_v48, %v5250_v62  ;;  %v5059_v62 = vld [vmem:[#allocation3 + $0xfa] sm:$0xff]  ;;  %v4710_v48 = vpack.c.bf16 %v4689_v13, %v4688_v36 }
 0x4c7   : > { %v4809_v49 = vpop.f32.mrf.mxu1 }
 0x4c8   : > { %7586 = vmatmul.msk.bf16.gmra.mxu3 %vm1859_vm1, %v5078_v56  ;;  %7604 = vmatmul.msk.bf16.gmra.mxu0 %vm1859_vm1, %v5078_v56  ;;  %v4966_v16 = vadd.f32 %v4965_v21, %v4809_v49  ;;  %v4656_v49 = vpack.c.bf16 %v4636_v28, %v4635_v42  ;;  %v4637_v42 = vld [vmem:[#allocation3 + $0x100] sm:$0xff] }
 0x4c9   : > { %7567 = vmatmul.msk.bf16.gmra.mxu2 %vm1859_vm1, %v4655_v43 }
 0x4ca   : > { %v5251_v53 = vadd.f32 %v5177_v35, %v4966_v16  ;;  %v5079_v16 = vpack.c.bf16 %v5059_v62, %v5058_v31  ;;  %v4638_v62 = vld [vmem:[#allocation3 + $0x108] sm:$0xff] }
 0x4cb   : > { %v5180_v9 = vpop.f32.mrf.mxu3 }
 0x4cc   : > { %v4968_v2 = vpop.f32.mrf.mxu2 }
 0x4cd   : > { %v5425_v8 = vpop.f32.mrf.mxu0 }
 0x4ce   : > { %v10256_v54 = vadd.f32 %v5425_v8, %v5251_v53 }
 0x4cf   : > { %v4812_v40 = vpop.f32.mrf.mxu1 }
 0x4d0   : > { %v4969_v43 = vadd.f32 %v4968_v2, %v4812_v40 }
 0x4d2   : > { %7549 = vmatmul.msk.bf16.gmra.mxu1 %vm1859_vm1, %v4710_v48  ;;  %v5252_v56 = vadd.f32 %v5180_v9, %v4969_v43  ;;  %v4690_v9 = vld [vmem:[#allocation3 + $0xf1] sm:$0xff]  ;;  %v4691_v48 = vld [vmem:[#allocation3 + $0xf9] sm:$0xff]  ;;  %v5060_v43 = vld [vmem:[#allocation3 + $0x102] sm:$0xff] }
 0x4d3   : > { %v5182_v26 = vpop.f32.mrf.mxu3 }
 0x4d4   : > { %v4970_v1 = vpop.f32.mrf.mxu2 }
 0x4d5   : > { %v5428_v21 = vpop.f32.mrf.mxu0 }
 0x4d6   : > { %v10259_v35 = vadd.f32 %v5428_v21, %v5252_v56  ;;  %v5061_v56 = vld [vmem:[#allocation3 + $0x10a] sm:$0xff]  ;;  %v4711_v21 = vpack.c.bf16 %v4691_v48, %v4690_v9  ;;  %v7647_v9 = vld [vmem:[%s11114_s2 + $0xc] sm:$0x3] }
 0x4d7   : > { %v4814_v53 = vpop.f32.mrf.mxu1 }
 0x4d8   : > { %7587 = vmatmul.msk.bf16.gmra.mxu3 %vm1859_vm1, %v5079_v16  ;;  %7605 = vmatmul.msk.bf16.gmra.mxu0 %vm1859_vm1, %v5079_v16  ;;  %v4971_v15 = vadd.f32 %v4970_v1, %v4814_v53  ;;  %v4657_v53 = vpack.c.bf16 %v4638_v62, %v4637_v42 }
 0x4d9   : > { %7568 = vmatmul.msk.bf16.gmra.mxu2 %vm1859_vm1, %v4656_v49 }
 0x4da   : > { %v5253_v2 = vadd.f32 %v5182_v26, %v4971_v15  ;;  %v5080_v15 = vpack.c.bf16 %v5061_v56, %v5060_v43  ;;  %v7628_v26 = vld [vmem:[%s11114_s2 + $0xa] sm:$0x3] }
 0x4db   : > { %v5185_v36 = vpop.f32.mrf.mxu3 }
 0x4dc   : > { %v4973_v8 = vpop.f32.mrf.mxu2 }
 0x4dd   : > { %v5430_v13 = vpop.f32.mrf.mxu0 }
 0x4de   : > { %v10264_v40 = vadd.f32 %v5430_v13, %v5253_v2  ;;  %v5883_v2 = vsel %vm2067_vm0, %v7628_v26, 0  ;;  %v4640_v26 = vld [vmem:[#allocation3 + $0x118] sm:$0xff] }
 0x4df   : > { %v4817_v28 = vpop.f32.mrf.mxu1  ;;  %5892 = vmatpush.bf16.msra.mxu2 %v5883_v2  ;;  %v5063_v2 = vld [vmem:[#allocation3 + $0x11a] sm:$0xff] }
 0x4e0   : > { %v4974_v49 = vadd.f32 %v4973_v8, %v4817_v28  ;;  %v6131_v28 = vsel %vm2067_vm0, %v7647_v9, 0 }
 0x4e1   : > { %6140 = vmatpush.bf16.msra.mxu3 %v6131_v28 }
 0x4e2   : > { %7550 = vmatmul.msk.bf16.gmra.mxu1 %vm1859_vm1, %v4711_v21  ;;  %v5254_v16 = vadd.f32 %v5185_v36, %v4974_v49  ;;  %v4692_v21 = vld [vmem:[#allocation3 + $0x101] sm:$0xff]  ;;  %v4693_v49 = vld [vmem:[#allocation3 + $0x109] sm:$0xff] }
 0x4e3   : > { %v5187_v0 = vpop.f32.mrf.mxu3 }
 0x4e4   : > { %v4975_v31 = vpop.f32.mrf.mxu2 }
 0x4e5   : > { %v5433_v1 = vpop.f32.mrf.mxu0 }
 0x4e6   : > { %v10271_v13 = vadd.f32 %v5433_v1, %v5254_v16  ;;  %v4639_v16 = vld [vmem:[#allocation3 + $0x110] sm:$0xff] }
 0x4e7   : > { %v4819_v8 = vpop.f32.mrf.mxu1  ;;  %v5062_v1 = vld [vmem:[#allocation3 + $0x112] sm:$0xff] }
 0x4e8   : > { %7588 = vmatmul.msk.bf16.gmra.mxu3 %vm1859_vm1, %v5080_v15  ;;  %7606 = vmatmul.msk.bf16.gmra.mxu0 %vm1859_vm1, %v5080_v15  ;;  %v4976_v48 = vadd.f32 %v4975_v31, %v4819_v8  ;;  %v7666_v31 = vld [vmem:[%s11114_s2 + $0xe] sm:$0x3]  ;;  %v4712_v8 = vpack.c.bf16 %v4693_v49, %v4692_v21 }
 0x4e9   : > { %7569 = vmatmul.msk.bf16.gmra.mxu2 %vm1859_vm1, %v4657_v53 }
 0x4ea   : > { %v5255_v62 = vadd.f32 %v5187_v0, %v4976_v48  ;;  %v6379_v0 = vsel %vm2067_vm0, %v7666_v31, 0 }
 0x4eb   : > { %v5190_v42 = vpop.f32.mrf.mxu3  ;;  %6388 = vmatpush.bf16.msra.mxu0 %v6379_v0  ;;  %v6020_v0 = vld [vmem:[#allocation3 + $0x24] sm:$0xff] }
 0x4ec   : > { %v4978_v36 = vpop.f32.mrf.mxu2 }
 0x4ed   : > { %v5435_v43 = vpop.f32.mrf.mxu0 }
 0x4ee   : > { %v10280_v56 = vadd.f32 %v5435_v43, %v5255_v62  ;;  %v4658_v62 = vpack.c.bf16 %v4640_v26, %v4639_v16  ;;  %v5081_v43 = vpack.c.bf16 %v5063_v2, %v5062_v1  ;;  %v4695_v26 = vld [vmem:[#allocation3 + $0x119] sm:$0xff] }
 0x4ef   : > { %v4822_v53 = vpop.f32.mrf.mxu1 }
 0x4f0   : > { %v4979_v63 = vadd.f32 %v4978_v36, %v4822_v53  ;;  %v4694_v53 = vld [vmem:[#allocation3 + $0x111] sm:$0xff] }
 0x4f2   : > { %7551 = vmatmul.msk.bf16.gmra.mxu1 %vm1859_vm1, %v4712_v8  ;;  %v5256_v48 = vadd.f32 %v5190_v42, %v4979_v63  ;;  %v5773_v8 = vld [vmem:[#allocation3 + $0x1c] sm:$0xff] }
 0x4f3   : > { %v5192_v9 = vpop.f32.mrf.mxu3 }
 0x4f4   : > { %v4980_v15 = vpop.f32.mrf.mxu2 }
 0x4f5   : > { %v5438_v28 = vpop.f32.mrf.mxu0 }
 0x4f6   : > { %v10291_v55 = vadd.f32 %v5438_v28, %v5256_v48  ;;  %v6021_v48 = vld [vmem:[#allocation3 + $0x2c] sm:$0xff]  ;;  %v4713_v28 = vpack.c.bf16 %v4695_v26, %v4694_v53 }
 0x4f7   : > { %v4824_v36 = vpop.f32.mrf.mxu1 }
 0x4f8   : > { %7589 = vmatmul.msk.bf16.gmra.mxu3 %vm1859_vm1, %v5081_v43  ;;  %7607 = vmatmul.msk.bf16.gmra.mxu0 %vm1859_vm1, %v5081_v43  ;;  %v4981_v42 = vadd.f32 %v4980_v15, %v4824_v36  ;;  %v5808_v36 = vpack.c.bf16 %v5773_v8, %v5772_v29  ;;  %v5525_v29 = vld [vmem:[#allocation3 + $0x1b] sm:$0xff] }
 0x4f9   : > { %7570 = vmatmul.msk.bf16.gmra.mxu2 %vm1859_vm1, %v4658_v62 }
 0x4fa   : > { %v5257_v49 = vadd.f32 %v5192_v9, %v4981_v42  ;;  %v6056_v42 = vpack.c.bf16 %v6021_v48, %v6020_v0  ;;  %v6022_v0 = vld [vmem:[#allocation3 + $0x34] sm:$0xff]  ;;  %v6023_v48 = vld [vmem:[#allocation3 + $0x3c] sm:$0xff] }
 0x4fb   : > { %v5195_v21 = vpop.f32.mrf.mxu3 }
 0x4fc   : > { %v4983_v63 = vpop.f32.mrf.mxu2 }
 0x4fd   : > { %v5440_v16 = vpop.f32.mrf.mxu0 }
 0x4fe   : > { %v10296_v1 = vadd.f32 %v5440_v16, %v5257_v49  ;;  %v5329_v49 = vpack.c.bf16 %v5311_v34, %v5310_v19 }
 0x4ff   : > { %v4827_v2 = vpop.f32.mrf.mxu1 }
 0x500   : > { %v4984_v62 = vadd.f32 %v4983_v63, %v4827_v2 }
 0x502   : > { %7552 = vmatmul.msk.bf16.gmra.mxu1 %vm1859_vm1, %v4713_v28  ;;  %v5258_v15 = vadd.f32 %v5195_v21, %v4984_v62  ;;  %v5524_v21 = vld [vmem:[#allocation3 + $0x13] sm:$0xff] }
 0x503   : > { %v5197_v43 = vpop.f32.mrf.mxu3  ;;  %v5560_v62 = vpack.c.bf16 %v5525_v29, %v5524_v21 }
 0x504   : > { %v4985_v31 = vpop.f32.mrf.mxu2 }
 0x505   : > { %v5443_v9 = vpop.f32.mrf.mxu0 }
 0x506   : > { %v10299_v16 = vadd.f32 %v5443_v9, %v5258_v15  ;;  %v6268_v9 = vld [vmem:[#allocation3 + $0x25] sm:$0xff] }
 0x507   : > { %v4829_v53 = vpop.f32.mrf.mxu1 }
 0x508   : > { %7648 = vmatmul.msk.bf16.vlgmr.msra.gmra.mxu3 %vm1859_vm1, %v6056_v42  ;;  %7608 = vmatmul.msk.bf16.gmra.mxu0 %vm1859_vm1, %v5329_v49  ;;  %v4986_v26 = vadd.f32 %v4985_v31, %v4829_v53  ;;  %v6057_v53 = vpack.c.bf16 %v6023_v48, %v6022_v0 }
 0x509   : > { %7629 = vmatmul.msk.bf16.vlgmr.msra.gmra.mxu2 %vm1859_vm1, %v5808_v36  ;;  %v6269_v36 = vld [vmem:[#allocation3 + $0x2d] sm:$0xff] }
 0x50a   : > { %v5259_v4 = vadd.f32 %v5197_v43, %v4986_v26  ;;  %v6304_v43 = vpack.c.bf16 %v6269_v36, %v6268_v9  ;;  %v6025_v9 = vld [vmem:[#allocation3 + $0x4c] sm:$0xff] }
 0x50b   : > { %v5200_v2 = vpop.f32.mrf.mxu3 }
 0x50c   : > { %v4988_v63 = vpop.f32.mrf.mxu2 }
 0x50d   : > { %v5445_v60 = vpop.f32.mrf.mxu0 }
 0x50e   : > { %v10304_v28 = vadd.f32 %v5445_v60, %v5259_v4 }
 0x50f   : > { %v4832_v8 = vpop.f32.mrf.mxu1 }
 0x510   : > { %v4989_v19 = vadd.f32 %v4988_v63, %v4832_v8 }
 0x512   : > { %7610 = vmatmul.msk.bf16.vlgmr.msrb.gmra.mxu1 %vm1859_vm1, %v5560_v62  ;;  %v5260_v49 = vadd.f32 %v5200_v2, %v4989_v19  ;;  %v5526_v2 = vld [vmem:[#allocation3 + $0x23] sm:$0xff]  ;;  %v5527_v62 = vld [vmem:[#allocation3 + $0x2b] sm:$0xff] }
 0x513   : > { %v5202_v15 = vpop.f32.mrf.mxu3  ;;  %v6024_v19 = vld [vmem:[#allocation3 + $0x44] sm:$0xff]  ;;  %v5561_v36 = vpack.c.bf16 %v5527_v62, %v5526_v2 }
 0x514   : > { %v4990_v34 = vpop.f32.mrf.mxu2 }
 0x515   : > { %v5448_v31 = vpop.f32.mrf.mxu0 }
 0x516   : > { %v10307_v26 = vadd.f32 %v5448_v31, %v5260_v49  ;;  %v6270_v31 = vld [vmem:[#allocation3 + $0x35] sm:$0xff] }
 0x517   : > { %v4834_v60 = vpop.f32.mrf.mxu1 }
 0x518   : > { %7649 = vmatmul.msk.bf16.gmra.mxu3 %vm1859_vm1, %v6057_v53  ;;  %7667 = vmatmul.msk.bf16.vlgmr.msra.gmra.mxu0 %vm1859_vm1, %v6304_v43  ;;  %v4991_v63 = vadd.f32 %v4990_v34, %v4834_v60  ;;  %v6058_v60 = vpack.c.bf16 %v6025_v9, %v6024_v19  ;;  %v6026_v9 = vld [vmem:[#allocation3 + $0x54] sm:$0xff] }
 0x519   : > { %7630 = vmatmul.msk.bf16.gmra.mxu2 %vm1859_vm1, %v6056_v42 }
 0x51a   : > { %v5261_v29 = vadd.f32 %v5202_v15, %v4991_v63  ;;  %v6305_v15 = vpack.c.bf16 %v6271_v45, %v6270_v31 }
 0x51b   : > { %v5205_v21 = vpop.f32.mrf.mxu3 }
 0x51c   : > { %v4993_v4 = vpop.f32.mrf.mxu2 }
 0x51d   : > { %v5450_v8 = vpop.f32.mrf.mxu0 }
 0x51e   : > { %v10312_v50 = vadd.f32 %v5450_v8, %v5261_v29 }
 0x51f   : > { %v4837_v0 = vpop.f32.mrf.mxu1 }
 0x520   : > { %v4994_v42 = vadd.f32 %v4993_v4, %v4837_v0 }
 0x522   : > { %7611 = vmatmul.msk.bf16.gmra.mxu1 %vm1859_vm1, %v5561_v36  ;;  %v5262_v43 = vadd.f32 %v5205_v21, %v4994_v42  ;;  %v5528_v21 = vld [vmem:[#allocation3 + $0x33] sm:$0xff]  ;;  %v5529_v36 = vld [vmem:[#allocation3 + $0x3b] sm:$0xff] }
 0x523   : > { %v5207_v49 = vpop.f32.mrf.mxu3  ;;  %v6027_v42 = vld [vmem:[#allocation3 + $0x5c] sm:$0xff]  ;;  %v5562_v31 = vpack.c.bf16 %v5529_v36, %v5528_v21 }
 0x524   : > { %v4995_v48 = vpop.f32.mrf.mxu2 }
 0x525   : > { %v5453_v34 = vpop.f32.mrf.mxu0 }
 0x526   : > { %v10315_v63 = vadd.f32 %v5453_v34, %v5262_v43  ;;  %v6272_v34 = vld [vmem:[#allocation3 + $0x45] sm:$0xff] }
 0x527   : > { %v4839_v29 = vpop.f32.mrf.mxu1 }
 0x528   : > { %7650 = vmatmul.msk.bf16.gmra.mxu3 %vm1859_vm1, %v6058_v60  ;;  %7668 = vmatmul.msk.bf16.gmra.mxu0 %vm1859_vm1, %v6305_v15  ;;  %v4996_v4 = vadd.f32 %v4995_v48, %v4839_v29  ;;  %v6059_v29 = vpack.c.bf16 %v6027_v42, %v6026_v9  ;;  %v6028_v42 = vld [vmem:[#allocation3 + $0x64] sm:$0xff] }
 0x529   : > { %7631 = vmatmul.msk.bf16.gmra.mxu2 %vm1859_vm1, %v6057_v53 }
 0x52a   : > { %v5263_v62 = vadd.f32 %v5207_v49, %v4996_v4  ;;  %v6306_v49 = vpack.c.bf16 %v6273_v24, %v6272_v34 }
 0x52b   : > { %v5210_v2 = vpop.f32.mrf.mxu3 }
 0x52c   : > { %v4998_v8 = vpop.f32.mrf.mxu2 }
 0x52d   : > { %v5455_v0 = vpop.f32.mrf.mxu0 }
 0x52e   : > { %v10320_v47 = vadd.f32 %v5455_v0, %v5263_v62 }
 0x52f   : > { %v4842_v19 = vpop.f32.mrf.mxu1 }
 0x530   : > { %v4999_v53 = vadd.f32 %v4998_v8, %v4842_v19 }
 0x532   : > { %7612 = vmatmul.msk.bf16.gmra.mxu1 %vm1859_vm1, %v5562_v31  ;;  %v5264_v15 = vadd.f32 %v5210_v2, %v4999_v53  ;;  %v5530_v2 = vld [vmem:[#allocation3 + $0x43] sm:$0xff]  ;;  %v5531_v31 = vld [vmem:[#allocation3 + $0x4b] sm:$0xff] }
 0x533   : > { %v5212_v43 = vpop.f32.mrf.mxu3  ;;  %v6029_v53 = vld [vmem:[#allocation3 + $0x6c] sm:$0xff]  ;;  %v5563_v34 = vpack.c.bf16 %v5531_v31, %v5530_v2 }
 0x534   : > { %v5000_v45 = vpop.f32.mrf.mxu2 }
 0x535   : > { %v5458_v48 = vpop.f32.mrf.mxu0 }
 0x536   : > { %v10323_v4 = vadd.f32 %v5458_v48, %v5264_v15  ;;  %v6274_v48 = vld [vmem:[#allocation3 + $0x55] sm:$0xff] }
 0x537   : > { %v4844_v62 = vpop.f32.mrf.mxu1 }
 0x538   : > { %7651 = vmatmul.msk.bf16.gmra.mxu3 %vm1859_vm1, %v6059_v29  ;;  %7669 = vmatmul.msk.bf16.gmra.mxu0 %vm1859_vm1, %v6306_v49  ;;  %v5001_v8 = vadd.f32 %v5000_v45, %v4844_v62  ;;  %v6060_v62 = vpack.c.bf16 %v6029_v53, %v6028_v42  ;;  %v6030_v53 = vld [vmem:[#allocation3 + $0x74] sm:$0xff] }
 0x539   : > { %7632 = vmatmul.msk.bf16.gmra.mxu2 %vm1859_vm1, %v6058_v60 }
 0x53a   : > { %v5265_v36 = vadd.f32 %v5212_v43, %v5001_v8  ;;  %v6307_v43 = vpack.c.bf16 %v6275_v61, %v6274_v48 }
 0x53b   : > { %v5215_v21 = vpop.f32.mrf.mxu3 }
 0x53c   : > { %v5003_v0 = vpop.f32.mrf.mxu2 }
 0x53d   : > { %v5460_v19 = vpop.f32.mrf.mxu0 }
 0x53e   : > { %v10328_v39 = vadd.f32 %v5460_v19, %v5265_v36 }
 0x53f   : > { %v4847_v9 = vpop.f32.mrf.mxu1 }
 0x540   : > { %v5004_v60 = vadd.f32 %v5003_v0, %v4847_v9 }
 0x542   : > { %7613 = vmatmul.msk.bf16.gmra.mxu1 %vm1859_vm1, %v5563_v34  ;;  %v5266_v49 = vadd.f32 %v5215_v21, %v5004_v60  ;;  %v5532_v21 = vld [vmem:[#allocation3 + $0x53] sm:$0xff]  ;;  %v5533_v34 = vld [vmem:[#allocation3 + $0x5b] sm:$0xff] }
 0x543   : > { %v5217_v15 = vpop.f32.mrf.mxu3  ;;  %v6031_v60 = vld [vmem:[#allocation3 + $0x7c] sm:$0xff]  ;;  %v5564_v48 = vpack.c.bf16 %v5533_v34, %v5532_v21 }
 0x544   : > { %v5005_v24 = vpop.f32.mrf.mxu2 }
 0x545   : > { %v5463_v45 = vpop.f32.mrf.mxu0 }
 0x546   : > { %v10331_v8 = vadd.f32 %v5463_v45, %v5266_v49  ;;  %v6276_v45 = vld [vmem:[#allocation3 + $0x65] sm:$0xff] }
 0x547   : > { %v4849_v36 = vpop.f32.mrf.mxu1 }
 0x548   : > { %7652 = vmatmul.msk.bf16.gmra.mxu3 %vm1859_vm1, %v6060_v62  ;;  %7670 = vmatmul.msk.bf16.gmra.mxu0 %vm1859_vm1, %v6307_v43  ;;  %v5006_v0 = vadd.f32 %v5005_v24, %v4849_v36  ;;  %v6061_v36 = vpack.c.bf16 %v6031_v60, %v6030_v53  ;;  %v6032_v60 = vld [vmem:[#allocation3 + $0x84] sm:$0xff] }
 0x549   : > { %7633 = vmatmul.msk.bf16.gmra.mxu2 %vm1859_vm1, %v6059_v29 }
 0x54a   : > { %v5267_v31 = vadd.f32 %v5217_v15, %v5006_v0  ;;  %v6308_v15 = vpack.c.bf16 %v6277_v11, %v6276_v45 }
 0x54b   : > { %v5220_v2 = vpop.f32.mrf.mxu3 }
 0x54c   : > { %v5008_v19 = vpop.f32.mrf.mxu2 }
 0x54d   : > { %v5465_v9 = vpop.f32.mrf.mxu0 }
 0x54e   : > { %v10336_v41 = vadd.f32 %v5465_v9, %v5267_v31 }
 0x54f   : > { %v4852_v42 = vpop.f32.mrf.mxu1 }
 0x550   : > { %v5009_v29 = vadd.f32 %v5008_v19, %v4852_v42 }
 0x552   : > { %7614 = vmatmul.msk.bf16.gmra.mxu1 %vm1859_vm1, %v5564_v48  ;;  %v5268_v43 = vadd.f32 %v5220_v2, %v5009_v29  ;;  %v5534_v2 = vld [vmem:[#allocation3 + $0x63] sm:$0xff]  ;;  %v5535_v48 = vld [vmem:[#allocation3 + $0x6b] sm:$0xff] }
 0x553   : > { %v5222_v49 = vpop.f32.mrf.mxu3  ;;  %v6033_v29 = vld [vmem:[#allocation3 + $0x8c] sm:$0xff]  ;;  %v5565_v45 = vpack.c.bf16 %v5535_v48, %v5534_v2 }
 0x554   : > { %v5010_v61 = vpop.f32.mrf.mxu2 }
 0x555   : > { %v5468_v24 = vpop.f32.mrf.mxu0 }
 0x556   : > { %v10339_v0 = vadd.f32 %v5468_v24, %v5268_v43  ;;  %v6278_v24 = vld [vmem:[#allocation3 + $0x75] sm:$0xff] }
 0x557   : > { %v4854_v31 = vpop.f32.mrf.mxu1 }
 0x558   : > { %7653 = vmatmul.msk.bf16.gmra.mxu3 %vm1859_vm1, %v6061_v36  ;;  %7671 = vmatmul.msk.bf16.gmra.mxu0 %vm1859_vm1, %v6308_v15  ;;  %v5011_v19 = vadd.f32 %v5010_v61, %v4854_v31  ;;  %v6062_v31 = vpack.c.bf16 %v6033_v29, %v6032_v60  ;;  %v6034_v29 = vld [vmem:[#allocation3 + $0x94] sm:$0xff] }
 0x559   : > { %7634 = vmatmul.msk.bf16.gmra.mxu2 %vm1859_vm1, %v6060_v62 }
 0x55a   : > { %v5269_v34 = vadd.f32 %v5222_v49, %v5011_v19  ;;  %v6309_v49 = vpack.c.bf16 %v6279_v7, %v6278_v24 }
 0x55b   : > { %v5225_v21 = vpop.f32.mrf.mxu3 }
 0x55c   : > { %v5013_v9 = vpop.f32.mrf.mxu2 }
 0x55d   : > { %v5470_v42 = vpop.f32.mrf.mxu0 }
 0x55e   : > { %v10344_v59 = vadd.f32 %v5470_v42, %v5269_v34 }
 0x55f   : > { %v4857_v53 = vpop.f32.mrf.mxu1 }
 0x560   : > { %v5014_v62 = vadd.f32 %v5013_v9, %v4857_v53 }
 0x562   : > { %7615 = vmatmul.msk.bf16.gmra.mxu1 %vm1859_vm1, %v5565_v45  ;;  %v5270_v15 = vadd.f32 %v5225_v21, %v5014_v62  ;;  %v5536_v21 = vld [vmem:[#allocation3 + $0x73] sm:$0xff]  ;;  %v5537_v45 = vld [vmem:[#allocation3 + $0x7b] sm:$0xff] }
 0x563   : > { %v5227_v43 = vpop.f32.mrf.mxu3  ;;  %v6035_v62 = vld [vmem:[#allocation3 + $0x9c] sm:$0xff]  ;;  %v5566_v24 = vpack.c.bf16 %v5537_v45, %v5536_v21 }
 0x564   : > { %v5015_v11 = vpop.f32.mrf.mxu2 }
 0x565   : > { %v5473_v61 = vpop.f32.mrf.mxu0 }
 0x566   : > { %v10347_v19 = vadd.f32 %v5473_v61, %v5270_v15  ;;  %v6280_v61 = vld [vmem:[#allocation3 + $0x85] sm:$0xff] }
 0x567   : > { %v4859_v34 = vpop.f32.mrf.mxu1 }
 0x568   : > { %7654 = vmatmul.msk.bf16.gmra.mxu3 %vm1859_vm1, %v6062_v31  ;;  %7672 = vmatmul.msk.bf16.gmra.mxu0 %vm1859_vm1, %v6309_v49  ;;  %v5016_v9 = vadd.f32 %v5015_v11, %v4859_v34  ;;  %v6063_v34 = vpack.c.bf16 %v6035_v62, %v6034_v29  ;;  %v6036_v62 = vld [vmem:[#allocation3 + $0xa4] sm:$0xff] }
 0x569   : > { %7635 = vmatmul.msk.bf16.gmra.mxu2 %vm1859_vm1, %v6061_v36 }
 0x56a   : > { %v5271_v48 = vadd.f32 %v5227_v43, %v5016_v9  ;;  %v6310_v43 = vpack.c.bf16 %v6281_v57, %v6280_v61 }
 0x56b   : > { %v5230_v2 = vpop.f32.mrf.mxu3 }
 0x56c   : > { %v5018_v42 = vpop.f32.mrf.mxu2 }
 0x56d   : > { %v5475_v53 = vpop.f32.mrf.mxu0 }
 0x56e   : > { %v10352_v30 = vadd.f32 %v5475_v53, %v5271_v48 }
 0x56f   : > { %v4862_v60 = vpop.f32.mrf.mxu1 }
 0x570   : > { %v5019_v36 = vadd.f32 %v5018_v42, %v4862_v60 }
 0x572   : > { %7616 = vmatmul.msk.bf16.gmra.mxu1 %vm1859_vm1, %v5566_v24  ;;  %v5272_v49 = vadd.f32 %v5230_v2, %v5019_v36  ;;  %v5538_v2 = vld [vmem:[#allocation3 + $0x83] sm:$0xff]  ;;  %v5539_v24 = vld [vmem:[#allocation3 + $0x8b] sm:$0xff] }
 0x573   : > { %v5232_v15 = vpop.f32.mrf.mxu3  ;;  %v6037_v36 = vld [vmem:[#allocation3 + $0xac] sm:$0xff]  ;;  %v5567_v61 = vpack.c.bf16 %v5539_v24, %v5538_v2 }
 0x574   : > { %v5020_v7 = vpop.f32.mrf.mxu2 }
 0x575   : > { %v5478_v11 = vpop.f32.mrf.mxu0 }
 0x576   : > { %v10355_v9 = vadd.f32 %v5478_v11, %v5272_v49  ;;  %v6282_v11 = vld [vmem:[#allocation3 + $0x95] sm:$0xff] }
 0x577   : > { %v4864_v48 = vpop.f32.mrf.mxu1 }
 0x578   : > { %7655 = vmatmul.msk.bf16.gmra.mxu3 %vm1859_vm1, %v6063_v34  ;;  %7673 = vmatmul.msk.bf16.gmra.mxu0 %vm1859_vm1, %v6310_v43  ;;  %v5021_v42 = vadd.f32 %v5020_v7, %v4864_v48  ;;  %v6064_v48 = vpack.c.bf16 %v6037_v36, %v6036_v62  ;;  %v6038_v36 = vld [vmem:[#allocation3 + $0xb4] sm:$0xff] }
 0x579   : > { %7636 = vmatmul.msk.bf16.gmra.mxu2 %vm1859_vm1, %v6062_v31 }
 0x57a   : > { %v5273_v45 = vadd.f32 %v5232_v15, %v5021_v42  ;;  %v6311_v15 = vpack.c.bf16 %v6283_v17, %v6282_v11 }
 0x57b   : > { %v5235_v21 = vpop.f32.mrf.mxu3 }
 0x57c   : > { %v5023_v53 = vpop.f32.mrf.mxu2 }
 0x57d   : > { %v5480_v60 = vpop.f32.mrf.mxu0 }
 0x57e   : > { %v10360_v37 = vadd.f32 %v5480_v60, %v5273_v45 }
 0x57f   : > { %v4867_v29 = vpop.f32.mrf.mxu1 }
 0x580   : > { %v5024_v31 = vadd.f32 %v5023_v53, %v4867_v29 }
 0x582   : > { %7617 = vmatmul.msk.bf16.gmra.mxu1 %vm1859_vm1, %v5567_v61  ;;  %v5274_v43 = vadd.f32 %v5235_v21, %v5024_v31  ;;  %v5540_v21 = vld [vmem:[#allocation3 + $0x93] sm:$0xff]  ;;  %v5541_v61 = vld [vmem:[#allocation3 + $0x9b] sm:$0xff] }
 0x583   : > { %v5237_v49 = vpop.f32.mrf.mxu3  ;;  %v6039_v31 = vld [vmem:[#allocation3 + $0xbc] sm:$0xff]  ;;  %v5568_v11 = vpack.c.bf16 %v5541_v61, %v5540_v21 }
 0x584   : > { %v5025_v57 = vpop.f32.mrf.mxu2 }
 0x585   : > { %v5483_v7 = vpop.f32.mrf.mxu0 }
 0x586   : > { %v10363_v42 = vadd.f32 %v5483_v7, %v5274_v43  ;;  %v6284_v7 = vld [vmem:[#allocation3 + $0xa5] sm:$0xff] }
 0x587   : > { %v4869_v45 = vpop.f32.mrf.mxu1 }
 0x588   : > { %7656 = vmatmul.msk.bf16.gmra.mxu3 %vm1859_vm1, %v6064_v48  ;;  %7674 = vmatmul.msk.bf16.gmra.mxu0 %vm1859_vm1, %v6311_v15  ;;  %v5026_v53 = vadd.f32 %v5025_v57, %v4869_v45  ;;  %v6285_v15 = vld [vmem:[#allocation3 + $0xad] sm:$0xff] }
 0x589   : > { %7637 = vmatmul.msk.bf16.gmra.mxu2 %vm1859_vm1, %v6063_v34 }
 0x58a   : > { %v5275_v24 = vadd.f32 %v5237_v49, %v5026_v53  ;;  %v6065_v49 = vpack.c.bf16 %v6039_v31, %v6038_v36  ;;  %v6312_v53 = vpack.c.bf16 %v6285_v15, %v6284_v7  ;;  %v5543_v36 = vld [vmem:[#allocation3 + $0xab] sm:$0xff] }
 0x58b   : > { %v6142_v2 = vpop.f32.mrf.mxu3  ;;  %v6040_v7 = vld [vmem:[#allocation3 + $0xc4] sm:$0xff]  ;;  %v6041_v15 = vld [vmem:[#allocation3 + $0xcc] sm:$0xff] }
 0x58c   : > { %v5894_v60 = vpop.f32.mrf.mxu2 }
 0x58d   : > { %v5485_v29 = vpop.f32.mrf.mxu0 }
 0x58e   : > { %v10368_v46 = vadd.f32 %v5485_v29, %v5275_v24 }
 0x58f   : > { %v5646_v62 = vpop.f32.mrf.mxu1 }
 0x590   : > { %v5736_v34 = vadd.f32 %v5646_v62, %v10211_v25 }
 0x592   : > { %7618 = vmatmul.msk.bf16.gmra.mxu1 %vm1859_vm1, %v5568_v11  ;;  %v5984_v57 = vadd.f32 %v5894_v60, %v5736_v34  ;;  %v5542_v34 = vld [vmem:[#allocation3 + $0xa3] sm:$0xff] }
 0x593   : > { %v6144_v43 = vpop.f32.mrf.mxu3 }
 0x594   : > { %v5896_v17 = vpop.f32.mrf.mxu2  ;;  %v6232_v24 = vadd.f32 %v6142_v2, %v5984_v57 }
 0x595   : > { %v6390_v45 = vpop.f32.mrf.mxu0 }
 0x596   : > { %v10375_v29 = vadd.f32 %v6390_v45, %v6232_v24  ;;  %v5569_v45 = vpack.c.bf16 %v5543_v36, %v5542_v34  ;;  %v6286_v24 = vld [vmem:[#allocation3 + $0xb5] sm:$0xff] }
 0x597   : > { %v5648_v25 = vpop.f32.mrf.mxu1 }
 0x598   : > { %7657 = vmatmul.msk.bf16.gmra.mxu3 %vm1859_vm1, %v6065_v49  ;;  %7675 = vmatmul.msk.bf16.gmra.mxu0 %vm1859_vm1, %v6312_v53  ;;  %v5737_v61 = vadd.f32 %v5648_v25, %v10216_v14  ;;  %v6066_v25 = vpack.c.bf16 %v6041_v15, %v6040_v7  ;;  %v5545_v7 = vld [vmem:[#allocation3 + $0xbb] sm:$0xff] }
 0x599   : > { %7638 = vmatmul.msk.bf16.gmra.mxu2 %vm1859_vm1, %v6064_v48  ;;  %v6042_v15 = vld [vmem:[#allocation3 + $0xd4] sm:$0xff] }
 0x59a   : > { %v5985_v44 = vadd.f32 %v5896_v17, %v5737_v61 }
 0x59b   : > { %v6147_v62 = vpop.f32.mrf.mxu3 }
 0x59c   : > { %v5899_v21 = vpop.f32.mrf.mxu2  ;;  %v6233_v60 = vadd.f32 %v6144_v43, %v5985_v44  ;;  %v6313_v44 = vpack.c.bf16 %v6287_v23, %v6286_v24 }
 0x59d   : > { %v6392_v11 = vpop.f32.mrf.mxu0 }
 0x59e   : > { %v10378_v31 = vadd.f32 %v6392_v11, %v6233_v60 }
 0x59f   : > { %v5651_v2 = vpop.f32.mrf.mxu1 }
 0x5a0   : > { %v5738_v57 = vadd.f32 %v5651_v2, %v10219_v22 }
 0x5a2   : > { %7619 = vmatmul.msk.bf16.gmra.mxu1 %vm1859_vm1, %v5569_v45  ;;  %v5986_v14 = vadd.f32 %v5899_v21, %v5738_v57  ;;  %v5544_v57 = vld [vmem:[#allocation3 + $0xb3] sm:$0xff]  ;;  %v6043_v45 = vld [vmem:[#allocation3 + $0xdc] sm:$0xff] }
 0x5a3   : > { %v6149_v53 = vpop.f32.mrf.mxu3 }
 0x5a4   : > { %v5901_v48 = vpop.f32.mrf.mxu2  ;;  %v6234_v43 = vadd.f32 %v6147_v62, %v5986_v14  ;;  %v5570_v14 = vpack.c.bf16 %v5545_v7, %v5544_v57 }
 0x5a5   : > { %v6395_v17 = vpop.f32.mrf.mxu0 }
 0x5a6   : > { %v10385_v61 = vadd.f32 %v6395_v17, %v6234_v43  ;;  %v6289_v43 = vld [vmem:[#allocation3 + $0xcd] sm:$0xff] }
 0x5a7   : > { %v5653_v22 = vpop.f32.mrf.mxu1 }
 0x5a8   : > { %7658 = vmatmul.msk.bf16.gmra.mxu3 %vm1859_vm1, %v6066_v25  ;;  %7676 = vmatmul.msk.bf16.gmra.mxu0 %vm1859_vm1, %v6313_v44  ;;  %v5739_v60 = vadd.f32 %v5653_v22, %v10224_v58  ;;  %v6288_v44 = vld [vmem:[#allocation3 + $0xc5] sm:$0xff]  ;;  %v6067_v22 = vpack.c.bf16 %v6043_v45, %v6042_v15 }
 0x5a9   : > { %7639 = vmatmul.msk.bf16.gmra.mxu2 %vm1859_vm1, %v6065_v49  ;;  %v5547_v15 = vld [vmem:[#allocation3 + $0xcb] sm:$0xff] }
 0x5aa   : > { %v5987_v36 = vadd.f32 %v5901_v48, %v5739_v60 }
 0x5ab   : > { %v6152_v34 = vpop.f32.mrf.mxu3 }
 0x5ac   : > { %v5904_v11 = vpop.f32.mrf.mxu2  ;;  %v6235_v21 = vadd.f32 %v6149_v53, %v5987_v36  ;;  %v6314_v53 = vpack.c.bf16 %v6289_v43, %v6288_v44  ;;  %v6045_v44 = vld [vmem:[#allocation3 + $0xec] sm:$0xff] }
 0x5ad   : > { %v6397_v2 = vpop.f32.mrf.mxu0 }
 0x5ae   : > { %v10388_v23 = vadd.f32 %v6397_v2, %v6235_v21 }
 0x5af   : > { %v5656_v62 = vpop.f32.mrf.mxu1 }
 0x5b0   : > { %v5740_v24 = vadd.f32 %v5656_v62, %v10227_v51 }
 0x5b2   : > { %7620 = vmatmul.msk.bf16.gmra.mxu1 %vm1859_vm1, %v5570_v14  ;;  %v5988_v58 = vadd.f32 %v5904_v11, %v5740_v24  ;;  %v5546_v24 = vld [vmem:[#allocation3 + $0xc3] sm:$0xff] }
 0x5b3   : > { %v6154_v17 = vpop.f32.mrf.mxu3  ;;  %v6044_v14 = vld [vmem:[#allocation3 + $0xe4] sm:$0xff] }
 0x5b4   : > { %v5906_v49 = vpop.f32.mrf.mxu2  ;;  %v6236_v60 = vadd.f32 %v6152_v34, %v5988_v58  ;;  %v5571_v58 = vpack.c.bf16 %v5547_v15, %v5546_v24 }
 0x5b5   : > { %v6400_v48 = vpop.f32.mrf.mxu0 }
 0x5b6   : > { %v10395_v36 = vadd.f32 %v6400_v48, %v6236_v60  ;;  %v6291_v60 = vld [vmem:[#allocation3 + $0xdd] sm:$0xff] }
 0x5b7   : > { %v5658_v51 = vpop.f32.mrf.mxu1 }
 0x5b8   : > { %7659 = vmatmul.msk.bf16.gmra.mxu3 %vm1859_vm1, %v6067_v22  ;;  %7677 = vmatmul.msk.bf16.gmra.mxu0 %vm1859_vm1, %v6314_v53  ;;  %v5741_v21 = vadd.f32 %v5658_v51, %v10232_v5  ;;  %v6290_v53 = vld [vmem:[#allocation3 + $0xd5] sm:$0xff]  ;;  %v6068_v51 = vpack.c.bf16 %v6045_v44, %v6044_v14 }
 0x5b9   : > { %7640 = vmatmul.msk.bf16.gmra.mxu2 %vm1859_vm1, %v6066_v25  ;;  %v5549_v14 = vld [vmem:[#allocation3 + $0xdb] sm:$0xff] }
 0x5ba   : > { %v5989_v7 = vadd.f32 %v5906_v49, %v5741_v21 }
 0x5bb   : > { %v6157_v57 = vpop.f32.mrf.mxu3 }
 0x5bc   : > { %v5909_v2 = vpop.f32.mrf.mxu2  ;;  %v6237_v11 = vadd.f32 %v6154_v17, %v5989_v7  ;;  %v6315_v17 = vpack.c.bf16 %v6291_v60, %v6290_v53  ;;  %v6047_v53 = vld [vmem:[#allocation3 + $0xfc] sm:$0xff] }
 0x5bd   : > { %v6402_v62 = vpop.f32.mrf.mxu0 }
 0x5be   : > { %v10398_v45 = vadd.f32 %v6402_v62, %v6237_v11 }
 0x5bf   : > { %v5661_v34 = vpop.f32.mrf.mxu1 }
 0x5c0   : > { %v5742_v43 = vadd.f32 %v5661_v34, %v10235_v3 }
 0x5c2   : > { %7621 = vmatmul.msk.bf16.gmra.mxu1 %vm1859_vm1, %v5571_v58  ;;  %v5990_v5 = vadd.f32 %v5909_v2, %v5742_v43  ;;  %v5548_v43 = vld [vmem:[#allocation3 + $0xd3] sm:$0xff] }
 0x5c3   : > { %v6159_v48 = vpop.f32.mrf.mxu3  ;;  %v6046_v58 = vld [vmem:[#allocation3 + $0xf4] sm:$0xff] }
 0x5c4   : > { %v5911_v25 = vpop.f32.mrf.mxu2  ;;  %v6238_v21 = vadd.f32 %v6157_v57, %v5990_v5  ;;  %v5572_v5 = vpack.c.bf16 %v5549_v14, %v5548_v43 }
 0x5c5   : > { %v6405_v49 = vpop.f32.mrf.mxu0 }
 0x5c6   : > { %v10405_v7 = vadd.f32 %v6405_v49, %v6238_v21  ;;  %v6293_v21 = vld [vmem:[#allocation3 + $0xed] sm:$0xff] }
 0x5c7   : > { %v5663_v3 = vpop.f32.mrf.mxu1 }
 0x5c8   : > { %7660 = vmatmul.msk.bf16.gmra.mxu3 %vm1859_vm1, %v6068_v51  ;;  %7678 = vmatmul.msk.bf16.gmra.mxu0 %vm1859_vm1, %v6315_v17  ;;  %v5743_v11 = vadd.f32 %v5663_v3, %v10240_v33  ;;  %v6292_v17 = vld [vmem:[#allocation3 + $0xe5] sm:$0xff]  ;;  %v6069_v3 = vpack.c.bf16 %v6047_v53, %v6046_v58 }
 0x5c9   : > { %7641 = vmatmul.msk.bf16.gmra.mxu2 %vm1859_vm1, %v6067_v22  ;;  %v5551_v58 = vld [vmem:[#allocation3 + $0xeb] sm:$0xff] }
 0x5ca   : > { %v5991_v15 = vadd.f32 %v5911_v25, %v5743_v11 }
 0x5cb   : > { %v6162_v24 = vpop.f32.mrf.mxu3 }
 0x5cc   : > { %v5914_v62 = vpop.f32.mrf.mxu2  ;;  %v6239_v2 = vadd.f32 %v6159_v48, %v5991_v15  ;;  %v6316_v48 = vpack.c.bf16 %v6293_v21, %v6292_v17  ;;  %v6049_v17 = vld [vmem:[#allocation3 + $0x10c] sm:$0xff] }
 0x5cd   : > { %v6407_v34 = vpop.f32.mrf.mxu0 }
 0x5ce   : > { %v10408_v44 = vadd.f32 %v6407_v34, %v6239_v2 }
 0x5cf   : > { %v5666_v57 = vpop.f32.mrf.mxu1 }
 0x5d0   : > { %v5744_v60 = vadd.f32 %v5666_v57, %v10243_v10 }
 0x5d2   : > { %7622 = vmatmul.msk.bf16.gmra.mxu1 %vm1859_vm1, %v5572_v5  ;;  %v5992_v33 = vadd.f32 %v5914_v62, %v5744_v60  ;;  %v5550_v60 = vld [vmem:[#allocation3 + $0xe3] sm:$0xff] }
 0x5d3   : > { %v6164_v49 = vpop.f32.mrf.mxu3  ;;  %v6048_v5 = vld [vmem:[#allocation3 + $0x104] sm:$0xff] }
 0x5d4   : > { %v5916_v22 = vpop.f32.mrf.mxu2  ;;  %v6240_v11 = vadd.f32 %v6162_v24, %v5992_v33  ;;  %v5573_v33 = vpack.c.bf16 %v5551_v58, %v5550_v60 }
 0x5d5   : > { %v6410_v25 = vpop.f32.mrf.mxu0 }
 0x5d6   : > { %v10415_v15 = vadd.f32 %v6410_v25, %v6240_v11  ;;  %v6295_v11 = vld [vmem:[#allocation3 + $0xfd] sm:$0xff] }
 0x5d7   : > { %v5668_v10 = vpop.f32.mrf.mxu1 }
 0x5d8   : > { %7661 = vmatmul.msk.bf16.gmra.mxu3 %vm1859_vm1, %v6069_v3  ;;  %7679 = vmatmul.msk.bf16.gmra.mxu0 %vm1859_vm1, %v6316_v48  ;;  %v5745_v2 = vadd.f32 %v5668_v10, %v10248_v12  ;;  %v6294_v48 = vld [vmem:[#allocation3 + $0xf5] sm:$0xff]  ;;  %v6070_v10 = vpack.c.bf16 %v6049_v17, %v6048_v5 }
 0x5d9   : > { %7642 = vmatmul.msk.bf16.gmra.mxu2 %vm1859_vm1, %v6068_v51  ;;  %v5553_v5 = vld [vmem:[#allocation3 + $0xfb] sm:$0xff] }
 0x5da   : > { %v5993_v14 = vadd.f32 %v5916_v22, %v5745_v2 }
 0x5db   : > { %v6167_v43 = vpop.f32.mrf.mxu3 }
 0x5dc   : > { %v5919_v34 = vpop.f32.mrf.mxu2  ;;  %v6241_v62 = vadd.f32 %v6164_v49, %v5993_v14  ;;  %v6317_v49 = vpack.c.bf16 %v6295_v11, %v6294_v48  ;;  %v6051_v48 = vld [vmem:[#allocation3 + $0x11c] sm:$0xff] }
 0x5dd   : > { %v6412_v57 = vpop.f32.mrf.mxu0 }
 0x5de   : > { %v10418_v53 = vadd.f32 %v6412_v57, %v6241_v62 }
 0x5df   : > { %v5671_v24 = vpop.f32.mrf.mxu1 }
 0x5e0   : > { %v5746_v21 = vadd.f32 %v5671_v24, %v10251_v20 }
 0x5e2   : > { %7623 = vmatmul.msk.bf16.gmra.mxu1 %vm1859_vm1, %v5573_v33  ;;  %v5994_v12 = vadd.f32 %v5919_v34, %v5746_v21  ;;  %v5552_v21 = vld [vmem:[#allocation3 + $0xf3] sm:$0xff] }
 0x5e3   : > { %v6169_v25 = vpop.f32.mrf.mxu3  ;;  %v6050_v33 = vld [vmem:[#allocation3 + $0x114] sm:$0xff] }
 0x5e4   : > { %v5921_v51 = vpop.f32.mrf.mxu2  ;;  %v6242_v2 = vadd.f32 %v6167_v43, %v5994_v12  ;;  %v5574_v12 = vpack.c.bf16 %v5553_v5, %v5552_v21 }
 0x5e5   : > { %v6415_v22 = vpop.f32.mrf.mxu0 }
 0x5e6   : > { %v10425_v14 = vadd.f32 %v6415_v22, %v6242_v2  ;;  %v6297_v2 = vld [vmem:[#allocation3 + $0x10d] sm:$0xff] }
 0x5e7   : > { %v5673_v20 = vpop.f32.mrf.mxu1 }
 0x5e8   : > { %7662 = vmatmul.msk.bf16.gmra.mxu3 %vm1859_vm1, %v6070_v10  ;;  %7680 = vmatmul.msk.bf16.gmra.mxu0 %vm1859_vm1, %v6317_v49  ;;  %v5747_v62 = vadd.f32 %v5673_v20, %v10256_v54  ;;  %v6296_v49 = vld [vmem:[#allocation3 + $0x105] sm:$0xff]  ;;  %v6071_v20 = vpack.c.bf16 %v6051_v48, %v6050_v33 }
 0x5e9   : > { %7643 = vmatmul.msk.bf16.gmra.mxu2 %vm1859_vm1, %v6069_v3  ;;  %v5555_v33 = vld [vmem:[#allocation3 + $0x10b] sm:$0xff] }
 0x5ea   : > { %v5995_v58 = vadd.f32 %v5921_v51, %v5747_v62 }
 0x5eb   : > { %v6172_v60 = vpop.f32.mrf.mxu3 }
 0x5ec   : > { %v5924_v57 = vpop.f32.mrf.mxu2  ;;  %v6243_v34 = vadd.f32 %v6169_v25, %v5995_v58  ;;  %v6318_v25 = vpack.c.bf16 %v6297_v2, %v6296_v49  ;;  %v6053_v49 = vld [vmem:[#allocation3 + $0x12c] sm:$0xff] }
 0x5ed   : > { %v6417_v24 = vpop.f32.mrf.mxu0 }
 0x5ee   : > { %v10428_v17 = vadd.f32 %v6417_v24, %v6243_v34 }
 0x5ef   : > { %v5676_v43 = vpop.f32.mrf.mxu1 }
 0x5f0   : > { %v5748_v11 = vadd.f32 %v5676_v43, %v10259_v35 }
 0x5f2   : > { %7624 = vmatmul.msk.bf16.gmra.mxu1 %vm1859_vm1, %v5574_v12  ;;  %v5996_v54 = vadd.f32 %v5924_v57, %v5748_v11  ;;  %v5554_v11 = vld [vmem:[#allocation3 + $0x103] sm:$0xff] }
 0x5f3   : > { %v6174_v22 = vpop.f32.mrf.mxu3  ;;  %v6052_v12 = vld [vmem:[#allocation3 + $0x124] sm:$0xff] }
 0x5f4   : > { %v5926_v3 = vpop.f32.mrf.mxu2  ;;  %v6244_v62 = vadd.f32 %v6172_v60, %v5996_v54  ;;  %v5575_v54 = vpack.c.bf16 %v5555_v33, %v5554_v11 }
 0x5f5   : > { %v6420_v51 = vpop.f32.mrf.mxu0 }
 0x5f6   : > { %v10435_v58 = vadd.f32 %v6420_v51, %v6244_v62  ;;  %v6299_v62 = vld [vmem:[#allocation3 + $0x11d] sm:$0xff] }
 0x5f7   : > { %v5678_v35 = vpop.f32.mrf.mxu1 }
 0x5f8   : > { %7663 = vmatmul.msk.bf16.gmra.mxu3 %vm1859_vm1, %v6071_v20  ;;  %7681 = vmatmul.msk.bf16.gmra.mxu0 %vm1859_vm1, %v6318_v25  ;;  %v5749_v34 = vadd.f32 %v5678_v35, %v10264_v40  ;;  %v6298_v25 = vld [vmem:[#allocation3 + $0x115] sm:$0xff]  ;;  %v6072_v35 = vpack.c.bf16 %v6053_v49, %v6052_v12 }
 0x5f9   : > { %7644 = vmatmul.msk.bf16.gmra.mxu2 %vm1859_vm1, %v6070_v10  ;;  %v5557_v12 = vld [vmem:[#allocation3 + $0x11b] sm:$0xff] }
 0x5fa   : > { %v5997_v5 = vadd.f32 %v5926_v3, %v5749_v34  ;;  %v6054_v49 = vld [vmem:[#allocation3 + $0x134] sm:$0xff] }
 0x5fb   : > { %v6177_v21 = vpop.f32.mrf.mxu3 }
 0x5fc   : > { %v5929_v24 = vpop.f32.mrf.mxu2  ;;  %v6245_v57 = vadd.f32 %v6174_v22, %v5997_v5  ;;  %v6319_v22 = vpack.c.bf16 %v6299_v62, %v6298_v25 }
 0x5fd   : > { %v6422_v43 = vpop.f32.mrf.mxu0 }
 0x5fe   : > { %v10438_v48 = vadd.f32 %v6422_v43, %v6245_v57 }
 0x5ff   : > { %v5681_v60 = vpop.f32.mrf.mxu1 }
 0x600   : > { %v5750_v2 = vadd.f32 %v5681_v60, %v10271_v13 }
 0x602   : > { %7625 = vmatmul.msk.bf16.gmra.mxu1 %vm1859_vm1, %v5575_v54  ;;  %v5998_v40 = vadd.f32 %v5929_v24, %v5750_v2  ;;  %v5556_v2 = vld [vmem:[#allocation3 + $0x113] sm:$0xff] }
 0x603   : > { %v6179_v51 = vpop.f32.mrf.mxu3 }
 0x604   : > { %v5931_v10 = vpop.f32.mrf.mxu2  ;;  %v6246_v34 = vadd.f32 %v6177_v21, %v5998_v40  ;;  %v6055_v21 = vld [vmem:[#allocation3 + $0x13c] sm:$0xff]  ;;  %v5576_v40 = vpack.c.bf16 %v5557_v12, %v5556_v2 }
 0x605   : > { %v6425_v3 = vpop.f32.mrf.mxu0  ;;  %v6073_v32 = vpack.c.bf16 %v6055_v21, %v6054_v49  ;;  %v5559_v21 = vld [vmem:[#allocation3 + $0x12b] sm:$0xff] }
 0x606   : > { %v10445_v5 = vadd.f32 %v6425_v3, %v6246_v34  ;;  %v6301_v34 = vld [vmem:[#allocation3 + $0x12d] sm:$0xff] }
 0x607   : > { %v5683_v13 = vpop.f32.mrf.mxu1 }
 0x608   : > { %7664 = vmatmul.msk.bf16.gmra.mxu3 %vm1859_vm1, %v6072_v35  ;;  %7682 = vmatmul.msk.bf16.gmra.mxu0 %vm1859_vm1, %v6319_v22  ;;  %v5751_v57 = vadd.f32 %v5683_v13, %v10280_v56  ;;  %v6300_v22 = vld [vmem:[#allocation3 + $0x125] sm:$0xff] }
 0x609   : > { %7645 = vmatmul.msk.bf16.gmra.mxu2 %vm1859_vm1, %v6071_v20 }
 0x60a   : > { %v5999_v33 = vadd.f32 %v5931_v10, %v5751_v57 }
 0x60b   : > { %v6182_v11 = vpop.f32.mrf.mxu3 }
 0x60c   : > { %v5934_v43 = vpop.f32.mrf.mxu2  ;;  %v6247_v24 = vadd.f32 %v6179_v51, %v5999_v33  ;;  %v6320_v51 = vpack.c.bf16 %v6301_v34, %v6300_v22 }
 0x60d   : > { %v6427_v60 = vpop.f32.mrf.mxu0 }
 0x60e   : > { %v10448_v54 = vadd.f32 %v6427_v60, %v6247_v24 }
 0x60f   : > { %v5686_v20 = vpop.f32.mrf.mxu1 }
 0x610   : > { %v5752_v62 = vadd.f32 %v5686_v20, %v10291_v55 }
 0x612   : > { %7626 = vmatmul.msk.bf16.gmra.mxu1 %vm1859_vm1, %v5576_v40  ;;  %v6000_v56 = vadd.f32 %v5934_v43, %v5752_v62  ;;  %v5558_v43 = vld [vmem:[#allocation3 + $0x123] sm:$0xff] }
 0x613   : > { %v6184_v3 = vpop.f32.mrf.mxu3  ;;  %v5577_v22 = vpack.c.bf16 %v5559_v21, %v5558_v43  ;;  %v6517_v43 = vld [vmem:[#allocation3 + $0x2e] sm:$0xff] }
 0x614   : > { %v5936_v25 = vpop.f32.mrf.mxu2  ;;  %v6248_v13 = vadd.f32 %v6182_v11, %v6000_v56  ;;  %v6302_v11 = vld [vmem:[#allocation3 + $0x135] sm:$0xff] }
 0x615   : > { %v6430_v10 = vpop.f32.mrf.mxu0 }
 0x616   : > { %v10455_v57 = vadd.f32 %v6430_v10, %v6248_v13 }
 0x617   : > { %v5688_v55 = vpop.f32.mrf.mxu1 }
 0x618   : > { %7665 = vmatmul.msk.bf16.gmra.mxu3 %vm1859_vm1, %v6073_v32  ;;  %7683 = vmatmul.msk.bf16.gmra.mxu0 %vm1859_vm1, %v6320_v51  ;;  %v5753_v60 = vadd.f32 %v5688_v55, %v10296_v1 }
 0x619   : > { %7646 = vmatmul.msk.bf16.gmra.mxu2 %vm1859_vm1, %v6072_v35  ;;  %v6303_v35 = vld [vmem:[#allocation3 + $0x13d] sm:$0xff] }
 0x61a   : > { %v6001_v2 = vadd.f32 %v5936_v25, %v5753_v60  ;;  %v6321_v56 = vpack.c.bf16 %v6303_v35, %v6302_v11 }
 0x61b   : > { %v6187_v24 = vpop.f32.mrf.mxu3 }
 0x61c   : > { %v5939_v33 = vpop.f32.mrf.mxu2  ;;  %v6249_v49 = vadd.f32 %v6184_v3, %v6001_v2 }
 0x61d   : > { %v6432_v12 = vpop.f32.mrf.mxu0 }
 0x61e   : > { %v10458_v20 = vadd.f32 %v6432_v12, %v6249_v49  ;;  %v6516_v49 = vld [vmem:[#allocation3 + $0x26] sm:$0xff] }
 0x61f   : > { %v5691_v62 = vpop.f32.mrf.mxu1 }
 0x620   : > { %v5754_v40 = vadd.f32 %v5691_v62, %v10299_v16 }
 0x622   : > { %7627 = vmatmul.msk.bf16.gmra.mxu1 %vm1859_vm1, %v5577_v22  ;;  %v6002_v1 = vadd.f32 %v5939_v33, %v5754_v40 }
 0x623   : > { %v6189_v34 = vpop.f32.mrf.mxu3 }
 0x624   : > { %v5941_v32 = vpop.f32.mrf.mxu2  ;;  %v6250_v25 = vadd.f32 %v6187_v24, %v6002_v1  ;;  %v6552_v24 = vpack.c.bf16 %v6517_v43, %v6516_v49 }
 0x625   : > { %v6435_v10 = vpop.f32.mrf.mxu0 }
 0x626   : > { %v10463_v3 = vadd.f32 %v6435_v10, %v6250_v25 }
 0x627   : > { %v5693_v51 = vpop.f32.mrf.mxu1 }
 0x628   : > { %7684 = vmatmul.msk.bf16.gmra.mxu0 %vm1859_vm1, %v6321_v56  ;;  %v5755_v55 = vadd.f32 %v5693_v51, %v10304_v28 }
 0x62a   : > { %v6003_v60 = vadd.f32 %v5941_v32, %v5755_v55  ;;  %v6518_v55 = vld [vmem:[#allocation3 + $0x36] sm:$0xff] }
 0x62b   : > { %v6192_v12 = vpop.f32.mrf.mxu3 }
 0x62c   : > { %v5944_v13 = vpop.f32.mrf.mxu2  ;;  %v6251_v16 = vadd.f32 %v6189_v34, %v6003_v60  ;;  %v6519_v60 = vld [vmem:[#allocation3 + $0x3e] sm:$0xff] }
 0x62d   : > { %v6437_v2 = vpop.f32.mrf.mxu0  ;;  %v6553_v49 = vpack.c.bf16 %v6519_v60, %v6518_v55 }
 0x62e   : > { %v10466_v21 = vadd.f32 %v6437_v2, %v6251_v16 }
 0x62f   : > { %v5696_v11 = vpop.f32.mrf.mxu1 }
 0x630   : > { %v5756_v33 = vadd.f32 %v5696_v11, %v10307_v26 }
 0x632   : > { %7686 = vmatmul.msk.bf16.vlgmr.msra.gmra.mxu1 %vm1859_vm1, %v6552_v24  ;;  %v6004_v62 = vadd.f32 %v5944_v13, %v5756_v33 }
 0x633   : > { %v6194_v56 = vpop.f32.mrf.mxu3 }
 0x634   : > { %v5946_v35 = vpop.f32.mrf.mxu2  ;;  %v6252_v22 = vadd.f32 %v6192_v12, %v6004_v62 }
 0x635   : > { %v6440_v40 = vpop.f32.mrf.mxu0 }
 0x636   : > { %v10470_v28 = vadd.f32 %v6440_v40, %v6252_v22 }
 0x637   : > { %v5698_v32 = vpop.f32.mrf.mxu1 }
 0x638   : > { %v5757_v34 = vadd.f32 %v5698_v32, %v10312_v50  ;;  %v6520_v32 = vld [vmem:[#allocation3 + $0x46] sm:$0xff] }
 0x63a   : > { %v6005_v1 = vadd.f32 %v5946_v35, %v5757_v34  ;;  %v6521_v34 = vld [vmem:[#allocation3 + $0x4e] sm:$0xff] }
 0x63b   : > { %v6197_v16 = vpop.f32.mrf.mxu3 }
 0x63c   : > { %v5949_v25 = vpop.f32.mrf.mxu2  ;;  %v6253_v51 = vadd.f32 %v6194_v56, %v6005_v1 }
 0x63d   : > { %v6442_v10 = vpop.f32.mrf.mxu0 }
 0x63e   : > { %v10473_v26 = vadd.f32 %v6442_v10, %v6253_v51  ;;  %v6554_v51 = vpack.c.bf16 %v6521_v34, %v6520_v32  ;;  %v6526_v34 = vld [vmem:[#allocation3 + $0x76] sm:$0xff] }
 0x63f   : > { %v5701_v2 = vpop.f32.mrf.mxu1 }
 0x640   : > { %v5758_v13 = vadd.f32 %v5701_v2, %v10315_v63 }
 0x642   : > { %7687 = vmatmul.msk.bf16.gmra.mxu1 %vm1859_vm1, %v6553_v49  ;;  %v6006_v12 = vadd.f32 %v5949_v25, %v5758_v13 }
 0x643   : > { %v6199_v62 = vpop.f32.mrf.mxu3 }
 0x644   : > { %v6254_v11 = vadd.f32 %v6197_v16, %v6006_v12  ;;  %v5951_v33 = vpop.f32.mrf.mxu2  ;;  %v6522_v12 = vld [vmem:[#allocation3 + $0x56] sm:$0xff] }
 0x645   : > { %v6445_v43 = vpop.f32.mrf.mxu0 }
 0x646   : > { %v10477_v50 = vadd.f32 %v6445_v43, %v6254_v11  ;;  %v6523_v43 = vld [vmem:[#allocation3 + $0x5e] sm:$0xff] }
 0x647   : > { %v5703_v24 = vpop.f32.mrf.mxu1 }
 0x648   : > { %v5759_v35 = vadd.f32 %v5703_v24, %v10320_v47 }
 0x64a   : > { %v6007_v40 = vadd.f32 %v5951_v33, %v5759_v35 }
 0x64b   : > { %v6202_v60 = vpop.f32.mrf.mxu3 }
 0x64c   : > { %v6255_v56 = vadd.f32 %v6199_v62, %v6007_v40  ;;  %v5954_v10 = vpop.f32.mrf.mxu2  ;;  %v6524_v62 = vld [vmem:[#allocation3 + $0x66] sm:$0xff]  ;;  %v6525_v40 = vld [vmem:[#allocation3 + $0x6e] sm:$0xff] }
 0x64d   : > { %v6447_v22 = vpop.f32.mrf.mxu0 }
 0x64e   : > { %v10480_v1 = vadd.f32 %v6447_v22, %v6255_v56 }
 0x64f   : > { %v5706_v63 = vpop.f32.mrf.mxu1 }
 0x650   : > { %v5760_v25 = vadd.f32 %v5706_v63, %v10323_v4  ;;  %v6555_v4 = vpack.c.bf16 %v6523_v43, %v6522_v12  ;;  %v6527_v63 = vld [vmem:[#allocation3 + $0x7e] sm:$0xff]  ;;  %v6530_v12 = vld [vmem:[#allocation3 + $0x96] sm:$0xff] }
 0x651   : > { %v6531_v43 = vld [vmem:[#allocation3 + $0x9e] sm:$0xff] }
 0x652   : > { %7688 = vmatmul.msk.bf16.gmra.mxu1 %vm1859_vm1, %v6554_v51  ;;  %v6008_v55 = vadd.f32 %v5954_v10, %v5760_v25 }
 0x654   : > { %v6256_v16 = vadd.f32 %v6202_v60, %v6008_v55  ;;  %v6528_v55 = vld [vmem:[#allocation3 + $0x86] sm:$0xff]  ;;  %v6529_v60 = vld [vmem:[#allocation3 + $0x8e] sm:$0xff] }
 0x655   : > { %v6450_v2 = vpop.f32.mrf.mxu0 }
 0x656   : > { %v10484_v47 = vadd.f32 %v6450_v2, %v6256_v16 }
 0x657   : > { %v5708_v13 = vpop.f32.mrf.mxu1 }
 0x658   : > { %v10487_v49 = vadd.f32 %v5708_v13, %v10328_v39  ;;  %v6556_v39 = vpack.c.bf16 %v6525_v40, %v6524_v62  ;;  %v6532_v62 = vld [vmem:[#allocation3 + $0xa6] sm:$0xff]  ;;  %v6533_v40 = vld [vmem:[#allocation3 + $0xae] sm:$0xff] }
 0x65f   : > { %v5711_v11 = vpop.f32.mrf.mxu1 }
 0x660   : > { %v10490_v33 = vadd.f32 %v5711_v11, %v10331_v8 }
 0x662   : > { %7689 = vmatmul.msk.bf16.gmra.mxu1 %vm1859_vm1, %v6555_v4 }
 0x667   : > { %v5713_v24 = vpop.f32.mrf.mxu1 }
 0x668   : > { %v10494_v35 = vadd.f32 %v5713_v24, %v10336_v41  ;;  %v6557_v41 = vpack.c.bf16 %v6527_v63, %v6526_v34  ;;  %v6534_v34 = vld [vmem:[#allocation3 + $0xb6] sm:$0xff]  ;;  %v6535_v63 = vld [vmem:[#allocation3 + $0xbe] sm:$0xff] }
 0x66f   : > { %v5716_v22 = vpop.f32.mrf.mxu1 }
 0x670   : > { %v10497_v56 = vadd.f32 %v5716_v22, %v10339_v0 }
 0x672   : > { %7690 = vmatmul.msk.bf16.gmra.mxu1 %vm1859_vm1, %v6556_v39 }
 0x677   : > { %v5718_v32 = vpop.f32.mrf.mxu1 }
 0x678   : > { %v10501_v8 = vadd.f32 %v5718_v32, %v10344_v59  ;;  %v6558_v59 = vpack.c.bf16 %v6529_v60, %v6528_v55  ;;  %v6536_v55 = vld [vmem:[#allocation3 + $0xc6] sm:$0xff]  ;;  %v6537_v60 = vld [vmem:[#allocation3 + $0xce] sm:$0xff] }
 0x67f   : > { %v5721_v10 = vpop.f32.mrf.mxu1 }
 0x680   : > { %v10504_v25 = vadd.f32 %v5721_v10, %v10347_v19 }
 0x682   : > { %7691 = vmatmul.msk.bf16.gmra.mxu1 %vm1859_vm1, %v6557_v41 }
 0x687   : > { %v5723_v51 = vpop.f32.mrf.mxu1 }
 0x688   : > { %v10508_v0 = vadd.f32 %v5723_v51, %v10352_v30  ;;  %v6559_v30 = vpack.c.bf16 %v6531_v43, %v6530_v12  ;;  %v6538_v12 = vld [vmem:[#allocation3 + $0xd6] sm:$0xff]  ;;  %v6539_v43 = vld [vmem:[#allocation3 + $0xde] sm:$0xff] }
 0x68f   : > { %v5726_v2 = vpop.f32.mrf.mxu1 }
 0x690   : > { %v10511_v16 = vadd.f32 %v5726_v2, %v10355_v9 }
 0x692   : > { %7692 = vmatmul.msk.bf16.gmra.mxu1 %vm1859_vm1, %v6558_v59 }
 0x697   : > { %v5728_v13 = vpop.f32.mrf.mxu1 }
 0x698   : > { %v10515_v19 = vadd.f32 %v5728_v13, %v10360_v37  ;;  %v6560_v37 = vpack.c.bf16 %v6533_v40, %v6532_v62  ;;  %v6540_v62 = vld [vmem:[#allocation3 + $0xe6] sm:$0xff]  ;;  %v6541_v40 = vld [vmem:[#allocation3 + $0xee] sm:$0xff] }
 0x69f   : > { %v5731_v11 = vpop.f32.mrf.mxu1 }
 0x6a0   : > { %v10518_v4 = vadd.f32 %v5731_v11, %v10363_v42 }
 0x6a2   : > { %11405 = vst [vmem:[#allocation22_spill] sm:$0xff] %v10518_v4  ;;  %7693 = vmatmul.msk.bf16.gmra.mxu1 %vm1859_vm1, %v6559_v30 }
 0x6a7   : > { %v5733_v24 = vpop.f32.mrf.mxu1 }
 0x6a8   : > { %v10522_v9 = vadd.f32 %v5733_v24, %v10368_v46  ;;  %v6561_v46 = vpack.c.bf16 %v6535_v63, %v6534_v34  ;;  %v6542_v34 = vld [vmem:[#allocation3 + $0xf6] sm:$0xff]  ;;  %v6543_v63 = vld [vmem:[#allocation3 + $0xfe] sm:$0xff] }
 0x6aa   : > { %11406 = vst [vmem:[#allocation24_spill] sm:$0xff] %v10522_v9 }
 0x6af   : > { %v6638_v22 = vpop.f32.mrf.mxu1 }
 0x6b0   : > { %v10525_v39 = vadd.f32 %v6638_v22, %v10375_v29 }
 0x6b2   : > { %11407 = vst [vmem:[#allocation36_spill] sm:$0xff] %v10525_v39  ;;  %7694 = vmatmul.msk.bf16.gmra.mxu1 %vm1859_vm1, %v6560_v37 }
 0x6b7   : > { %v6640_v32 = vpop.f32.mrf.mxu1 }
 0x6b8   : > { %v10529_v42 = vadd.f32 %v6640_v32, %v10378_v31  ;;  %v6562_v31 = vpack.c.bf16 %v6537_v60, %v6536_v55  ;;  %v6544_v55 = vld [vmem:[#allocation3 + $0x106] sm:$0xff]  ;;  %v6545_v60 = vld [vmem:[#allocation3 + $0x10e] sm:$0xff] }
 0x6ba   : > { %11408 = vst [vmem:[#allocation35_spill] sm:$0xff] %v10529_v42 }
 0x6bf   : > { %v6643_v10 = vpop.f32.mrf.mxu1 }
 0x6c0   : > { %v10532_v41 = vadd.f32 %v6643_v10, %v10385_v61 }
 0x6c2   : > { %11409 = vst [vmem:[#allocation38_spill] sm:$0xff] %v10532_v41  ;;  %7695 = vmatmul.msk.bf16.gmra.mxu1 %vm1859_vm1, %v6561_v46 }
 0x6c7   : > { %v6645_v51 = vpop.f32.mrf.mxu1 }
 0x6c8   : > { %v10536_v29 = vadd.f32 %v6645_v51, %v10388_v23  ;;  %v6563_v23 = vpack.c.bf16 %v6539_v43, %v6538_v12  ;;  %v6546_v12 = vld [vmem:[#allocation3 + $0x116] sm:$0xff]  ;;  %v6547_v43 = vld [vmem:[#allocation3 + $0x11e] sm:$0xff] }
 0x6ca   : > { %11410 = vst [vmem:[#allocation12_spill] sm:$0xff] %v10536_v29 }
 0x6cf   : > { %v6648_v2 = vpop.f32.mrf.mxu1 }
 0x6d0   : > { %v10539_v59 = vadd.f32 %v6648_v2, %v10395_v36 }
 0x6d2   : > { %11411 = vst [vmem:[#allocation14_spill] sm:$0xff] %v10539_v59  ;;  %7696 = vmatmul.msk.bf16.gmra.mxu1 %vm1859_vm1, %v6562_v31 }
 0x6d7   : > { %v6650_v13 = vpop.f32.mrf.mxu1 }
 0x6d8   : > { %v10543_v61 = vadd.f32 %v6650_v13, %v10398_v45  ;;  %v6564_v45 = vpack.c.bf16 %v6541_v40, %v6540_v62  ;;  %v6548_v62 = vld [vmem:[#allocation3 + $0x126] sm:$0xff]  ;;  %v6549_v40 = vld [vmem:[#allocation3 + $0x12e] sm:$0xff] }
 0x6df   : > { %v6653_v11 = vpop.f32.mrf.mxu1 }
 0x6e0   : > { %v10546_v30 = vadd.f32 %v6653_v11, %v10405_v7 }
 0x6e2   : > { %11412 = vst [vmem:[#allocation39_spill] sm:$0xff] %v10546_v30  ;;  %7697 = vmatmul.msk.bf16.gmra.mxu1 %vm1859_vm1, %v6563_v23 }
 0x6e7   : > { %v6655_v24 = vpop.f32.mrf.mxu1 }
 0x6e8   : > { %v10550_v36 = vadd.f32 %v6655_v24, %v10408_v44  ;;  %v6565_v44 = vpack.c.bf16 %v6543_v63, %v6542_v34  ;;  %v6550_v34 = vld [vmem:[#allocation3 + $0x136] sm:$0xff]  ;;  %v6551_v63 = vld [vmem:[#allocation3 + $0x13e] sm:$0xff] }
 0x6ea   : > { %11413 = vst [vmem:[#allocation4_spill] sm:$0xff] %v10550_v36 }
 0x6ef   : > { %v6658_v22 = vpop.f32.mrf.mxu1 }
 0x6f0   : > { %v10553_v37 = vadd.f32 %v6658_v22, %v10415_v15 }
 0x6f2   : > { %11414 = vst [vmem:[#allocation6_spill] sm:$0xff] %v10553_v37  ;;  %7698 = vmatmul.msk.bf16.gmra.mxu1 %vm1859_vm1, %v6564_v45 }
 0x6f7   : > { %v6660_v32 = vpop.f32.mrf.mxu1 }
 0x6f8   : > { %v10557_v7 = vadd.f32 %v6660_v32, %v10418_v53  ;;  %v6566_v53 = vpack.c.bf16 %v6545_v60, %v6544_v55 }
 0x6fa   : > { %11415 = vst [vmem:[#allocation42_spill] sm:$0xff] %v10557_v7 }
 0x6ff   : > { %v6663_v10 = vpop.f32.mrf.mxu1 }
 0x700   : > { %v10560_v46 = vadd.f32 %v6663_v10, %v10425_v14  ;;  %v6569_v10 = vpack.c.bf16 %v6551_v63, %v6550_v34  ;;  %v6767_v34 = vmul.f32 %v11377_v27, %v10536_v29  ;;  %v11418_v27 = vld [vmem:[#allocation27_spill] sm:$0xff] }
 0x702   : > { %7699 = vmatmul.msk.bf16.gmra.mxu1 %vm1859_vm1, %v6565_v44 }
 0x707   : > { %v6665_v51 = vpop.f32.mrf.mxu1 }
 0x708   : > { %v10564_v15 = vadd.f32 %v6665_v51, %v10428_v17  ;;  %v6567_v17 = vpack.c.bf16 %v6547_v43, %v6546_v12 }
 0x70a   : > { %11416 = vst [vmem:[#allocation21_spill] sm:$0xff] %v10564_v15 }
 0x70f   : > { %v6668_v2 = vpop.f32.mrf.mxu1 }
 0x710   : > { %v10567_v31 = vadd.f32 %v6668_v2, %v10435_v58 }
 0x712   : > { %11417 = vst [vmem:[#allocation23_spill] sm:$0xff] %v10567_v31  ;;  %7700 = vmatmul.msk.bf16.gmra.mxu1 %vm1859_vm1, %v6566_v53  ;;  %v10600_v53 = vpop.f32.mrf.mxu2 }
 0x717   : > { %v6670_v13 = vpop.f32.mrf.mxu1 }
 0x718   : > { %v10571_v14 = vadd.f32 %v6670_v13, %v10438_v48  ;;  %v6568_v48 = vpack.c.bf16 %v6549_v40, %v6548_v62  ;;  %v10602_v13 = vpop.f32.mrf.mxu3  ;;  %v6765_v62 = vmul.f32 %v11375_v38, %v10529_v42  ;;  %v6764_v40 = vmul.f32 %v11374_v52, %v10525_v39 }
 0x71a   : > { %v6877_v38 = vmul.f32 %v6764_v40, %v10525_v39  ;;  %v6801_v52 = vsel %vm1859_vm1, %v6765_v62, 0.0 }
 0x71f   : > { %v6673_v11 = vpop.f32.mrf.mxu1 }
 0x720   : > { %v10574_v23 = vadd.f32 %v6673_v11, %v10445_v5 }
 0x722   : > { %7701 = vmatmul.msk.bf16.gmra.mxu1 %vm1859_vm1, %v6567_v17  ;;  %v10611_v17 = vpop.f32.mrf.mxu3 }
 0x727   : > { %v6675_v24 = vpop.f32.mrf.mxu1 }
 0x728   : > { %v10578_v58 = vadd.f32 %v6675_v24, %v10448_v54 }
 0x72f   : > { %v6678_v22 = vpop.f32.mrf.mxu1 }
 0x730   : > { %v10581_v45 = vadd.f32 %v6678_v22, %v10455_v57  ;;  %v6766_v22 = vmul.f32 %v11376_v6, %v10532_v41  ;;  %v6768_v6 = vmul.f32 %v11378_v18, %v10539_v59 }
 0x732   : > { %7702 = vmatmul.msk.bf16.gmra.mxu1 %vm1859_vm1, %v6568_v48  ;;  %v6807_v39 = vsel %vm1859_vm1, %v6768_v6, 0.0 }
 0x737   : > { %v6680_v32 = vpop.f32.mrf.mxu1 }
 0x738   : > { %v10585_v5 = vadd.f32 %v6680_v32, %v10458_v20  ;;  %v10629_v32 = vpop.f32.mrf.mxu3 }
 0x73f   : > { %v6683_v44 = vpop.f32.mrf.mxu1 }
 0x740   : > { %v10588_v54 = vadd.f32 %v6683_v44, %v10463_v3  ;;  %v10604_v3 = vpop.f32.mrf.mxu0  ;;  %v10662_v4 = vpop.f32.mrf.mxu3 }
 0x742   : > { %7703 = vmatmul.msk.bf16.gmra.mxu1 %vm1859_vm1, %v6569_v10  ;;  %v6879_v10 = vmul.f32 %v6766_v22, %v10532_v41 }
 0x744   : > { %v6916_v18 = vsel %vm1859_vm1, %v6879_v10, 0.0 }
 0x747   : > { %v6685_v51 = vpop.f32.mrf.mxu1 }
 0x748   : > { %v10592_v57 = vadd.f32 %v6685_v51, %v10466_v21  ;;  %v10609_v21 = vpop.f32.mrf.mxu2  ;;  %v6803_v51 = vsel %vm1859_vm1, %v6766_v22, 0.0  ;;  %v11419_v22 = vld [vmem:[#allocation28_spill] sm:$0xff] }
 0x749   : > { %v6770_v41 = vmul.f32 %v11419_v22, %v10546_v30 }
 0x74f   : > { %v6688_v55 = vpop.f32.mrf.mxu1 }
 0x750   : > { %v10595_v60 = vadd.f32 %v6688_v55, %v10470_v28  ;;  %v10618_v24 = vpop.f32.mrf.mxu2  ;;  %v6880_v55 = vmul.f32 %v6767_v34, %v10536_v29 }
 0x757   : > { %v6690_v2 = vpop.f32.mrf.mxu1 }
 0x758   : > { %v10598_v20 = vadd.f32 %v6690_v2, %v10473_v26  ;;  %v10616_v26 = vpop.f32.mrf.mxu0  ;;  %v6769_v2 = vmul.f32 %v11418_v27, %v10543_v61  ;;  %v6918_v27 = vsel %vm1859_vm1, %v6880_v55, 0.0 }
 0x75f   : > { %v6693_v12 = vpop.f32.mrf.mxu1 }
 0x760   : > { %v10607_v43 = vadd.f32 %v6693_v12, %v10477_v50  ;;  %v10634_v63 = vpop.f32.mrf.mxu0  ;;  %v10647_v12 = vpop.f32.mrf.mxu2 }
 0x767   : > { %v6695_v11 = vpop.f32.mrf.mxu1 }
 0x768   : > { %v10614_v28 = vadd.f32 %v6695_v11, %v10480_v1  ;;  %v6878_v1 = vmul.f32 %v6765_v62, %v10529_v42  ;;  %v6913_v11 = vsel %vm1859_vm1, %v6877_v38, 0.0  ;;  %v6882_v38 = vmul.f32 %v6769_v2, %v10543_v61 }
 0x76a   : > { %v6914_v44 = vsel %vm1859_vm1, %v6878_v1, 0.0  ;;  %v6881_v1 = vmul.f32 %v6768_v6, %v10539_v59  ;;  %v6809_v59 = vsel %vm1859_vm1, %v6769_v2, 0.0  ;;  %v6922_v22 = vsel %vm1859_vm1, %v6882_v38, 0.0  ;;  %v10683_v38 = vpop.f32.mrf.mxu2 }
 0x76b   : > { %v6915_v29 = vadd.f32 %v6914_v44, %v6913_v11  ;;  %v6883_v44 = vmul.f32 %v6770_v41, %v10546_v30  ;;  %v10669_v11 = vpop.f32.mrf.mxu0 }
 0x76d   : > { %v6917_v9 = vadd.f32 %v6916_v18, %v6915_v29  ;;  %v6811_v29 = vsel %vm1859_vm1, %v6770_v41, 0.0  ;;  %v11422_v18 = vld [vmem:[#allocation31_spill] sm:$0xff]  ;;  %v6924_v30 = vsel %vm1859_vm1, %v6883_v44, 0.0 }
 0x76f   : > { %v6698_v50 = vpop.f32.mrf.mxu1  ;;  %v6919_v6 = vadd.f32 %v6918_v27, %v6917_v9 }
 0x770   : > { %v10627_v48 = vadd.f32 %v6698_v50, %v10484_v47  ;;  %v6800_v47 = vsel %vm1859_vm1, %v6764_v40, 0.0  ;;  %v6805_v40 = vsel %vm1859_vm1, %v6767_v34, 0.0  ;;  %v6920_v34 = vsel %vm1859_vm1, %v6881_v1, 0.0 }
 0x771   : > { %v6802_v62 = vadd.f32 %v6801_v52, %v6800_v47  ;;  %v11420_v52 = vld [vmem:[#allocation29_spill] sm:$0xff]  ;;  %v6921_v1 = vadd.f32 %v6920_v34, %v6919_v6 }
 0x772   : > { %v6771_v47 = vmul.f32 %v11420_v52, %v10550_v36  ;;  %v11424_v6 = vld [vmem:[#allocation33_spill] sm:$0xff] }
 0x773   : > { %v6804_v42 = vadd.f32 %v6803_v51, %v6802_v62  ;;  %v11421_v51 = vld [vmem:[#allocation30_spill] sm:$0xff]  ;;  %v6923_v41 = vadd.f32 %v6922_v22, %v6921_v1  ;;  %v6775_v44 = vmul.f32 %v11424_v6, %v10564_v15  ;;  %v11425_v22 = vld [vmem:[#allocation8_spill] sm:$0xff] }
 0x774   : > { %v6772_v55 = vmul.f32 %v11421_v51, %v10553_v37  ;;  %v6813_v51 = vsel %vm1859_vm1, %v6771_v47, 0.0 }
 0x775   : > { %v6806_v10 = vadd.f32 %v6805_v40, %v6804_v42  ;;  %v6884_v42 = vmul.f32 %v6771_v47, %v10550_v36  ;;  %v6773_v40 = vmul.f32 %v11422_v18, %v10557_v7 }
 0x776   : > { %v6885_v9 = vmul.f32 %v6772_v55, %v10553_v37  ;;  %v6815_v34 = vsel %vm1859_vm1, %v6772_v55, 0.0 }
 0x777   : > { %v10650_v50 = vpop.f32.mrf.mxu1  ;;  %v6808_v62 = vadd.f32 %v6807_v39, %v6806_v10  ;;  %v11423_v39 = vld [vmem:[#allocation32_spill] sm:$0xff]  ;;  %v6926_v36 = vsel %vm1859_vm1, %v6884_v42, 0.0  ;;  %v6817_v37 = vsel %vm1859_vm1, %v6773_v40, 0.0 }
 0x778   : > { %v6774_v27 = vmul.f32 %v11423_v39, %v10560_v46  ;;  %v6928_v18 = vsel %vm1859_vm1, %v6885_v9, 0.0 }
 0x779   : > { %v6810_v2 = vadd.f32 %v6809_v59, %v6808_v62  ;;  %v6886_v59 = vmul.f32 %v6773_v40, %v10557_v7  ;;  %v6925_v62 = vadd.f32 %v6924_v30, %v6923_v41  ;;  %v6888_v30 = vmul.f32 %v6775_v44, %v10564_v15  ;;  %v10704_v41 = vpop.f32.mrf.mxu0 }
 0x77a   : > { %v6887_v39 = vmul.f32 %v6774_v27, %v10560_v46  ;;  %v6819_v7 = vsel %vm1859_vm1, %v6774_v27, 0.0  ;;  %v6009_v40 = vadd.f32 %v10600_v53, %v10487_v49 }
 0x77b   : > { %v6812_v10 = vadd.f32 %v6811_v29, %v6810_v2  ;;  %v6776_v29 = vmul.f32 %v11425_v22, %v10567_v31  ;;  %v6927_v1 = vadd.f32 %v6926_v36, %v6925_v62  ;;  %v10695_v2 = vpop.f32.mrf.mxu3  ;;  %v6930_v55 = vsel %vm1859_vm1, %v6886_v59, 0.0  ;;  %v11427_v62 = vld [vmem:[#allocation10_spill] sm:$0xff] }
 0x77c   : > { %v6821_v59 = vsel %vm1859_vm1, %v6775_v44, 0.0  ;;  %v6934_v15 = vsel %vm1859_vm1, %v6888_v30, 0.0  ;;  %v6010_v44 = vadd.f32 %v10609_v21, %v10490_v33 }
 0x77d   : > { %v6814_v47 = vadd.f32 %v6813_v51, %v6812_v10  ;;  %v11426_v51 = vld [vmem:[#allocation9_spill] sm:$0xff]  ;;  %v6929_v10 = vadd.f32 %v6928_v18, %v6927_v1  ;;  %v6889_v27 = vmul.f32 %v6776_v29, %v10567_v31  ;;  %v6823_v49 = vsel %vm1859_vm1, %v6776_v29, 0.0  ;;  %v5969_v1 = vpop.f32.mrf.mxu2  ;;  %v11429_v29 = vld [vmem:[#allocation11_spill] sm:$0xff] }
 0x77e   : > { %v6777_v9 = vmul.f32 %v11426_v51, %v10571_v14 }
 0x77f   : > { %v10676_v52 = vpop.f32.mrf.mxu1  ;;  %v6816_v42 = vadd.f32 %v6815_v34, %v6814_v47  ;;  %v6932_v34 = vsel %vm1859_vm1, %v6887_v39, 0.0  ;;  %v6778_v47 = vmul.f32 %v11427_v62, %v10574_v23  ;;  %v6931_v22 = vadd.f32 %v6930_v55, %v6929_v10 }
 0x780   : > { %v6890_v53 = vmul.f32 %v6777_v9, %v10571_v14  ;;  %v6257_v39 = vadd.f32 %v10602_v13, %v6009_v40  ;;  %v6936_v55 = vsel %vm1859_vm1, %v6889_v27, 0.0  ;;  %v6780_v10 = vmul.f32 %v11429_v29, %v10581_v45  ;;  %v11430_v40 = vld [vmem:[#allocation15_spill] sm:$0xff] }
 0x781   : > { %v6818_v6 = vadd.f32 %v6817_v37, %v6816_v42  ;;  %v11428_v37 = vld [vmem:[#allocation34_spill] sm:$0xff]  ;;  %v6933_v42 = vadd.f32 %v6932_v34, %v6931_v22  ;;  %v6891_v30 = vmul.f32 %v6778_v47, %v10574_v23  ;;  %v6827_v33 = vsel %vm1859_vm1, %v6778_v47, 0.0 }
 0x782   : > { %v6779_v18 = vmul.f32 %v11428_v37, %v10578_v58  ;;  %v6938_v13 = vsel %vm1859_vm1, %v6890_v53, 0.0  ;;  %v6781_v34 = vmul.f32 %v11430_v40, %v10585_v5  ;;  %v6893_v47 = vmul.f32 %v6780_v10, %v10581_v45 }
 0x783   : > { %v6820_v51 = vadd.f32 %v6819_v7, %v6818_v6  ;;  %v6825_v7 = vsel %vm1859_vm1, %v6777_v9, 0.0  ;;  %v6505_v6 = vadd.f32 %v10604_v3, %v6257_v39  ;;  %v6935_v62 = vadd.f32 %v6934_v15, %v6933_v42  ;;  %v6217_v15 = vpop.f32.mrf.mxu3 }
 0x784   : > { %v6892_v21 = vmul.f32 %v6779_v18, %v10578_v58  ;;  %v6258_v9 = vadd.f32 %v10611_v17, %v6010_v44  ;;  %v6829_v3 = vsel %vm1859_vm1, %v6779_v18, 0.0  ;;  %v6012_v17 = vadd.f32 %v10647_v12, %v10497_v56 }
 0x785   : > { %v6822_v31 = vadd.f32 %v6821_v59, %v6820_v51  ;;  %v6011_v59 = vadd.f32 %v10618_v24, %v10494_v35  ;;  %v6937_v27 = vadd.f32 %v6936_v55, %v6935_v62  ;;  %v10745_v35 = vpop.f32.mrf.mxu0  ;;  %v6831_v55 = vsel %vm1859_vm1, %v6780_v10, 0.0  ;;  %v11433_v10 = vld [vmem:[#allocation16_spill] sm:$0xff] }
 0x786   : > { %v6506_v39 = vadd.f32 %v10616_v26, %v6258_v9  ;;  %v6942_v42 = vsel %vm1859_vm1, %v6892_v21, 0.0  ;;  %v6894_v18 = vmul.f32 %v6781_v34, %v10585_v5  ;;  %v6013_v26 = vadd.f32 %v10683_v38, %v10501_v8  ;;  %v5971_v9 = vpop.f32.mrf.mxu2 }
 0x787   : > { %v10706_v36 = vpop.f32.mrf.mxu1  ;;  %v6824_v37 = vadd.f32 %v6823_v49, %v6822_v31  ;;  %v6940_v31 = vsel %vm1859_vm1, %v6891_v30, 0.0  ;;  %v11431_v49 = vld [vmem:[#allocation37_spill] sm:$0xff]  ;;  %v6939_v24 = vadd.f32 %v6938_v13, %v6937_v27  ;;  %v6259_v29 = vadd.f32 %v10629_v32, %v6011_v59 }
 0x788   : > { %v6782_v53 = vmul.f32 %v11431_v49, %v10588_v54  ;;  %v6944_v12 = vsel %vm1859_vm1, %v6893_v47, 0.0  ;;  %v6260_v21 = vadd.f32 %v10662_v4, %v6012_v17  ;;  %v6946_v8 = vsel %vm1859_vm1, %v6894_v18, 0.0 }
 0x789   : > { %v6826_v22 = vadd.f32 %v6825_v7, %v6824_v37  ;;  %v11432_v7 = vld [vmem:[#allocation13_spill] sm:$0xff]  ;;  %v6941_v62 = vadd.f32 %v6940_v31, %v6939_v24  ;;  %v6833_v37 = vsel %vm1859_vm1, %v6781_v34, 0.0  ;;  %v6507_v40 = vadd.f32 %v10634_v63, %v6259_v29 }
 0x78a   : > { %v6783_v30 = vmul.f32 %v11432_v7, %v10592_v57  ;;  %v6895_v13 = vmul.f32 %v6782_v53, %v10588_v54  ;;  %v6835_v38 = vsel %vm1859_vm1, %v6782_v53, 0.0  ;;  %v11434_v34 = vld [vmem:[#allocation17_spill] sm:$0xff]  ;;  %v6261_v31 = vadd.f32 %v10695_v2, %v6013_v26  ;;  %v11435_v53 = vld [vmem:[#allocation40_spill] sm:$0xff]  ;;  %v11436_v2 = vld [vmem:[#allocation18_spill] sm:$0xff] }
 0x78b   : > { %v6828_v44 = vadd.f32 %v6827_v33, %v6826_v22  ;;  %v6784_v33 = vmul.f32 %v11433_v10, %v10595_v60  ;;  %v6943_v32 = vadd.f32 %v6942_v42, %v6941_v62  ;;  %v6785_v22 = vmul.f32 %v11434_v34, %v10598_v20 }
 0x78c   : > { %v6896_v27 = vmul.f32 %v6783_v30, %v10592_v57  ;;  %v6948_v63 = vsel %vm1859_vm1, %v6895_v13, 0.0  ;;  %v6837_v17 = vsel %vm1859_vm1, %v6783_v30, 0.0  ;;  %v6014_v42 = vadd.f32 %v5969_v1, %v10504_v25 }
 0x78d   : > { %v6830_v56 = vadd.f32 %v6829_v3, %v6828_v44  ;;  %v6508_v3 = vadd.f32 %v10669_v11, %v6260_v21  ;;  %v6945_v47 = vadd.f32 %v6944_v12, %v6943_v32  ;;  %v6897_v24 = vmul.f32 %v6784_v33, %v10595_v60  ;;  %v6219_v11 = vpop.f32.mrf.mxu3  ;;  %v6467_v12 = vpop.f32.mrf.mxu0 }
 0x78e   : > { %v6786_v44 = vmul.f32 %v11435_v53, %v10607_v43  ;;  %v6787_v7 = vmul.f32 %v11436_v2, %v10614_v28  ;;  %v6950_v29 = vsel %vm1859_vm1, %v6896_v27, 0.0  ;;  %v6839_v26 = vsel %vm1859_vm1, %v6784_v33, 0.0  ;;  %v11437_v33 = vld [vmem:[#allocation19_spill] sm:$0xff] }
 0x78f   : > { %v10735_v51 = vpop.f32.mrf.mxu1  ;;  %v6832_v59 = vadd.f32 %v6831_v55, %v6830_v56  ;;  %v6947_v55 = vadd.f32 %v6946_v8, %v6945_v47  ;;  %v6898_v62 = vmul.f32 %v6785_v22, %v10598_v20  ;;  %v10781_v30 = vadd.f32 %v10650_v50, %v6505_v6 }
 0x790   : > { %v6509_v56 = vadd.f32 %v10704_v41, %v6261_v31  ;;  %v10785_v1 = vadd.f32 %v10676_v52, %v6506_v39  ;;  %v6952_v13 = vsel %vm1859_vm1, %v6897_v24, 0.0  ;;  %v6841_v10 = vsel %vm1859_vm1, %v6785_v22, 0.0  ;;  %v11438_v52 = vld [vmem:[#allocation41_spill] sm:$0xff]  ;;  %v5974_v22 = vpop.f32.mrf.mxu2 }
 0x791   : > { %v6834_v4 = vadd.f32 %v6833_v37, %v6832_v59  ;;  %v6949_v37 = vadd.f32 %v6948_v63, %v6947_v55  ;;  %v6899_v21 = vmul.f32 %v6786_v44, %v10607_v43  ;;  %v6788_v32 = vmul.f32 %v11437_v33, %v10627_v48 }
 0x792   : > { %v6262_v59 = vadd.f32 %v6217_v15, %v6014_v42  ;;  %v6900_v41 = vmul.f32 %v6787_v7, %v10614_v28  ;;  %v6954_v8 = vsel %vm1859_vm1, %v6898_v62, 0.0  ;;  %v6789_v39 = vmul.f32 %v11438_v52, %v10781_v30  ;;  %v11439_v15 = vld [vmem:[#allocation20_spill] sm:$0xff] }
 0x793   : > { %v6836_v18 = vadd.f32 %v6835_v38, %v6834_v4  ;;  %v6951_v50 = vadd.f32 %v6950_v29, %v6949_v37  ;;  %v6843_v38 = vsel %vm1859_vm1, %v6786_v44, 0.0  ;;  %v10798_v27 = vadd.f32 %v10706_v36, %v6507_v40 }
 0x794   : > { %v6015_v34 = vadd.f32 %v5971_v9, %v10508_v0  ;;  %v6790_v4 = vmul.f32 %v11439_v15, %v10785_v1  ;;  %v6845_v24 = vsel %vm1859_vm1, %v6787_v7, 0.0  ;;  %v6901_v53 = vmul.f32 %v6788_v32, %v10627_v48 }
 0x795   : > { %v6838_v25 = vadd.f32 %v6837_v17, %v6836_v18  ;;  %v6953_v31 = vadd.f32 %v6952_v13, %v6951_v50  ;;  %v6956_v17 = vsel %vm1859_vm1, %v6899_v21, 0.0  ;;  %v10807_v44 = vadd.f32 %v10735_v51, %v6508_v3  ;;  %v11440_v18 = vld [vmem:[#allocation43_spill] sm:$0xff]  ;;  %v6222_v3 = vpop.f32.mrf.mxu3  ;;  %v6470_v33 = vpop.f32.mrf.mxu0  ;;  %v11442_v50 = vld [vmem:[#allocation45_spill] sm:$0xff] }
 0x796   : > { %v6510_v36 = vadd.f32 %v10745_v35, %v6262_v59  ;;  %v6958_v9 = vsel %vm1859_vm1, %v6900_v41, 0.0  ;;  %v6847_v42 = vsel %vm1859_vm1, %v6788_v32, 0.0  ;;  %v6902_v55 = vmul.f32 %v6789_v39, %v10781_v30 }
 0x797   : > { %v6710_v49 = vpop.f32.mrf.mxu1  ;;  %v6840_v6 = vadd.f32 %v6839_v26, %v6838_v25  ;;  %v6955_v40 = vadd.f32 %v6954_v8, %v6953_v31  ;;  %v6791_v2 = vmul.f32 %v11440_v18, %v10798_v27  ;;  %v6263_v7 = vadd.f32 %v6219_v11, %v6015_v34  ;;  %v11441_v25 = vld [vmem:[#allocation44_spill] sm:$0xff]  ;;  %v11443_v31 = vld [vmem:[#allocation46_spill] sm:$0xff] }
 0x798   : > { %v10815_v29 = vadd.f32 %v6710_v49, %v6509_v56  ;;  %v6903_v51 = vmul.f32 %v6790_v4, %v10785_v1  ;;  %v6960_v35 = vsel %vm1859_vm1, %v6901_v53, 0.0  ;;  %v6849_v37 = vsel %vm1859_vm1, %v6789_v39, 0.0  ;;  %v11444_v53 = vld [vmem:[#allocation47_spill] sm:$0xff] }
 0x799   : > { %v6842_v47 = vadd.f32 %v6841_v10, %v6840_v6  ;;  %v6957_v26 = vadd.f32 %v6956_v17, %v6955_v40  ;;  %v6792_v13 = vmul.f32 %v11441_v25, %v10807_v44  ;;  %v6511_v21 = vadd.f32 %v6467_v12, %v6263_v7 }
 0x79a   : > { %v6962_v11 = vsel %vm1859_vm1, %v6902_v55, 0.0  ;;  %v6851_v56 = vsel %vm1859_vm1, %v6790_v4, 0.0  ;;  %v6904_v59 = vmul.f32 %v6791_v2, %v10798_v27  ;;  %v6793_v6 = vmul.f32 %v11442_v50, %v10815_v29  ;;  %v5976_v4 = vpop.f32.mrf.mxu2 }
 0x79b   : > { %v6844_v0 = vadd.f32 %v6843_v38, %v6842_v47  ;;  %v6959_v32 = vadd.f32 %v6958_v9, %v6957_v26  ;;  %v6016_v41 = vadd.f32 %v5974_v22, %v10511_v16  ;;  %v6964_v52 = vsel %vm1859_vm1, %v6903_v51, 0.0 }
 0x79c   : > { %v6853_v12 = vsel %vm1859_vm1, %v6791_v2, 0.0  ;;  %v6905_v34 = vmul.f32 %v6792_v13, %v10807_v44  ;;  %v6855_v16 = vsel %vm1859_vm1, %v6792_v13, 0.0  ;;  %v6906_v22 = vmul.f32 %v6793_v6, %v10815_v29 }
 0x79d   : > { %v6846_v62 = vadd.f32 %v6845_v24, %v6844_v0  ;;  %v6961_v8 = vadd.f32 %v6960_v35, %v6959_v32  ;;  %v6966_v24 = vsel %vm1859_vm1, %v6904_v59, 0.0  ;;  %v6264_v9 = vadd.f32 %v6222_v3, %v6016_v41  ;;  %v6224_v26 = vpop.f32.mrf.mxu3  ;;  %v6472_v25 = vpop.f32.mrf.mxu0 }
 0x79e   : > { %v6857_v55 = vsel %vm1859_vm1, %v6793_v6, 0.0  ;;  %v6970_v51 = vsel %vm1859_vm1, %v6906_v22, 0.0  ;;  %v6017_v32 = vadd.f32 %v5976_v4, %v10515_v19  ;;  %v11445_v6 = vld [vmem:[#allocation48_spill] sm:$0xff] }
 0x79f   : > { %v6713_v63 = vpop.f32.mrf.mxu1  ;;  %v6848_v49 = vadd.f32 %v6847_v42, %v6846_v62  ;;  %v6968_v42 = vsel %vm1859_vm1, %v6905_v34, 0.0  ;;  %v6512_v62 = vadd.f32 %v6470_v33, %v6264_v9 }
 0x7a0   : > { %v10822_v10 = vadd.f32 %v6713_v63, %v6510_v36  ;;  %v6963_v63 = vadd.f32 %v6962_v11, %v6961_v8 }
 0x7a1   : > { %v6850_v38 = vadd.f32 %v6849_v37, %v6848_v49 }
 0x7a2   : > { %v6794_v47 = vmul.f32 %v11443_v31, %v10822_v10  ;;  %v6965_v40 = vadd.f32 %v6964_v52, %v6963_v63  ;;  %v5979_v8 = vpop.f32.mrf.mxu2 }
 0x7a3   : > { %v6852_v17 = vadd.f32 %v6851_v56, %v6850_v38 }
 0x7a4   : > { %v6907_v18 = vmul.f32 %v6794_v47, %v10822_v10  ;;  %v6967_v2 = vadd.f32 %v6966_v24, %v6965_v40  ;;  %v6859_v35 = vsel %vm1859_vm1, %v6794_v47, 0.0  ;;  %v11447_v40 = vld [vmem:[#allocation49_spill] sm:$0xff] }
 0x7a5   : > { %v6854_v0 = vadd.f32 %v6853_v12, %v6852_v17  ;;  %v6227_v63 = vpop.f32.mrf.mxu3 }
 0x7a6   : > { %v6969_v13 = vadd.f32 %v6968_v42, %v6967_v2  ;;  %v6972_v49 = vsel %vm1859_vm1, %v6907_v18, 0.0 }
 0x7a7   : > { %v6715_v39 = vpop.f32.mrf.mxu1  ;;  %v6856_v7 = vadd.f32 %v6855_v16, %v6854_v0  ;;  %v11446_v16 = vld [vmem:[#allocation22_spill] sm:$0xff] }
 0x7a8   : > { %v10835_v15 = vadd.f32 %v6715_v39, %v6511_v21  ;;  %v6971_v59 = vadd.f32 %v6970_v51, %v6969_v13  ;;  %v6265_v39 = vadd.f32 %v6224_v26, %v6017_v32  ;;  %v6018_v22 = vadd.f32 %v5979_v8, %v11446_v16 }
 0x7a9   : > { %v6858_v21 = vadd.f32 %v6857_v55, %v6856_v7 }
 0x7aa   : > { %v6795_v36 = vmul.f32 %v11444_v53, %v10835_v15  ;;  %v6973_v38 = vadd.f32 %v6972_v49, %v6971_v59  ;;  %v6513_v47 = vadd.f32 %v6472_v25, %v6265_v39  ;;  %v6266_v9 = vadd.f32 %v6227_v63, %v6018_v22  ;;  %v5981_v18 = vpop.f32.mrf.mxu2 }
 0x7ab   : > { %v6860_v33 = vadd.f32 %v6859_v35, %v6858_v21  ;;  %v11448_v35 = vld [vmem:[#allocation24_spill] sm:$0xff]  ;;  %v11449_v21 = vld [vmem:[#allocation5_spill] sm:$0xff] }
 0x7ac   : > { %v6908_v37 = vmul.f32 %v6795_v36, %v10835_v15  ;;  %v6861_v11 = vsel %vm1859_vm1, %v6795_v36, 0.0  ;;  %v6475_v36 = vpop.f32.mrf.mxu0 }
 0x7ad   : > { %v6862_v52 = vadd.f32 %v6861_v11, %v6860_v33  ;;  %v6514_v7 = vadd.f32 %v6475_v36, %v6266_v9  ;;  %v6229_v13 = vpop.f32.mrf.mxu3 }
 0x7ae   : > { %v6974_v50 = vsel %vm1859_vm1, %v6908_v37, 0.0  ;;  %v6019_v37 = vadd.f32 %v5981_v18, %v11448_v35 }
 0x7af   : > { %v6718_v3 = vpop.f32.mrf.mxu1  ;;  %v6975_v34 = vadd.f32 %v6974_v50, %v6973_v38 }
 0x7b0   : > { %v10851_v56 = vadd.f32 %v6718_v3, %v6512_v62  ;;  %v6267_v49 = vadd.f32 %v6229_v13, %v6019_v37 }
 0x7b2   : > { %v6796_v41 = vmul.f32 %v11445_v6, %v10851_v56 }
 0x7b4   : > { %v6863_v12 = vsel %vm1859_vm1, %v6796_v41, 0.0  ;;  %v6909_v19 = vmul.f32 %v6796_v41, %v10851_v56  ;;  %v6477_v32 = vpop.f32.mrf.mxu0 }
 0x7b5   : > { %v6864_v31 = vadd.f32 %v6863_v12, %v6862_v52  ;;  %v6515_v50 = vadd.f32 %v6477_v32, %v6267_v49  ;;  %v11450_v52 = vld [vmem:[#allocation50_spill] sm:$0xff] }
 0x7b6   : > { %v6976_v4 = vsel %vm1859_vm1, %v6909_v19, 0.0 }
 0x7b7   : > { %v6977_v17 = vadd.f32 %v6976_v4, %v6975_v34  ;;  %v6720_v24 = vpop.f32.mrf.mxu1 }
 0x7b8   : > { %v10860_v53 = vadd.f32 %v6720_v24, %v6513_v47 }
 0x7ba   : > { %v6797_v0 = vmul.f32 %v11447_v40, %v10860_v53 }
 0x7bc   : > { %v6865_v42 = vsel %vm1859_vm1, %v6797_v0, 0.0  ;;  %v6910_v55 = vmul.f32 %v6797_v0, %v10860_v53 }
 0x7bd   : > { %v6866_v2 = vadd.f32 %v6865_v42, %v6864_v31 }
 0x7be   : > { %v6978_v26 = vsel %vm1859_vm1, %v6910_v55, 0.0 }
 0x7bf   : > { %v6979_v62 = vadd.f32 %v6978_v26, %v6977_v17  ;;  %v6723_v51 = vpop.f32.mrf.mxu1 }
 0x7c0   : > { %v10868_v25 = vadd.f32 %v6723_v51, %v6514_v7 }
 0x7c2   : > { %v6798_v3 = vmul.f32 %v11449_v21, %v10868_v25 }
 0x7c4   : > { %v6867_v11 = vsel %vm1859_vm1, %v6798_v3, 0.0  ;;  %v6911_v59 = vmul.f32 %v6798_v3, %v10868_v25 }
 0x7c5   : > { %v6868_v33 = vadd.f32 %v6867_v11, %v6866_v2  ;;  %v11451_v11 = vld [vmem:[#allocation36_spill] sm:$0xff] }
 0x7c6   : > { %v6980_v6 = vsel %vm1859_vm1, %v6911_v59, 0.0 }
 0x7c7   : > { %v6981_v41 = vadd.f32 %v6980_v6, %v6979_v62  ;;  %v6725_v8 = vpop.f32.mrf.mxu1  ;;  %v11453_v6 = vld [vmem:[#allocation38_spill] sm:$0xff] }
 0x7c8   : > { %v10875_v38 = vadd.f32 %v6725_v8, %v6515_v50  ;;  %v11454_v8 = vld [vmem:[#allocation12_spill] sm:$0xff] }
 0x7ca   : > { %v6799_v39 = vmul.f32 %v11450_v52, %v10875_v38 }
 0x7cc   : > { %v6869_v12 = vsel %vm1859_vm1, %v6799_v39, 0.0  ;;  %v6912_v19 = vmul.f32 %v6799_v39, %v10875_v38  ;;  %v11455_v39 = vld [vmem:[#allocation14_spill] sm:$0xff] }
 0x7cd   : > { %v6870_v34 = vadd.f32 %v6869_v12, %v6868_v33  ;;  %v11452_v33 = vld [vmem:[#allocation35_spill] sm:$0xff] }
 0x7ce   : > { %v6982_v31 = vsel %vm1859_vm1, %v6912_v19, 0.0 }
 0x7cf   : > { %v6871_v47 = vrot.slane %v6870_v34, 4  ;;  %v6983_v4 = vadd.f32 %v6982_v31, %v6981_v41  ;;  %v11456_v31 = vld [vmem:[#allocation39_spill] sm:$0xff] }
 0x7d1   : > { %v6872_v63 = vadd.f32 %v6871_v47, %v6870_v34  ;;  %v6984_v17 = vrot.slane %v6983_v4, 4 }
 0x7d3   : > { %v6873_v24 = vrot.slane %v6872_v63, 2  ;;  %v6985_v16 = vadd.f32 %v6984_v17, %v6983_v4  ;;  %v11457_v4 = vld [vmem:[#allocation4_spill] sm:$0xff]  ;;  %v11458_v17 = vld [vmem:[#allocation6_spill] sm:$0xff] }
 0x7d5   : > { %v6874_v22 = vadd.f32 %v6873_v24, %v6872_v63  ;;  %v6986_v36 = vrot.slane %v6985_v16, 2 }
 0x7d7   : > { %v6875_v40 = vrot.slane %v6874_v22, 1  ;;  %v6987_v0 = vadd.f32 %v6986_v36, %v6985_v16  ;;  %v11459_v16 = vld [vmem:[#allocation42_spill] sm:$0xff] }
 0x7d9   : > { %v6876_v9 = vadd.f32 %v6875_v40, %v6874_v22  ;;  %v6988_v42 = vrot.slane %v6987_v0, 1  ;;  %v11460_v40 = vld [vmem:[#allocation21_spill] sm:$0xff] }
 0x7db   : > { %v6989_v55 = vadd.f32 %v6988_v42, %v6987_v0  ;;  %v10882_v18 = vmul.f32 0.00390625, %v6876_v9 }
 0x7dd   : > { %v6991_v2 = vmul.f32 0.00390625, %v6989_v55  ;;  %v6992_v7 = vmul.f32 %v10882_v18, %v10882_v18  ;;  %v7026_v51 = vsub.f32 %v10835_v15, %v10882_v18  ;;  %v7027_v35 = vsub.f32 %v10851_v56, %v10882_v18 }
 0x7de   : > { %v7028_v37 = vsub.f32 %v10860_v53, %v10882_v18  ;;  %v7029_v13 = vsub.f32 %v10868_v25, %v10882_v18  ;;  %v7030_v21 = vsub.f32 %v10875_v38, %v10882_v18  ;;  %v6995_v59 = vsub.f32 %v11451_v11, %v10882_v18 }
 0x7df   : > { %v6993_v26 = vsub.f32 %v6991_v2, %v6992_v7  ;;  %v6996_v50 = vsub.f32 %v11452_v33, %v10882_v18  ;;  %v6997_v41 = vsub.f32 %v11453_v6, %v10882_v18  ;;  %v6998_v52 = vsub.f32 %v11454_v8, %v10882_v18 }
 0x7e0   : > { %v6999_v12 = vsub.f32 %v11455_v39, %v10882_v18  ;;  %v7000_v34 = vsub.f32 %v10543_v61, %v10882_v18  ;;  %v7001_v47 = vsub.f32 %v11456_v31, %v10882_v18  ;;  %v7002_v63 = vsub.f32 %v11457_v4, %v10882_v18  ;;  %v11461_v61 = vld [vmem:[#allocation23_spill] sm:$0xff] }
 0x7e1   : > { %v6994_v62 = vmax.f32 %v6993_v26, 0.0  ;;  %v7003_v24 = vsub.f32 %v11458_v17, %v10882_v18  ;;  %v7004_v22 = vsub.f32 %v11459_v16, %v10882_v18  ;;  %v7005_v36 = vsub.f32 %v10560_v46, %v10882_v18 }
 0x7e2   : > { %v7006_v0 = vsub.f32 %v11460_v40, %v10882_v18  ;;  %v7007_v42 = vsub.f32 %v11461_v61, %v10882_v18  ;;  %v7008_v55 = vsub.f32 %v10571_v14, %v10882_v18  ;;  %v7009_v2 = vsub.f32 %v10574_v23, %v10882_v18 }
 0x7e3   : > { %v7031_v3 = vadd.f32 1e-05, %v6994_v62  ;;  %v7010_v7 = vsub.f32 %v10578_v58, %v10882_v18  ;;  %v7011_v26 = vsub.f32 %v10581_v45, %v10882_v18  ;;  %v7012_v46 = vsub.f32 %v10585_v5, %v10882_v18 }
 0x7e4   : > { %v7014_v14 = vsub.f32 %v10592_v57, %v10882_v18  ;;  %v7015_v23 = vsub.f32 %v10595_v60, %v10882_v18  ;;  %v7016_v58 = vsub.f32 %v10598_v20, %v10882_v18  ;;  %v7017_v45 = vsub.f32 %v10607_v43, %v10882_v18 }
 0x7e5   : > { %7825 = vrsqrt.f32 %v7031_v3  ;;  %v7018_v5 = vsub.f32 %v10614_v28, %v10882_v18  ;;  %vm7038_vm14 = vweird.f32 %v7031_v3  ;;  %v7020_v57 = vsub.f32 %v10781_v30, %v10882_v18 }
 0x7e6   : > { %v7021_v60 = vsub.f32 %v10785_v1, %v10882_v18  ;;  %v7022_v20 = vsub.f32 %v10798_v27, %v10882_v18  ;;  %v7023_v43 = vsub.f32 %v10807_v44, %v10882_v18  ;;  %v7024_v28 = vsub.f32 %v10815_v29, %v10882_v18 }
 0x7eb   : > { %v7826_v32 = vpop.eup %7825 }
 0x7ec   : > { %v7033_v49 = vmul.f32 %v7826_v32, %v7031_v3  ;;  %vm7039_vm0 = vweird.f32 %v7826_v32  ;;  %v7025_v3 = vsub.f32 %v10822_v10, %v10882_v18 }
 0x7ed   : > { %vm7040_vm15 = vmor %vm7038_vm14, %vm7039_vm0 }
 0x7ee   : > { %v7034_v19 = vmul.f32 %v7826_v32, %v7033_v49  ;;  %v7013_v49 = vsub.f32 %v10588_v54, %v10882_v18  ;;  %v7019_v54 = vsub.f32 %v10627_v48, %v10882_v18 }
 0x7f0   : > { %v7035_v9 = vmul.f32 0.5, %v7034_v19 }
 0x7f2   : > { %v7036_v62 = vsub.f32 1.5, %v7035_v9 }
 0x7f4   : > { %v7037_v11 = vmul.f32 %v7826_v32, %v7036_v62 }
 0x7f6   : > { %v7041_v48 = vsel %vm7040_vm15, %v7826_v32, %v7037_v11 }
 0x7f7   : > { %v7042_v33 = vmul.f32 %v7041_v48, %v6995_v59  ;;  %v7043_v6 = vmul.f32 %v7041_v48, %v6996_v50  ;;  %v7044_v30 = vmul.f32 %v7041_v48, %v6997_v41  ;;  %v7045_v8 = vmul.f32 %v7041_v48, %v6998_v52  ;;  %v7821_v50 = vld [vmem:[%s326_s22] ss:$0 sm:$0xff] }
 0x7f8   : > { %v7046_v39 = vmul.f32 %v7041_v48, %v6999_v12  ;;  %v7047_v1 = vmul.f32 %v7041_v48, %v7000_v34  ;;  %v7048_v19 = vmul.f32 %v7041_v48, %v7001_v47  ;;  %v7049_v27 = vmul.f32 %v7041_v48, %v7002_v63 }
 0x7f9   : > { %v7050_v31 = vmul.f32 %v7041_v48, %v7003_v24  ;;  %v7051_v4 = vmul.f32 %v7041_v48, %v7004_v22  ;;  %v7052_v17 = vmul.f32 %v7041_v48, %v7005_v36  ;;  %v7053_v44 = vmul.f32 %v7041_v48, %v7006_v0 }
 0x7fa   : > { %v7054_v16 = vmul.f32 %v7041_v48, %v7007_v42  ;;  %v7055_v40 = vmul.f32 %v7041_v48, %v7008_v55  ;;  %v7056_v29 = vmul.f32 %v7041_v48, %v7009_v2  ;;  %v7057_v9 = vmul.f32 %v7041_v48, %v7010_v7 }
 0x7fb   : > { %v7058_v61 = vmul.f32 %v7041_v48, %v7011_v26  ;;  %v7059_v10 = vmul.f32 %v7041_v48, %v7012_v46  ;;  %v7060_v32 = vmul.f32 %v7041_v48, %v7013_v49  ;;  %v7061_v59 = vmul.f32 %v7041_v48, %v7014_v14 }
 0x7fc   : > { %v7062_v41 = vmul.f32 %v7041_v48, %v7015_v23  ;;  %v7063_v52 = vmul.f32 %v7041_v48, %v7016_v58  ;;  %v7064_v12 = vmul.f32 %v7041_v48, %v7017_v45  ;;  %v7065_v34 = vmul.f32 %v7041_v48, %v7018_v5 }
 0x7fd   : > { %v7066_v47 = vmul.f32 %v7041_v48, %v7019_v54  ;;  %v7067_v63 = vmul.f32 %v7041_v48, %v7020_v57  ;;  %v7068_v24 = vmul.f32 %v7041_v48, %v7021_v60  ;;  %v7069_v22 = vmul.f32 %v7041_v48, %v7022_v20  ;;  %v7822_v57 = vld [vmem:[%s329_s30] ss:$0 sm:$0xff]  ;;  %s7808_s30 = smul.u32 288, %s11463_s25 }
 0x7fe   : > { %v7070_v36 = vmul.f32 %v7041_v48, %v7023_v43  ;;  %v7071_v0 = vmul.f32 %v7041_v48, %v7024_v28  ;;  %v7072_v42 = vmul.f32 %v7041_v48, %v7025_v3  ;;  %v7073_v55 = vmul.f32 %v7041_v48, %v7026_v51 }
 0x7ff   : > { %v7074_v2 = vmul.f32 %v7041_v48, %v7027_v35  ;;  %v7075_v7 = vmul.f32 %v7041_v48, %v7028_v37  ;;  %v7076_v26 = vmul.f32 %v7041_v48, %v7029_v13  ;;  %v7077_v46 = vmul.f32 %v7041_v48, %v7030_v21  ;;  %s11011_s28 = scalar_lea.vmem %s11119_s7, %s7808_s30 }
 0x800   : > { %v7082_v62 = vmul.f32 %v7821_v50, %v7042_v33  ;;  %v7083_v49 = vmul.f32 %v7821_v50, %v7043_v6  ;;  %v7084_v15 = vmul.f32 %v7821_v50, %v7044_v30  ;;  %v7085_v51 = vmul.f32 %v7821_v50, %v7045_v8 }
 0x801   : > { %v7086_v14 = vmul.f32 %v7821_v50, %v7046_v39  ;;  %v7087_v56 = vmul.f32 %v7821_v50, %v7047_v1  ;;  %v7088_v35 = vmul.f32 %v7821_v50, %v7048_v19  ;;  %v7089_v23 = vmul.f32 %v7821_v50, %v7049_v27 }
 0x802   : > { %v7090_v58 = vmul.f32 %v7821_v50, %v7050_v31  ;;  %v7091_v53 = vmul.f32 %v7821_v50, %v7051_v4  ;;  %v7092_v37 = vmul.f32 %v7821_v50, %v7052_v17  ;;  %v7093_v45 = vmul.f32 %v7821_v50, %v7053_v44 }
 0x803   : > { %v7094_v5 = vmul.f32 %v7821_v50, %v7054_v16  ;;  %v7095_v25 = vmul.f32 %v7821_v50, %v7055_v40  ;;  %v7096_v13 = vmul.f32 %v7821_v50, %v7056_v29  ;;  %v7097_v11 = vmul.f32 %v7821_v50, %v7057_v9 }
 0x804   : > { %v7098_v54 = vmul.f32 %v7821_v50, %v7058_v61  ;;  %v7099_v38 = vmul.f32 %v7821_v50, %v7059_v10  ;;  %v7100_v18 = vmul.f32 %v7821_v50, %v7060_v32  ;;  %v7101_v21 = vmul.f32 %v7821_v50, %v7061_v59 }
 0x805   : > { %v7102_v60 = vmul.f32 %v7821_v50, %v7062_v41  ;;  %v7103_v20 = vmul.f32 %v7821_v50, %v7063_v52  ;;  %v7104_v43 = vmul.f32 %v7821_v50, %v7064_v12  ;;  %v7105_v28 = vmul.f32 %v7821_v50, %v7065_v34 }
 0x806   : > { %v7106_v3 = vmul.f32 %v7821_v50, %v7066_v47  ;;  %v7107_v48 = vmul.f32 %v7821_v50, %v7067_v63  ;;  %v7108_v33 = vmul.f32 %v7821_v50, %v7068_v24  ;;  %v7109_v6 = vmul.f32 %v7821_v50, %v7069_v22 }
 0x807   : > { %v7110_v30 = vmul.f32 %v7821_v50, %v7070_v36  ;;  %v7111_v8 = vmul.f32 %v7821_v50, %v7071_v0  ;;  %v7112_v39 = vmul.f32 %v7821_v50, %v7072_v42  ;;  %v7113_v1 = vmul.f32 %v7821_v50, %v7073_v55 }
 0x808   : > { %v7114_v19 = vmul.f32 %v7821_v50, %v7074_v2  ;;  %v7115_v27 = vmul.f32 %v7821_v50, %v7075_v7  ;;  %v7116_v31 = vmul.f32 %v7821_v50, %v7076_v26  ;;  %v7117_v4 = vmul.f32 %v7821_v50, %v7077_v46 }
 0x809   : > { %v7122_v17 = vadd.f32 %v7822_v57, %v7082_v62  ;;  %v7123_v44 = vadd.f32 %v7822_v57, %v7083_v49  ;;  %v7124_v16 = vadd.f32 %v7822_v57, %v7084_v15  ;;  %v7125_v40 = vadd.f32 %v7822_v57, %v7085_v51 }
 0x80a   : > { %v7126_v29 = vadd.f32 %v7822_v57, %v7086_v14  ;;  %v7127_v9 = vadd.f32 %v7822_v57, %v7087_v56  ;;  %v7128_v61 = vadd.f32 %v7822_v57, %v7088_v35  ;;  %v7129_v10 = vadd.f32 %v7822_v57, %v7089_v23 }
 0x80b   : > { %v7130_v32 = vadd.f32 %v7822_v57, %v7090_v58  ;;  %v7131_v59 = vadd.f32 %v7822_v57, %v7091_v53  ;;  %v7132_v41 = vadd.f32 %v7822_v57, %v7092_v37  ;;  %v7133_v52 = vadd.f32 %v7822_v57, %v7093_v45 }
 0x80c   : > { %v7134_v12 = vadd.f32 %v7822_v57, %v7094_v5  ;;  %v7135_v34 = vadd.f32 %v7822_v57, %v7095_v25  ;;  %v7136_v47 = vadd.f32 %v7822_v57, %v7096_v13  ;;  %v7137_v63 = vadd.f32 %v7822_v57, %v7097_v11 }
 0x80d   : > { %v7138_v24 = vadd.f32 %v7822_v57, %v7098_v54  ;;  %v7139_v50 = vadd.f32 %v7822_v57, %v7099_v38  ;;  %v7140_v22 = vadd.f32 %v7822_v57, %v7100_v18  ;;  %v7141_v36 = vadd.f32 %v7822_v57, %v7101_v21 }
 0x80e   : > { %v10984_v0 = vadd.f32 %v7822_v57, %v7102_v60  ;;  %v10986_v42 = vadd.f32 %v7822_v57, %v7103_v20  ;;  %v10988_v55 = vadd.f32 %v7822_v57, %v7104_v43  ;;  %v10990_v2 = vadd.f32 %v7822_v57, %v7105_v28 }
 0x80f   : > { %v10992_v7 = vadd.f32 %v7822_v57, %v7106_v3  ;;  %v10994_v26 = vadd.f32 %v7822_v57, %v7107_v48  ;;  %v10996_v46 = vadd.f32 %v7822_v57, %v7108_v33  ;;  %v10998_v62 = vadd.f32 %v7822_v57, %v7109_v6 }
 0x810   : > { %v11000_v49 = vadd.f32 %v7822_v57, %v7110_v30  ;;  %v11002_v15 = vadd.f32 %v7822_v57, %v7111_v8  ;;  %v11004_v51 = vadd.f32 %v7822_v57, %v7112_v39  ;;  %v11006_v14 = vadd.f32 %v7822_v57, %v7113_v1 }
 0x811   : > { %v11013_v56 = vadd.f32 %v7822_v57, %v7114_v19  ;;  %v11015_v35 = vadd.f32 %v7822_v57, %v7115_v27  ;;  %v11017_v23 = vadd.f32 %v7822_v57, %v7116_v31  ;;  %v11019_v58 = vadd.f32 %v7822_v57, %v7117_v4 }
 0x812   : > { %v7158_v53 = vmax.f32 %v7122_v17, 0.0  ;;  %v7159_v37 = vmax.f32 %v7123_v44, 0.0  ;;  %v7160_v45 = vmax.f32 %v7124_v16, 0.0  ;;  %v7161_v5 = vmax.f32 %v7125_v40, 0.0 }
 0x813   : > { %v7162_v25 = vmax.f32 %v7126_v29, 0.0  ;;  %v7163_v13 = vmax.f32 %v7127_v9, 0.0  ;;  %v7164_v11 = vmax.f32 %v7128_v61, 0.0  ;;  %v7165_v54 = vmax.f32 %v7129_v10, 0.0 }
 0x814   : > { %7194 = vst.msk [vmem:[%s11011_s28] sm:$0xff] %vm1859_vm1, %v7158_v53  ;;  %v7166_v38 = vmax.f32 %v7130_v32, 0.0  ;;  %v7167_v18 = vmax.f32 %v7131_v59, 0.0  ;;  %v7168_v21 = vmax.f32 %v7132_v41, 0.0  ;;  %v7169_v57 = vmax.f32 %v7133_v52, 0.0 }
 0x815   : > { %7195 = vst.msk [vmem:[%s11011_s28 + $0x8] sm:$0xff] %vm1859_vm1, %v7159_v37  ;;  %v7170_v60 = vmax.f32 %v7134_v12, 0.0  ;;  %v7171_v20 = vmax.f32 %v7135_v34, 0.0  ;;  %v7172_v43 = vmax.f32 %v7136_v47, 0.0  ;;  %v7173_v28 = vmax.f32 %v7137_v63, 0.0 }
 0x816   : > { %7196 = vst.msk [vmem:[%s11011_s28 + $0x10] sm:$0xff] %vm1859_vm1, %v7160_v45  ;;  %v7174_v3 = vmax.f32 %v7138_v24, 0.0  ;;  %v7175_v48 = vmax.f32 %v7139_v50, 0.0  ;;  %v7176_v33 = vmax.f32 %v7140_v22, 0.0  ;;  %v7177_v6 = vmax.f32 %v7141_v36, 0.0 }
 0x817   : > { %7197 = vst.msk [vmem:[%s11011_s28 + $0x18] sm:$0xff] %vm1859_vm1, %v7161_v5  ;;  %v7178_v30 = vmax.f32 %v10984_v0, 0.0  ;;  %v7179_v8 = vmax.f32 %v10986_v42, 0.0  ;;  %v7180_v39 = vmax.f32 %v10988_v55, 0.0  ;;  %v7181_v1 = vmax.f32 %v10990_v2, 0.0 }
 0x818   : > { %7198 = vst.msk [vmem:[%s11011_s28 + $0x20] sm:$0xff] %vm1859_vm1, %v7162_v25  ;;  %v7182_v19 = vmax.f32 %v10992_v7, 0.0  ;;  %v7183_v27 = vmax.f32 %v10994_v26, 0.0  ;;  %v7184_v31 = vmax.f32 %v10996_v46, 0.0  ;;  %v7185_v4 = vmax.f32 %v10998_v62, 0.0 }
 0x819   : > { %7199 = vst.msk [vmem:[%s11011_s28 + $0x28] sm:$0xff] %vm1859_vm1, %v7163_v13  ;;  %v7186_v17 = vmax.f32 %v11000_v49, 0.0  ;;  %v7187_v44 = vmax.f32 %v11002_v15, 0.0  ;;  %v7188_v16 = vmax.f32 %v11004_v51, 0.0  ;;  %v7189_v40 = vmax.f32 %v11006_v14, 0.0 }
 0x81a   : > { %7200 = vst.msk [vmem:[%s11011_s28 + $0x30] sm:$0xff] %vm1859_vm1, %v7164_v11  ;;  %v7190_v29 = vmax.f32 %v11013_v56, 0.0  ;;  %v7191_v9 = vmax.f32 %v11015_v35, 0.0  ;;  %v7192_v61 = vmax.f32 %v11017_v23, 0.0  ;;  %v7193_v10 = vmax.f32 %v11019_v58, 0.0 }
 0x81b   : > { %7201 = vst.msk [vmem:[%s11011_s28 + $0x38] sm:$0xff] %vm1859_vm1, %v7165_v54 }
 0x81c   : > { %7202 = vst.msk [vmem:[%s11011_s28 + $0x40] sm:$0xff] %vm1859_vm1, %v7166_v38 }
 0x81d   : > { %7203 = vst.msk [vmem:[%s11011_s28 + $0x48] sm:$0xff] %vm1859_vm1, %v7167_v18 }
 0x81e   : > { %7204 = vst.msk [vmem:[%s11011_s28 + $0x50] sm:$0xff] %vm1859_vm1, %v7168_v21 }
 0x81f   : > { %7205 = vst.msk [vmem:[%s11011_s28 + $0x58] sm:$0xff] %vm1859_vm1, %v7169_v57 }
 0x820   : > { %7206 = vst.msk [vmem:[%s11011_s28 + $0x60] sm:$0xff] %vm1859_vm1, %v7170_v60 }
 0x821   : > { %7207 = vst.msk [vmem:[%s11011_s28 + $0x68] sm:$0xff] %vm1859_vm1, %v7171_v20 }
 0x822   : > { %7208 = vst.msk [vmem:[%s11011_s28 + $0x70] sm:$0xff] %vm1859_vm1, %v7172_v43 }
 0x823   : > { %7209 = vst.msk [vmem:[%s11011_s28 + $0x78] sm:$0xff] %vm1859_vm1, %v7173_v28 }
 0x824   : > { %7210 = vst.msk [vmem:[%s11011_s28 + $0x80] sm:$0xff] %vm1859_vm1, %v7174_v3 }
 0x825   : > { %7211 = vst.msk [vmem:[%s11011_s28 + $0x88] sm:$0xff] %vm1859_vm1, %v7175_v48 }
 0x826   : > { %7212 = vst.msk [vmem:[%s11011_s28 + $0x90] sm:$0xff] %vm1859_vm1, %v7176_v33 }
 0x827   : > { %7213 = vst.msk [vmem:[%s11011_s28 + $0x98] sm:$0xff] %vm1859_vm1, %v7177_v6 }
 0x828   : > { %7214 = vst.msk [vmem:[%s11011_s28 + $0xa0] sm:$0xff] %vm1859_vm1, %v7178_v30 }
 0x829   : > { %7215 = vst.msk [vmem:[%s11011_s28 + $0xa8] sm:$0xff] %vm1859_vm1, %v7179_v8 }
 0x82a   : > { %7216 = vst.msk [vmem:[%s11011_s28 + $0xb0] sm:$0xff] %vm1859_vm1, %v7180_v39 }
 0x82b   : > { %7217 = vst.msk [vmem:[%s11011_s28 + $0xb8] sm:$0xff] %vm1859_vm1, %v7181_v1 }
 0x82c   : > { %7218 = vst.msk [vmem:[%s11011_s28 + $0xc0] sm:$0xff] %vm1859_vm1, %v7182_v19 }
 0x82d   : > { %7219 = vst.msk [vmem:[%s11011_s28 + $0xc8] sm:$0xff] %vm1859_vm1, %v7183_v27 }
 0x82e   : > { %7220 = vst.msk [vmem:[%s11011_s28 + $0xd0] sm:$0xff] %vm1859_vm1, %v7184_v31 }
 0x82f   : > { %7221 = vst.msk [vmem:[%s11011_s28 + $0xd8] sm:$0xff] %vm1859_vm1, %v7185_v4 }
 0x830   : > { %7222 = vst.msk [vmem:[%s11011_s28 + $0xe0] sm:$0xff] %vm1859_vm1, %v7186_v17 }
 0x831   : > { %7223 = vst.msk [vmem:[%s11011_s28 + $0xe8] sm:$0xff] %vm1859_vm1, %v7187_v44 }
 0x832   : > { %7224 = vst.msk [vmem:[%s11011_s28 + $0xf0] sm:$0xff] %vm1859_vm1, %v7188_v16 }
 0x833   : > { %7225 = vst.msk [vmem:[%s11011_s28 + $0xf8] sm:$0xff] %vm1859_vm1, %v7189_v40 }
 0x834   : > { %7226 = vst.msk [vmem:[%s11011_s28 + $0x100] sm:$0xff] %vm1859_vm1, %v7190_v29 }
 0x835   : > { %7227 = vst.msk [vmem:[%s11011_s28 + $0x108] sm:$0xff] %vm1859_vm1, %v7191_v9 }
 0x836   : > { %7228 = vst.msk [vmem:[%s11011_s28 + $0x110] sm:$0xff] %vm1859_vm1, %v7192_v61 }
 0x837   : > { %7229 = vst.msk [vmem:[%s11011_s28 + $0x118] sm:$0xff] %vm1859_vm1, %v7193_v10 }
 0x838 PF: > { %s17_s24 = sadd.s32 1, %s7834_s24  }
 0x839   : > { %p14_p4 = scmp.ge.s32.totalorder %s17_s24, 4  }
 0x83b   :  { %16 = sbr.rel (!%p14_p4) target bundleno = 1 (0x1), region = 106 }

</bundles_post_ra>
